<compile_context>
chip_gen: v6e
topology: v6e:2x2x1
jax: 0.10.0
libtpu: 0.0.40
codegen_flags: <defaults>
</compile_context>

<pallas_src>
import functools

import jax
import jax.numpy as jnp
from jax.experimental import pallas as pl
from jax.experimental.pallas import tpu as pltpu

LANE = 128
_BLOCK_IMGS = 8          # images per grid step (v6e could use 16; 8 fits v5e/v7x)


def _round_up(x, m):
    return (x + m - 1) // m * m


# ---------------------------------------------------------------------------
# Kernel A: conv (im2col GEMM, pool-grouped rows) + max-pool + bias + ReLU
# ---------------------------------------------------------------------------
def _conv_pool_kernel(p_ref, w_ref, b_ref, o_ref, *, n_blk, pooled_rows):
    # p_ref: (n_blk, 4*P, Kp) bf16  - patches, 4 pool-phase groups of P rows
    # w_ref: (Kp, Cout) bf16        - flattened conv weights (zero padded)
    # b_ref: (1, Cout) f32          - bias (zero padded)
    # o_ref: (n_blk, P, Cout) bf16  - pooled + bias + ReLU activations
    P = pooled_rows
    Kp = w_ref.shape[0]
    Cout = w_ref.shape[1]

    def group_gemm(g):
        # (n_blk, P, Kp) -> (n_blk*P, Kp): P is a multiple of 8, Kp is the lane
        # dim, so this reshape is layout-preserving.
        lhs = p_ref[:, pl.ds(g * P, P), :].reshape(n_blk * P, Kp)
        return jnp.dot(lhs, w_ref[...], preferred_element_type=jnp.float32)

    # 2x2 max-pool == elementwise max over the four pool-phase GEMMs.
    m = jnp.maximum(jnp.maximum(group_gemm(0), group_gemm(1)),
                    jnp.maximum(group_gemm(2), group_gemm(3)))
    # Bias + ReLU after pooling (commutes with max), on the 4x smaller result.
    act = jnp.maximum(m + b_ref[...], 0.0)
    o_ref[...] = act.reshape(n_blk, P, Cout).astype(o_ref.dtype)


def conv_relu_pool(patches, w, b, *, block_n):
    """patches: (N, 4*P, Kp) bf16; w: (Kp, 128) bf16; b: (1, 128) f32."""
    N, R, Kp = patches.shape
    Cout = w.shape[1]
    P = R // 4
    kernel = functools.partial(_conv_pool_kernel, n_blk=block_n, pooled_rows=P)
    flops = 2 * N * R * Kp * Cout
    bytes_accessed = (patches.size * 2 + w.size * 2 + b.size * 4
                      + N * P * Cout * 2)
    return pl.pallas_call(
        kernel,
        out_shape=jax.ShapeDtypeStruct((N, P, Cout), jnp.bfloat16),
        grid=(N // block_n,),
        in_specs=[
            pl.BlockSpec((block_n, R, Kp), lambda n: (n, 0, 0)),
            pl.BlockSpec((Kp, Cout), lambda n: (0, 0)),
            pl.BlockSpec((1, Cout), lambda n: (0, 0)),
        ],
        out_specs=pl.BlockSpec((block_n, P, Cout), lambda n: (n, 0, 0)),
        compiler_params=pltpu.CompilerParams(dimension_semantics=("parallel",)),
        cost_estimate=pl.CostEstimate(flops=flops, transcendentals=0,
                                      bytes_accessed=bytes_accessed),
    )(patches, w, b)


# ---------------------------------------------------------------------------
# Kernel B: conv2 GEMM + pool2 + bias + ReLU + fc1 + ReLU + fc2 + ReLU + fc3
# ---------------------------------------------------------------------------
def _conv2_head_kernel(p_ref, w2_ref, b2_ref, wf1_ref, bf1_ref, wf2_ref,
                       bf2_ref, wf3_ref, bf3_ref, o_ref, *, n_blk):
    # p_ref: (n_blk, 4*40, 512) bf16 conv2 patches (pool-grouped, s padded 5->8)
    Kp = w2_ref.shape[0]
    P = p_ref.shape[1] // 4            # 40 = 5 (rows) x 8 (padded cols)

    def group_gemm(g):
        lhs = p_ref[:, pl.ds(g * P, P), :].reshape(n_blk * P, Kp)
        return jnp.dot(lhs, w2_ref[...], preferred_element_type=jnp.float32)

    m = jnp.maximum(jnp.maximum(group_gemm(0), group_gemm(1)),
                    jnp.maximum(group_gemm(2), group_gemm(3)))
    act = jnp.maximum(m + b2_ref[...], 0.0).astype(jnp.bfloat16)   # (n_blk*40, 128)
    act = act.reshape(n_blk, 5, 8, LANE)                           # (b, r, s, c)

    # Flatten the valid 5x5 spatial grid into a lane-dense (n_blk, 3200) fc
    # input (each piece is a full 128-lane tile, so the concat is cheap).
    feats = jnp.concatenate(
        [act[:, r, s, :] for r in range(5) for s in range(5)], axis=-1)

    h = jnp.dot(feats, wf1_ref[...], preferred_element_type=jnp.float32)
    h = jnp.maximum(h + bf1_ref[...], 0.0).astype(jnp.bfloat16)
    h = jnp.dot(h, wf2_ref[...], preferred_element_type=jnp.float32)
    h = jnp.maximum(h + bf2_ref[...], 0.0).astype(jnp.bfloat16)
    out = jnp.dot(h, wf3_ref[...], preferred_element_type=jnp.float32) + bf3_ref[...]
    o_ref[...] = out.astype(o_ref.dtype)


def conv2_head(patches, w2, b2, wf1, bf1, wf2, bf2, wf3, bf3, *, block_n):
    N, R, Kp = patches.shape
    H = LANE
    kernel = functools.partial(_conv2_head_kernel, n_blk=block_n)
    flops = 2 * N * (R * Kp * H + 25 * H * H + H * H + H * H)
    bytes_accessed = (patches.size * 2
                      + (w2.size + wf1.size + wf2.size + wf3.size) * 2
                      + (b2.size + bf1.size + bf2.size + bf3.size) * 4
                      + N * H * 4)
    return pl.pallas_call(
        kernel,
        out_shape=jax.ShapeDtypeStruct((N, H), jnp.float32),
        grid=(N // block_n,),
        in_specs=[
            pl.BlockSpec((block_n, R, Kp), lambda n: (n, 0, 0)),
            pl.BlockSpec((Kp, H), lambda n: (0, 0)),
            pl.BlockSpec((1, H), lambda n: (0, 0)),
            pl.BlockSpec((25 * H, H), lambda n: (0, 0)),
            pl.BlockSpec((1, H), lambda n: (0, 0)),
            pl.BlockSpec((H, H), lambda n: (0, 0)),
            pl.BlockSpec((1, H), lambda n: (0, 0)),
            pl.BlockSpec((H, H), lambda n: (0, 0)),
            pl.BlockSpec((1, H), lambda n: (0, 0)),
        ],
        out_specs=pl.BlockSpec((block_n, H), lambda n: (n, 0)),
        compiler_params=pltpu.CompilerParams(dimension_semantics=("parallel",)),
        cost_estimate=pl.CostEstimate(flops=flops, transcendentals=0,
                                      bytes_accessed=bytes_accessed),
    )(patches, w2, b2, wf1, bf1, wf2, bf2, wf3, bf3)


# ---------------------------------------------------------------------------
# XLA glue: pool-grouped im2col patch extraction
# ---------------------------------------------------------------------------
def _pool_grouped_patches(x, ksize, kpad):
    """x: (N, H, W, C) bf16 -> (N, 4*POH*POWp, kpad) bf16 patches.

    Rows per image are ordered (pool phase (dr,ds), pooled row r, pooled col s)
    with the pooled width padded to a multiple of 8; features are (kh, kw, c)
    zero-padded to kpad lanes.
    """
    N, H, W, C = x.shape
    OH, OW = H - ksize + 1, W - ksize + 1
    POH, POW = OH // 2, OW // 2
    POWp = _round_up(POW, 8)
    feat = ksize * ksize * C
    cols = [x[:, kh:kh + OH, kw:kw + OW, :]
            for kh in range(ksize) for kw in range(ksize)]
    p = jnp.concatenate(cols, axis=-1)                       # (N, OH, OW, feat)
    groups = [p[:, dr::2, ds::2, :] for dr in (0, 1) for ds in (0, 1)]
    g = jnp.stack(groups, axis=1)                            # (N, 4, POH, POW, feat)
    g = jnp.pad(g, ((0, 0), (0, 0), (0, 0), (0, POWp - POW), (0, kpad - feat)))
    return g.reshape(N, 4 * POH * POWp, kpad)


# ---------------------------------------------------------------------------
# One-time weight preparation (hoisted out of the forward pass)
# ---------------------------------------------------------------------------
def prepare_params(params):
    def conv_prep(w, b, kpad):
        O, C, K, _ = w.shape
        feat = K * K * C
        wm = jnp.transpose(w, (2, 3, 1, 0)).reshape(feat, O)   # rows = (kh, kw, c)
        wm = jnp.pad(wm, ((0, kpad - feat), (0, LANE - O))).astype(jnp.bfloat16)
        bm = jnp.pad(b, (0, LANE - O)).reshape(1, LANE).astype(jnp.float32)
        return wm, bm

    def fc_prep(w, b, in_pad):
        i, o = w.shape
        wm = jnp.pad(w, ((0, in_pad - i), (0, LANE - o))).astype(jnp.bfloat16)
        bm = jnp.pad(b, (0, LANE - o)).reshape(1, LANE).astype(jnp.float32)
        return wm, bm

    w1, b1 = conv_prep(params["conv1_w"], params["conv1_b"], 128)
    w2, b2 = conv_prep(params["conv2_w"], params["conv2_b"], 512)

    # fc1: reorder rows from PyTorch's (c, h, w) flatten to our (h, w, c-pad-128)
    fw = params["fc1_w"].reshape(32, 5, 5, 120)            # (c, h, w, out)
    fw = jnp.transpose(fw, (1, 2, 0, 3))                    # (h, w, c, out)
    fw = jnp.pad(fw, ((0, 0), (0, 0), (0, LANE - 32), (0, 0)))
    fw = fw.reshape(5 * 5 * LANE, 120)                      # (3200, 120)
    wf1, bf1 = fc_prep(fw, params["fc1_b"], 25 * LANE)
    wf2, bf2 = fc_prep(params["fc2_w"], params["fc2_b"], LANE)
    wf3, bf3 = fc_prep(params["fc3_w"], params["fc3_b"], LANE)

    return {"w1": w1, "b1": b1, "w2": w2, "b2": b2,
            "w_fc1": wf1, "b_fc1": bf1, "w_fc2": wf2, "b_fc2": bf2,
            "w_fc3": wf3, "b_fc3": bf3}


# ---------------------------------------------------------------------------
# LeNet
# ---------------------------------------------------------------------------
def init_lenet_params(key):
    ks = jax.random.split(key, 10)

    def w(k, shape, fan_in):
        bound = 1.0 / jnp.sqrt(fan_in)
        return jax.random.uniform(k, shape, jnp.float32, -bound, bound)

    return {
        "conv1_w": w(ks[0], (16, 3, 5, 5), 3 * 5 * 5),
        "conv1_b": w(ks[1], (16,), 3 * 5 * 5),
        "conv2_w": w(ks[2], (32, 16, 5, 5), 16 * 5 * 5),
        "conv2_b": w(ks[3], (32,), 16 * 5 * 5),
        "fc1_w": w(ks[4], (32 * 5 * 5, 120), 32 * 5 * 5),   # (in, out) = torch W.T
        "fc1_b": w(ks[5], (120,), 32 * 5 * 5),
        "fc2_w": w(ks[6], (120, 84), 120),
        "fc2_b": w(ks[7], (84,), 120),
        "fc3_w": w(ks[8], (84, 10), 84),
        "fc3_b": w(ks[9], (10,), 84),
    }


def lenet_forward(prep, x):
    # x: (N, 3, 32, 32) f32 (PyTorch NCHW interface)
    N = x.shape[0]
    B = _BLOCK_IMGS
    Npad = _round_up(N, B)
    xh = jnp.transpose(x, (0, 2, 3, 1)).astype(jnp.bfloat16)          # NHWC, bf16
    if Npad != N:
        xh = jnp.pad(xh, ((0, Npad - N), (0, 0), (0, 0), (0, 0)))

    # conv1 + bias + ReLU + pool1 (one fused kernel; pool folded into the GEMM)
    p1 = _pool_grouped_patches(xh, ksize=5, kpad=128)                 # (Npad, 896, 128)
    y1 = conv_relu_pool(p1, prep["w1"], prep["b1"], block_n=B)        # (Npad, 224, 128)

    # re-expose pool1 output as NHWC (drop row/channel padding) for conv2 glue
    y1 = y1.reshape(Npad, 14, 16, LANE)[:, :, :14, :16]               # (Npad, 14, 14, 16)

    # conv2 + pool2 + fc1 + fc2 + fc3 (one fused kernel)
    p2 = _pool_grouped_patches(y1, ksize=5, kpad=512)                 # (Npad, 160, 512)
    logits = conv2_head(p2, prep["w2"], prep["b2"],
                        prep["w_fc1"], prep["b_fc1"],
                        prep["w_fc2"], prep["b_fc2"],
                        prep["w_fc3"], prep["b_fc3"], block_n=B)      # (Npad, 128) f32
    return logits[:N, :10]


# ---------------------------------------------------------------------------
# Pure-JAX f32 reference (for a tolerance check of the bf16 Pallas path)
# ---------------------------------------------------------------------------
def _lenet_reference(params, x):
    def conv(x, w, b):
        y = jax.lax.conv_general_dilated(
            x, w, (1, 1), "VALID", dimension_numbers=("NCHW", "OIHW", "NCHW"))
        return y + b.reshape(1, -1, 1, 1)

    def pool(x):
        return jax.lax.reduce_window(x, -jnp.inf, jax.lax.max,
                                     (1, 1, 2, 2), (1, 1, 2, 2), "VALID")

    y = pool(jax.nn.relu(conv(x, params["conv1_w"], params["conv1_b"])))
    y = pool(jax.nn.relu(conv(y, params["conv2_w"], params["conv2_b"])))
    y = y.reshape(x.shape[0], -1)
    y = jax.nn.relu(y @ params["fc1_w"] + params["fc1_b"])
    y = jax.nn.relu(y @ params["fc2_w"] + params["fc2_b"])
    return y @ params["fc3_w"] + params["fc3_b"]


if __name__ == "__main__":
    key = jax.random.PRNGKey(0)
    pkey, xkey = jax.random.split(key)
    params = init_lenet_params(pkey)
    prep = prepare_params(params)          # one-time weight prep (hoisted)

    # LeNet expects 32x32 spatial input (32 -> 28 -> 14 -> 10 -> 5).
    x = jax.random.normal(xkey, (2, 3, 32, 32), dtype=jnp.float32)

    out = jax.jit(lenet_forward)(prep, x)
    out = jax.block_until_ready(out)
    assert out.shape == (2, 10), out.shape
    assert bool(jnp.all(jnp.isfinite(out)))

    ref = _lenet_reference(params, x)
    err = float(jnp.max(jnp.abs(out.astype(jnp.float32) - ref)))
    assert err < 0.05, f"max |diff| vs f32 reference = {err}"
    print("KERNEL_OK")
</pallas_src>

<mosaic_0001>
module attributes {stable_mosaic.version = 11 : i64} {
  func.func @_conv_pool_kernel(%arg0: i32, %arg1: memref<8x896x128xbf16, #tpu.memory_space<vmem>>, %arg2: memref<128x128xbf16, #tpu.memory_space<vmem>>, %arg3: memref<1x128xf32, #tpu.memory_space<vmem>>, %arg4: memref<8x224x128xbf16, #tpu.memory_space<vmem>>) attributes {dimension_semantics = [#tpu.dimension_semantics<parallel>], iteration_bounds = array<i64: 1>, scalar_prefetch = 0 : i64, scratch_operands = 0 : i64, tpu.core_type = #tpu.core_type<tc>, window_params = [{transform_indices = @transform_0, window_bounds = array<i64: 8, 896, 128>}, {pipeline_mode = #tpu.pipeline_mode<synchronous>, transform_indices = @transform_1, window_bounds = array<i64: 128, 128>}, {pipeline_mode = #tpu.pipeline_mode<synchronous>, transform_indices = @transform_2, window_bounds = array<i64: 1, 128>}, {transform_indices = @transform_3, window_bounds = array<i64: 8, 224, 128>}]} {
    %c0 = arith.constant 0 : index
    %c0_0 = arith.constant 0 : index
    %c0_1 = arith.constant 0 : index
    %0 = vector.load %arg1[%c0, %c0_0, %c0_1] : memref<8x896x128xbf16, #tpu.memory_space<vmem>>, vector<8x224x128xbf16>
    %1 = vector.shape_cast %0 : vector<8x224x128xbf16> to vector<1792x128xbf16>
    %c0_2 = arith.constant 0 : index
    %c0_3 = arith.constant 0 : index
    %2 = vector.load %arg2[%c0_2, %c0_3] : memref<128x128xbf16, #tpu.memory_space<vmem>>, vector<128x128xbf16>
    %cst = arith.constant dense<0.000000e+00> : vector<1792x128xf32>
    %3 = tpu.matmul %1, %2, %cst {dimension_numbers = #tpu.dot_dimension_numbers<[1], [0], [0], [1], [0, 0, 1, 1], [], []>} : vector<1792x128xbf16>, vector<128x128xbf16>, vector<1792x128xf32> -> vector<1792x128xf32>
    %c0_4 = arith.constant 0 : index
    %c224 = arith.constant 224 : index
    %c0_5 = arith.constant 0 : index
    %4 = vector.load %arg1[%c0_4, %c224, %c0_5] : memref<8x896x128xbf16, #tpu.memory_space<vmem>>, vector<8x224x128xbf16>
    %5 = vector.shape_cast %4 : vector<8x224x128xbf16> to vector<1792x128xbf16>
    %c0_6 = arith.constant 0 : index
    %c0_7 = arith.constant 0 : index
    %6 = vector.load %arg2[%c0_6, %c0_7] : memref<128x128xbf16, #tpu.memory_space<vmem>>, vector<128x128xbf16>
    %cst_8 = arith.constant dense<0.000000e+00> : vector<1792x128xf32>
    %7 = tpu.matmul %5, %6, %cst_8 {dimension_numbers = #tpu.dot_dimension_numbers<[1], [0], [0], [1], [0, 0, 1, 1], [], []>} : vector<1792x128xbf16>, vector<128x128xbf16>, vector<1792x128xf32> -> vector<1792x128xf32>
    %8 = arith.maximumf %3, %7 : vector<1792x128xf32>
    %c0_9 = arith.constant 0 : index
    %c448 = arith.constant 448 : index
    %c0_10 = arith.constant 0 : index
    %9 = vector.load %arg1[%c0_9, %c448, %c0_10] : memref<8x896x128xbf16, #tpu.memory_space<vmem>>, vector<8x224x128xbf16>
    %10 = vector.shape_cast %9 : vector<8x224x128xbf16> to vector<1792x128xbf16>
    %c0_11 = arith.constant 0 : index
    %c0_12 = arith.constant 0 : index
    %11 = vector.load %arg2[%c0_11, %c0_12] : memref<128x128xbf16, #tpu.memory_space<vmem>>, vector<128x128xbf16>
    %cst_13 = arith.constant dense<0.000000e+00> : vector<1792x128xf32>
    %12 = tpu.matmul %10, %11, %cst_13 {dimension_numbers = #tpu.dot_dimension_numbers<[1], [0], [0], [1], [0, 0, 1, 1], [], []>} : vector<1792x128xbf16>, vector<128x128xbf16>, vector<1792x128xf32> -> vector<1792x128xf32>
    %c0_14 = arith.constant 0 : index
    %c672 = arith.constant 672 : index
    %c0_15 = arith.constant 0 : index
    %13 = vector.load %arg1[%c0_14, %c672, %c0_15] : memref<8x896x128xbf16, #tpu.memory_space<vmem>>, vector<8x224x128xbf16>
    %14 = vector.shape_cast %13 : vector<8x224x128xbf16> to vector<1792x128xbf16>
    %c0_16 = arith.constant 0 : index
    %c0_17 = arith.constant 0 : index
    %15 = vector.load %arg2[%c0_16, %c0_17] : memref<128x128xbf16, #tpu.memory_space<vmem>>, vector<128x128xbf16>
    %cst_18 = arith.constant dense<0.000000e+00> : vector<1792x128xf32>
    %16 = tpu.matmul %14, %15, %cst_18 {dimension_numbers = #tpu.dot_dimension_numbers<[1], [0], [0], [1], [0, 0, 1, 1], [], []>} : vector<1792x128xbf16>, vector<128x128xbf16>, vector<1792x128xf32> -> vector<1792x128xf32>
    %17 = arith.maximumf %12, %16 : vector<1792x128xf32>
    %18 = arith.maximumf %8, %17 : vector<1792x128xf32>
    %c0_19 = arith.constant 0 : index
    %c0_20 = arith.constant 0 : index
    %19 = vector.load %arg3[%c0_19, %c0_20] : memref<1x128xf32, #tpu.memory_space<vmem>>, vector<1x128xf32>
    %20 = vector.broadcast %19 : vector<1x128xf32> to vector<1792x128xf32>
    %21 = arith.addf %18, %20 : vector<1792x128xf32>
    %cst_21 = arith.constant 0.000000e+00 : f32
    %22 = vector.broadcast %cst_21 : f32 to vector<1792x128xf32>
    %23 = arith.maximumf %21, %22 : vector<1792x128xf32>
    %24 = vector.shape_cast %23 : vector<1792x128xf32> to vector<8x224x128xf32>
    %25 = arith.truncf %24 : vector<8x224x128xf32> to vector<8x224x128xbf16>
    %c0_22 = arith.constant 0 : index
    %c0_23 = arith.constant 0 : index
    %c0_24 = arith.constant 0 : index
    %26 = vector.load %arg4[%c0_22, %c0_23, %c0_24] : memref<8x224x128xbf16, #tpu.memory_space<vmem>>, vector<8x224x128xbf16>
    tpu.vector_store %arg4[%c0_22, %c0_23, %c0_24], %25 {strides = array<i32>} : memref<8x224x128xbf16, #tpu.memory_space<vmem>>, vector<8x224x128xbf16>,
    return
  }
  func.func @transform_0(%arg0: i32) -> (i32, i32, i32) {
    %c0_i32 = arith.constant 0 : i32
    %c0_i32_0 = arith.constant 0 : i32
    %c0_i32_1 = arith.constant 0 : i32
    return %arg0, %c0_i32, %c0_i32_0 : i32, i32, i32
  }
  func.func @transform_1(%arg0: i32) -> (i32, i32) {
    %c0_i32 = arith.constant 0 : i32
    %c0_i32_0 = arith.constant 0 : i32
    %c0_i32_1 = arith.constant 0 : i32
    return %c0_i32, %c0_i32_0 : i32, i32
  }
  func.func @transform_2(%arg0: i32) -> (i32, i32) {
    %c0_i32 = arith.constant 0 : i32
    %c0_i32_0 = arith.constant 0 : i32
    %c0_i32_1 = arith.constant 0 : i32
    return %c0_i32, %c0_i32_0 : i32, i32
  }
  func.func @transform_3(%arg0: i32) -> (i32, i32, i32) {
    %c0_i32 = arith.constant 0 : i32
    %c0_i32_0 = arith.constant 0 : i32
    %c0_i32_1 = arith.constant 0 : i32
    return %arg0, %c0_i32, %c0_i32_0 : i32, i32, i32
  }
}

module attributes {stable_mosaic.version = 11 : i64} {
  func.func @_conv2_head_kernel(%arg0: i32, %arg1: memref<8x160x512xbf16, #tpu.memory_space<vmem>>, %arg2: memref<512x128xbf16, #tpu.memory_space<vmem>>, %arg3: memref<1x128xf32, #tpu.memory_space<vmem>>, %arg4: memref<3200x128xbf16, #tpu.memory_space<vmem>>, %arg5: memref<1x128xf32, #tpu.memory_space<vmem>>, %arg6: memref<128x128xbf16, #tpu.memory_space<vmem>>, %arg7: memref<1x128xf32, #tpu.memory_space<vmem>>, %arg8: memref<128x128xbf16, #tpu.memory_space<vmem>>, %arg9: memref<1x128xf32, #tpu.memory_space<vmem>>, %arg10: memref<8x128xf32, #tpu.memory_space<vmem>>) attributes {dimension_semantics = [#tpu.dimension_semantics<parallel>], iteration_bounds = array<i64: 1>, scalar_prefetch = 0 : i64, scratch_operands = 0 : i64, tpu.core_type = #tpu.core_type<tc>, window_params = [{transform_indices = @transform_0, window_bounds = array<i64: 8, 160, 512>}, {pipeline_mode = #tpu.pipeline_mode<synchronous>, transform_indices = @transform_1, window_bounds = array<i64: 512, 128>}, {pipeline_mode = #tpu.pipeline_mode<synchronous>, transform_indices = @transform_2, window_bounds = array<i64: 1, 128>}, {pipeline_mode = #tpu.pipeline_mode<synchronous>, transform_indices = @transform_3, window_bounds = array<i64: 3200, 128>}, {pipeline_mode = #tpu.pipeline_mode<synchronous>, transform_indices = @transform_4, window_bounds = array<i64: 1, 128>}, {pipeline_mode = #tpu.pipeline_mode<synchronous>, transform_indices = @transform_5, window_bounds = array<i64: 128, 128>}, {pipeline_mode = #tpu.pipeline_mode<synchronous>, transform_indices = @transform_6, window_bounds = array<i64: 1, 128>}, {pipeline_mode = #tpu.pipeline_mode<synchronous>, transform_indices = @transform_7, window_bounds = array<i64: 128, 128>}, {pipeline_mode = #tpu.pipeline_mode<synchronous>, transform_indices = @transform_8, window_bounds = array<i64: 1, 128>}, {transform_indices = @transform_9, window_bounds = array<i64: 8, 128>}]} {
    %c0 = arith.constant 0 : index
    %c0_0 = arith.constant 0 : index
    %c0_1 = arith.constant 0 : index
    %0 = vector.load %arg1[%c0, %c0_0, %c0_1] : memref<8x160x512xbf16, #tpu.memory_space<vmem>>, vector<8x40x512xbf16>
    %1 = vector.shape_cast %0 : vector<8x40x512xbf16> to vector<320x512xbf16>
    %c0_2 = arith.constant 0 : index
    %c0_3 = arith.constant 0 : index
    %2 = vector.load %arg2[%c0_2, %c0_3] : memref<512x128xbf16, #tpu.memory_space<vmem>>, vector<512x128xbf16>
    %cst = arith.constant dense<0.000000e+00> : vector<320x128xf32>
    %3 = tpu.matmul %1, %2, %cst {dimension_numbers = #tpu.dot_dimension_numbers<[1], [0], [0], [1], [0, 0, 1, 1], [], []>} : vector<320x512xbf16>, vector<512x128xbf16>, vector<320x128xf32> -> vector<320x128xf32>
    %c0_4 = arith.constant 0 : index
    %c40 = arith.constant 40 : index
    %c0_5 = arith.constant 0 : index
    %4 = vector.load %arg1[%c0_4, %c40, %c0_5] : memref<8x160x512xbf16, #tpu.memory_space<vmem>>, vector<8x40x512xbf16>
    %5 = vector.shape_cast %4 : vector<8x40x512xbf16> to vector<320x512xbf16>
    %c0_6 = arith.constant 0 : index
    %c0_7 = arith.constant 0 : index
    %6 = vector.load %arg2[%c0_6, %c0_7] : memref<512x128xbf16, #tpu.memory_space<vmem>>, vector<512x128xbf16>
    %cst_8 = arith.constant dense<0.000000e+00> : vector<320x128xf32>
    %7 = tpu.matmul %5, %6, %cst_8 {dimension_numbers = #tpu.dot_dimension_numbers<[1], [0], [0], [1], [0, 0, 1, 1], [], []>} : vector<320x512xbf16>, vector<512x128xbf16>, vector<320x128xf32> -> vector<320x128xf32>
    %8 = arith.maximumf %3, %7 : vector<320x128xf32>
    %c0_9 = arith.constant 0 : index
    %c80 = arith.constant 80 : index
    %c0_10 = arith.constant 0 : index
    %9 = vector.load %arg1[%c0_9, %c80, %c0_10] : memref<8x160x512xbf16, #tpu.memory_space<vmem>>, vector<8x40x512xbf16>
    %10 = vector.shape_cast %9 : vector<8x40x512xbf16> to vector<320x512xbf16>
    %c0_11 = arith.constant 0 : index
    %c0_12 = arith.constant 0 : index
    %11 = vector.load %arg2[%c0_11, %c0_12] : memref<512x128xbf16, #tpu.memory_space<vmem>>, vector<512x128xbf16>
    %cst_13 = arith.constant dense<0.000000e+00> : vector<320x128xf32>
    %12 = tpu.matmul %10, %11, %cst_13 {dimension_numbers = #tpu.dot_dimension_numbers<[1], [0], [0], [1], [0, 0, 1, 1], [], []>} : vector<320x512xbf16>, vector<512x128xbf16>, vector<320x128xf32> -> vector<320x128xf32>
    %c0_14 = arith.constant 0 : index
    %c120 = arith.constant 120 : index
    %c0_15 = arith.constant 0 : index
    %13 = vector.load %arg1[%c0_14, %c120, %c0_15] : memref<8x160x512xbf16, #tpu.memory_space<vmem>>, vector<8x40x512xbf16>
    %14 = vector.shape_cast %13 : vector<8x40x512xbf16> to vector<320x512xbf16>
    %c0_16 = arith.constant 0 : index
    %c0_17 = arith.constant 0 : index
    %15 = vector.load %arg2[%c0_16, %c0_17] : memref<512x128xbf16, #tpu.memory_space<vmem>>, vector<512x128xbf16>
    %cst_18 = arith.constant dense<0.000000e+00> : vector<320x128xf32>
    %16 = tpu.matmul %14, %15, %cst_18 {dimension_numbers = #tpu.dot_dimension_numbers<[1], [0], [0], [1], [0, 0, 1, 1], [], []>} : vector<320x512xbf16>, vector<512x128xbf16>, vector<320x128xf32> -> vector<320x128xf32>
    %17 = arith.maximumf %12, %16 : vector<320x128xf32>
    %18 = arith.maximumf %8, %17 : vector<320x128xf32>
    %c0_19 = arith.constant 0 : index
    %c0_20 = arith.constant 0 : index
    %19 = vector.load %arg3[%c0_19, %c0_20] : memref<1x128xf32, #tpu.memory_space<vmem>>, vector<1x128xf32>
    %20 = vector.broadcast %19 : vector<1x128xf32> to vector<320x128xf32>
    %21 = arith.addf %18, %20 : vector<320x128xf32>
    %cst_21 = arith.constant 0.000000e+00 : f32
    %22 = vector.broadcast %cst_21 : f32 to vector<320x128xf32>
    %23 = arith.maximumf %21, %22 : vector<320x128xf32>
    %24 = arith.truncf %23 : vector<320x128xf32> to vector<320x128xbf16>
    %25 = vector.shape_cast %24 : vector<320x128xbf16> to vector<8x5x8x128xbf16>
    %26 = vector.extract_strided_slice %25 {offsets = [0, 0, 0, 0], sizes = [8, 1, 1, 128], strides = [1, 1, 1, 1]} : vector<8x5x8x128xbf16> to vector<8x1x1x128xbf16>
    %27 = vector.shape_cast %26 : vector<8x1x1x128xbf16> to vector<8x128xbf16>
    %28 = vector.extract_strided_slice %25 {offsets = [0, 0, 1, 0], sizes = [8, 1, 1, 128], strides = [1, 1, 1, 1]} : vector<8x5x8x128xbf16> to vector<8x1x1x128xbf16>
    %29 = vector.shape_cast %28 : vector<8x1x1x128xbf16> to vector<8x128xbf16>
    %30 = vector.extract_strided_slice %25 {offsets = [0, 0, 2, 0], sizes = [8, 1, 1, 128], strides = [1, 1, 1, 1]} : vector<8x5x8x128xbf16> to vector<8x1x1x128xbf16>
    %31 = vector.shape_cast %30 : vector<8x1x1x128xbf16> to vector<8x128xbf16>
    %32 = vector.extract_strided_slice %25 {offsets = [0, 0, 3, 0], sizes = [8, 1, 1, 128], strides = [1, 1, 1, 1]} : vector<8x5x8x128xbf16> to vector<8x1x1x128xbf16>
    %33 = vector.shape_cast %32 : vector<8x1x1x128xbf16> to vector<8x128xbf16>
    %34 = vector.extract_strided_slice %25 {offsets = [0, 0, 4, 0], sizes = [8, 1, 1, 128], strides = [1, 1, 1, 1]} : vector<8x5x8x128xbf16> to vector<8x1x1x128xbf16>
    %35 = vector.shape_cast %34 : vector<8x1x1x128xbf16> to vector<8x128xbf16>
    %36 = vector.extract_strided_slice %25 {offsets = [0, 1, 0, 0], sizes = [8, 1, 1, 128], strides = [1, 1, 1, 1]} : vector<8x5x8x128xbf16> to vector<8x1x1x128xbf16>
    %37 = vector.shape_cast %36 : vector<8x1x1x128xbf16> to vector<8x128xbf16>
    %38 = vector.extract_strided_slice %25 {offsets = [0, 1, 1, 0], sizes = [8, 1, 1, 128], strides = [1, 1, 1, 1]} : vector<8x5x8x128xbf16> to vector<8x1x1x128xbf16>
    %39 = vector.shape_cast %38 : vector<8x1x1x128xbf16> to vector<8x128xbf16>
    %40 = vector.extract_strided_slice %25 {offsets = [0, 1, 2, 0], sizes = [8, 1, 1, 128], strides = [1, 1, 1, 1]} : vector<8x5x8x128xbf16> to vector<8x1x1x128xbf16>
    %41 = vector.shape_cast %40 : vector<8x1x1x128xbf16> to vector<8x128xbf16>
    %42 = vector.extract_strided_slice %25 {offsets = [0, 1, 3, 0], sizes = [8, 1, 1, 128], strides = [1, 1, 1, 1]} : vector<8x5x8x128xbf16> to vector<8x1x1x128xbf16>
    %43 = vector.shape_cast %42 : vector<8x1x1x128xbf16> to vector<8x128xbf16>
    %44 = vector.extract_strided_slice %25 {offsets = [0, 1, 4, 0], sizes = [8, 1, 1, 128], strides = [1, 1, 1, 1]} : vector<8x5x8x128xbf16> to vector<8x1x1x128xbf16>
    %45 = vector.shape_cast %44 : vector<8x1x1x128xbf16> to vector<8x128xbf16>
    %46 = vector.extract_strided_slice %25 {offsets = [0, 2, 0, 0], sizes = [8, 1, 1, 128], strides = [1, 1, 1, 1]} : vector<8x5x8x128xbf16> to vector<8x1x1x128xbf16>
    %47 = vector.shape_cast %46 : vector<8x1x1x128xbf16> to vector<8x128xbf16>
    %48 = vector.extract_strided_slice %25 {offsets = [0, 2, 1, 0], sizes = [8, 1, 1, 128], strides = [1, 1, 1, 1]} : vector<8x5x8x128xbf16> to vector<8x1x1x128xbf16>
    %49 = vector.shape_cast %48 : vector<8x1x1x128xbf16> to vector<8x128xbf16>
    %50 = vector.extract_strided_slice %25 {offsets = [0, 2, 2, 0], sizes = [8, 1, 1, 128], strides = [1, 1, 1, 1]} : vector<8x5x8x128xbf16> to vector<8x1x1x128xbf16>
    %51 = vector.shape_cast %50 : vector<8x1x1x128xbf16> to vector<8x128xbf16>
    %52 = vector.extract_strided_slice %25 {offsets = [0, 2, 3, 0], sizes = [8, 1, 1, 128], strides = [1, 1, 1, 1]} : vector<8x5x8x128xbf16> to vector<8x1x1x128xbf16>
    %53 = vector.shape_cast %52 : vector<8x1x1x128xbf16> to vector<8x128xbf16>
    %54 = vector.extract_strided_slice %25 {offsets = [0, 2, 4, 0], sizes = [8, 1, 1, 128], strides = [1, 1, 1, 1]} : vector<8x5x8x128xbf16> to vector<8x1x1x128xbf16>
    %55 = vector.shape_cast %54 : vector<8x1x1x128xbf16> to vector<8x128xbf16>
    %56 = vector.extract_strided_slice %25 {offsets = [0, 3, 0, 0], sizes = [8, 1, 1, 128], strides = [1, 1, 1, 1]} : vector<8x5x8x128xbf16> to vector<8x1x1x128xbf16>
    %57 = vector.shape_cast %56 : vector<8x1x1x128xbf16> to vector<8x128xbf16>
    %58 = vector.extract_strided_slice %25 {offsets = [0, 3, 1, 0], sizes = [8, 1, 1, 128], strides = [1, 1, 1, 1]} : vector<8x5x8x128xbf16> to vector<8x1x1x128xbf16>
    %59 = vector.shape_cast %58 : vector<8x1x1x128xbf16> to vector<8x128xbf16>
    %60 = vector.extract_strided_slice %25 {offsets = [0, 3, 2, 0], sizes = [8, 1, 1, 128], strides = [1, 1, 1, 1]} : vector<8x5x8x128xbf16> to vector<8x1x1x128xbf16>
    %61 = vector.shape_cast %60 : vector<8x1x1x128xbf16> to vector<8x128xbf16>
    %62 = vector.extract_strided_slice %25 {offsets = [0, 3, 3, 0], sizes = [8, 1, 1, 128], strides = [1, 1, 1, 1]} : vector<8x5x8x128xbf16> to vector<8x1x1x128xbf16>
    %63 = vector.shape_cast %62 : vector<8x1x1x128xbf16> to vector<8x128xbf16>
    %64 = vector.extract_strided_slice %25 {offsets = [0, 3, 4, 0], sizes = [8, 1, 1, 128], strides = [1, 1, 1, 1]} : vector<8x5x8x128xbf16> to vector<8x1x1x128xbf16>
    %65 = vector.shape_cast %64 : vector<8x1x1x128xbf16> to vector<8x128xbf16>
    %66 = vector.extract_strided_slice %25 {offsets = [0, 4, 0, 0], sizes = [8, 1, 1, 128], strides = [1, 1, 1, 1]} : vector<8x5x8x128xbf16> to vector<8x1x1x128xbf16>
    %67 = vector.shape_cast %66 : vector<8x1x1x128xbf16> to vector<8x128xbf16>
    %68 = vector.extract_strided_slice %25 {offsets = [0, 4, 1, 0], sizes = [8, 1, 1, 128], strides = [1, 1, 1, 1]} : vector<8x5x8x128xbf16> to vector<8x1x1x128xbf16>
    %69 = vector.shape_cast %68 : vector<8x1x1x128xbf16> to vector<8x128xbf16>
    %70 = vector.extract_strided_slice %25 {offsets = [0, 4, 2, 0], sizes = [8, 1, 1, 128], strides = [1, 1, 1, 1]} : vector<8x5x8x128xbf16> to vector<8x1x1x128xbf16>
    %71 = vector.shape_cast %70 : vector<8x1x1x128xbf16> to vector<8x128xbf16>
    %72 = vector.extract_strided_slice %25 {offsets = [0, 4, 3, 0], sizes = [8, 1, 1, 128], strides = [1, 1, 1, 1]} : vector<8x5x8x128xbf16> to vector<8x1x1x128xbf16>
    %73 = vector.shape_cast %72 : vector<8x1x1x128xbf16> to vector<8x128xbf16>
    %74 = vector.extract_strided_slice %25 {offsets = [0, 4, 4, 0], sizes = [8, 1, 1, 128], strides = [1, 1, 1, 1]} : vector<8x5x8x128xbf16> to vector<8x1x1x128xbf16>
    %75 = vector.shape_cast %74 : vector<8x1x1x128xbf16> to vector<8x128xbf16>
    %76 = tpu.concatenate %27, %29, %31, %33, %35, %37, %39, %41, %43, %45, %47, %49, %51, %53, %55, %57 in 1 : vector<8x128xbf16>, vector<8x128xbf16>, vector<8x128xbf16>, vector<8x128xbf16>, vector<8x128xbf16>, vector<8x128xbf16>, vector<8x128xbf16>, vector<8x128xbf16>, vector<8x128xbf16>, vector<8x128xbf16>, vector<8x128xbf16>, vector<8x128xbf16>, vector<8x128xbf16>, vector<8x128xbf16>, vector<8x128xbf16>, vector<8x128xbf16> -> vector<8x2048xbf16>
    %77 = tpu.concatenate %59, %61, %63, %65, %67, %69, %71, %73, %75 in 1 : vector<8x128xbf16>, vector<8x128xbf16>, vector<8x128xbf16>, vector<8x128xbf16>, vector<8x128xbf16>, vector<8x128xbf16>, vector<8x128xbf16>, vector<8x128xbf16>, vector<8x128xbf16> -> vector<8x1152xbf16>
    %78 = tpu.concatenate %76, %77 in 1 : vector<8x2048xbf16>, vector<8x1152xbf16> -> vector<8x3200xbf16>
    %c0_22 = arith.constant 0 : index
    %c0_23 = arith.constant 0 : index
    %79 = vector.load %arg4[%c0_22, %c0_23] : memref<3200x128xbf16, #tpu.memory_space<vmem>>, vector<3200x128xbf16>
    %cst_24 = arith.constant dense<0.000000e+00> : vector<8x128xf32>
    %80 = tpu.matmul %78, %79, %cst_24 {dimension_numbers = #tpu.dot_dimension_numbers<[1], [0], [0], [1], [0, 0, 1, 1], [], []>} : vector<8x3200xbf16>, vector<3200x128xbf16>, vector<8x128xf32> -> vector<8x128xf32>
    %c0_25 = arith.constant 0 : index
    %c0_26 = arith.constant 0 : index
    %81 = vector.load %arg5[%c0_25, %c0_26] : memref<1x128xf32, #tpu.memory_space<vmem>>, vector<1x128xf32>
    %82 = vector.broadcast %81 : vector<1x128xf32> to vector<8x128xf32>
    %83 = arith.addf %80, %82 : vector<8x128xf32>
    %cst_27 = arith.constant 0.000000e+00 : f32
    %84 = vector.broadcast %cst_27 : f32 to vector<8x128xf32>
    %85 = arith.maximumf %83, %84 : vector<8x128xf32>
    %86 = arith.truncf %85 : vector<8x128xf32> to vector<8x128xbf16>
    %c0_28 = arith.constant 0 : index
    %c0_29 = arith.constant 0 : index
    %87 = vector.load %arg6[%c0_28, %c0_29] : memref<128x128xbf16, #tpu.memory_space<vmem>>, vector<128x128xbf16>
    %cst_30 = arith.constant dense<0.000000e+00> : vector<8x128xf32>
    %88 = tpu.matmul %86, %87, %cst_30 {dimension_numbers = #tpu.dot_dimension_numbers<[1], [0], [0], [1], [0, 0, 1, 1], [], []>} : vector<8x128xbf16>, vector<128x128xbf16>, vector<8x128xf32> -> vector<8x128xf32>
    %c0_31 = arith.constant 0 : index
    %c0_32 = arith.constant 0 : index
    %89 = vector.load %arg7[%c0_31, %c0_32] : memref<1x128xf32, #tpu.memory_space<vmem>>, vector<1x128xf32>
    %90 = vector.broadcast %89 : vector<1x128xf32> to vector<8x128xf32>
    %91 = arith.addf %88, %90 : vector<8x128xf32>
    %cst_33 = arith.constant 0.000000e+00 : f32
    %92 = vector.broadcast %cst_33 : f32 to vector<8x128xf32>
    %93 = arith.maximumf %91, %92 : vector<8x128xf32>
    %94 = arith.truncf %93 : vector<8x128xf32> to vector<8x128xbf16>
    %c0_34 = arith.constant 0 : index
    %c0_35 = arith.constant 0 : index
    %95 = vector.load %arg8[%c0_34, %c0_35] : memref<128x128xbf16, #tpu.memory_space<vmem>>, vector<128x128xbf16>
    %cst_36 = arith.constant dense<0.000000e+00> : vector<8x128xf32>
    %96 = tpu.matmul %94, %95, %cst_36 {dimension_numbers = #tpu.dot_dimension_numbers<[1], [0], [0], [1], [0, 0, 1, 1], [], []>} : vector<8x128xbf16>, vector<128x128xbf16>, vector<8x128xf32> -> vector<8x128xf32>
    %c0_37 = arith.constant 0 : index
    %c0_38 = arith.constant 0 : index
    %97 = vector.load %arg9[%c0_37, %c0_38] : memref<1x128xf32, #tpu.memory_space<vmem>>, vector<1x128xf32>
    %98 = vector.broadcast %97 : vector<1x128xf32> to vector<8x128xf32>
    %99 = arith.addf %96, %98 : vector<8x128xf32>
    %c0_39 = arith.constant 0 : index
    %c0_40 = arith.constant 0 : index
    %100 = vector.load %arg10[%c0_39, %c0_40] : memref<8x128xf32, #tpu.memory_space<vmem>>, vector<8x128xf32>
    tpu.vector_store %arg10[%c0_39, %c0_40], %99 {strides = array<i32>} : memref<8x128xf32, #tpu.memory_space<vmem>>, vector<8x128xf32>,
    return
  }
  func.func @transform_0(%arg0: i32) -> (i32, i32, i32) {
    %c0_i32 = arith.constant 0 : i32
    %c0_i32_0 = arith.constant 0 : i32
    %c0_i32_1 = arith.constant 0 : i32
    return %arg0, %c0_i32, %c0_i32_0 : i32, i32, i32
  }
  func.func @transform_1(%arg0: i32) -> (i32, i32) {
    %c0_i32 = arith.constant 0 : i32
    %c0_i32_0 = arith.constant 0 : i32
    %c0_i32_1 = arith.constant 0 : i32
    return %c0_i32, %c0_i32_0 : i32, i32
  }
  func.func @transform_2(%arg0: i32) -> (i32, i32) {
    %c0_i32 = arith.constant 0 : i32
    %c0_i32_0 = arith.constant 0 : i32
    %c0_i32_1 = arith.constant 0 : i32
    return %c0_i32, %c0_i32_0 : i32, i32
  }
  func.func @transform_3(%arg0: i32) -> (i32, i32) {
    %c0_i32 = arith.constant 0 : i32
    %c0_i32_0 = arith.constant 0 : i32
    %c0_i32_1 = arith.constant 0 : i32
    return %c0_i32, %c0_i32_0 : i32, i32
  }
  func.func @transform_4(%arg0: i32) -> (i32, i32) {
    %c0_i32 = arith.constant 0 : i32
    %c0_i32_0 = arith.constant 0 : i32
    %c0_i32_1 = arith.constant 0 : i32
    return %c0_i32, %c0_i32_0 : i32, i32
  }
  func.func @transform_5(%arg0: i32) -> (i32, i32) {
    %c0_i32 = arith.constant 0 : i32
    %c0_i32_0 = arith.constant 0 : i32
    %c0_i32_1 = arith.constant 0 : i32
    return %c0_i32, %c0_i32_0 : i32, i32
  }
  func.func @transform_6(%arg0: i32) -> (i32, i32) {
    %c0_i32 = arith.constant 0 : i32
    %c0_i32_0 = arith.constant 0 : i32
    %c0_i32_1 = arith.constant 0 : i32
    return %c0_i32, %c0_i32_0 : i32, i32
  }
  func.func @transform_7(%arg0: i32) -> (i32, i32) {
    %c0_i32 = arith.constant 0 : i32
    %c0_i32_0 = arith.constant 0 : i32
    %c0_i32_1 = arith.constant 0 : i32
    return %c0_i32, %c0_i32_0 : i32, i32
  }
  func.func @transform_8(%arg0: i32) -> (i32, i32) {
    %c0_i32 = arith.constant 0 : i32
    %c0_i32_0 = arith.constant 0 : i32
    %c0_i32_1 = arith.constant 0 : i32
    return %c0_i32, %c0_i32_0 : i32, i32
  }
  func.func @transform_9(%arg0: i32) -> (i32, i32) {
    %c0_i32 = arith.constant 0 : i32
    %c0_i32_0 = arith.constant 0 : i32
    return %arg0, %c0_i32 : i32, i32
  }
}

</mosaic_0001>

<bundles_post_ra>
// kernel: lenet_forward.2
= control target key start
LH: loop header
LB: loop body
LE: loop exit
PB: predicated region body
PF: predicated region fallthrough
CT: control target
= control target key end

     0   :  { %s17149_s1 = inlined_call_operand.vmem [shape: bf16[128,128], index: 1, kind: input, shape index: {}]   ;;  %s17150_s0 = inlined_call_operand.vmem [shape: bf16[8,896,128], index: 0, kind: input, shape index: {}]   ;;  %s17151_s2 = inlined_call_operand.vmem [shape: f32[1,128], index: 2, kind: input, shape index: {}]   ;;  %s17152_s3 = inlined_call_operand.vmem [shape: bf16[8,224,128], index: 3, kind: output, shape index: {}]  }
   0x1   :  { %v12646_v0 = vld [vmem:[%s17149_s1 + $0x38] sm:$0xff]   ;;  %v12647_v1 = vld [vmem:[%s17149_s1 + $0x30] sm:$0xff]   ;;  %v13134_v2 = vld [vmem:[%s17149_s1 + $0x28] sm:$0xff]  }
   0x2   :  { %11686 = vmatprep.subr.bf16.mxu0 %v12646_v0  ;;  %11926 = vmatprep.subr.bf16.mxu1 %v12646_v0  ;;  %v13139_v3 = vld [vmem:[%s17149_s1 + $0x20] sm:$0xff]   ;;  %v12655_v5 = vld [vmem:[%s17150_s0 + $0x70] sm:$0xff]   ;;  %v13156_v6 = vld [vmem:[%s17149_s1 + $0x18] sm:$0xff]  }
   0x3   :  { %11687 = vmatpush3.bf16.msra.mxu0 %v12646_v0  ;;  %11927 = vmatpush3.bf16.msra.mxu1 %v12646_v0  ;;  %v12654_v4 = vld [vmem:[%s17150_s0] sm:$0xff]   ;;  %v13165_v7 = vld [vmem:[%s17149_s1 + $0x10] sm:$0xff]   ;;  %v13174_v8 = vld [vmem:[%s17149_s1 + $0x8] sm:$0xff]  }
   0x4   :  { %11688 = vmatprep.subr.bf16.mxu0 %v12647_v1  ;;  %11928 = vmatprep.subr.bf16.mxu1 %v12647_v1  ;;  %v13183_v9 = vld [vmem:[%s17149_s1] sm:$0xff]   ;;  %v12656_v10 = vld [vmem:[%s17150_s0 + $0x8] sm:$0xff]   ;;  %v12657_v11 = vld [vmem:[%s17150_s0 + $0x78] sm:$0xff]  }
   0x5   :  { %11702 = vmatprep.mubr.bf16.mxu0 %v12654_v4  ;;  %11942 = vmatprep.mubr.bf16.mxu1 %v12655_v5  ;;  %v12658_v12 = vld [vmem:[%s17150_s0 + $0x10] sm:$0xff]   ;;  %v12659_v13 = vld [vmem:[%s17150_s0 + $0x80] sm:$0xff]   ;;  %v12660_v14 = vld [vmem:[%s17150_s0 + $0x18] sm:$0xff]  }
   0x6   :  { %v12661_v15 = vld [vmem:[%s17150_s0 + $0x88] sm:$0xff]   ;;  %v12662_v16 = vld [vmem:[%s17150_s0 + $0x20] sm:$0xff]   ;;  %v12663_v17 = vld [vmem:[%s17150_s0 + $0x90] sm:$0xff]  }
   0x7   :  { %11689 = vmatpush3.bf16.msra.mxu0 %v12647_v1  ;;  %11929 = vmatpush3.bf16.msra.mxu1 %v12647_v1  ;;  %v12664_v18 = vld [vmem:[%s17150_s0 + $0x28] sm:$0xff]   ;;  %v12665_v19 = vld [vmem:[%s17150_s0 + $0x98] sm:$0xff]   ;;  %v12666_v20 = vld [vmem:[%s17150_s0 + $0x30] sm:$0xff]  }
   0x8   :  { %11690 = vmatprep.subr.bf16.mxu0 %v13134_v2  ;;  %11930 = vmatprep.subr.bf16.mxu1 %v13134_v2  ;;  %v12667_v21 = vld [vmem:[%s17150_s0 + $0xa0] sm:$0xff]   ;;  %v12668_v22 = vld [vmem:[%s17150_s0 + $0x38] sm:$0xff]   ;;  %v12669_v23 = vld [vmem:[%s17150_s0 + $0xa8] sm:$0xff]  }
   0x9   :  { %v12670_v24 = vld [vmem:[%s17150_s0 + $0x40] sm:$0xff]   ;;  %v12671_v25 = vld [vmem:[%s17150_s0 + $0xb0] sm:$0xff]   ;;  %v12672_v26 = vld [vmem:[%s17150_s0 + $0x48] sm:$0xff]  }
   0xa   :  { %v12673_v27 = vld [vmem:[%s17150_s0 + $0xb8] sm:$0xff]   ;;  %v12674_v28 = vld [vmem:[%s17150_s0 + $0x50] sm:$0xff]   ;;  %v12675_v29 = vld [vmem:[%s17150_s0 + $0xc0] sm:$0xff]  }
   0xb   :  { %11691 = vmatpush3.bf16.msra.mxu0 %v13134_v2  ;;  %11931 = vmatpush3.bf16.msra.mxu1 %v13134_v2  ;;  %v12676_v30 = vld [vmem:[%s17150_s0 + $0x58] sm:$0xff]   ;;  %v12677_v31 = vld [vmem:[%s17150_s0 + $0xc8] sm:$0xff]   ;;  %v12678_v32 = vld [vmem:[%s17150_s0 + $0x60] sm:$0xff]  }
   0xc   :  { %11692 = vmatprep.subr.bf16.mxu0 %v13139_v3  ;;  %11932 = vmatprep.subr.bf16.mxu1 %v13139_v3  ;;  %v12679_v33 = vld [vmem:[%s17150_s0 + $0xd0] sm:$0xff]   ;;  %v12680_v34 = vld [vmem:[%s17150_s0 + $0x68] sm:$0xff]   ;;  %v12681_v35 = vld [vmem:[%s17150_s0 + $0xd8] sm:$0xff]  }
   0xd   :  { %v12682_v36 = vld [vmem:[%s17150_s0 + $0x1c0] sm:$0xff]   ;;  %v12683_v37 = vld [vmem:[%s17150_s0 + $0x230] sm:$0xff]   ;;  %v12684_v38 = vld [vmem:[%s17150_s0 + $0x1c8] sm:$0xff]  }
   0xe   :  { %v12685_v39 = vld [vmem:[%s17150_s0 + $0x238] sm:$0xff]   ;;  %v12686_v40 = vld [vmem:[%s17150_s0 + $0x1d0] sm:$0xff]   ;;  %v12687_v41 = vld [vmem:[%s17150_s0 + $0x240] sm:$0xff]  }
   0xf   :  { %11693 = vmatpush3.bf16.msra.mxu0 %v13139_v3  ;;  %11933 = vmatpush3.bf16.msra.mxu1 %v13139_v3  ;;  %v12688_v42 = vld [vmem:[%s17150_s0 + $0x1d8] sm:$0xff]   ;;  %v12689_v43 = vld [vmem:[%s17150_s0 + $0x248] sm:$0xff]   ;;  %v12690_v44 = vld [vmem:[%s17150_s0 + $0x1e0] sm:$0xff]  }
  0x10   :  { %11694 = vmatprep.subr.bf16.mxu0 %v13156_v6  ;;  %11934 = vmatprep.subr.bf16.mxu1 %v13156_v6  ;;  %v12691_v45 = vld [vmem:[%s17150_s0 + $0x250] sm:$0xff]   ;;  %v12692_v46 = vld [vmem:[%s17150_s0 + $0x1e8] sm:$0xff]   ;;  %v12693_v47 = vld [vmem:[%s17150_s0 + $0x258] sm:$0xff]  }
  0x11   :  { %v12694_v48 = vld [vmem:[%s17150_s0 + $0x1f0] sm:$0xff]   ;;  %v12695_v49 = vld [vmem:[%s17150_s0 + $0x260] sm:$0xff]   ;;  %v12696_v50 = vld [vmem:[%s17150_s0 + $0x1f8] sm:$0xff]  }
  0x12   :  { %v12697_v51 = vld [vmem:[%s17150_s0 + $0x268] sm:$0xff]   ;;  %v12698_v52 = vld [vmem:[%s17150_s0 + $0x200] sm:$0xff]   ;;  %v12699_v53 = vld [vmem:[%s17150_s0 + $0x270] sm:$0xff]  }
  0x13   :  { %11695 = vmatpush3.bf16.msra.mxu0 %v13156_v6  ;;  %11935 = vmatpush3.bf16.msra.mxu1 %v13156_v6  ;;  %v12700_v54 = vld [vmem:[%s17150_s0 + $0x208] sm:$0xff]   ;;  %v12701_v55 = vld [vmem:[%s17150_s0 + $0x278] sm:$0xff]   ;;  %v12702_v56 = vld [vmem:[%s17150_s0 + $0x210] sm:$0xff]  }
  0x14   :  { %11696 = vmatprep.subr.bf16.mxu0 %v13165_v7  ;;  %11936 = vmatprep.subr.bf16.mxu1 %v13165_v7  ;;  %v12703_v57 = vld [vmem:[%s17150_s0 + $0x280] sm:$0xff]   ;;  %v12704_v58 = vld [vmem:[%s17150_s0 + $0x218] sm:$0xff]   ;;  %v12705_v59 = vld [vmem:[%s17150_s0 + $0x288] sm:$0xff]  }
  0x15   :  { %v12706_v60 = vld [vmem:[%s17150_s0 + $0x220] sm:$0xff]   ;;  %v12707_v61 = vld [vmem:[%s17150_s0 + $0x290] sm:$0xff]   ;;  %v12708_v62 = vld [vmem:[%s17150_s0 + $0x228] sm:$0xff]  }
  0x16   :  { %v12709_v63 = vld [vmem:[%s17150_s0 + $0x298] sm:$0xff]   ;;  %v12714_v4 = vld [vmem:[%s17150_s0 + $0x390] sm:$0xff]   ;;  %v12715_v5 = vld [vmem:[%s17150_s0 + $0x400] sm:$0xff]  }
  0x17   :  { %11697 = vmatpush3.bf16.msra.mxu0 %v13165_v7  ;;  %11937 = vmatpush3.bf16.msra.mxu1 %v13165_v7 }
  0x18   :  { %11698 = vmatprep.subr.bf16.mxu0 %v13174_v8  ;;  %11938 = vmatprep.subr.bf16.mxu1 %v13174_v8 }
  0x1b   :  { %11699 = vmatpush3.bf16.msra.mxu0 %v13174_v8  ;;  %11939 = vmatpush3.bf16.msra.mxu1 %v13174_v8 }
  0x1c   :  { %11700 = vmatprep.subr.bf16.mxu0 %v13183_v9  ;;  %11940 = vmatprep.subr.bf16.mxu1 %v13183_v9 }
  0x1f   :  { %11701 = vmatpush3.bf16.msra.mxu0 %v13183_v9  ;;  %11941 = vmatpush3.bf16.msra.mxu1 %v13183_v9 }
  0x20   :  { %12166 = vmatprep.subr.bf16.mxu0 %v12646_v0  ;;  %12406 = vmatprep.subr.bf16.mxu1 %v12646_v0 }
  0x22   :  { %11703 = vmatmul.mubr.bf16.vlgmr.msra.gmra.mxu0 %v12656_v10  ;;  %11943 = vmatmul.mubr.bf16.vlgmr.msra.gmra.mxu1 %v12657_v11  ;;  %v12720_v10 = vld [vmem:[%s17150_s0 + $0x3a8] sm:$0xff]   ;;  %v12721_v11 = vld [vmem:[%s17150_s0 + $0x418] sm:$0xff]  }
  0x23   :  { %12167 = vmatpush3.bf16.msra.mxu0 %v12646_v0  ;;  %12407 = vmatpush3.bf16.msra.mxu1 %v12646_v0  ;;  %v12710_v0 = vld [vmem:[%s17150_s0 + $0x380] sm:$0xff]  }
  0x24   :  { %11706 = vmatprep.mubr.bf16.mxu0 %v12658_v12  ;;  %11946 = vmatprep.mubr.bf16.mxu1 %v12659_v13  ;;  %v12722_v12 = vld [vmem:[%s17150_s0 + $0x3b0] sm:$0xff]   ;;  %v12723_v13 = vld [vmem:[%s17150_s0 + $0x420] sm:$0xff]  }
  0x25   :  { %12168 = vmatprep.subr.bf16.mxu0 %v12647_v1  ;;  %12408 = vmatprep.subr.bf16.mxu1 %v12647_v1 }
  0x27   :  { %12169 = vmatpush3.bf16.msra.mxu0 %v12647_v1  ;;  %12409 = vmatpush3.bf16.msra.mxu1 %v12647_v1  ;;  %v12711_v1 = vld [vmem:[%s17150_s0 + $0x3f0] sm:$0xff]  }
  0x28   :  { %12170 = vmatprep.subr.bf16.mxu0 %v13134_v2  ;;  %12410 = vmatprep.subr.bf16.mxu1 %v13134_v2 }
  0x2a   :  { %11707 = vmatmul.mubr.bf16.gmra.mxu0 %v12660_v14  ;;  %11947 = vmatmul.mubr.bf16.gmra.mxu1 %v12661_v15  ;;  %v12724_v14 = vld [vmem:[%s17150_s0 + $0x3b8] sm:$0xff]   ;;  %v12725_v15 = vld [vmem:[%s17150_s0 + $0x428] sm:$0xff]  }
  0x2b   :  { %11710 = vmatprep.mubr.bf16.mxu0 %v12662_v16  ;;  %11950 = vmatprep.mubr.bf16.mxu1 %v12663_v17  ;;  %v12726_v16 = vld [vmem:[%s17150_s0 + $0x3c0] sm:$0xff]   ;;  %v12727_v17 = vld [vmem:[%s17150_s0 + $0x430] sm:$0xff]  }
  0x2c   :  { %12171 = vmatpush3.bf16.msra.mxu0 %v13134_v2  ;;  %12411 = vmatpush3.bf16.msra.mxu1 %v13134_v2  ;;  %v12712_v2 = vld [vmem:[%s17150_s0 + $0x388] sm:$0xff]  }
  0x2d   :  { %12172 = vmatprep.subr.bf16.mxu0 %v13139_v3  ;;  %12412 = vmatprep.subr.bf16.mxu1 %v13139_v3 }
  0x30   :  { %12173 = vmatpush3.bf16.msra.mxu0 %v13139_v3  ;;  %12413 = vmatpush3.bf16.msra.mxu1 %v13139_v3  ;;  %v12713_v3 = vld [vmem:[%s17150_s0 + $0x3f8] sm:$0xff]  }
  0x31   :  { %12174 = vmatprep.subr.bf16.mxu0 %v13156_v6  ;;  %12414 = vmatprep.subr.bf16.mxu1 %v13156_v6 }
  0x32   :  { %11711 = vmatmul.mubr.bf16.gmra.mxu0 %v12664_v18  ;;  %11951 = vmatmul.mubr.bf16.gmra.mxu1 %v12665_v19  ;;  %v12728_v18 = vld [vmem:[%s17150_s0 + $0x3c8] sm:$0xff]   ;;  %v12729_v19 = vld [vmem:[%s17150_s0 + $0x438] sm:$0xff]  }
  0x33   :  { %11714 = vmatprep.mubr.bf16.mxu0 %v12666_v20  ;;  %11954 = vmatprep.mubr.bf16.mxu1 %v12667_v21  ;;  %v12730_v20 = vld [vmem:[%s17150_s0 + $0x3d0] sm:$0xff]   ;;  %v12731_v21 = vld [vmem:[%s17150_s0 + $0x440] sm:$0xff]  }
  0x34   :  { %12175 = vmatpush3.bf16.msra.mxu0 %v13156_v6  ;;  %12415 = vmatpush3.bf16.msra.mxu1 %v13156_v6  ;;  %v12716_v6 = vld [vmem:[%s17150_s0 + $0x398] sm:$0xff]  }
  0x35   :  { %12176 = vmatprep.subr.bf16.mxu0 %v13165_v7  ;;  %12416 = vmatprep.subr.bf16.mxu1 %v13165_v7 }
  0x38   :  { %12177 = vmatpush3.bf16.msra.mxu0 %v13165_v7  ;;  %12417 = vmatpush3.bf16.msra.mxu1 %v13165_v7  ;;  %v12717_v7 = vld [vmem:[%s17150_s0 + $0x408] sm:$0xff]  }
  0x39   :  { %12178 = vmatprep.subr.bf16.mxu0 %v13174_v8  ;;  %12418 = vmatprep.subr.bf16.mxu1 %v13174_v8 }
  0x3a   :  { %11715 = vmatmul.mubr.bf16.gmra.mxu0 %v12668_v22  ;;  %11955 = vmatmul.mubr.bf16.gmra.mxu1 %v12669_v23  ;;  %v12732_v22 = vld [vmem:[%s17150_s0 + $0x3d8] sm:$0xff]   ;;  %v12733_v23 = vld [vmem:[%s17150_s0 + $0x448] sm:$0xff]  }
  0x3b   :  { %11718 = vmatprep.mubr.bf16.mxu0 %v12670_v24  ;;  %11958 = vmatprep.mubr.bf16.mxu1 %v12671_v25  ;;  %v12734_v24 = vld [vmem:[%s17150_s0 + $0x3e0] sm:$0xff]   ;;  %v12735_v25 = vld [vmem:[%s17150_s0 + $0x450] sm:$0xff]  }
  0x3c   :  { %12179 = vmatpush3.bf16.msra.mxu0 %v13174_v8  ;;  %12419 = vmatpush3.bf16.msra.mxu1 %v13174_v8  ;;  %v12718_v8 = vld [vmem:[%s17150_s0 + $0x3a0] sm:$0xff]  }
  0x3d   :  { %12180 = vmatprep.subr.bf16.mxu0 %v13183_v9  ;;  %12420 = vmatprep.subr.bf16.mxu1 %v13183_v9 }
  0x40   :  { %12181 = vmatpush3.bf16.msra.mxu0 %v13183_v9  ;;  %12421 = vmatpush3.bf16.msra.mxu1 %v13183_v9  ;;  %v12719_v9 = vld [vmem:[%s17150_s0 + $0x410] sm:$0xff]  }
  0x42   :  { %11719 = vmatmul.mubr.bf16.gmra.mxu0 %v12672_v26  ;;  %11959 = vmatmul.mubr.bf16.gmra.mxu1 %v12673_v27  ;;  %v12736_v26 = vld [vmem:[%s17150_s0 + $0x3e8] sm:$0xff]   ;;  %v12737_v27 = vld [vmem:[%s17150_s0 + $0x458] sm:$0xff]  }
  0x43   :  { %11722 = vmatprep.mubr.bf16.mxu0 %v12674_v28  ;;  %11962 = vmatprep.mubr.bf16.mxu1 %v12675_v29  ;;  %v12738_v28 = vld [vmem:[%s17150_s0 + $0x540] sm:$0xff]   ;;  %v12739_v29 = vld [vmem:[%s17150_s0 + $0x5b0] sm:$0xff]  }
  0x4a   :  { %11723 = vmatmul.mubr.bf16.gmra.mxu0 %v12676_v30  ;;  %11963 = vmatmul.mubr.bf16.gmra.mxu1 %v12677_v31  ;;  %v12740_v30 = vld [vmem:[%s17150_s0 + $0x548] sm:$0xff]   ;;  %v12741_v31 = vld [vmem:[%s17150_s0 + $0x5b8] sm:$0xff]  }
  0x4b   :  { %11726 = vmatprep.mubr.bf16.mxu0 %v12678_v32  ;;  %11966 = vmatprep.mubr.bf16.mxu1 %v12679_v33  ;;  %v12742_v32 = vld [vmem:[%s17150_s0 + $0x550] sm:$0xff]   ;;  %v12743_v33 = vld [vmem:[%s17150_s0 + $0x5c0] sm:$0xff]  }
  0x52   :  { %11727 = vmatmul.mubr.bf16.gmra.mxu0 %v12680_v34  ;;  %11967 = vmatmul.mubr.bf16.gmra.mxu1 %v12681_v35  ;;  %v12744_v34 = vld [vmem:[%s17150_s0 + $0x558] sm:$0xff]   ;;  %v12745_v35 = vld [vmem:[%s17150_s0 + $0x5c8] sm:$0xff]  }
  0x53   :  { %11730 = vmatprep.mubr.bf16.mxu0 %v12682_v36  ;;  %11970 = vmatprep.mubr.bf16.mxu1 %v12683_v37  ;;  %v12746_v36 = vld [vmem:[%s17150_s0 + $0x560] sm:$0xff]   ;;  %v12747_v37 = vld [vmem:[%s17150_s0 + $0x5d0] sm:$0xff]  }
  0x5a   :  { %11731 = vmatmul.mubr.bf16.gmra.mxu0 %v12684_v38  ;;  %11971 = vmatmul.mubr.bf16.gmra.mxu1 %v12685_v39  ;;  %v12748_v38 = vld [vmem:[%s17150_s0 + $0x568] sm:$0xff]   ;;  %v12749_v39 = vld [vmem:[%s17150_s0 + $0x5d8] sm:$0xff]  }
  0x5b   :  { %11734 = vmatprep.mubr.bf16.mxu0 %v12686_v40  ;;  %11974 = vmatprep.mubr.bf16.mxu1 %v12687_v41  ;;  %v12750_v40 = vld [vmem:[%s17150_s0 + $0x570] sm:$0xff]   ;;  %v12751_v41 = vld [vmem:[%s17150_s0 + $0x5e0] sm:$0xff]  }
  0x62   :  { %11735 = vmatmul.mubr.bf16.gmra.mxu0 %v12688_v42  ;;  %11975 = vmatmul.mubr.bf16.gmra.mxu1 %v12689_v43  ;;  %v12752_v42 = vld [vmem:[%s17150_s0 + $0x578] sm:$0xff]   ;;  %v12753_v43 = vld [vmem:[%s17150_s0 + $0x5e8] sm:$0xff]  }
  0x63   :  { %11738 = vmatprep.mubr.bf16.mxu0 %v12690_v44  ;;  %11978 = vmatprep.mubr.bf16.mxu1 %v12691_v45  ;;  %v12754_v44 = vld [vmem:[%s17150_s0 + $0x580] sm:$0xff]   ;;  %v12755_v45 = vld [vmem:[%s17150_s0 + $0x5f0] sm:$0xff]  }
  0x6a   :  { %11739 = vmatmul.mubr.bf16.gmra.mxu0 %v12692_v46  ;;  %11979 = vmatmul.mubr.bf16.gmra.mxu1 %v12693_v47 }
  0x6b   :  { %11742 = vmatprep.mubr.bf16.mxu0 %v12694_v48  ;;  %11982 = vmatprep.mubr.bf16.mxu1 %v12695_v49 }
  0x72   :  { %11743 = vmatmul.mubr.bf16.gmra.mxu0 %v12696_v50  ;;  %11983 = vmatmul.mubr.bf16.gmra.mxu1 %v12697_v51  ;;  %v12756_v51 = vld [vmem:[%s17150_s0 + $0x588] sm:$0xff]  }
  0x73   :  { %11746 = vmatprep.mubr.bf16.mxu0 %v12698_v52  ;;  %11986 = vmatprep.mubr.bf16.mxu1 %v12699_v53  ;;  %v12757_v52 = vld [vmem:[%s17150_s0 + $0x5f8] sm:$0xff]  }
  0x7a   :  { %11747 = vmatmul.mubr.bf16.gmra.mxu0 %v12700_v54  ;;  %11987 = vmatmul.mubr.bf16.gmra.mxu1 %v12701_v55 }
  0x7b   :  { %11750 = vmatprep.mubr.bf16.mxu0 %v12702_v56  ;;  %11990 = vmatprep.mubr.bf16.mxu1 %v12703_v57  ;;  %v12758_v57 = vld [vmem:[%s17150_s0 + $0x590] sm:$0xff]  }
  0x82   :  { %11751 = vmatmul.mubr.bf16.gmra.mxu0 %v12704_v58  ;;  %11991 = vmatmul.mubr.bf16.gmra.mxu1 %v12705_v59  ;;  %v12759_v58 = vld [vmem:[%s17150_s0 + $0x600] sm:$0xff]  }
  0x83   :  { %11754 = vmatprep.mubr.bf16.mxu0 %v12706_v60  ;;  %11994 = vmatprep.mubr.bf16.mxu1 %v12707_v61 }
  0x8a   :  { %11755 = vmatmul.mubr.bf16.gmra.mxu0 %v12708_v62  ;;  %11995 = vmatmul.mubr.bf16.gmra.mxu1 %v12709_v63 }
  0x8b   :  { %11758 = vmatprep.mubr.bf16.mxu0 %v12710_v0  ;;  %11998 = vmatprep.mubr.bf16.mxu1 %v12711_v1  ;;  %v12783_v0 = vld [vmem:[%s17150_s0 + $0x7b0] sm:$0xff]  }
  0x92   :  { %11759 = vmatmul.mubr.bf16.gmra.mxu0 %v12712_v2  ;;  %11999 = vmatmul.mubr.bf16.gmra.mxu1 %v12713_v3  ;;  %v12760_v3 = vld [vmem:[%s17150_s0 + $0x598] sm:$0xff]  }
  0x93   :  { %11762 = vmatprep.mubr.bf16.mxu0 %v12714_v4  ;;  %12002 = vmatprep.mubr.bf16.mxu1 %v12715_v5  ;;  %v12761_v4 = vld [vmem:[%s17150_s0 + $0x608] sm:$0xff]   ;;  %v12780_v5 = vld [vmem:[%s17150_s0 + $0x738] sm:$0xff]  }
  0x9a   :  { %11763 = vmatmul.mubr.bf16.gmra.mxu0 %v12716_v6  ;;  %12003 = vmatmul.mubr.bf16.gmra.mxu1 %v12717_v7 }
  0x9b   :  { %11766 = vmatprep.mubr.bf16.mxu0 %v12718_v8  ;;  %12006 = vmatprep.mubr.bf16.mxu1 %v12719_v9  ;;  %v12762_v9 = vld [vmem:[%s17150_s0 + $0x5a0] sm:$0xff]  }
  0xa2   :  { %11767 = vmatmul.mubr.bf16.gmra.mxu0 %v12720_v10  ;;  %12007 = vmatmul.mubr.bf16.gmra.mxu1 %v12721_v11  ;;  %v12763_v10 = vld [vmem:[%s17150_s0 + $0x610] sm:$0xff]  }
  0xa3   :  { %11770 = vmatprep.mubr.bf16.mxu0 %v12722_v12  ;;  %12010 = vmatprep.mubr.bf16.mxu1 %v12723_v13 }
  0xaa   :  { %11771 = vmatmul.mubr.bf16.gmra.mxu0 %v12724_v14  ;;  %12011 = vmatmul.mubr.bf16.gmra.mxu1 %v12725_v15 }
  0xab   :  { %11774 = vmatprep.mubr.bf16.mxu0 %v12726_v16  ;;  %12014 = vmatprep.mubr.bf16.mxu1 %v12727_v17 }
  0xb2   :  { %11775 = vmatmul.mubr.bf16.gmra.mxu0 %v12728_v18  ;;  %12015 = vmatmul.mubr.bf16.gmra.mxu1 %v12729_v19  ;;  %v12764_v19 = vld [vmem:[%s17150_s0 + $0x5a8] sm:$0xff]  }
  0xb3   :  { %11778 = vmatprep.mubr.bf16.mxu0 %v12730_v20  ;;  %12018 = vmatprep.mubr.bf16.mxu1 %v12731_v21  ;;  %v12765_v20 = vld [vmem:[%s17150_s0 + $0x618] sm:$0xff]  }
  0xba   :  { %11779 = vmatmul.mubr.bf16.gmra.mxu0 %v12732_v22  ;;  %12019 = vmatmul.mubr.bf16.gmra.mxu1 %v12733_v23 }
  0xbb   :  { %11782 = vmatprep.mubr.bf16.mxu0 %v12734_v24  ;;  %12022 = vmatprep.mubr.bf16.mxu1 %v12735_v25  ;;  %v12766_v25 = vld [vmem:[%s17150_s0 + $0x700] sm:$0xff]  }
  0xc2   :  { %11783 = vmatmul.mubr.bf16.gmra.mxu0 %v12736_v26  ;;  %12023 = vmatmul.mubr.bf16.gmra.mxu1 %v12737_v27  ;;  %v12767_v26 = vld [vmem:[%s17150_s0 + $0x770] sm:$0xff]  }
  0xc3   :  { %11786 = vmatprep.mubr.bf16.mxu0 %v12738_v28  ;;  %12026 = vmatprep.mubr.bf16.mxu1 %v12739_v29 }
  0xca   :  { %11787 = vmatmul.mubr.bf16.gmra.mxu0 %v12740_v30  ;;  %12027 = vmatmul.mubr.bf16.gmra.mxu1 %v12741_v31 }
  0xcb   :  { %11790 = vmatprep.mubr.bf16.mxu0 %v12742_v32  ;;  %12030 = vmatprep.mubr.bf16.mxu1 %v12743_v33  ;;  %v12779_v32 = vld [vmem:[%s17150_s0 + $0x7a0] sm:$0xff]  }
  0xd2   :  { %11791 = vmatmul.mubr.bf16.gmra.mxu0 %v12744_v34  ;;  %12031 = vmatmul.mubr.bf16.gmra.mxu1 %v12745_v35  ;;  %v12768_v35 = vld [vmem:[%s17150_s0 + $0x708] sm:$0xff]  }
  0xd3   :  { %11794 = vmatprep.mubr.bf16.mxu0 %v12746_v36  ;;  %12034 = vmatprep.mubr.bf16.mxu1 %v12747_v37  ;;  %v12769_v36 = vld [vmem:[%s17150_s0 + $0x778] sm:$0xff]   ;;  %v12776_v37 = vld [vmem:[%s17150_s0 + $0x728] sm:$0xff]  }
  0xda   :  { %11795 = vmatmul.mubr.bf16.gmra.mxu0 %v12748_v38  ;;  %12035 = vmatmul.mubr.bf16.gmra.mxu1 %v12749_v39 }
  0xdb   :  { %11798 = vmatprep.mubr.bf16.mxu0 %v12750_v40  ;;  %12038 = vmatprep.mubr.bf16.mxu1 %v12751_v41  ;;  %v12770_v41 = vld [vmem:[%s17150_s0 + $0x710] sm:$0xff]  }
  0xe2   :  { %v13515_v46 = vpop.f32.mrf.mxu0  ;;  %11799 = vmatmul.mubr.bf16.gmra.mxu0 %v12752_v42  ;;  %v13517_v47 = vpop.f32.mrf.mxu1  ;;  %12039 = vmatmul.mubr.bf16.gmra.mxu1 %v12753_v43  ;;  %v12771_v42 = vld [vmem:[%s17150_s0 + $0x780] sm:$0xff]  }
  0xe3   :  { %11802 = vmatprep.mubr.bf16.mxu0 %v12754_v44  ;;  %12042 = vmatprep.mubr.bf16.mxu1 %v12755_v45 }
  0xe4   :  { %v13521_v49 = vpop.f32.mrf.mxu0  ;;  %v13523_v50 = vpop.f32.mrf.mxu1 }
  0xe6   :  { %v13533_v54 = vpop.f32.mrf.mxu0  ;;  %v13535_v55 = vpop.f32.mrf.mxu1 }
  0xe8   :  { %v13545_v59 = vpop.f32.mrf.mxu0  ;;  %v13547_v60 = vpop.f32.mrf.mxu1 }
  0xea   :  { %v13551_v62 = vpop.f32.mrf.mxu0  ;;  %11803 = vmatmul.mubr.bf16.gmra.mxu0 %v12756_v51  ;;  %v13553_v63 = vpop.f32.mrf.mxu1  ;;  %12043 = vmatmul.mubr.bf16.gmra.mxu1 %v12757_v52 }
  0xeb   :  { %11806 = vmatprep.mubr.bf16.mxu0 %v12758_v57  ;;  %12046 = vmatprep.mubr.bf16.mxu1 %v12759_v58 }
  0xec   :  { %v13557_v1 = vpop.f32.mrf.mxu0  ;;  %v13559_v2 = vpop.f32.mrf.mxu1 }
  0xee   :  { %v13569_v6 = vpop.f32.mrf.mxu0  ;;  %v13571_v7 = vpop.f32.mrf.mxu1 }
  0xf0   :  { %v13581_v11 = vpop.f32.mrf.mxu0  ;;  %v13583_v12 = vpop.f32.mrf.mxu1 }
  0xf2   :  { %v13587_v14 = vpop.f32.mrf.mxu0  ;;  %11807 = vmatmul.mubr.bf16.gmra.mxu0 %v12760_v3  ;;  %v13589_v15 = vpop.f32.mrf.mxu1  ;;  %12047 = vmatmul.mubr.bf16.gmra.mxu1 %v12761_v4  ;;  %v12772_v4 = vld [vmem:[%s17150_s0 + $0x718] sm:$0xff]  }
  0xf3   :  { %11810 = vmatprep.mubr.bf16.mxu0 %v12762_v9  ;;  %12050 = vmatprep.mubr.bf16.mxu1 %v12763_v10  ;;  %v12773_v9 = vld [vmem:[%s17150_s0 + $0x788] sm:$0xff]  }
  0xf4   :  { %v13593_v17 = vpop.f32.mrf.mxu0  ;;  %v13595_v18 = vpop.f32.mrf.mxu1 }
  0xf6   :  { %v13605_v22 = vpop.f32.mrf.mxu0  ;;  %v13607_v23 = vpop.f32.mrf.mxu1 }
  0xf8   :  { %v13617_v27 = vpop.f32.mrf.mxu0  ;;  %v13619_v28 = vpop.f32.mrf.mxu1 }
  0xfa   :  { %v13623_v30 = vpop.f32.mrf.mxu0  ;;  %11811 = vmatmul.mubr.bf16.gmra.mxu0 %v12764_v19  ;;  %v13625_v31 = vpop.f32.mrf.mxu1  ;;  %12051 = vmatmul.mubr.bf16.gmra.mxu1 %v12765_v20 }
  0xfb   :  { %11814 = vmatprep.mubr.bf16.mxu0 %v12766_v25  ;;  %12054 = vmatprep.mubr.bf16.mxu1 %v12767_v26  ;;  %v12774_v26 = vld [vmem:[%s17150_s0 + $0x720] sm:$0xff]  }
  0xfc   :  { %v13629_v33 = vpop.f32.mrf.mxu0  ;;  %v13631_v34 = vpop.f32.mrf.mxu1 }
  0xfe   :  { %v13641_v38 = vpop.f32.mrf.mxu0  ;;  %v13643_v39 = vpop.f32.mrf.mxu1 }
 0x100   :  { %v13653_v43 = vpop.f32.mrf.mxu0  ;;  %v13655_v44 = vpop.f32.mrf.mxu1 }
 0x102   :  { %v13659_v51 = vpop.f32.mrf.mxu0  ;;  %11815 = vmatmul.mubr.bf16.gmra.mxu0 %v12768_v35  ;;  %v13661_v52 = vpop.f32.mrf.mxu1  ;;  %12055 = vmatmul.mubr.bf16.gmra.mxu1 %v12769_v36  ;;  %v12775_v35 = vld [vmem:[%s17150_s0 + $0x790] sm:$0xff]  }
 0x103   :  { %11818 = vmatprep.mubr.bf16.mxu0 %v12770_v41  ;;  %12058 = vmatprep.mubr.bf16.mxu1 %v12771_v42 }
 0x104   :  { %v13665_v58 = vpop.f32.mrf.mxu0  ;;  %v13667_v3 = vpop.f32.mrf.mxu1 }
 0x106   :  { %v13677_v19 = vpop.f32.mrf.mxu0  ;;  %v13679_v20 = vpop.f32.mrf.mxu1 }
 0x108   :  { %v13689_v36 = vpop.f32.mrf.mxu0  ;;  %v13691_v41 = vpop.f32.mrf.mxu1 }
 0x10a   :  { %v13695_v10 = vpop.f32.mrf.mxu0  ;;  %11819 = vmatmul.mubr.bf16.gmra.mxu0 %v12772_v4  ;;  %v13697_v57 = vpop.f32.mrf.mxu1  ;;  %12059 = vmatmul.mubr.bf16.gmra.mxu1 %v12773_v9  ;;  %v12777_v4 = vld [vmem:[%s17150_s0 + $0x798] sm:$0xff]  }
 0x10b   :  { %11822 = vmatprep.mubr.bf16.mxu0 %v12774_v26  ;;  %12062 = vmatprep.mubr.bf16.mxu1 %v12775_v35  ;;  %v12778_v35 = vld [vmem:[%s17150_s0 + $0x730] sm:$0xff]  }
 0x10c   :  { %v13701_v45 = vpop.f32.mrf.mxu0  ;;  %v13703_v40 = vpop.f32.mrf.mxu1 }
 0x10e   :  { %v13713_v42 = vpop.f32.mrf.mxu0  ;;  %v13715_v25 = vpop.f32.mrf.mxu1 }
 0x110   :  { %v13725_v29 = vpop.f32.mrf.mxu0  ;;  %v13727_v24 = vpop.f32.mrf.mxu1 }
 0x111   :  { %17555 = vst [vmem:[#allocation2_spill] sm:$0xff] %v13725_v29  ;;  %17556 = vst [vmem:[#allocation3_spill] sm:$0xff] %v13727_v24 }
 0x112   :  { %v13731_v21 = vpop.f32.mrf.mxu0  ;;  %11823 = vmatmul.mubr.bf16.gmra.mxu0 %v12776_v37  ;;  %v13733_v16 = vpop.f32.mrf.mxu1  ;;  %12063 = vmatmul.mubr.bf16.gmra.mxu1 %v12777_v4  ;;  %v12781_v37 = vld [vmem:[%s17150_s0 + $0x7a8] sm:$0xff]  }
 0x113   :  { %17557 = vst [vmem:[#allocation4_spill] sm:$0xff] %v13731_v21  ;;  %17558 = vst [vmem:[#allocation5_spill] sm:$0xff] %v13733_v16  ;;  %11826 = vmatprep.mubr.bf16.mxu0 %v12778_v35  ;;  %12066 = vmatprep.mubr.bf16.mxu1 %v12779_v32  ;;  %v12782_v35 = vld [vmem:[%s17150_s0 + $0x740] sm:$0xff]  }
 0x114   :  { %v13737_v13 = vpop.f32.mrf.mxu0  ;;  %v13739_v8 = vpop.f32.mrf.mxu1  ;;  %v15537_v21 = vld [vmem:[%s17151_s2] ss:$0 sm:$0xff] }
 0x115   :  { %17559 = vst [vmem:[#allocation6_spill] sm:$0xff] %v13737_v13  ;;  %17560 = vst [vmem:[#allocation7_spill] sm:$0xff] %v13739_v8  ;;  %v12784_v8 = vld [vmem:[%s17150_s0 + $0x748] sm:$0xff]  }
 0x116   :  { %v13749_v9 = vpop.f32.mrf.mxu0  ;;  %v13751_v26 = vpop.f32.mrf.mxu1 }
 0x117   :  { %17561 = vst [vmem:[#allocation8_spill] sm:$0xff] %v13749_v9  ;;  %17562 = vst [vmem:[#allocation9_spill] sm:$0xff] %v13751_v26 }
 0x118   :  { %v13761_v61 = vpop.f32.mrf.mxu0  ;;  %v13763_v56 = vpop.f32.mrf.mxu1 }
 0x119   :  { %17563 = vst [vmem:[#allocation10_spill] sm:$0xff] %v13761_v61  ;;  %17564 = vst [vmem:[#allocation11_spill] sm:$0xff] %v13763_v56  ;;  %v12788_v61 = vld [vmem:[%s17150_s0 + $0x758] sm:$0xff]  }
 0x11a   :  { %v13767_v53 = vpop.f32.mrf.mxu0  ;;  %11827 = vmatmul.mubr.bf16.gmra.mxu0 %v12780_v5  ;;  %v13769_v48 = vpop.f32.mrf.mxu1  ;;  %12067 = vmatmul.mubr.bf16.gmra.mxu1 %v12781_v37  ;;  %v12785_v5 = vld [vmem:[%s17150_s0 + $0x7b8] sm:$0xff]  }
 0x11b   :  { %17565 = vst [vmem:[#allocation12_spill] sm:$0xff] %v13767_v53  ;;  %17566 = vst [vmem:[#allocation13_spill] sm:$0xff] %v13769_v48  ;;  %11830 = vmatprep.mubr.bf16.mxu0 %v12782_v35  ;;  %12070 = vmatprep.mubr.bf16.mxu1 %v12783_v0  ;;  %v12786_v35 = vld [vmem:[%s17150_s0 + $0x750] sm:$0xff]   ;;  %v12787_v48 = vld [vmem:[%s17150_s0 + $0x7c0] sm:$0xff]  }
 0x11c   :  { %v13773_v26 = vpop.f32.mrf.mxu0  ;;  %v13775_v9 = vpop.f32.mrf.mxu1 }
 0x11d   :  { %17567 = vst [vmem:[#allocation14_spill] sm:$0xff] %v13773_v26  ;;  %17568 = vst [vmem:[#allocation15_spill] sm:$0xff] %v13775_v9 }
 0x11e   :  { %v13785_v4 = vpop.f32.mrf.mxu0  ;;  %v13787_v32 = vpop.f32.mrf.mxu1 }
 0x11f   :  { %17569 = vst [vmem:[#allocation16_spill] sm:$0xff] %v13785_v4  ;;  %17570 = vst [vmem:[#allocation17_spill] sm:$0xff] %v13787_v32 }
 0x120   :  { %v13797_v53 = vpop.f32.mrf.mxu0  ;;  %v13799_v56 = vpop.f32.mrf.mxu1 }
 0x121   :  { %17571 = vst [vmem:[#allocation18_spill] sm:$0xff] %v13797_v53  ;;  %17572 = vst [vmem:[#allocation19_spill] sm:$0xff] %v13799_v56  ;;  %v12792_v53 = vld [vmem:[%s17150_s0 + $0x768] sm:$0xff]  }
 0x122   :  { %v13803_v9 = vpop.f32.mrf.mxu0  ;;  %11831 = vmatmul.mubr.bf16.gmra.mxu0 %v12784_v8  ;;  %v13805_v26 = vpop.f32.mrf.mxu1  ;;  %12071 = vmatmul.mubr.bf16.gmra.mxu1 %v12785_v5  ;;  %v12789_v8 = vld [vmem:[%s17150_s0 + $0x7c8] sm:$0xff]  }
 0x123   :  { %17573 = vst [vmem:[#allocation20_spill] sm:$0xff] %v13803_v9  ;;  %17574 = vst [vmem:[#allocation21_spill] sm:$0xff] %v13805_v26  ;;  %11834 = vmatprep.mubr.bf16.mxu0 %v12786_v35  ;;  %12074 = vmatprep.mubr.bf16.mxu1 %v12787_v48  ;;  %v12790_v35 = vld [vmem:[%s17150_s0 + $0x760] sm:$0xff]   ;;  %v12791_v26 = vld [vmem:[%s17150_s0 + $0x7d0] sm:$0xff]  }
 0x124   :  { %v13809_v32 = vpop.f32.mrf.mxu0  ;;  %v13811_v4 = vpop.f32.mrf.mxu1 }
 0x125   :  { %17575 = vst [vmem:[#allocation22_spill] sm:$0xff] %v13809_v32  ;;  %17576 = vst [vmem:[#allocation23_spill] sm:$0xff] %v13811_v4 }
 0x126   :  { %v13821_v37 = vpop.f32.mrf.mxu0  ;;  %v13823_v0 = vpop.f32.mrf.mxu1 }
 0x127   :  { %17577 = vst [vmem:[#allocation24_spill] sm:$0xff] %v13821_v37  ;;  %17578 = vst [vmem:[#allocation25_spill] sm:$0xff] %v13823_v0 }
 0x128   :  { %v13833_v9 = vpop.f32.mrf.mxu0  ;;  %v13835_v56 = vpop.f32.mrf.mxu1 }
 0x129   :  { %17579 = vst [vmem:[#allocation26_spill] sm:$0xff] %v13833_v9  ;;  %17580 = vst [vmem:[#allocation27_spill] sm:$0xff] %v13835_v56  ;;  %v12796_v9 = vld [vmem:[%s17150_s0 + $0x8c8] sm:$0xff]  }
 0x12a   :  { %v13839_v4 = vpop.f32.mrf.mxu0  ;;  %11835 = vmatmul.mubr.bf16.gmra.mxu0 %v12788_v61  ;;  %v13841_v32 = vpop.f32.mrf.mxu1  ;;  %12075 = vmatmul.mubr.bf16.gmra.mxu1 %v12789_v8  ;;  %v12793_v61 = vld [vmem:[%s17150_s0 + $0x7d8] sm:$0xff]  }
 0x12b   :  { %17581 = vst [vmem:[#allocation28_spill] sm:$0xff] %v13839_v4  ;;  %17582 = vst [vmem:[#allocation29_spill] sm:$0xff] %v13841_v32  ;;  %11838 = vmatprep.mubr.bf16.mxu0 %v12790_v35  ;;  %12078 = vmatprep.mubr.bf16.mxu1 %v12791_v26  ;;  %v12794_v35 = vld [vmem:[%s17150_s0 + $0x8c0] sm:$0xff]   ;;  %v12795_v32 = vld [vmem:[%s17150_s0 + $0x930] sm:$0xff]  }
 0x12c   :  { %v13845_v0 = vpop.f32.mrf.mxu0  ;;  %v13847_v37 = vpop.f32.mrf.mxu1 }
 0x12d   :  { %17583 = vst [vmem:[#allocation30_spill] sm:$0xff] %v13845_v0  ;;  %17584 = vst [vmem:[#allocation31_spill] sm:$0xff] %v13847_v37 }
 0x12e   :  { %v13857_v5 = vpop.f32.mrf.mxu0  ;;  %v13859_v48 = vpop.f32.mrf.mxu1 }
 0x12f   :  { %17585 = vst [vmem:[#allocation32_spill] sm:$0xff] %v13857_v5  ;;  %17586 = vst [vmem:[#allocation33_spill] sm:$0xff] %v13859_v48 }
 0x130   :  { %v13869_v4 = vpop.f32.mrf.mxu0  ;;  %v13871_v56 = vpop.f32.mrf.mxu1 }
 0x131   :  { %17587 = vst [vmem:[#allocation34_spill] sm:$0xff] %v13869_v4  ;;  %17588 = vst [vmem:[#allocation35_spill] sm:$0xff] %v13871_v56  ;;  %v12800_v4 = vld [vmem:[%s17150_s0 + $0x8d8] sm:$0xff]  }
 0x132   :  { %v13875_v37 = vpop.f32.mrf.mxu0  ;;  %11839 = vmatmul.mubr.bf16.gmra.mxu0 %v12792_v53  ;;  %v13877_v0 = vpop.f32.mrf.mxu1  ;;  %12079 = vmatmul.mubr.bf16.gmra.mxu1 %v12793_v61  ;;  %v12797_v53 = vld [vmem:[%s17150_s0 + $0x938] sm:$0xff]  }
 0x133   :  { %17589 = vst [vmem:[#allocation36_spill] sm:$0xff] %v13875_v37  ;;  %17590 = vst [vmem:[#allocation37_spill] sm:$0xff] %v13877_v0  ;;  %11842 = vmatprep.mubr.bf16.mxu0 %v12794_v35  ;;  %12082 = vmatprep.mubr.bf16.mxu1 %v12795_v32  ;;  %v12798_v35 = vld [vmem:[%s17150_s0 + $0x8d0] sm:$0xff]   ;;  %v12799_v0 = vld [vmem:[%s17150_s0 + $0x940] sm:$0xff]  }
 0x134   :  { %v13881_v48 = vpop.f32.mrf.mxu0  ;;  %v13883_v5 = vpop.f32.mrf.mxu1 }
 0x135   :  { %17591 = vst [vmem:[#allocation38_spill] sm:$0xff] %v13881_v48  ;;  %17592 = vst [vmem:[#allocation39_spill] sm:$0xff] %v13883_v5 }
 0x136   :  { %v13893_v8 = vpop.f32.mrf.mxu0  ;;  %v13895_v26 = vpop.f32.mrf.mxu1 }
 0x137   :  { %17593 = vst [vmem:[#allocation40_spill] sm:$0xff] %v13893_v8  ;;  %17594 = vst [vmem:[#allocation41_spill] sm:$0xff] %v13895_v26 }
 0x138   :  { %v13905_v37 = vpop.f32.mrf.mxu0  ;;  %v13907_v56 = vpop.f32.mrf.mxu1 }
 0x139   :  { %17595 = vst [vmem:[#allocation42_spill] sm:$0xff] %v13905_v37  ;;  %17596 = vst [vmem:[#allocation43_spill] sm:$0xff] %v13907_v56  ;;  %v12804_v37 = vld [vmem:[%s17150_s0 + $0x8e8] sm:$0xff]  }
 0x13a   :  { %v13911_v5 = vpop.f32.mrf.mxu0  ;;  %11843 = vmatmul.mubr.bf16.gmra.mxu0 %v12796_v9  ;;  %v13913_v48 = vpop.f32.mrf.mxu1  ;;  %12083 = vmatmul.mubr.bf16.gmra.mxu1 %v12797_v53  ;;  %v12801_v9 = vld [vmem:[%s17150_s0 + $0x948] sm:$0xff]  }
 0x13b   :  { %17597 = vst [vmem:[#allocation44_spill] sm:$0xff] %v13911_v5  ;;  %17598 = vst [vmem:[#allocation45_spill] sm:$0xff] %v13913_v48  ;;  %11846 = vmatprep.mubr.bf16.mxu0 %v12798_v35  ;;  %12086 = vmatprep.mubr.bf16.mxu1 %v12799_v0  ;;  %v12802_v35 = vld [vmem:[%s17150_s0 + $0x8e0] sm:$0xff]   ;;  %v12803_v48 = vld [vmem:[%s17150_s0 + $0x950] sm:$0xff]  }
 0x13c   :  { %v13917_v26 = vpop.f32.mrf.mxu0  ;;  %v13919_v8 = vpop.f32.mrf.mxu1 }
 0x13d   :  { %17599 = vst [vmem:[#allocation46_spill] sm:$0xff] %v13917_v26  ;;  %17600 = vst [vmem:[#allocation47_spill] sm:$0xff] %v13919_v8 }
 0x13e   :  { %v13929_v61 = vpop.f32.mrf.mxu0  ;;  %v13931_v32 = vpop.f32.mrf.mxu1 }
 0x13f   :  { %17601 = vst [vmem:[#allocation48_spill] sm:$0xff] %v13929_v61  ;;  %17602 = vst [vmem:[#allocation49_spill] sm:$0xff] %v13931_v32 }
 0x140   :  { %v13941_v5 = vpop.f32.mrf.mxu0  ;;  %v13943_v56 = vpop.f32.mrf.mxu1 }
 0x141   :  { %17603 = vst [vmem:[#allocation50_spill] sm:$0xff] %v13941_v5  ;;  %17604 = vst [vmem:[#allocation51_spill] sm:$0xff] %v13943_v56  ;;  %v12808_v5 = vld [vmem:[%s17150_s0 + $0x8f8] sm:$0xff]  }
 0x142   :  { %v13947_v8 = vpop.f32.mrf.mxu0  ;;  %11847 = vmatmul.mubr.bf16.gmra.mxu0 %v12800_v4  ;;  %v13949_v26 = vpop.f32.mrf.mxu1  ;;  %12087 = vmatmul.mubr.bf16.gmra.mxu1 %v12801_v9  ;;  %v12805_v4 = vld [vmem:[%s17150_s0 + $0x958] sm:$0xff]  }
 0x143   :  { %17605 = vst [vmem:[#allocation52_spill] sm:$0xff] %v13947_v8  ;;  %17606 = vst [vmem:[#allocation53_spill] sm:$0xff] %v13949_v26  ;;  %11850 = vmatprep.mubr.bf16.mxu0 %v12802_v35  ;;  %12090 = vmatprep.mubr.bf16.mxu1 %v12803_v48  ;;  %v12806_v35 = vld [vmem:[%s17150_s0 + $0x8f0] sm:$0xff]   ;;  %v12807_v26 = vld [vmem:[%s17150_s0 + $0x960] sm:$0xff]  }
 0x144   :  { %v13953_v32 = vpop.f32.mrf.mxu0  ;;  %v13955_v61 = vpop.f32.mrf.mxu1 }
 0x145   :  { %17607 = vst [vmem:[#allocation54_spill] sm:$0xff] %v13953_v32  ;;  %17608 = vst [vmem:[#allocation55_spill] sm:$0xff] %v13955_v61 }
 0x146   :  { %v13965_v53 = vpop.f32.mrf.mxu0  ;;  %v13967_v0 = vpop.f32.mrf.mxu1 }
 0x147   :  { %17609 = vst [vmem:[#allocation56_spill] sm:$0xff] %v13965_v53  ;;  %17610 = vst [vmem:[#allocation57_spill] sm:$0xff] %v13967_v0 }
 0x148   :  { %v13977_v8 = vpop.f32.mrf.mxu0  ;;  %v13979_v56 = vpop.f32.mrf.mxu1 }
 0x149   :  { %17611 = vst [vmem:[#allocation58_spill] sm:$0xff] %v13977_v8  ;;  %17612 = vst [vmem:[#allocation59_spill] sm:$0xff] %v13979_v56  ;;  %v12812_v8 = vld [vmem:[%s17150_s0 + $0x908] sm:$0xff]  }
 0x14a   :  { %v13983_v61 = vpop.f32.mrf.mxu0  ;;  %11851 = vmatmul.mubr.bf16.gmra.mxu0 %v12804_v37  ;;  %v13985_v32 = vpop.f32.mrf.mxu1  ;;  %12091 = vmatmul.mubr.bf16.gmra.mxu1 %v12805_v4  ;;  %v12809_v37 = vld [vmem:[%s17150_s0 + $0x968] sm:$0xff]  }
 0x14b   :  { %17613 = vst [vmem:[#allocation60_spill] sm:$0xff] %v13983_v61  ;;  %17614 = vst [vmem:[#allocation61_spill] sm:$0xff] %v13985_v32  ;;  %11854 = vmatprep.mubr.bf16.mxu0 %v12806_v35  ;;  %12094 = vmatprep.mubr.bf16.mxu1 %v12807_v26  ;;  %v12810_v35 = vld [vmem:[%s17150_s0 + $0x900] sm:$0xff]   ;;  %v12811_v32 = vld [vmem:[%s17150_s0 + $0x970] sm:$0xff]  }
 0x14c   :  { %v13989_v0 = vpop.f32.mrf.mxu0  ;;  %v13991_v53 = vpop.f32.mrf.mxu1 }
 0x14d   :  { %17615 = vst [vmem:[#allocation62_spill] sm:$0xff] %v13989_v0  ;;  %17616 = vst [vmem:[#allocation63_spill] sm:$0xff] %v13991_v53 }
 0x14e   :  { %v14001_v9 = vpop.f32.mrf.mxu0  ;;  %v14003_v48 = vpop.f32.mrf.mxu1 }
 0x14f   :  { %17617 = vst [vmem:[#allocation64_spill] sm:$0xff] %v14001_v9  ;;  %17618 = vst [vmem:[#allocation65_spill] sm:$0xff] %v14003_v48 }
 0x150   :  { %v14013_v61 = vpop.f32.mrf.mxu0  ;;  %v14015_v56 = vpop.f32.mrf.mxu1 }
 0x151   :  { %17619 = vst [vmem:[#allocation66_spill] sm:$0xff] %v14013_v61  ;;  %17620 = vst [vmem:[#allocation67_spill] sm:$0xff] %v14015_v56  ;;  %v12816_v61 = vld [vmem:[%s17150_s0 + $0x918] sm:$0xff]  }
 0x152   :  { %v14019_v53 = vpop.f32.mrf.mxu0  ;;  %11855 = vmatmul.mubr.bf16.gmra.mxu0 %v12808_v5  ;;  %v14021_v0 = vpop.f32.mrf.mxu1  ;;  %12095 = vmatmul.mubr.bf16.gmra.mxu1 %v12809_v37  ;;  %v12813_v5 = vld [vmem:[%s17150_s0 + $0x978] sm:$0xff]  }
 0x153   :  { %17621 = vst [vmem:[#allocation68_spill] sm:$0xff] %v14019_v53  ;;  %17622 = vst [vmem:[#allocation69_spill] sm:$0xff] %v14021_v0  ;;  %11858 = vmatprep.mubr.bf16.mxu0 %v12810_v35  ;;  %12098 = vmatprep.mubr.bf16.mxu1 %v12811_v32  ;;  %v12814_v35 = vld [vmem:[%s17150_s0 + $0x910] sm:$0xff]   ;;  %v12815_v0 = vld [vmem:[%s17150_s0 + $0x980] sm:$0xff]  }
 0x154   :  { %v14025_v48 = vpop.f32.mrf.mxu0  ;;  %v14027_v9 = vpop.f32.mrf.mxu1 }
 0x155   :  { %17623 = vst [vmem:[#allocation70_spill] sm:$0xff] %v14025_v48  ;;  %17624 = vst [vmem:[#allocation71_spill] sm:$0xff] %v14027_v9 }
 0x156   :  { %v14037_v4 = vpop.f32.mrf.mxu0  ;;  %v14039_v26 = vpop.f32.mrf.mxu1 }
 0x157   :  { %17625 = vst [vmem:[#allocation72_spill] sm:$0xff] %v14037_v4  ;;  %17626 = vst [vmem:[#allocation73_spill] sm:$0xff] %v14039_v26 }
 0x158   :  { %v14049_v53 = vpop.f32.mrf.mxu0  ;;  %v14051_v56 = vpop.f32.mrf.mxu1 }
 0x159   :  { %17627 = vst [vmem:[#allocation74_spill] sm:$0xff] %v14049_v53  ;;  %17628 = vst [vmem:[#allocation75_spill] sm:$0xff] %v14051_v56  ;;  %v12820_v53 = vld [vmem:[%s17150_s0 + $0x928] sm:$0xff]  }
 0x15a   :  { %v14055_v9 = vpop.f32.mrf.mxu0  ;;  %11859 = vmatmul.mubr.bf16.gmra.mxu0 %v12812_v8  ;;  %v14057_v48 = vpop.f32.mrf.mxu1  ;;  %12099 = vmatmul.mubr.bf16.gmra.mxu1 %v12813_v5  ;;  %v12817_v8 = vld [vmem:[%s17150_s0 + $0x988] sm:$0xff]  }
 0x15b   :  { %17629 = vst [vmem:[#allocation76_spill] sm:$0xff] %v14055_v9  ;;  %17630 = vst [vmem:[#allocation77_spill] sm:$0xff] %v14057_v48  ;;  %11862 = vmatprep.mubr.bf16.mxu0 %v12814_v35  ;;  %12102 = vmatprep.mubr.bf16.mxu1 %v12815_v0  ;;  %v12818_v35 = vld [vmem:[%s17150_s0 + $0x920] sm:$0xff]   ;;  %v12819_v48 = vld [vmem:[%s17150_s0 + $0x990] sm:$0xff]  }
 0x15c   :  { %v14061_v26 = vpop.f32.mrf.mxu0  ;;  %v14063_v4 = vpop.f32.mrf.mxu1 }
 0x15d   :  { %17631 = vst [vmem:[#allocation78_spill] sm:$0xff] %v14061_v26  ;;  %17632 = vst [vmem:[#allocation79_spill] sm:$0xff] %v14063_v4 }
 0x15e   :  { %v14073_v37 = vpop.f32.mrf.mxu0  ;;  %v14075_v32 = vpop.f32.mrf.mxu1 }
 0x15f   :  { %17633 = vst [vmem:[#allocation80_spill] sm:$0xff] %v14073_v37  ;;  %17634 = vst [vmem:[#allocation81_spill] sm:$0xff] %v14075_v32 }
 0x160   :  { %v14085_v9 = vpop.f32.mrf.mxu0  ;;  %v14087_v56 = vpop.f32.mrf.mxu1 }
 0x161   :  { %17635 = vst [vmem:[#allocation82_spill] sm:$0xff] %v14085_v9  ;;  %17636 = vst [vmem:[#allocation83_spill] sm:$0xff] %v14087_v56  ;;  %v12824_v9 = vld [vmem:[%s17150_s0 + $0xa88] sm:$0xff]  }
 0x162   :  { %v14091_v4 = vpop.f32.mrf.mxu0  ;;  %11863 = vmatmul.mubr.bf16.gmra.mxu0 %v12816_v61  ;;  %v14093_v26 = vpop.f32.mrf.mxu1  ;;  %12103 = vmatmul.mubr.bf16.gmra.mxu1 %v12817_v8  ;;  %v12821_v61 = vld [vmem:[%s17150_s0 + $0x998] sm:$0xff]  }
 0x163   :  { %17637 = vst [vmem:[#allocation84_spill] sm:$0xff] %v14091_v4  ;;  %17638 = vst [vmem:[#allocation85_spill] sm:$0xff] %v14093_v26  ;;  %11866 = vmatprep.mubr.bf16.mxu0 %v12818_v35  ;;  %12106 = vmatprep.mubr.bf16.mxu1 %v12819_v48  ;;  %v12822_v35 = vld [vmem:[%s17150_s0 + $0xa80] sm:$0xff]   ;;  %v12823_v26 = vld [vmem:[%s17150_s0 + $0xaf0] sm:$0xff]  }
 0x164   :  { %v14097_v32 = vpop.f32.mrf.mxu0  ;;  %v14099_v37 = vpop.f32.mrf.mxu1 }
 0x165   :  { %17639 = vst [vmem:[#allocation86_spill] sm:$0xff] %v14097_v32  ;;  %17640 = vst [vmem:[#allocation87_spill] sm:$0xff] %v14099_v37 }
 0x166   :  { %v14109_v5 = vpop.f32.mrf.mxu0  ;;  %v14111_v0 = vpop.f32.mrf.mxu1 }
 0x167   :  { %17641 = vst [vmem:[#allocation88_spill] sm:$0xff] %v14109_v5  ;;  %17642 = vst [vmem:[#allocation89_spill] sm:$0xff] %v14111_v0 }
 0x168   :  { %v14121_v4 = vpop.f32.mrf.mxu0  ;;  %v14123_v56 = vpop.f32.mrf.mxu1 }
 0x169   :  { %17643 = vst [vmem:[#allocation90_spill] sm:$0xff] %v14121_v4  ;;  %17644 = vst [vmem:[#allocation91_spill] sm:$0xff] %v14123_v56  ;;  %v12828_v4 = vld [vmem:[%s17150_s0 + $0xa98] sm:$0xff]  }
 0x16a   :  { %v14127_v37 = vpop.f32.mrf.mxu0  ;;  %11867 = vmatmul.mubr.bf16.gmra.mxu0 %v12820_v53  ;;  %v14129_v32 = vpop.f32.mrf.mxu1  ;;  %12107 = vmatmul.mubr.bf16.gmra.mxu1 %v12821_v61  ;;  %v12825_v53 = vld [vmem:[%s17150_s0 + $0xaf8] sm:$0xff]  }
 0x16b   :  { %17645 = vst [vmem:[#allocation92_spill] sm:$0xff] %v14127_v37  ;;  %17646 = vst [vmem:[#allocation93_spill] sm:$0xff] %v14129_v32  ;;  %11870 = vmatprep.mubr.bf16.mxu0 %v12822_v35  ;;  %12110 = vmatprep.mubr.bf16.mxu1 %v12823_v26  ;;  %v12826_v35 = vld [vmem:[%s17150_s0 + $0xa90] sm:$0xff]   ;;  %v12827_v32 = vld [vmem:[%s17150_s0 + $0xb00] sm:$0xff]  }
 0x16c   :  { %v14133_v0 = vpop.f32.mrf.mxu0  ;;  %v14135_v5 = vpop.f32.mrf.mxu1 }
 0x16d   :  { %17647 = vst [vmem:[#allocation94_spill] sm:$0xff] %v14133_v0  ;;  %17648 = vst [vmem:[#allocation95_spill] sm:$0xff] %v14135_v5 }
 0x16e   :  { %v14145_v8 = vpop.f32.mrf.mxu0  ;;  %v14147_v48 = vpop.f32.mrf.mxu1 }
 0x16f   :  { %17649 = vst [vmem:[#allocation96_spill] sm:$0xff] %v14145_v8  ;;  %17650 = vst [vmem:[#allocation97_spill] sm:$0xff] %v14147_v48 }
 0x170   :  { %v14157_v37 = vpop.f32.mrf.mxu0  ;;  %v14159_v56 = vpop.f32.mrf.mxu1 }
 0x171   :  { %17651 = vst [vmem:[#allocation98_spill] sm:$0xff] %v14157_v37  ;;  %17652 = vst [vmem:[#allocation99_spill] sm:$0xff] %v14159_v56  ;;  %v12832_v37 = vld [vmem:[%s17150_s0 + $0xaa8] sm:$0xff]  }
 0x172   :  { %v14163_v5 = vpop.f32.mrf.mxu0  ;;  %11871 = vmatmul.mubr.bf16.gmra.mxu0 %v12824_v9  ;;  %v14165_v0 = vpop.f32.mrf.mxu1  ;;  %12111 = vmatmul.mubr.bf16.gmra.mxu1 %v12825_v53  ;;  %v12829_v9 = vld [vmem:[%s17150_s0 + $0xb08] sm:$0xff]  }
 0x173   :  { %17653 = vst [vmem:[#allocation100_spill] sm:$0xff] %v14163_v5  ;;  %17654 = vst [vmem:[#allocation101_spill] sm:$0xff] %v14165_v0  ;;  %11874 = vmatprep.mubr.bf16.mxu0 %v12826_v35  ;;  %12114 = vmatprep.mubr.bf16.mxu1 %v12827_v32  ;;  %v12830_v35 = vld [vmem:[%s17150_s0 + $0xaa0] sm:$0xff]   ;;  %v12831_v0 = vld [vmem:[%s17150_s0 + $0xb10] sm:$0xff]  }
 0x174   :  { %v14169_v48 = vpop.f32.mrf.mxu0  ;;  %v14171_v8 = vpop.f32.mrf.mxu1 }
 0x175   :  { %17655 = vst [vmem:[#allocation102_spill] sm:$0xff] %v14169_v48  ;;  %17656 = vst [vmem:[#allocation103_spill] sm:$0xff] %v14171_v8 }
 0x176   :  { %v14181_v61 = vpop.f32.mrf.mxu0  ;;  %v14183_v26 = vpop.f32.mrf.mxu1 }
 0x177   :  { %17657 = vst [vmem:[#allocation104_spill] sm:$0xff] %v14181_v61  ;;  %17658 = vst [vmem:[#allocation105_spill] sm:$0xff] %v14183_v26 }
 0x178   :  { %v14193_v5 = vpop.f32.mrf.mxu0  ;;  %v14195_v56 = vpop.f32.mrf.mxu1 }
 0x179   :  { %17659 = vst [vmem:[#allocation106_spill] sm:$0xff] %v14193_v5  ;;  %17660 = vst [vmem:[#allocation107_spill] sm:$0xff] %v14195_v56  ;;  %v12839_v5 = vld [vmem:[%s17150_s0 + $0xb30] sm:$0xff]  }
 0x17a   :  { %v14199_v8 = vpop.f32.mrf.mxu0  ;;  %11875 = vmatmul.mubr.bf16.gmra.mxu0 %v12828_v4  ;;  %v14201_v48 = vpop.f32.mrf.mxu1  ;;  %12115 = vmatmul.mubr.bf16.gmra.mxu1 %v12829_v9  ;;  %v12833_v4 = vld [vmem:[%s17150_s0 + $0xb18] sm:$0xff]  }
 0x17b   :  { %17661 = vst [vmem:[#allocation108_spill] sm:$0xff] %v14199_v8  ;;  %17662 = vst [vmem:[#allocation109_spill] sm:$0xff] %v14201_v48  ;;  %11878 = vmatprep.mubr.bf16.mxu0 %v12830_v35  ;;  %12118 = vmatprep.mubr.bf16.mxu1 %v12831_v0  ;;  %v12834_v35 = vld [vmem:[%s17150_s0 + $0xab0] sm:$0xff]   ;;  %v12835_v48 = vld [vmem:[%s17150_s0 + $0xb20] sm:$0xff]  }
 0x17c   :  { %v14205_v26 = vpop.f32.mrf.mxu0  ;;  %v14207_v61 = vpop.f32.mrf.mxu1 }
 0x17d   :  { %17663 = vst [vmem:[#allocation110_spill] sm:$0xff] %v14205_v26  ;;  %17664 = vst [vmem:[#allocation111_spill] sm:$0xff] %v14207_v61 }
 0x17e   :  { %v14217_v53 = vpop.f32.mrf.mxu0  ;;  %v14219_v32 = vpop.f32.mrf.mxu1 }
 0x17f   :  { %17665 = vst [vmem:[#allocation112_spill] sm:$0xff] %v14217_v53  ;;  %17666 = vst [vmem:[#allocation113_spill] sm:$0xff] %v14219_v32 }
 0x180   :  { %v14229_v8 = vpop.f32.mrf.mxu0  ;;  %v14231_v56 = vpop.f32.mrf.mxu1 }
 0x181   :  { %17667 = vst [vmem:[#allocation114_spill] sm:$0xff] %v14229_v8  ;;  %17668 = vst [vmem:[#allocation115_spill] sm:$0xff] %v14231_v56  ;;  %v12843_v56 = vld [vmem:[%s17150_s0 + $0xb40] sm:$0xff]  }
 0x182   :  { %v14235_v61 = vpop.f32.mrf.mxu0  ;;  %11879 = vmatmul.mubr.bf16.gmra.mxu0 %v12832_v37  ;;  %v14237_v26 = vpop.f32.mrf.mxu1  ;;  %12119 = vmatmul.mubr.bf16.gmra.mxu1 %v12833_v4  ;;  %v12836_v37 = vld [vmem:[%s17150_s0 + $0xab8] sm:$0xff]   ;;  %v12837_v4 = vld [vmem:[%s17150_s0 + $0xb28] sm:$0xff]  }
 0x183   :  { %17669 = vst [vmem:[#allocation116_spill] sm:$0xff] %v14235_v61  ;;  %17670 = vst [vmem:[#allocation117_spill] sm:$0xff] %v14237_v26  ;;  %11882 = vmatprep.mubr.bf16.mxu0 %v12834_v35  ;;  %12122 = vmatprep.mubr.bf16.mxu1 %v12835_v48  ;;  %v12838_v35 = vld [vmem:[%s17150_s0 + $0xac0] sm:$0xff]  }
 0x184   :  { %v14241_v32 = vpop.f32.mrf.mxu0  ;;  %v14243_v53 = vpop.f32.mrf.mxu1 }
 0x185   :  { %17671 = vst [vmem:[#allocation118_spill] sm:$0xff] %v14241_v32  ;;  %17672 = vst [vmem:[#allocation119_spill] sm:$0xff] %v14243_v53 }
 0x186   :  { %v14247_v13 = vpop.f32.mrf.mxu0  ;;  %v14249_v9 = vpop.f32.mrf.mxu1 }
 0x187   :  { %17673 = vst [vmem:[#allocation120_spill] sm:$0xff] %v14247_v13  ;;  %17674 = vst [vmem:[#allocation121_spill] sm:$0xff] %v14249_v9 }
 0x188   :  { %v14265_v0 = vpop.f32.mrf.mxu0  ;;  %v14267_v53 = vpop.f32.mrf.mxu1 }
 0x189   :  { %17675 = vst [vmem:[#allocation122_spill] sm:$0xff] %v14265_v0  ;;  %17676 = vst [vmem:[#allocation123_spill] sm:$0xff] %v14267_v53  ;;  %v12847_v53 = vld [vmem:[%s17150_s0 + $0xb50] sm:$0xff]  }
 0x18a   :  { %v14271_v26 = vpop.f32.mrf.mxu0  ;;  %11883 = vmatmul.mubr.bf16.gmra.mxu0 %v12836_v37  ;;  %v14273_v61 = vpop.f32.mrf.mxu1  ;;  %12123 = vmatmul.mubr.bf16.gmra.mxu1 %v12837_v4  ;;  %v12840_v37 = vld [vmem:[%s17150_s0 + $0xac8] sm:$0xff]   ;;  %v12841_v4 = vld [vmem:[%s17150_s0 + $0xb38] sm:$0xff]  }
 0x18b   :  { %17677 = vst [vmem:[#allocation124_spill] sm:$0xff] %v14271_v26  ;;  %17678 = vst [vmem:[#allocation125_spill] sm:$0xff] %v14273_v61  ;;  %11886 = vmatprep.mubr.bf16.mxu0 %v12838_v35  ;;  %12126 = vmatprep.mubr.bf16.mxu1 %v12839_v5  ;;  %v12842_v35 = vld [vmem:[%s17150_s0 + $0xad0] sm:$0xff]  }
 0x18c   :  { %v14277_v9 = vpop.f32.mrf.mxu0  ;;  %v14279_v13 = vpop.f32.mrf.mxu1 }
 0x18d   :  { %17679 = vst [vmem:[#allocation126_spill] sm:$0xff] %v14277_v9  ;;  %17680 = vst [vmem:[#allocation127_spill] sm:$0xff] %v14279_v13 }
 0x18e   :  { %v14283_v8 = vpop.f32.mrf.mxu0  ;;  %v14285_v32 = vpop.f32.mrf.mxu1 }
 0x18f   :  { %17681 = vst [vmem:[#allocation128_spill] sm:$0xff] %v14283_v8  ;;  %17682 = vst [vmem:[#allocation129_spill] sm:$0xff] %v14285_v32 }
 0x190   :  { %v14301_v48 = vpop.f32.mrf.mxu0  ;;  %v14303_v13 = vpop.f32.mrf.mxu1 }
 0x191   :  { %17683 = vst [vmem:[#allocation130_spill] sm:$0xff] %v14301_v48  ;;  %17684 = vst [vmem:[#allocation131_spill] sm:$0xff] %v14303_v13  ;;  %v12851_v13 = vld [vmem:[%s17150_s0 + $0xcb0] sm:$0xff]  }
 0x192   :  { %v14307_v61 = vpop.f32.mrf.mxu0  ;;  %11887 = vmatmul.mubr.bf16.gmra.mxu0 %v12840_v37  ;;  %v14309_v26 = vpop.f32.mrf.mxu1  ;;  %12127 = vmatmul.mubr.bf16.gmra.mxu1 %v12841_v4  ;;  %v12844_v37 = vld [vmem:[%s17150_s0 + $0xad8] sm:$0xff]   ;;  %v12845_v4 = vld [vmem:[%s17150_s0 + $0xb48] sm:$0xff]  }
 0x193   :  { %17685 = vst [vmem:[#allocation132_spill] sm:$0xff] %v14307_v61  ;;  %17686 = vst [vmem:[#allocation133_spill] sm:$0xff] %v14309_v26  ;;  %11890 = vmatprep.mubr.bf16.mxu0 %v12842_v35  ;;  %12130 = vmatprep.mubr.bf16.mxu1 %v12843_v56  ;;  %v12846_v35 = vld [vmem:[%s17150_s0 + $0xae0] sm:$0xff]  }
 0x194   :  { %v14313_v32 = vpop.f32.mrf.mxu0  ;;  %v14315_v8 = vpop.f32.mrf.mxu1 }
 0x195   :  { %17687 = vst [vmem:[#allocation134_spill] sm:$0xff] %v14313_v32  ;;  %17688 = vst [vmem:[#allocation135_spill] sm:$0xff] %v14315_v8 }
 0x196   :  { %v14319_v0 = vpop.f32.mrf.mxu0  ;;  %v14321_v9 = vpop.f32.mrf.mxu1 }
 0x197   :  { %17689 = vst [vmem:[#allocation136_spill] sm:$0xff] %v14319_v0  ;;  %17690 = vst [vmem:[#allocation137_spill] sm:$0xff] %v14321_v9 }
 0x198   :  { %v14337_v5 = vpop.f32.mrf.mxu0  ;;  %v14339_v8 = vpop.f32.mrf.mxu1 }
 0x199   :  { %17691 = vst [vmem:[#allocation138_spill] sm:$0xff] %v14337_v5  ;;  %17692 = vst [vmem:[#allocation139_spill] sm:$0xff] %v14339_v8  ;;  %v12855_v8 = vld [vmem:[%s17150_s0 + $0xcc0] sm:$0xff]  }
 0x19a   :  { %v14343_v26 = vpop.f32.mrf.mxu0  ;;  %11891 = vmatmul.mubr.bf16.gmra.mxu0 %v12844_v37  ;;  %v14345_v61 = vpop.f32.mrf.mxu1  ;;  %12131 = vmatmul.mubr.bf16.gmra.mxu1 %v12845_v4  ;;  %v12848_v37 = vld [vmem:[%s17150_s0 + $0xae8] sm:$0xff]   ;;  %v12849_v4 = vld [vmem:[%s17150_s0 + $0xb58] sm:$0xff]  }
 0x19b   :  { %17693 = vst [vmem:[#allocation140_spill] sm:$0xff] %v14343_v26  ;;  %17694 = vst [vmem:[#allocation141_spill] sm:$0xff] %v14345_v61  ;;  %11894 = vmatprep.mubr.bf16.mxu0 %v12846_v35  ;;  %12134 = vmatprep.mubr.bf16.mxu1 %v12847_v53  ;;  %v12850_v35 = vld [vmem:[%s17150_s0 + $0xc40] sm:$0xff]  }
 0x19c   :  { %v14349_v9 = vpop.f32.mrf.mxu0  ;;  %v14351_v0 = vpop.f32.mrf.mxu1 }
 0x19d   :  { %17695 = vst [vmem:[#allocation142_spill] sm:$0xff] %v14349_v9  ;;  %17696 = vst [vmem:[#allocation143_spill] sm:$0xff] %v14351_v0 }
 0x19e   :  { %v14355_v48 = vpop.f32.mrf.mxu0  ;;  %v14357_v32 = vpop.f32.mrf.mxu1 }
 0x19f   :  { %17697 = vst [vmem:[#allocation144_spill] sm:$0xff] %v14355_v48  ;;  %17698 = vst [vmem:[#allocation145_spill] sm:$0xff] %v14357_v32 }
 0x1a0   :  { %v14373_v56 = vpop.f32.mrf.mxu0  ;;  %v14375_v0 = vpop.f32.mrf.mxu1 }
 0x1a1   :  { %17699 = vst [vmem:[#allocation146_spill] sm:$0xff] %v14373_v56  ;;  %17700 = vst [vmem:[#allocation147_spill] sm:$0xff] %v14375_v0  ;;  %v12859_v0 = vld [vmem:[%s17150_s0 + $0xcd0] sm:$0xff]  }
 0x1a2   :  { %v14379_v61 = vpop.f32.mrf.mxu0  ;;  %11895 = vmatmul.mubr.bf16.gmra.mxu0 %v12848_v37  ;;  %v14381_v26 = vpop.f32.mrf.mxu1  ;;  %12135 = vmatmul.mubr.bf16.gmra.mxu1 %v12849_v4  ;;  %v12852_v37 = vld [vmem:[%s17150_s0 + $0xc48] sm:$0xff]   ;;  %v12853_v4 = vld [vmem:[%s17150_s0 + $0xcb8] sm:$0xff]  }
 0x1a3   :  { %17701 = vst [vmem:[#allocation148_spill] sm:$0xff] %v14379_v61  ;;  %17702 = vst [vmem:[#allocation149_spill] sm:$0xff] %v14381_v26  ;;  %11898 = vmatprep.mubr.bf16.mxu0 %v12850_v35  ;;  %12138 = vmatprep.mubr.bf16.mxu1 %v12851_v13  ;;  %v12854_v35 = vld [vmem:[%s17150_s0 + $0xc50] sm:$0xff]  }
 0x1a4   :  { %v14385_v32 = vpop.f32.mrf.mxu0  ;;  %v14387_v48 = vpop.f32.mrf.mxu1 }
 0x1a5   :  { %17703 = vst [vmem:[#allocation150_spill] sm:$0xff] %v14385_v32  ;;  %17704 = vst [vmem:[#allocation151_spill] sm:$0xff] %v14387_v48 }
 0x1a6   :  { %v14391_v5 = vpop.f32.mrf.mxu0  ;;  %v14393_v9 = vpop.f32.mrf.mxu1 }
 0x1a7   :  { %17705 = vst [vmem:[#allocation152_spill] sm:$0xff] %v14391_v5  ;;  %17706 = vst [vmem:[#allocation153_spill] sm:$0xff] %v14393_v9 }
 0x1a8   :  { %v14409_v53 = vpop.f32.mrf.mxu0  ;;  %v14411_v48 = vpop.f32.mrf.mxu1 }
 0x1a9   :  { %17707 = vst [vmem:[#allocation154_spill] sm:$0xff] %v14409_v53  ;;  %17708 = vst [vmem:[#allocation155_spill] sm:$0xff] %v14411_v48  ;;  %v12863_v48 = vld [vmem:[%s17150_s0 + $0xce0] sm:$0xff]  }
 0x1aa   :  { %v14415_v26 = vpop.f32.mrf.mxu0  ;;  %11899 = vmatmul.mubr.bf16.gmra.mxu0 %v12852_v37  ;;  %v14417_v61 = vpop.f32.mrf.mxu1  ;;  %12139 = vmatmul.mubr.bf16.gmra.mxu1 %v12853_v4  ;;  %v12856_v37 = vld [vmem:[%s17150_s0 + $0xc58] sm:$0xff]   ;;  %v12857_v4 = vld [vmem:[%s17150_s0 + $0xcc8] sm:$0xff]  }
 0x1ab   :  { %17709 = vst [vmem:[#allocation156_spill] sm:$0xff] %v14415_v26  ;;  %17710 = vst [vmem:[#allocation157_spill] sm:$0xff] %v14417_v61  ;;  %11902 = vmatprep.mubr.bf16.mxu0 %v12854_v35  ;;  %12142 = vmatprep.mubr.bf16.mxu1 %v12855_v8  ;;  %v12858_v35 = vld [vmem:[%s17150_s0 + $0xc60] sm:$0xff]  }
 0x1ac   :  { %v14421_v9 = vpop.f32.mrf.mxu0  ;;  %v14423_v5 = vpop.f32.mrf.mxu1 }
 0x1ad   :  { %17711 = vst [vmem:[#allocation158_spill] sm:$0xff] %v14421_v9  ;;  %17712 = vst [vmem:[#allocation159_spill] sm:$0xff] %v14423_v5 }
 0x1ae   :  { %v14427_v56 = vpop.f32.mrf.mxu0  ;;  %v14429_v32 = vpop.f32.mrf.mxu1 }
 0x1af   :  { %17713 = vst [vmem:[#allocation160_spill] sm:$0xff] %v14427_v56  ;;  %17714 = vst [vmem:[#allocation161_spill] sm:$0xff] %v14429_v32 }
 0x1b0   :  { %v14445_v13 = vpop.f32.mrf.mxu0  ;;  %v14447_v5 = vpop.f32.mrf.mxu1 }
 0x1b1   :  { %17715 = vst [vmem:[#allocation162_spill] sm:$0xff] %v14445_v13  ;;  %17716 = vst [vmem:[#allocation163_spill] sm:$0xff] %v14447_v5  ;;  %v12867_v5 = vld [vmem:[%s17150_s0 + $0xcf0] sm:$0xff]  }
 0x1b2   :  { %v14451_v61 = vpop.f32.mrf.mxu0  ;;  %11903 = vmatmul.mubr.bf16.gmra.mxu0 %v12856_v37  ;;  %v14453_v26 = vpop.f32.mrf.mxu1  ;;  %12143 = vmatmul.mubr.bf16.gmra.mxu1 %v12857_v4  ;;  %v12860_v37 = vld [vmem:[%s17150_s0 + $0xc68] sm:$0xff]   ;;  %v12861_v4 = vld [vmem:[%s17150_s0 + $0xcd8] sm:$0xff]  }
 0x1b3   :  { %17717 = vst [vmem:[#allocation164_spill] sm:$0xff] %v14451_v61  ;;  %17718 = vst [vmem:[#allocation165_spill] sm:$0xff] %v14453_v26  ;;  %11906 = vmatprep.mubr.bf16.mxu0 %v12858_v35  ;;  %12146 = vmatprep.mubr.bf16.mxu1 %v12859_v0  ;;  %v12862_v35 = vld [vmem:[%s17150_s0 + $0xc70] sm:$0xff]  }
 0x1b4   :  { %v14457_v32 = vpop.f32.mrf.mxu0  ;;  %v14459_v56 = vpop.f32.mrf.mxu1 }
 0x1b5   :  { %17719 = vst [vmem:[#allocation166_spill] sm:$0xff] %v14457_v32  ;;  %17720 = vst [vmem:[#allocation167_spill] sm:$0xff] %v14459_v56 }
 0x1b6   :  { %v14463_v53 = vpop.f32.mrf.mxu0  ;;  %v14465_v9 = vpop.f32.mrf.mxu1 }
 0x1b7   :  { %17721 = vst [vmem:[#allocation168_spill] sm:$0xff] %v14463_v53  ;;  %17722 = vst [vmem:[#allocation169_spill] sm:$0xff] %v14465_v9 }
 0x1b8   :  { %v14481_v8 = vpop.f32.mrf.mxu0  ;;  %v14483_v56 = vpop.f32.mrf.mxu1 }
 0x1b9   :  { %17723 = vst [vmem:[#allocation170_spill] sm:$0xff] %v14481_v8  ;;  %17724 = vst [vmem:[#allocation171_spill] sm:$0xff] %v14483_v56  ;;  %v12871_v56 = vld [vmem:[%s17150_s0 + $0xd00] sm:$0xff]  }
 0x1ba   :  { %v14487_v26 = vpop.f32.mrf.mxu0  ;;  %11907 = vmatmul.mubr.bf16.gmra.mxu0 %v12860_v37  ;;  %v14489_v61 = vpop.f32.mrf.mxu1  ;;  %12147 = vmatmul.mubr.bf16.gmra.mxu1 %v12861_v4  ;;  %v12864_v37 = vld [vmem:[%s17150_s0 + $0xc78] sm:$0xff]   ;;  %v12865_v4 = vld [vmem:[%s17150_s0 + $0xce8] sm:$0xff]  }
 0x1bb   :  { %17725 = vst [vmem:[#allocation172_spill] sm:$0xff] %v14487_v26  ;;  %17726 = vst [vmem:[#allocation173_spill] sm:$0xff] %v14489_v61  ;;  %11910 = vmatprep.mubr.bf16.mxu0 %v12862_v35  ;;  %12150 = vmatprep.mubr.bf16.mxu1 %v12863_v48  ;;  %v12866_v35 = vld [vmem:[%s17150_s0 + $0xc80] sm:$0xff]  }
 0x1bc   :  { %v14493_v9 = vpop.f32.mrf.mxu0  ;;  %v14495_v53 = vpop.f32.mrf.mxu1 }
 0x1bd   :  { %17727 = vst [vmem:[#allocation174_spill] sm:$0xff] %v14493_v9  ;;  %17728 = vst [vmem:[#allocation175_spill] sm:$0xff] %v14495_v53 }
 0x1be   :  { %v14499_v13 = vpop.f32.mrf.mxu0  ;;  %v14501_v32 = vpop.f32.mrf.mxu1 }
 0x1bf   :  { %17729 = vst [vmem:[#allocation176_spill] sm:$0xff] %v14499_v13  ;;  %17730 = vst [vmem:[#allocation177_spill] sm:$0xff] %v14501_v32 }
 0x1c0   :  { %v14517_v0 = vpop.f32.mrf.mxu0  ;;  %v14519_v53 = vpop.f32.mrf.mxu1 }
 0x1c1   :  { %17731 = vst [vmem:[#allocation178_spill] sm:$0xff] %v14517_v0  ;;  %17732 = vst [vmem:[#allocation179_spill] sm:$0xff] %v14519_v53  ;;  %v12875_v53 = vld [vmem:[%s17150_s0 + $0xd10] sm:$0xff]  }
 0x1c2   :  { %v14523_v61 = vpop.f32.mrf.mxu0  ;;  %11911 = vmatmul.mubr.bf16.gmra.mxu0 %v12864_v37  ;;  %v14525_v26 = vpop.f32.mrf.mxu1  ;;  %12151 = vmatmul.mubr.bf16.gmra.mxu1 %v12865_v4  ;;  %v12868_v37 = vld [vmem:[%s17150_s0 + $0xc88] sm:$0xff]   ;;  %v12869_v4 = vld [vmem:[%s17150_s0 + $0xcf8] sm:$0xff]  }
 0x1c3   :  { %17733 = vst [vmem:[#allocation180_spill] sm:$0xff] %v14523_v61  ;;  %17734 = vst [vmem:[#allocation181_spill] sm:$0xff] %v14525_v26  ;;  %11914 = vmatprep.mubr.bf16.mxu0 %v12866_v35  ;;  %12154 = vmatprep.mubr.bf16.mxu1 %v12867_v5  ;;  %v12870_v35 = vld [vmem:[%s17150_s0 + $0xc90] sm:$0xff]  }
 0x1c4   :  { %v14529_v32 = vpop.f32.mrf.mxu0  ;;  %v14531_v13 = vpop.f32.mrf.mxu1 }
 0x1c5   :  { %17735 = vst [vmem:[#allocation182_spill] sm:$0xff] %v14529_v32  ;;  %17736 = vst [vmem:[#allocation183_spill] sm:$0xff] %v14531_v13 }
 0x1c6   :  { %v14535_v8 = vpop.f32.mrf.mxu0  ;;  %v14537_v9 = vpop.f32.mrf.mxu1 }
 0x1c7   :  { %17737 = vst [vmem:[#allocation184_spill] sm:$0xff] %v14535_v8  ;;  %17738 = vst [vmem:[#allocation185_spill] sm:$0xff] %v14537_v9 }
 0x1c8   :  { %v14553_v48 = vpop.f32.mrf.mxu0  ;;  %v14555_v13 = vpop.f32.mrf.mxu1 }
 0x1c9   :  { %17739 = vst [vmem:[#allocation186_spill] sm:$0xff] %v14553_v48  ;;  %17740 = vst [vmem:[#allocation187_spill] sm:$0xff] %v14555_v13  ;;  %v12879_v13 = vld [vmem:[%s17150_s0 + $0x150] sm:$0xff]  }
 0x1ca   :  { %v14559_v26 = vpop.f32.mrf.mxu0  ;;  %11915 = vmatmul.mubr.bf16.gmra.mxu0 %v12868_v37  ;;  %v14561_v61 = vpop.f32.mrf.mxu1  ;;  %12155 = vmatmul.mubr.bf16.gmra.mxu1 %v12869_v4  ;;  %v12872_v37 = vld [vmem:[%s17150_s0 + $0xc98] sm:$0xff]   ;;  %v12873_v4 = vld [vmem:[%s17150_s0 + $0xd08] sm:$0xff]  }
 0x1cb   :  { %17741 = vst [vmem:[#allocation188_spill] sm:$0xff] %v14559_v26  ;;  %17742 = vst [vmem:[#allocation189_spill] sm:$0xff] %v14561_v61  ;;  %11918 = vmatprep.mubr.bf16.mxu0 %v12870_v35  ;;  %12158 = vmatprep.mubr.bf16.mxu1 %v12871_v56  ;;  %v12874_v35 = vld [vmem:[%s17150_s0 + $0xca0] sm:$0xff]  }
 0x1cc   :  { %v14565_v9 = vpop.f32.mrf.mxu0  ;;  %v14567_v8 = vpop.f32.mrf.mxu1 }
 0x1cd   :  { %17743 = vst [vmem:[#allocation190_spill] sm:$0xff] %v14565_v9  ;;  %17744 = vst [vmem:[#allocation191_spill] sm:$0xff] %v14567_v8 }
 0x1ce   :  { %v14571_v0 = vpop.f32.mrf.mxu0  ;;  %v14573_v32 = vpop.f32.mrf.mxu1 }
 0x1cf   :  { %17745 = vst [vmem:[#allocation192_spill] sm:$0xff] %v14571_v0  ;;  %17746 = vst [vmem:[#allocation193_spill] sm:$0xff] %v14573_v32 }
 0x1d0   :  { %v14589_v5 = vpop.f32.mrf.mxu0  ;;  %v14591_v8 = vpop.f32.mrf.mxu1 }
 0x1d1   :  { %17747 = vst [vmem:[#allocation194_spill] sm:$0xff] %v14589_v5  ;;  %17748 = vst [vmem:[#allocation195_spill] sm:$0xff] %v14591_v8  ;;  %v12883_v8 = vld [vmem:[%s17150_s0 + $0x160] sm:$0xff]  }
 0x1d2   :  { %v14595_v61 = vpop.f32.mrf.mxu0  ;;  %11919 = vmatmul.mubr.bf16.gmra.mxu0 %v12872_v37  ;;  %v14597_v26 = vpop.f32.mrf.mxu1  ;;  %12159 = vmatmul.mubr.bf16.gmra.mxu1 %v12873_v4  ;;  %v12876_v37 = vld [vmem:[%s17150_s0 + $0xca8] sm:$0xff]   ;;  %v12877_v4 = vld [vmem:[%s17150_s0 + $0xd18] sm:$0xff]  }
 0x1d3   :  { %17749 = vst [vmem:[#allocation196_spill] sm:$0xff] %v14595_v61  ;;  %17750 = vst [vmem:[#allocation197_spill] sm:$0xff] %v14597_v26  ;;  %11922 = vmatprep.mubr.bf16.mxu0 %v12874_v35  ;;  %12162 = vmatprep.mubr.bf16.mxu1 %v12875_v53  ;;  %v12878_v35 = vld [vmem:[%s17150_s0 + $0xe0] sm:$0xff]  }
 0x1d4   :  { %v14601_v32 = vpop.f32.mrf.mxu0  ;;  %v14603_v0 = vpop.f32.mrf.mxu1 }
 0x1d5   :  { %17751 = vst [vmem:[#allocation198_spill] sm:$0xff] %v14601_v32  ;;  %17752 = vst [vmem:[#allocation199_spill] sm:$0xff] %v14603_v0 }
 0x1d6   :  { %v14607_v48 = vpop.f32.mrf.mxu0  ;;  %v14609_v9 = vpop.f32.mrf.mxu1 }
 0x1d7   :  { %17753 = vst [vmem:[#allocation200_spill] sm:$0xff] %v14607_v48  ;;  %17754 = vst [vmem:[#allocation201_spill] sm:$0xff] %v14609_v9 }
 0x1d8   :  { %v14625_v56 = vpop.f32.mrf.mxu0  ;;  %v14627_v0 = vpop.f32.mrf.mxu1 }
 0x1d9   :  { %17755 = vst [vmem:[#allocation202_spill] sm:$0xff] %v14625_v56  ;;  %17756 = vst [vmem:[#allocation203_spill] sm:$0xff] %v14627_v0  ;;  %v12887_v0 = vld [vmem:[%s17150_s0 + $0x170] sm:$0xff]  }
 0x1da   :  { %v14631_v26 = vpop.f32.mrf.mxu0  ;;  %11923 = vmatmul.mubr.bf16.gmra.mxu0 %v12876_v37  ;;  %v14633_v61 = vpop.f32.mrf.mxu1  ;;  %12163 = vmatmul.mubr.bf16.gmra.mxu1 %v12877_v4  ;;  %v12880_v37 = vld [vmem:[%s17150_s0 + $0xe8] sm:$0xff]   ;;  %v12881_v4 = vld [vmem:[%s17150_s0 + $0x158] sm:$0xff]  }
 0x1db   :  { %17757 = vst [vmem:[#allocation204_spill] sm:$0xff] %v14631_v26  ;;  %17758 = vst [vmem:[#allocation205_spill] sm:$0xff] %v14633_v61  ;;  %12182 = vmatprep.mubr.bf16.mxu0 %v12878_v35  ;;  %12422 = vmatprep.mubr.bf16.mxu1 %v12879_v13  ;;  %v12882_v35 = vld [vmem:[%s17150_s0 + $0xf0] sm:$0xff]  }
 0x1dc   :  { %v14637_v9 = vpop.f32.mrf.mxu0  ;;  %v14639_v48 = vpop.f32.mrf.mxu1 }
 0x1dd   :  { %17759 = vst [vmem:[#allocation206_spill] sm:$0xff] %v14637_v9  ;;  %17760 = vst [vmem:[#allocation207_spill] sm:$0xff] %v14639_v48 }
 0x1de   :  { %v14643_v5 = vpop.f32.mrf.mxu0  ;;  %v14645_v32 = vpop.f32.mrf.mxu1 }
 0x1df   :  { %17761 = vst [vmem:[#allocation208_spill] sm:$0xff] %v14643_v5  ;;  %17762 = vst [vmem:[#allocation209_spill] sm:$0xff] %v14645_v32 }
 0x1e0   :  { %v14661_v53 = vpop.f32.mrf.mxu0  ;;  %v14663_v48 = vpop.f32.mrf.mxu1 }
 0x1e1   :  { %17763 = vst [vmem:[#allocation210_spill] sm:$0xff] %v14661_v53  ;;  %17764 = vst [vmem:[#allocation211_spill] sm:$0xff] %v14663_v48  ;;  %v12891_v48 = vld [vmem:[%s17150_s0 + $0x180] sm:$0xff]  }
 0x1e2   :  { %v14667_v61 = vpop.f32.mrf.mxu0  ;;  %v14669_v26 = vpop.f32.mrf.mxu1  ;;  %12183 = vmatmul.mubr.bf16.vlgmr.msra.gmra.mxu0 %v12880_v37  ;;  %12423 = vmatmul.mubr.bf16.vlgmr.msra.gmra.mxu1 %v12881_v4  ;;  %v12884_v37 = vld [vmem:[%s17150_s0 + $0xf8] sm:$0xff]   ;;  %v12885_v4 = vld [vmem:[%s17150_s0 + $0x168] sm:$0xff]  }
 0x1e3   :  { %17765 = vst [vmem:[#allocation212_spill] sm:$0xff] %v14667_v61  ;;  %17766 = vst [vmem:[#allocation213_spill] sm:$0xff] %v14669_v26  ;;  %12186 = vmatprep.mubr.bf16.mxu0 %v12882_v35  ;;  %12426 = vmatprep.mubr.bf16.mxu1 %v12883_v8  ;;  %v12886_v35 = vld [vmem:[%s17150_s0 + $0x100] sm:$0xff]  }
 0x1e4   :  { %v14673_v32 = vpop.f32.mrf.mxu0  ;;  %v14675_v5 = vpop.f32.mrf.mxu1 }
 0x1e5   :  { %17767 = vst [vmem:[#allocation214_spill] sm:$0xff] %v14673_v32  ;;  %17768 = vst [vmem:[#allocation215_spill] sm:$0xff] %v14675_v5 }
 0x1e6   :  { %v14679_v56 = vpop.f32.mrf.mxu0  ;;  %v14681_v9 = vpop.f32.mrf.mxu1 }
 0x1e7   :  { %17769 = vst [vmem:[#allocation216_spill] sm:$0xff] %v14679_v56  ;;  %17770 = vst [vmem:[#allocation217_spill] sm:$0xff] %v14681_v9 }
 0x1e8   :  { %v14697_v13 = vpop.f32.mrf.mxu0  ;;  %v14699_v5 = vpop.f32.mrf.mxu1 }
 0x1e9   :  { %17771 = vst [vmem:[#allocation218_spill] sm:$0xff] %v14697_v13  ;;  %17772 = vst [vmem:[#allocation219_spill] sm:$0xff] %v14699_v5  ;;  %v12895_v5 = vld [vmem:[%s17150_s0 + $0x190] sm:$0xff]  }
 0x1ea   :  { %v14703_v26 = vpop.f32.mrf.mxu0  ;;  %v14705_v61 = vpop.f32.mrf.mxu1  ;;  %12187 = vmatmul.mubr.bf16.gmra.mxu0 %v12884_v37  ;;  %12427 = vmatmul.mubr.bf16.gmra.mxu1 %v12885_v4  ;;  %v12888_v37 = vld [vmem:[%s17150_s0 + $0x108] sm:$0xff]   ;;  %v12889_v4 = vld [vmem:[%s17150_s0 + $0x178] sm:$0xff]  }
 0x1eb   :  { %17773 = vst [vmem:[#allocation220_spill] sm:$0xff] %v14703_v26  ;;  %17774 = vst [vmem:[#allocation221_spill] sm:$0xff] %v14705_v61  ;;  %12190 = vmatprep.mubr.bf16.mxu0 %v12886_v35  ;;  %12430 = vmatprep.mubr.bf16.mxu1 %v12887_v0  ;;  %v12890_v35 = vld [vmem:[%s17150_s0 + $0x110] sm:$0xff]  }
 0x1ec   :  { %v14709_v9 = vpop.f32.mrf.mxu0  ;;  %v14711_v56 = vpop.f32.mrf.mxu1 }
 0x1ed   :  { %17775 = vst [vmem:[#allocation222_spill] sm:$0xff] %v14709_v9  ;;  %17776 = vst [vmem:[#allocation223_spill] sm:$0xff] %v14711_v56 }
 0x1ee   :  { %v14715_v53 = vpop.f32.mrf.mxu0  ;;  %v14717_v32 = vpop.f32.mrf.mxu1 }
 0x1ef   :  { %17777 = vst [vmem:[#allocation224_spill] sm:$0xff] %v14715_v53  ;;  %17778 = vst [vmem:[#allocation225_spill] sm:$0xff] %v14717_v32 }
 0x1f0   :  { %v14733_v8 = vpop.f32.mrf.mxu0  ;;  %v14735_v56 = vpop.f32.mrf.mxu1 }
 0x1f1   :  { %17779 = vst [vmem:[#allocation226_spill] sm:$0xff] %v14733_v8  ;;  %17780 = vst [vmem:[#allocation227_spill] sm:$0xff] %v14735_v56  ;;  %v12899_v56 = vld [vmem:[%s17150_s0 + $0x1a0] sm:$0xff]  }
 0x1f2   :  { %v14739_v61 = vpop.f32.mrf.mxu0  ;;  %v14741_v26 = vpop.f32.mrf.mxu1  ;;  %12191 = vmatmul.mubr.bf16.gmra.mxu0 %v12888_v37  ;;  %12431 = vmatmul.mubr.bf16.gmra.mxu1 %v12889_v4  ;;  %v12892_v37 = vld [vmem:[%s17150_s0 + $0x118] sm:$0xff]   ;;  %v12893_v4 = vld [vmem:[%s17150_s0 + $0x188] sm:$0xff]  }
 0x1f3   :  { %17781 = vst [vmem:[#allocation228_spill] sm:$0xff] %v14739_v61  ;;  %17782 = vst [vmem:[#allocation229_spill] sm:$0xff] %v14741_v26  ;;  %12194 = vmatprep.mubr.bf16.mxu0 %v12890_v35  ;;  %12434 = vmatprep.mubr.bf16.mxu1 %v12891_v48  ;;  %v12894_v35 = vld [vmem:[%s17150_s0 + $0x120] sm:$0xff]  }
 0x1f4   :  { %v14745_v32 = vpop.f32.mrf.mxu0  ;;  %v14747_v53 = vpop.f32.mrf.mxu1 }
 0x1f5   :  { %17783 = vst [vmem:[#allocation230_spill] sm:$0xff] %v14745_v32  ;;  %17784 = vst [vmem:[#allocation231_spill] sm:$0xff] %v14747_v53 }
 0x1f6   :  { %v14751_v13 = vpop.f32.mrf.mxu0  ;;  %v14753_v9 = vpop.f32.mrf.mxu1 }
 0x1f7   :  { %17785 = vst [vmem:[#allocation232_spill] sm:$0xff] %v14751_v13  ;;  %17786 = vst [vmem:[#allocation233_spill] sm:$0xff] %v14753_v9 }
 0x1f8   :  { %v14769_v0 = vpop.f32.mrf.mxu0  ;;  %v14771_v53 = vpop.f32.mrf.mxu1 }
 0x1f9   :  { %17787 = vst [vmem:[#allocation234_spill] sm:$0xff] %v14769_v0  ;;  %17788 = vst [vmem:[#allocation235_spill] sm:$0xff] %v14771_v53  ;;  %v12903_v53 = vld [vmem:[%s17150_s0 + $0x1b0] sm:$0xff]  }
 0x1fa   :  { %v14775_v26 = vpop.f32.mrf.mxu0  ;;  %v14777_v61 = vpop.f32.mrf.mxu1  ;;  %12195 = vmatmul.mubr.bf16.gmra.mxu0 %v12892_v37  ;;  %12435 = vmatmul.mubr.bf16.gmra.mxu1 %v12893_v4  ;;  %v12896_v37 = vld [vmem:[%s17150_s0 + $0x128] sm:$0xff]   ;;  %v12897_v4 = vld [vmem:[%s17150_s0 + $0x198] sm:$0xff]  }
 0x1fb   :  { %17789 = vst [vmem:[#allocation236_spill] sm:$0xff] %v14775_v26  ;;  %17790 = vst [vmem:[#allocation237_spill] sm:$0xff] %v14777_v61  ;;  %12198 = vmatprep.mubr.bf16.mxu0 %v12894_v35  ;;  %12438 = vmatprep.mubr.bf16.mxu1 %v12895_v5  ;;  %v12898_v35 = vld [vmem:[%s17150_s0 + $0x130] sm:$0xff]  }
 0x1fc   :  { %v14781_v9 = vpop.f32.mrf.mxu0  ;;  %v14783_v13 = vpop.f32.mrf.mxu1 }
 0x1fd   :  { %17791 = vst [vmem:[#allocation238_spill] sm:$0xff] %v14781_v9  ;;  %17792 = vst [vmem:[#allocation239_spill] sm:$0xff] %v14783_v13 }
 0x1fe   :  { %v14787_v8 = vpop.f32.mrf.mxu0  ;;  %v14789_v32 = vpop.f32.mrf.mxu1 }
 0x1ff   :  { %17793 = vst [vmem:[#allocation240_spill] sm:$0xff] %v14787_v8  ;;  %17794 = vst [vmem:[#allocation241_spill] sm:$0xff] %v14789_v32 }
 0x200   :  { %v14805_v48 = vpop.f32.mrf.mxu0  ;;  %v14807_v13 = vpop.f32.mrf.mxu1 }
 0x201   :  { %17795 = vst [vmem:[#allocation242_spill] sm:$0xff] %v14805_v48  ;;  %17796 = vst [vmem:[#allocation243_spill] sm:$0xff] %v14807_v13  ;;  %v12907_v13 = vld [vmem:[%s17150_s0 + $0x310] sm:$0xff]  }
 0x202   :  { %v14811_v61 = vpop.f32.mrf.mxu0  ;;  %v14813_v26 = vpop.f32.mrf.mxu1  ;;  %12199 = vmatmul.mubr.bf16.gmra.mxu0 %v12896_v37  ;;  %12439 = vmatmul.mubr.bf16.gmra.mxu1 %v12897_v4  ;;  %v12900_v37 = vld [vmem:[%s17150_s0 + $0x138] sm:$0xff]   ;;  %v12901_v4 = vld [vmem:[%s17150_s0 + $0x1a8] sm:$0xff]  }
 0x203   :  { %17797 = vst [vmem:[#allocation244_spill] sm:$0xff] %v14811_v61  ;;  %17798 = vst [vmem:[#allocation245_spill] sm:$0xff] %v14813_v26  ;;  %12202 = vmatprep.mubr.bf16.mxu0 %v12898_v35  ;;  %12442 = vmatprep.mubr.bf16.mxu1 %v12899_v56  ;;  %v12902_v35 = vld [vmem:[%s17150_s0 + $0x140] sm:$0xff]  }
 0x204   :  { %v14817_v32 = vpop.f32.mrf.mxu0  ;;  %v14819_v8 = vpop.f32.mrf.mxu1 }
 0x205   :  { %17799 = vst [vmem:[#allocation246_spill] sm:$0xff] %v14817_v32  ;;  %17800 = vst [vmem:[#allocation247_spill] sm:$0xff] %v14819_v8 }
 0x206   :  { %v14823_v0 = vpop.f32.mrf.mxu0  ;;  %v14825_v9 = vpop.f32.mrf.mxu1 }
 0x207   :  { %17801 = vst [vmem:[#allocation248_spill] sm:$0xff] %v14823_v0  ;;  %17802 = vst [vmem:[#allocation249_spill] sm:$0xff] %v14825_v9 }
 0x208   :  { %v14841_v5 = vpop.f32.mrf.mxu0  ;;  %v14843_v8 = vpop.f32.mrf.mxu1 }
 0x209   :  { %17803 = vst [vmem:[#allocation250_spill] sm:$0xff] %v14841_v5  ;;  %17804 = vst [vmem:[#allocation251_spill] sm:$0xff] %v14843_v8  ;;  %v12911_v8 = vld [vmem:[%s17150_s0 + $0x320] sm:$0xff]  }
 0x20a   :  { %v14847_v26 = vpop.f32.mrf.mxu0  ;;  %v14849_v61 = vpop.f32.mrf.mxu1  ;;  %12203 = vmatmul.mubr.bf16.gmra.mxu0 %v12900_v37  ;;  %12443 = vmatmul.mubr.bf16.gmra.mxu1 %v12901_v4  ;;  %v12904_v37 = vld [vmem:[%s17150_s0 + $0x148] sm:$0xff]   ;;  %v12905_v4 = vld [vmem:[%s17150_s0 + $0x1b8] sm:$0xff]  }
 0x20b   :  { %17805 = vst [vmem:[#allocation252_spill] sm:$0xff] %v14847_v26  ;;  %17806 = vst [vmem:[#allocation253_spill] sm:$0xff] %v14849_v61  ;;  %12206 = vmatprep.mubr.bf16.mxu0 %v12902_v35  ;;  %12446 = vmatprep.mubr.bf16.mxu1 %v12903_v53  ;;  %v12906_v35 = vld [vmem:[%s17150_s0 + $0x2a0] sm:$0xff]  }
 0x20c   :  { %v14853_v9 = vpop.f32.mrf.mxu0  ;;  %v14855_v0 = vpop.f32.mrf.mxu1 }
 0x20d   :  { %17807 = vst [vmem:[#allocation254_spill] sm:$0xff] %v14853_v9  ;;  %17808 = vst [vmem:[#allocation255_spill] sm:$0xff] %v14855_v0 }
 0x20e   :  { %v14859_v48 = vpop.f32.mrf.mxu0  ;;  %v14861_v32 = vpop.f32.mrf.mxu1 }
 0x20f   :  { %17809 = vst [vmem:[#allocation256_spill] sm:$0xff] %v14859_v48  ;;  %17810 = vst [vmem:[#allocation257_spill] sm:$0xff] %v14861_v32 }
 0x210   :  { %v14877_v56 = vpop.f32.mrf.mxu0  ;;  %v14879_v0 = vpop.f32.mrf.mxu1 }
 0x211   :  { %17811 = vst [vmem:[#allocation258_spill] sm:$0xff] %v14877_v56  ;;  %17812 = vst [vmem:[#allocation259_spill] sm:$0xff] %v14879_v0  ;;  %v12915_v0 = vld [vmem:[%s17150_s0 + $0x330] sm:$0xff]  }
 0x212   :  { %v14883_v61 = vpop.f32.mrf.mxu0  ;;  %v14885_v26 = vpop.f32.mrf.mxu1  ;;  %12207 = vmatmul.mubr.bf16.gmra.mxu0 %v12904_v37  ;;  %12447 = vmatmul.mubr.bf16.gmra.mxu1 %v12905_v4  ;;  %v12908_v37 = vld [vmem:[%s17150_s0 + $0x2a8] sm:$0xff]   ;;  %v12909_v4 = vld [vmem:[%s17150_s0 + $0x318] sm:$0xff]  }
 0x213   :  { %17813 = vst [vmem:[#allocation260_spill] sm:$0xff] %v14883_v61  ;;  %17814 = vst [vmem:[#allocation261_spill] sm:$0xff] %v14885_v26  ;;  %12210 = vmatprep.mubr.bf16.mxu0 %v12906_v35  ;;  %12450 = vmatprep.mubr.bf16.mxu1 %v12907_v13  ;;  %v12910_v35 = vld [vmem:[%s17150_s0 + $0x2b0] sm:$0xff]  }
 0x214   :  { %v14889_v32 = vpop.f32.mrf.mxu0  ;;  %v14891_v48 = vpop.f32.mrf.mxu1 }
 0x215   :  { %17815 = vst [vmem:[#allocation262_spill] sm:$0xff] %v14889_v32  ;;  %17816 = vst [vmem:[#allocation263_spill] sm:$0xff] %v14891_v48 }
 0x216   :  { %v14895_v5 = vpop.f32.mrf.mxu0  ;;  %v14897_v9 = vpop.f32.mrf.mxu1 }
 0x217   :  { %17817 = vst [vmem:[#allocation264_spill] sm:$0xff] %v14895_v5  ;;  %17818 = vst [vmem:[#allocation265_spill] sm:$0xff] %v14897_v9 }
 0x218   :  { %v14913_v53 = vpop.f32.mrf.mxu0  ;;  %v14915_v48 = vpop.f32.mrf.mxu1 }
 0x219   :  { %17819 = vst [vmem:[#allocation266_spill] sm:$0xff] %v14913_v53  ;;  %17820 = vst [vmem:[#allocation267_spill] sm:$0xff] %v14915_v48  ;;  %v12919_v48 = vld [vmem:[%s17150_s0 + $0x340] sm:$0xff]  }
 0x21a   :  { %v14919_v26 = vpop.f32.mrf.mxu0  ;;  %v14921_v61 = vpop.f32.mrf.mxu1  ;;  %12211 = vmatmul.mubr.bf16.gmra.mxu0 %v12908_v37  ;;  %12451 = vmatmul.mubr.bf16.gmra.mxu1 %v12909_v4  ;;  %v12912_v37 = vld [vmem:[%s17150_s0 + $0x2b8] sm:$0xff]   ;;  %v12913_v4 = vld [vmem:[%s17150_s0 + $0x328] sm:$0xff]  }
 0x21b   :  { %17821 = vst [vmem:[#allocation268_spill] sm:$0xff] %v14919_v26  ;;  %17822 = vst [vmem:[#allocation269_spill] sm:$0xff] %v14921_v61  ;;  %12214 = vmatprep.mubr.bf16.mxu0 %v12910_v35  ;;  %12454 = vmatprep.mubr.bf16.mxu1 %v12911_v8  ;;  %v12914_v35 = vld [vmem:[%s17150_s0 + $0x2c0] sm:$0xff]  }
 0x21c   :  { %v14925_v9 = vpop.f32.mrf.mxu0  ;;  %v14927_v5 = vpop.f32.mrf.mxu1 }
 0x21d   :  { %17823 = vst [vmem:[#allocation270_spill] sm:$0xff] %v14925_v9  ;;  %17824 = vst [vmem:[#allocation271_spill] sm:$0xff] %v14927_v5 }
 0x21e   :  { %v14931_v56 = vpop.f32.mrf.mxu0  ;;  %v14933_v32 = vpop.f32.mrf.mxu1 }
 0x21f   :  { %17825 = vst [vmem:[#allocation272_spill] sm:$0xff] %v14931_v56  ;;  %17826 = vst [vmem:[#allocation273_spill] sm:$0xff] %v14933_v32 }
 0x220   :  { %v14949_v13 = vpop.f32.mrf.mxu0  ;;  %v14951_v5 = vpop.f32.mrf.mxu1 }
 0x221   :  { %17827 = vst [vmem:[#allocation274_spill] sm:$0xff] %v14949_v13  ;;  %17828 = vst [vmem:[#allocation275_spill] sm:$0xff] %v14951_v5  ;;  %v12923_v5 = vld [vmem:[%s17150_s0 + $0x350] sm:$0xff]  }
 0x222   :  { %v14955_v61 = vpop.f32.mrf.mxu0  ;;  %v14957_v26 = vpop.f32.mrf.mxu1  ;;  %12215 = vmatmul.mubr.bf16.gmra.mxu0 %v12912_v37  ;;  %12455 = vmatmul.mubr.bf16.gmra.mxu1 %v12913_v4  ;;  %v12916_v37 = vld [vmem:[%s17150_s0 + $0x2c8] sm:$0xff]   ;;  %v12917_v4 = vld [vmem:[%s17150_s0 + $0x338] sm:$0xff]  }
 0x223   :  { %17829 = vst [vmem:[#allocation276_spill] sm:$0xff] %v14955_v61  ;;  %17830 = vst [vmem:[#allocation277_spill] sm:$0xff] %v14957_v26  ;;  %12218 = vmatprep.mubr.bf16.mxu0 %v12914_v35  ;;  %12458 = vmatprep.mubr.bf16.mxu1 %v12915_v0  ;;  %v12918_v35 = vld [vmem:[%s17150_s0 + $0x2d0] sm:$0xff]  }
 0x224   :  { %v14961_v32 = vpop.f32.mrf.mxu0  ;;  %v14963_v56 = vpop.f32.mrf.mxu1 }
 0x225   :  { %17831 = vst [vmem:[#allocation278_spill] sm:$0xff] %v14961_v32  ;;  %17832 = vst [vmem:[#allocation279_spill] sm:$0xff] %v14963_v56 }
 0x226   :  { %v14967_v53 = vpop.f32.mrf.mxu0  ;;  %v14969_v9 = vpop.f32.mrf.mxu1 }
 0x227   :  { %17833 = vst [vmem:[#allocation280_spill] sm:$0xff] %v14967_v53  ;;  %17834 = vst [vmem:[#allocation281_spill] sm:$0xff] %v14969_v9 }
 0x228   :  { %v14985_v8 = vpop.f32.mrf.mxu0  ;;  %v14987_v56 = vpop.f32.mrf.mxu1 }
 0x229   :  { %17835 = vst [vmem:[#allocation282_spill] sm:$0xff] %v14985_v8  ;;  %17836 = vst [vmem:[#allocation283_spill] sm:$0xff] %v14987_v56  ;;  %v12927_v56 = vld [vmem:[%s17150_s0 + $0x360] sm:$0xff]  }
 0x22a   :  { %v14991_v26 = vpop.f32.mrf.mxu0  ;;  %v14993_v61 = vpop.f32.mrf.mxu1  ;;  %12219 = vmatmul.mubr.bf16.gmra.mxu0 %v12916_v37  ;;  %12459 = vmatmul.mubr.bf16.gmra.mxu1 %v12917_v4  ;;  %v12920_v37 = vld [vmem:[%s17150_s0 + $0x2d8] sm:$0xff]   ;;  %v12921_v4 = vld [vmem:[%s17150_s0 + $0x348] sm:$0xff]  }
 0x22b   :  { %17837 = vst [vmem:[#allocation284_spill] sm:$0xff] %v14991_v26  ;;  %17838 = vst [vmem:[#allocation285_spill] sm:$0xff] %v14993_v61  ;;  %12222 = vmatprep.mubr.bf16.mxu0 %v12918_v35  ;;  %12462 = vmatprep.mubr.bf16.mxu1 %v12919_v48  ;;  %v12922_v35 = vld [vmem:[%s17150_s0 + $0x2e0] sm:$0xff]  }
 0x22c   :  { %v14997_v9 = vpop.f32.mrf.mxu0  ;;  %v14999_v53 = vpop.f32.mrf.mxu1 }
 0x22d   :  { %17839 = vst [vmem:[#allocation286_spill] sm:$0xff] %v14997_v9  ;;  %17840 = vst [vmem:[#allocation287_spill] sm:$0xff] %v14999_v53 }
 0x22e   :  { %v15003_v13 = vpop.f32.mrf.mxu0  ;;  %v15005_v32 = vpop.f32.mrf.mxu1 }
 0x22f   :  { %17841 = vst [vmem:[#allocation288_spill] sm:$0xff] %v15003_v13  ;;  %17842 = vst [vmem:[#allocation289_spill] sm:$0xff] %v15005_v32 }
 0x230   :  { %v15021_v0 = vpop.f32.mrf.mxu0  ;;  %v15023_v53 = vpop.f32.mrf.mxu1 }
 0x231   :  { %17843 = vst [vmem:[#allocation290_spill] sm:$0xff] %v15021_v0  ;;  %17844 = vst [vmem:[#allocation291_spill] sm:$0xff] %v15023_v53  ;;  %v12931_v53 = vld [vmem:[%s17150_s0 + $0x370] sm:$0xff]  }
 0x232   :  { %v15027_v61 = vpop.f32.mrf.mxu0  ;;  %v15029_v26 = vpop.f32.mrf.mxu1  ;;  %12223 = vmatmul.mubr.bf16.gmra.mxu0 %v12920_v37  ;;  %12463 = vmatmul.mubr.bf16.gmra.mxu1 %v12921_v4  ;;  %v12924_v37 = vld [vmem:[%s17150_s0 + $0x2e8] sm:$0xff]   ;;  %v12925_v4 = vld [vmem:[%s17150_s0 + $0x358] sm:$0xff]  }
 0x233   :  { %17845 = vst [vmem:[#allocation292_spill] sm:$0xff] %v15027_v61  ;;  %17846 = vst [vmem:[#allocation293_spill] sm:$0xff] %v15029_v26  ;;  %12226 = vmatprep.mubr.bf16.mxu0 %v12922_v35  ;;  %12466 = vmatprep.mubr.bf16.mxu1 %v12923_v5  ;;  %v12926_v35 = vld [vmem:[%s17150_s0 + $0x2f0] sm:$0xff]  }
 0x234   :  { %v15033_v32 = vpop.f32.mrf.mxu0  ;;  %v15035_v13 = vpop.f32.mrf.mxu1 }
 0x235   :  { %17847 = vst [vmem:[#allocation294_spill] sm:$0xff] %v15033_v32  ;;  %17848 = vst [vmem:[#allocation295_spill] sm:$0xff] %v15035_v13 }
 0x236   :  { %v15039_v8 = vpop.f32.mrf.mxu0  ;;  %v15041_v9 = vpop.f32.mrf.mxu1 }
 0x237   :  { %17849 = vst [vmem:[#allocation296_spill] sm:$0xff] %v15039_v8  ;;  %17850 = vst [vmem:[#allocation297_spill] sm:$0xff] %v15041_v9 }
 0x238   :  { %v15057_v48 = vpop.f32.mrf.mxu0  ;;  %v15059_v13 = vpop.f32.mrf.mxu1 }
 0x239   :  { %17851 = vst [vmem:[#allocation298_spill] sm:$0xff] %v15057_v48  ;;  %17852 = vst [vmem:[#allocation299_spill] sm:$0xff] %v15059_v13  ;;  %v12935_v13 = vld [vmem:[%s17150_s0 + $0x4d0] sm:$0xff]  }
 0x23a   :  { %v15063_v26 = vpop.f32.mrf.mxu0  ;;  %v15065_v61 = vpop.f32.mrf.mxu1  ;;  %12227 = vmatmul.mubr.bf16.gmra.mxu0 %v12924_v37  ;;  %12467 = vmatmul.mubr.bf16.gmra.mxu1 %v12925_v4  ;;  %v12928_v37 = vld [vmem:[%s17150_s0 + $0x2f8] sm:$0xff]   ;;  %v12929_v4 = vld [vmem:[%s17150_s0 + $0x368] sm:$0xff]  }
 0x23b   :  { %17853 = vst [vmem:[#allocation300_spill] sm:$0xff] %v15063_v26  ;;  %17854 = vst [vmem:[#allocation301_spill] sm:$0xff] %v15065_v61  ;;  %12230 = vmatprep.mubr.bf16.mxu0 %v12926_v35  ;;  %12470 = vmatprep.mubr.bf16.mxu1 %v12927_v56  ;;  %v12930_v35 = vld [vmem:[%s17150_s0 + $0x300] sm:$0xff]  }
 0x23c   :  { %v15069_v9 = vpop.f32.mrf.mxu0  ;;  %v15071_v8 = vpop.f32.mrf.mxu1 }
 0x23d   :  { %17855 = vst [vmem:[#allocation302_spill] sm:$0xff] %v15069_v9  ;;  %17856 = vst [vmem:[#allocation303_spill] sm:$0xff] %v15071_v8 }
 0x23e   :  { %v15075_v0 = vpop.f32.mrf.mxu0  ;;  %v15077_v32 = vpop.f32.mrf.mxu1 }
 0x23f   :  { %17857 = vst [vmem:[#allocation304_spill] sm:$0xff] %v15075_v0  ;;  %17858 = vst [vmem:[#allocation305_spill] sm:$0xff] %v15077_v32 }
 0x240   :  { %v15093_v5 = vpop.f32.mrf.mxu0  ;;  %v15095_v8 = vpop.f32.mrf.mxu1 }
 0x241   :  { %17859 = vst [vmem:[#allocation306_spill] sm:$0xff] %v15093_v5  ;;  %17860 = vst [vmem:[#allocation307_spill] sm:$0xff] %v15095_v8  ;;  %v12939_v8 = vld [vmem:[%s17150_s0 + $0x4e0] sm:$0xff]  }
 0x242   :  { %v15099_v61 = vpop.f32.mrf.mxu0  ;;  %v15101_v26 = vpop.f32.mrf.mxu1  ;;  %12231 = vmatmul.mubr.bf16.gmra.mxu0 %v12928_v37  ;;  %12471 = vmatmul.mubr.bf16.gmra.mxu1 %v12929_v4  ;;  %v12932_v37 = vld [vmem:[%s17150_s0 + $0x308] sm:$0xff]   ;;  %v12933_v4 = vld [vmem:[%s17150_s0 + $0x378] sm:$0xff]  }
 0x243   :  { %17861 = vst [vmem:[#allocation308_spill] sm:$0xff] %v15099_v61  ;;  %17862 = vst [vmem:[#allocation309_spill] sm:$0xff] %v15101_v26  ;;  %12234 = vmatprep.mubr.bf16.mxu0 %v12930_v35  ;;  %12474 = vmatprep.mubr.bf16.mxu1 %v12931_v53  ;;  %v12934_v35 = vld [vmem:[%s17150_s0 + $0x460] sm:$0xff]  }
 0x244   :  { %v15105_v32 = vpop.f32.mrf.mxu0  ;;  %v15107_v0 = vpop.f32.mrf.mxu1 }
 0x245   :  { %17863 = vst [vmem:[#allocation310_spill] sm:$0xff] %v15105_v32  ;;  %17864 = vst [vmem:[#allocation311_spill] sm:$0xff] %v15107_v0 }
 0x246   :  { %v15111_v48 = vpop.f32.mrf.mxu0  ;;  %v15113_v9 = vpop.f32.mrf.mxu1 }
 0x247   :  { %17865 = vst [vmem:[#allocation312_spill] sm:$0xff] %v15111_v48  ;;  %17866 = vst [vmem:[#allocation313_spill] sm:$0xff] %v15113_v9 }
 0x248   :  { %v15129_v56 = vpop.f32.mrf.mxu0  ;;  %v15131_v0 = vpop.f32.mrf.mxu1 }
 0x249   :  { %17867 = vst [vmem:[#allocation314_spill] sm:$0xff] %v15129_v56  ;;  %17868 = vst [vmem:[#allocation315_spill] sm:$0xff] %v15131_v0  ;;  %v12943_v0 = vld [vmem:[%s17150_s0 + $0x4f0] sm:$0xff]  }
 0x24a   :  { %v15135_v26 = vpop.f32.mrf.mxu0  ;;  %v15137_v61 = vpop.f32.mrf.mxu1  ;;  %12235 = vmatmul.mubr.bf16.gmra.mxu0 %v12932_v37  ;;  %12475 = vmatmul.mubr.bf16.gmra.mxu1 %v12933_v4  ;;  %v12936_v37 = vld [vmem:[%s17150_s0 + $0x468] sm:$0xff]   ;;  %v12937_v4 = vld [vmem:[%s17150_s0 + $0x4d8] sm:$0xff]  }
 0x24b   :  { %17869 = vst [vmem:[#allocation316_spill] sm:$0xff] %v15135_v26  ;;  %17870 = vst [vmem:[#allocation317_spill] sm:$0xff] %v15137_v61  ;;  %12238 = vmatprep.mubr.bf16.mxu0 %v12934_v35  ;;  %12478 = vmatprep.mubr.bf16.mxu1 %v12935_v13  ;;  %v12938_v35 = vld [vmem:[%s17150_s0 + $0x470] sm:$0xff]  }
 0x24c   :  { %v15141_v9 = vpop.f32.mrf.mxu0  ;;  %v15143_v48 = vpop.f32.mrf.mxu1 }
 0x24d   :  { %17871 = vst [vmem:[#allocation318_spill] sm:$0xff] %v15141_v9  ;;  %17872 = vst [vmem:[#allocation319_spill] sm:$0xff] %v15143_v48 }
 0x24e   :  { %v15147_v5 = vpop.f32.mrf.mxu0  ;;  %v15149_v32 = vpop.f32.mrf.mxu1 }
 0x24f   :  { %17873 = vst [vmem:[#allocation320_spill] sm:$0xff] %v15147_v5  ;;  %17874 = vst [vmem:[#allocation321_spill] sm:$0xff] %v15149_v32 }
 0x250   :  { %v15165_v53 = vpop.f32.mrf.mxu0  ;;  %v15167_v48 = vpop.f32.mrf.mxu1 }
 0x251   :  { %17875 = vst [vmem:[#allocation322_spill] sm:$0xff] %v15165_v53  ;;  %17876 = vst [vmem:[#allocation323_spill] sm:$0xff] %v15167_v48  ;;  %v12947_v48 = vld [vmem:[%s17150_s0 + $0x500] sm:$0xff]  }
 0x252   :  { %v15171_v61 = vpop.f32.mrf.mxu0  ;;  %v15173_v26 = vpop.f32.mrf.mxu1  ;;  %12239 = vmatmul.mubr.bf16.gmra.mxu0 %v12936_v37  ;;  %12479 = vmatmul.mubr.bf16.gmra.mxu1 %v12937_v4  ;;  %v12940_v37 = vld [vmem:[%s17150_s0 + $0x478] sm:$0xff]   ;;  %v12941_v4 = vld [vmem:[%s17150_s0 + $0x4e8] sm:$0xff]  }
 0x253   :  { %17877 = vst [vmem:[#allocation324_spill] sm:$0xff] %v15171_v61  ;;  %17878 = vst [vmem:[#allocation325_spill] sm:$0xff] %v15173_v26  ;;  %12242 = vmatprep.mubr.bf16.mxu0 %v12938_v35  ;;  %12482 = vmatprep.mubr.bf16.mxu1 %v12939_v8  ;;  %v12942_v35 = vld [vmem:[%s17150_s0 + $0x480] sm:$0xff]  }
 0x254   :  { %v15177_v32 = vpop.f32.mrf.mxu0  ;;  %v15179_v5 = vpop.f32.mrf.mxu1 }
 0x255   :  { %17879 = vst [vmem:[#allocation326_spill] sm:$0xff] %v15177_v32  ;;  %17880 = vst [vmem:[#allocation327_spill] sm:$0xff] %v15179_v5 }
 0x256   :  { %v15183_v56 = vpop.f32.mrf.mxu0  ;;  %v15185_v9 = vpop.f32.mrf.mxu1 }
 0x257   :  { %17881 = vst [vmem:[#allocation328_spill] sm:$0xff] %v15183_v56  ;;  %17882 = vst [vmem:[#allocation329_spill] sm:$0xff] %v15185_v9 }
 0x258   :  { %v15201_v13 = vpop.f32.mrf.mxu0  ;;  %v15203_v5 = vpop.f32.mrf.mxu1 }
 0x259   :  { %17883 = vst [vmem:[#allocation330_spill] sm:$0xff] %v15201_v13  ;;  %17884 = vst [vmem:[#allocation331_spill] sm:$0xff] %v15203_v5  ;;  %v12951_v5 = vld [vmem:[%s17150_s0 + $0x510] sm:$0xff]  }
 0x25a   :  { %v15207_v26 = vpop.f32.mrf.mxu0  ;;  %v15209_v61 = vpop.f32.mrf.mxu1  ;;  %12243 = vmatmul.mubr.bf16.gmra.mxu0 %v12940_v37  ;;  %12483 = vmatmul.mubr.bf16.gmra.mxu1 %v12941_v4  ;;  %v12944_v37 = vld [vmem:[%s17150_s0 + $0x488] sm:$0xff]   ;;  %v12945_v4 = vld [vmem:[%s17150_s0 + $0x4f8] sm:$0xff]  }
 0x25b   :  { %17885 = vst [vmem:[#allocation332_spill] sm:$0xff] %v15207_v26  ;;  %17886 = vst [vmem:[#allocation333_spill] sm:$0xff] %v15209_v61  ;;  %12246 = vmatprep.mubr.bf16.mxu0 %v12942_v35  ;;  %12486 = vmatprep.mubr.bf16.mxu1 %v12943_v0  ;;  %v12946_v35 = vld [vmem:[%s17150_s0 + $0x490] sm:$0xff]  }
 0x25c   :  { %v15213_v9 = vpop.f32.mrf.mxu0  ;;  %v15215_v56 = vpop.f32.mrf.mxu1 }
 0x25d   :  { %17887 = vst [vmem:[#allocation334_spill] sm:$0xff] %v15213_v9  ;;  %17888 = vst [vmem:[#allocation335_spill] sm:$0xff] %v15215_v56 }
 0x25e   :  { %v15219_v53 = vpop.f32.mrf.mxu0  ;;  %v15221_v32 = vpop.f32.mrf.mxu1 }
 0x25f   :  { %17889 = vst [vmem:[#allocation336_spill] sm:$0xff] %v15219_v53  ;;  %17890 = vst [vmem:[#allocation337_spill] sm:$0xff] %v15221_v32 }
 0x260   :  { %v15237_v8 = vpop.f32.mrf.mxu0  ;;  %v15239_v56 = vpop.f32.mrf.mxu1 }
 0x261   :  { %17891 = vst [vmem:[#allocation338_spill] sm:$0xff] %v15237_v8  ;;  %17892 = vst [vmem:[#allocation339_spill] sm:$0xff] %v15239_v56  ;;  %v12955_v56 = vld [vmem:[%s17150_s0 + $0x520] sm:$0xff]  }
 0x262   :  { %v15243_v61 = vpop.f32.mrf.mxu0  ;;  %v15245_v26 = vpop.f32.mrf.mxu1  ;;  %12247 = vmatmul.mubr.bf16.gmra.mxu0 %v12944_v37  ;;  %12487 = vmatmul.mubr.bf16.gmra.mxu1 %v12945_v4  ;;  %v12948_v37 = vld [vmem:[%s17150_s0 + $0x498] sm:$0xff]   ;;  %v12949_v4 = vld [vmem:[%s17150_s0 + $0x508] sm:$0xff]  }
 0x263   :  { %17893 = vst [vmem:[#allocation340_spill] sm:$0xff] %v15243_v61  ;;  %17894 = vst [vmem:[#allocation341_spill] sm:$0xff] %v15245_v26  ;;  %12250 = vmatprep.mubr.bf16.mxu0 %v12946_v35  ;;  %12490 = vmatprep.mubr.bf16.mxu1 %v12947_v48  ;;  %v12950_v35 = vld [vmem:[%s17150_s0 + $0x4a0] sm:$0xff]  }
 0x264   :  { %v15249_v32 = vpop.f32.mrf.mxu0  ;;  %v15251_v53 = vpop.f32.mrf.mxu1 }
 0x265   :  { %17895 = vst [vmem:[#allocation342_spill] sm:$0xff] %v15249_v32  ;;  %17896 = vst [vmem:[#allocation343_spill] sm:$0xff] %v15251_v53 }
 0x266   :  { %v15255_v13 = vpop.f32.mrf.mxu0  ;;  %v15257_v9 = vpop.f32.mrf.mxu1 }
 0x267   :  { %17897 = vst [vmem:[#allocation344_spill] sm:$0xff] %v15255_v13  ;;  %17898 = vst [vmem:[#allocation345_spill] sm:$0xff] %v15257_v9 }
 0x268   :  { %v15273_v0 = vpop.f32.mrf.mxu0  ;;  %v15275_v53 = vpop.f32.mrf.mxu1 }
 0x269   :  { %17899 = vst [vmem:[#allocation346_spill] sm:$0xff] %v15273_v0  ;;  %17900 = vst [vmem:[#allocation347_spill] sm:$0xff] %v15275_v53  ;;  %v12959_v53 = vld [vmem:[%s17150_s0 + $0x530] sm:$0xff]  }
 0x26a   :  { %v15279_v26 = vpop.f32.mrf.mxu0  ;;  %v15281_v61 = vpop.f32.mrf.mxu1  ;;  %12251 = vmatmul.mubr.bf16.gmra.mxu0 %v12948_v37  ;;  %12491 = vmatmul.mubr.bf16.gmra.mxu1 %v12949_v4  ;;  %v12952_v37 = vld [vmem:[%s17150_s0 + $0x4a8] sm:$0xff]   ;;  %v12953_v4 = vld [vmem:[%s17150_s0 + $0x518] sm:$0xff]  }
 0x26b   :  { %17901 = vst [vmem:[#allocation348_spill] sm:$0xff] %v15279_v26  ;;  %17902 = vst [vmem:[#allocation349_spill] sm:$0xff] %v15281_v61  ;;  %12254 = vmatprep.mubr.bf16.mxu0 %v12950_v35  ;;  %12494 = vmatprep.mubr.bf16.mxu1 %v12951_v5  ;;  %v12954_v35 = vld [vmem:[%s17150_s0 + $0x4b0] sm:$0xff]  }
 0x26c   :  { %v15285_v9 = vpop.f32.mrf.mxu0  ;;  %v15287_v13 = vpop.f32.mrf.mxu1 }
 0x26d   :  { %17903 = vst [vmem:[#allocation350_spill] sm:$0xff] %v15285_v9  ;;  %17904 = vst [vmem:[#allocation351_spill] sm:$0xff] %v15287_v13 }
 0x26e   :  { %v15291_v8 = vpop.f32.mrf.mxu0  ;;  %v15293_v32 = vpop.f32.mrf.mxu1 }
 0x26f   :  { %17905 = vst [vmem:[#allocation352_spill] sm:$0xff] %v15291_v8  ;;  %17906 = vst [vmem:[#allocation353_spill] sm:$0xff] %v15293_v32 }
 0x270   :  { %v15309_v48 = vpop.f32.mrf.mxu0  ;;  %v15311_v13 = vpop.f32.mrf.mxu1 }
 0x271   :  { %17907 = vst [vmem:[#allocation354_spill] sm:$0xff] %v15309_v48  ;;  %17908 = vst [vmem:[#allocation355_spill] sm:$0xff] %v15311_v13  ;;  %v12963_v13 = vld [vmem:[%s17150_s0 + $0x690] sm:$0xff]  }
 0x272   :  { %v15315_v61 = vpop.f32.mrf.mxu0  ;;  %v15317_v26 = vpop.f32.mrf.mxu1  ;;  %12255 = vmatmul.mubr.bf16.gmra.mxu0 %v12952_v37  ;;  %12495 = vmatmul.mubr.bf16.gmra.mxu1 %v12953_v4  ;;  %v12956_v37 = vld [vmem:[%s17150_s0 + $0x4b8] sm:$0xff]   ;;  %v12957_v4 = vld [vmem:[%s17150_s0 + $0x528] sm:$0xff]  }
 0x273   :  { %17909 = vst [vmem:[#allocation356_spill] sm:$0xff] %v15315_v61  ;;  %17910 = vst [vmem:[#allocation357_spill] sm:$0xff] %v15317_v26  ;;  %12258 = vmatprep.mubr.bf16.mxu0 %v12954_v35  ;;  %12498 = vmatprep.mubr.bf16.mxu1 %v12955_v56  ;;  %v12958_v35 = vld [vmem:[%s17150_s0 + $0x4c0] sm:$0xff]  }
 0x274   :  { %v15321_v32 = vpop.f32.mrf.mxu0  ;;  %v15323_v8 = vpop.f32.mrf.mxu1 }
 0x275   :  { %17911 = vst [vmem:[#allocation358_spill] sm:$0xff] %v15321_v32  ;;  %17912 = vst [vmem:[#allocation359_spill] sm:$0xff] %v15323_v8 }
 0x276   :  { %v15327_v0 = vpop.f32.mrf.mxu0  ;;  %v15329_v9 = vpop.f32.mrf.mxu1 }
 0x277   :  { %17913 = vst [vmem:[#allocation360_spill] sm:$0xff] %v15327_v0  ;;  %17914 = vst [vmem:[#allocation361_spill] sm:$0xff] %v15329_v9 }
 0x278   :  { %v15345_v5 = vpop.f32.mrf.mxu0  ;;  %v15347_v8 = vpop.f32.mrf.mxu1 }
 0x279   :  { %17915 = vst [vmem:[#allocation362_spill] sm:$0xff] %v15345_v5  ;;  %17916 = vst [vmem:[#allocation363_spill] sm:$0xff] %v15347_v8  ;;  %v12967_v8 = vld [vmem:[%s17150_s0 + $0x6a0] sm:$0xff]  }
 0x27a   :  { %v15351_v26 = vpop.f32.mrf.mxu0  ;;  %v15353_v61 = vpop.f32.mrf.mxu1  ;;  %12259 = vmatmul.mubr.bf16.gmra.mxu0 %v12956_v37  ;;  %12499 = vmatmul.mubr.bf16.gmra.mxu1 %v12957_v4  ;;  %v12960_v37 = vld [vmem:[%s17150_s0 + $0x4c8] sm:$0xff]   ;;  %v12961_v4 = vld [vmem:[%s17150_s0 + $0x538] sm:$0xff]  }
 0x27b   :  { %17917 = vst [vmem:[#allocation364_spill] sm:$0xff] %v15351_v26  ;;  %17918 = vst [vmem:[#allocation365_spill] sm:$0xff] %v15353_v61  ;;  %12262 = vmatprep.mubr.bf16.mxu0 %v12958_v35  ;;  %12502 = vmatprep.mubr.bf16.mxu1 %v12959_v53  ;;  %v12962_v35 = vld [vmem:[%s17150_s0 + $0x620] sm:$0xff]  }
 0x27c   :  { %v15357_v9 = vpop.f32.mrf.mxu0  ;;  %v15359_v0 = vpop.f32.mrf.mxu1 }
 0x27d   :  { %17919 = vst [vmem:[#allocation366_spill] sm:$0xff] %v15357_v9  ;;  %17920 = vst [vmem:[#allocation367_spill] sm:$0xff] %v15359_v0 }
 0x27e   :  { %v15363_v48 = vpop.f32.mrf.mxu0  ;;  %v15365_v32 = vpop.f32.mrf.mxu1 }
 0x27f   :  { %17921 = vst [vmem:[#allocation368_spill] sm:$0xff] %v15363_v48  ;;  %17922 = vst [vmem:[#allocation369_spill] sm:$0xff] %v15365_v32 }
 0x280   :  { %v15381_v56 = vpop.f32.mrf.mxu0  ;;  %v15383_v0 = vpop.f32.mrf.mxu1 }
 0x281   :  { %17923 = vst [vmem:[#allocation370_spill] sm:$0xff] %v15381_v56  ;;  %17924 = vst [vmem:[#allocation371_spill] sm:$0xff] %v15383_v0  ;;  %v12971_v0 = vld [vmem:[%s17150_s0 + $0x6b0] sm:$0xff]  }
 0x282   :  { %v15387_v61 = vpop.f32.mrf.mxu0  ;;  %v15389_v26 = vpop.f32.mrf.mxu1  ;;  %12263 = vmatmul.mubr.bf16.gmra.mxu0 %v12960_v37  ;;  %12503 = vmatmul.mubr.bf16.gmra.mxu1 %v12961_v4  ;;  %v12964_v37 = vld [vmem:[%s17150_s0 + $0x628] sm:$0xff]   ;;  %v12965_v4 = vld [vmem:[%s17150_s0 + $0x698] sm:$0xff]  }
 0x283   :  { %17925 = vst [vmem:[#allocation372_spill] sm:$0xff] %v15387_v61  ;;  %17926 = vst [vmem:[#allocation373_spill] sm:$0xff] %v15389_v26  ;;  %12266 = vmatprep.mubr.bf16.mxu0 %v12962_v35  ;;  %12506 = vmatprep.mubr.bf16.mxu1 %v12963_v13  ;;  %v12966_v35 = vld [vmem:[%s17150_s0 + $0x630] sm:$0xff]  }
 0x284   :  { %v15393_v32 = vpop.f32.mrf.mxu0  ;;  %v15395_v48 = vpop.f32.mrf.mxu1 }
 0x285   :  { %17927 = vst [vmem:[#allocation374_spill] sm:$0xff] %v15393_v32  ;;  %17928 = vst [vmem:[#allocation375_spill] sm:$0xff] %v15395_v48 }
 0x286   :  { %v15399_v5 = vpop.f32.mrf.mxu0  ;;  %v15401_v9 = vpop.f32.mrf.mxu1 }
 0x287   :  { %17929 = vst [vmem:[#allocation376_spill] sm:$0xff] %v15399_v5  ;;  %17930 = vst [vmem:[#allocation377_spill] sm:$0xff] %v15401_v9 }
 0x288   :  { %v15417_v53 = vpop.f32.mrf.mxu0  ;;  %v15419_v48 = vpop.f32.mrf.mxu1 }
 0x289   :  { %17931 = vst [vmem:[#allocation378_spill] sm:$0xff] %v15417_v53  ;;  %17932 = vst [vmem:[#allocation379_spill] sm:$0xff] %v15419_v48  ;;  %v12975_v48 = vld [vmem:[%s17150_s0 + $0x6c0] sm:$0xff]  }
 0x28a   :  { %v15423_v26 = vpop.f32.mrf.mxu0  ;;  %v15425_v61 = vpop.f32.mrf.mxu1  ;;  %12267 = vmatmul.mubr.bf16.gmra.mxu0 %v12964_v37  ;;  %12507 = vmatmul.mubr.bf16.gmra.mxu1 %v12965_v4  ;;  %v12968_v37 = vld [vmem:[%s17150_s0 + $0x638] sm:$0xff]   ;;  %v12969_v4 = vld [vmem:[%s17150_s0 + $0x6a8] sm:$0xff]  }
 0x28b   :  { %17933 = vst [vmem:[#allocation380_spill] sm:$0xff] %v15423_v26  ;;  %17934 = vst [vmem:[#allocation381_spill] sm:$0xff] %v15425_v61  ;;  %12270 = vmatprep.mubr.bf16.mxu0 %v12966_v35  ;;  %12510 = vmatprep.mubr.bf16.mxu1 %v12967_v8  ;;  %v12970_v35 = vld [vmem:[%s17150_s0 + $0x640] sm:$0xff]  }
 0x28c   :  { %v15429_v9 = vpop.f32.mrf.mxu0  ;;  %v15431_v5 = vpop.f32.mrf.mxu1 }
 0x28d   :  { %17935 = vst [vmem:[#allocation382_spill] sm:$0xff] %v15429_v9  ;;  %17936 = vst [vmem:[#allocation383_spill] sm:$0xff] %v15431_v5 }
 0x28e   :  { %v15435_v56 = vpop.f32.mrf.mxu0  ;;  %v15437_v32 = vpop.f32.mrf.mxu1 }
 0x28f   :  { %17937 = vst [vmem:[#allocation384_spill] sm:$0xff] %v15435_v56  ;;  %17938 = vst [vmem:[#allocation385_spill] sm:$0xff] %v15437_v32 }
 0x290   :  { %v15453_v13 = vpop.f32.mrf.mxu0  ;;  %v15455_v5 = vpop.f32.mrf.mxu1 }
 0x291   :  { %17939 = vst [vmem:[#allocation386_spill] sm:$0xff] %v15453_v13  ;;  %17940 = vst [vmem:[#allocation387_spill] sm:$0xff] %v15455_v5  ;;  %v12979_v5 = vld [vmem:[%s17150_s0 + $0x6d0] sm:$0xff]  }
 0x292   :  { %v15459_v61 = vpop.f32.mrf.mxu0  ;;  %v15461_v26 = vpop.f32.mrf.mxu1  ;;  %12271 = vmatmul.mubr.bf16.gmra.mxu0 %v12968_v37  ;;  %12511 = vmatmul.mubr.bf16.gmra.mxu1 %v12969_v4  ;;  %v12972_v37 = vld [vmem:[%s17150_s0 + $0x648] sm:$0xff]   ;;  %v12973_v4 = vld [vmem:[%s17150_s0 + $0x6b8] sm:$0xff]  }
 0x293   :  { %17941 = vst [vmem:[#allocation388_spill] sm:$0xff] %v15459_v61  ;;  %17942 = vst [vmem:[#allocation389_spill] sm:$0xff] %v15461_v26  ;;  %12274 = vmatprep.mubr.bf16.mxu0 %v12970_v35  ;;  %12514 = vmatprep.mubr.bf16.mxu1 %v12971_v0  ;;  %v12974_v35 = vld [vmem:[%s17150_s0 + $0x650] sm:$0xff]  }
 0x294   :  { %v15465_v32 = vpop.f32.mrf.mxu0  ;;  %v15467_v56 = vpop.f32.mrf.mxu1 }
 0x295   :  { %17943 = vst [vmem:[#allocation390_spill] sm:$0xff] %v15465_v32  ;;  %17944 = vst [vmem:[#allocation391_spill] sm:$0xff] %v15467_v56 }
 0x296   :  { %v15471_v53 = vpop.f32.mrf.mxu0  ;;  %v15473_v9 = vpop.f32.mrf.mxu1 }
 0x297   :  { %17945 = vst [vmem:[#allocation392_spill] sm:$0xff] %v15471_v53  ;;  %17946 = vst [vmem:[#allocation393_spill] sm:$0xff] %v15473_v9 }
 0x298   :  { %v15489_v8 = vpop.f32.mrf.mxu0  ;;  %v15491_v56 = vpop.f32.mrf.mxu1 }
 0x299   :  { %17947 = vst [vmem:[#allocation394_spill] sm:$0xff] %v15489_v8  ;;  %17948 = vst [vmem:[#allocation395_spill] sm:$0xff] %v15491_v56  ;;  %v17957_v56 = vmax.f32 %v13515_v46, %v13517_v47  ;;  %v17958_v46 = vmax.f32 %v13521_v49, %v13523_v50 }
 0x29a   :  { %v15495_v26 = vpop.f32.mrf.mxu0  ;;  %v15497_v61 = vpop.f32.mrf.mxu1  ;;  %12275 = vmatmul.mubr.bf16.gmra.mxu0 %v12972_v37  ;;  %12515 = vmatmul.mubr.bf16.gmra.mxu1 %v12973_v4  ;;  %v12976_v37 = vld [vmem:[%s17150_s0 + $0x658] sm:$0xff]   ;;  %v12977_v4 = vld [vmem:[%s17150_s0 + $0x6c8] sm:$0xff]  }
 0x29b   :  { %17949 = vst [vmem:[#allocation396_spill] sm:$0xff] %v15495_v26  ;;  %17950 = vst [vmem:[#allocation397_spill] sm:$0xff] %v15497_v61  ;;  %12278 = vmatprep.mubr.bf16.mxu0 %v12974_v35  ;;  %12518 = vmatprep.mubr.bf16.mxu1 %v12975_v48  ;;  %v12978_v35 = vld [vmem:[%s17150_s0 + $0x660] sm:$0xff]  }
 0x29c   :  { %v15501_v9 = vpop.f32.mrf.mxu0  ;;  %v15503_v53 = vpop.f32.mrf.mxu1 }
 0x29d   :  { %17951 = vst [vmem:[#allocation398_spill] sm:$0xff] %v15501_v9  ;;  %17952 = vst [vmem:[#allocation399_spill] sm:$0xff] %v15503_v53 }
 0x29e   :  { %v15507_v13 = vpop.f32.mrf.mxu0  ;;  %v15509_v32 = vpop.f32.mrf.mxu1 }
 0x29f   :  { %17953 = vst [vmem:[#allocation400_spill] sm:$0xff] %v15507_v13  ;;  %17954 = vst [vmem:[#allocation401_spill] sm:$0xff] %v15509_v32 }
 0x2a0   :  { %v15525_v0 = vpop.f32.mrf.mxu0  ;;  %v15527_v53 = vpop.f32.mrf.mxu1 }
 0x2a1   :  { %17955 = vst [vmem:[#allocation402_spill] sm:$0xff] %v15525_v0  ;;  %17956 = vst [vmem:[#allocation403_spill] sm:$0xff] %v15527_v53 }
 0x2a2   :  { %v12184_v61 = vpop.f32.mrf.mxu0  ;;  %12279 = vmatmul.mubr.bf16.gmra.mxu0 %v12976_v37  ;;  %v12424_v26 = vpop.f32.mrf.mxu1  ;;  %12519 = vmatmul.mubr.bf16.gmra.mxu1 %v12977_v4 }
 0x2a3   :  { %v7605_v48 = vmax.f32 %v12184_v61, %v12424_v26  ;;  %12282 = vmatprep.mubr.bf16.mxu0 %v12978_v35  ;;  %12522 = vmatprep.mubr.bf16.mxu1 %v12979_v5  ;;  %v12980_v61 = vld [vmem:[%s17150_s0 + $0x668] sm:$0xff]   ;;  %v12981_v26 = vld [vmem:[%s17150_s0 + $0x6d8] sm:$0xff]   ;;  %v12982_v5 = vld [vmem:[%s17150_s0 + $0x670] sm:$0xff]  }
 0x2a4   :  { %v4883_v32 = vpop.f32.mrf.mxu0  ;;  %v6708_v13 = vpop.f32.mrf.mxu1 }
 0x2a5   :  { %v7829_v8 = vmax.f32 %v17957_v56, %v7605_v48  ;;  %v7603_v16 = vmax.f32 %v4883_v32, %v6708_v13  ;;  %v12983_v56 = vld [vmem:[%s17150_s0 + $0x6e0] sm:$0xff]   ;;  %v17959_v48 = vmax.f32 %v13533_v54, %v13535_v55 }
 0x2a6   :  { %v12185_v9 = vpop.f32.mrf.mxu0  ;;  %v12425_v53 = vpop.f32.mrf.mxu1 }
 0x2a7   :  { %v7827_v47 = vmax.f32 %v17958_v46, %v7603_v16  ;;  %v7606_v32 = vmax.f32 %v12185_v9, %v12425_v53  ;;  %v8060_v4 = vadd.f32 %v15537_v21, %v7829_v8  ;;  %v17960_v53 = vmax.f32 %v13545_v59, %v13547_v60  ;;  %v12984_v59 = vld [vmem:[%s17150_s0 + $0x678] sm:$0xff]   ;;  %v12985_v60 = vld [vmem:[%s17150_s0 + $0x6e8] sm:$0xff]  }
 0x2a8   :  { %v4886_v13 = vpop.f32.mrf.mxu0  ;;  %v6711_v37 = vpop.f32.mrf.mxu1 }
 0x2a9   :  { %v7830_v35 = vmax.f32 %v17959_v48, %v7606_v32  ;;  %v7604_v0 = vmax.f32 %v4886_v13, %v6711_v37  ;;  %v8058_v49 = vadd.f32 %v15537_v21, %v7827_v47  ;;  %v8284_v54 = vmax.f32 %v8060_v4, 0.0 }
 0x2aa   :  { %v12188_v50 = vpop.f32.mrf.mxu0  ;;  %12283 = vmatmul.mubr.bf16.gmra.mxu0 %v12980_v61  ;;  %v12428_v16 = vpop.f32.mrf.mxu1  ;;  %12523 = vmatmul.mubr.bf16.gmra.mxu1 %v12981_v26  ;;  %v17961_v61 = vmax.f32 %v13551_v62, %v13553_v63  ;;  %v12986_v62 = vld [vmem:[%s17150_s0 + $0x680] sm:$0xff]   ;;  %v12987_v63 = vld [vmem:[%s17150_s0 + $0x6f0] sm:$0xff]  }
 0x2ab   :  { %v8061_v9 = vadd.f32 %v15537_v21, %v7830_v35  ;;  %v7828_v46 = vmax.f32 %v17960_v53, %v7604_v0  ;;  %v7609_v24 = vmax.f32 %v12188_v50, %v12428_v16  ;;  %12286 = vmatprep.mubr.bf16.mxu0 %v12982_v5  ;;  %12526 = vmatprep.mubr.bf16.mxu1 %v12983_v56  ;;  %v8282_v0 = vmax.f32 %v8058_v49, 0.0 }
 0x2ac   :  { %v4899_v8 = vpop.f32.mrf.mxu0  ;;  %v6724_v29 = vpop.f32.mrf.mxu1 }
 0x2ad   :  { %v8285_v55 = vmax.f32 %v8061_v9, 0.0  ;;  %v8059_v32 = vadd.f32 %v15537_v21, %v7828_v46  ;;  %v7607_v47 = vmax.f32 %v4899_v8, %v6724_v29  ;;  %v7833_v26 = vmax.f32 %v17961_v61, %v7609_v24 }
 0x2ae   :  { %v12189_v13 = vpop.f32.mrf.mxu0  ;;  %v12429_v37 = vpop.f32.mrf.mxu1  ;;  %v17962_v29 = vmax.f32 %v13557_v1, %v13559_v2  ;;  %v17963_v2 = vmax.f32 %v13569_v6, %v13571_v7  ;;  %v17964_v8 = vmax.f32 %v13581_v11, %v13583_v12  ;;  %v17965_v61 = vmax.f32 %v13587_v14, %v13589_v15  ;;  %v12988_v11 = vld [vmem:[%s17150_s0 + $0x688] sm:$0xff]   ;;  %v12989_v12 = vld [vmem:[%s17150_s0 + $0x6f8] sm:$0xff]   ;;  %v12990_v14 = vld [vmem:[%s17150_s0 + $0x7e0] sm:$0xff]  }
 0x2af   :  { %v10543_v5 = vpack.c.bf16 %v8285_v55, %v8284_v54  ;;  %v8283_v56 = vmax.f32 %v8059_v32, 0.0  ;;  %v7610_v24 = vmax.f32 %v12189_v13, %v12429_v37  ;;  %v8064_v1 = vadd.f32 %v15537_v21, %v7833_v26  ;;  %v12991_v15 = vld [vmem:[%s17150_s0 + $0x850] sm:$0xff]  }
 0x2b0   :  { %v7831_v4 = vmax.f32 %v17962_v29, %v7607_v47  ;;  %v4902_v48 = vpop.f32.mrf.mxu0  ;;  %v6727_v35 = vpop.f32.mrf.mxu1 }
 0x2b1   :  { %11095 = vst [vmem:[%s17152_s3 + $0x8] sm:$0xff] %v10543_v5   ;;  %v10538_v49 = vpack.c.bf16 %v8283_v56, %v8282_v0  ;;  %v7608_v50 = vmax.f32 %v4902_v48, %v6727_v35  ;;  %v7834_v16 = vmax.f32 %v17963_v2, %v7610_v24  ;;  %v8288_v37 = vmax.f32 %v8064_v1, 0.0 }
 0x2b2   :  { %v12192_v9 = vpop.f32.mrf.mxu0  ;;  %12287 = vmatmul.mubr.bf16.gmra.mxu0 %v12984_v59  ;;  %v12432_v53 = vpop.f32.mrf.mxu1  ;;  %12527 = vmatmul.mubr.bf16.gmra.mxu1 %v12985_v60  ;;  %v8062_v46 = vadd.f32 %v15537_v21, %v7831_v4 }
 0x2b3   :  { %10539 = vst [vmem:[%s17152_s3] sm:$0xff] %v10538_v49   ;;  %v7832_v54 = vmax.f32 %v17964_v8, %v7608_v50  ;;  %v7613_v55 = vmax.f32 %v12192_v9, %v12432_v53  ;;  %12290 = vmatprep.mubr.bf16.mxu0 %v12986_v62  ;;  %12530 = vmatprep.mubr.bf16.mxu1 %v12987_v63 }
 0x2b4   :  { %v8065_v6 = vadd.f32 %v15537_v21, %v7834_v16  ;;  %v4915_v7 = vpop.f32.mrf.mxu0  ;;  %v6740_v32 = vpop.f32.mrf.mxu1  ;;  %v8286_v5 = vmax.f32 %v8062_v46, 0.0  ;;  %v17966_v62 = vmax.f32 %v13593_v17, %v13595_v18  ;;  %v17967_v50 = vmax.f32 %v13605_v22, %v13607_v23 }
 0x2b5   :  { %v8063_v47 = vadd.f32 %v15537_v21, %v7832_v54  ;;  %v7837_v26 = vmax.f32 %v17965_v61, %v7613_v55  ;;  %v7611_v13 = vmax.f32 %v4915_v7, %v6740_v32  ;;  %v17968_v23 = vmax.f32 %v13617_v27, %v13619_v28  ;;  %v12993_v27 = vld [vmem:[%s17150_s0 + $0x858] sm:$0xff]  }
 0x2b6   :  { %v8289_v59 = vmax.f32 %v8065_v6, 0.0  ;;  %v12193_v60 = vpop.f32.mrf.mxu0  ;;  %v12433_v0 = vpop.f32.mrf.mxu1  ;;  %v17969_v6 = vmax.f32 %v13623_v30, %v13625_v31  ;;  %v12994_v31 = vld [vmem:[%s17150_s0 + $0x7f0] sm:$0xff]  }
 0x2b7   :  { %v8287_v56 = vmax.f32 %v8063_v47, 0.0  ;;  %v7614_v29 = vmax.f32 %v12193_v60, %v12433_v0  ;;  %v7835_v63 = vmax.f32 %v17966_v62, %v7611_v13  ;;  %v8068_v49 = vadd.f32 %v15537_v21, %v7837_v26  ;;  %v12992_v13 = vld [vmem:[%s17150_s0 + $0x7e8] sm:$0xff]   ;;  %v12995_v60 = vld [vmem:[%s17150_s0 + $0x860] sm:$0xff]  }
 0x2b8   :  { %v10553_v4 = vpack.c.bf16 %v8289_v59, %v8288_v37  ;;  %v4918_v24 = vpop.f32.mrf.mxu0  ;;  %v6743_v48 = vpop.f32.mrf.mxu1  ;;  %v17970_v37 = vmax.f32 %v13629_v33, %v13631_v34  ;;  %v17971_v34 = vmax.f32 %v13641_v38, %v13643_v39 }
 0x2b9   :  { %v10548_v35 = vpack.c.bf16 %v8287_v56, %v8286_v5  ;;  %v7838_v1 = vmax.f32 %v17967_v50, %v7614_v29  ;;  %v7612_v2 = vmax.f32 %v4918_v24, %v6743_v48  ;;  %v8066_v22 = vadd.f32 %v15537_v21, %v7835_v63 }
 0x2ba   :  { %11097 = vst [vmem:[%s17152_s3 + $0x18] sm:$0xff] %v10553_v4   ;;  %v12196_v16 = vpop.f32.mrf.mxu0  ;;  %12291 = vmatmul.mubr.bf16.gmra.mxu0 %v12988_v11  ;;  %v12436_v9 = vpop.f32.mrf.mxu1  ;;  %12531 = vmatmul.mubr.bf16.gmra.mxu1 %v12989_v12  ;;  %v8292_v54 = vmax.f32 %v8068_v49, 0.0  ;;  %v17972_v24 = vmax.f32 %v13653_v43, %v13655_v44 }
 0x2bb   :  { %11096 = vst [vmem:[%s17152_s3 + $0x10] sm:$0xff] %v10548_v35   ;;  %v8069_v17 = vadd.f32 %v15537_v21, %v7838_v1  ;;  %v7617_v18 = vmax.f32 %v12196_v16, %v12436_v9  ;;  %12294 = vmatprep.mubr.bf16.mxu0 %v12990_v14  ;;  %12534 = vmatprep.mubr.bf16.mxu1 %v12991_v15  ;;  %v8290_v0 = vmax.f32 %v8066_v22, 0.0 }
 0x2bc   :  { %v7836_v53 = vmax.f32 %v17968_v23, %v7612_v2  ;;  %v4931_v46 = vpop.f32.mrf.mxu0  ;;  %v6756_v8 = vpop.f32.mrf.mxu1  ;;  %v17973_v16 = vmax.f32 %v13659_v51, %v13661_v52  ;;  %v12998_v51 = vld [vmem:[%s17150_s0 + $0x800] sm:$0xff]   ;;  %v12999_v52 = vld [vmem:[%s17150_s0 + $0x870] sm:$0xff]  }
 0x2bd   :  { %v8293_v55 = vmax.f32 %v8069_v17, 0.0  ;;  %v7841_v7 = vmax.f32 %v17969_v6, %v7617_v18  ;;  %v7615_v32 = vmax.f32 %v4931_v46, %v6756_v8  ;;  %v12996_v17 = vld [vmem:[%s17150_s0 + $0x7f8] sm:$0xff]   ;;  %v12997_v18 = vld [vmem:[%s17150_s0 + $0x868] sm:$0xff]   ;;  %v17974_v46 = vmax.f32 %v13665_v58, %v13667_v3 }
 0x2be   :  { %v8067_v47 = vadd.f32 %v15537_v21, %v7836_v53  ;;  %v12197_v61 = vpop.f32.mrf.mxu0  ;;  %v12437_v26 = vpop.f32.mrf.mxu1  ;;  %v17975_v3 = vmax.f32 %v13677_v19, %v13679_v20 }
 0x2bf   :  { %v10563_v28 = vpack.c.bf16 %v8293_v55, %v8292_v54  ;;  %v7839_v59 = vmax.f32 %v17970_v37, %v7615_v32  ;;  %v7618_v30 = vmax.f32 %v12197_v61, %v12437_v26  ;;  %v8072_v33 = vadd.f32 %v15537_v21, %v7841_v7 }
 0x2c0   :  { %v8291_v11 = vmax.f32 %v8067_v47, 0.0  ;;  %v4934_v12 = vpop.f32.mrf.mxu0  ;;  %v6759_v5 = vpop.f32.mrf.mxu1 }
 0x2c1   :  { %11099 = vst [vmem:[%s17152_s3 + $0x28] sm:$0xff] %v10563_v28   ;;  %v7842_v56 = vmax.f32 %v17971_v34, %v7618_v30  ;;  %v7616_v29 = vmax.f32 %v4934_v12, %v6759_v5  ;;  %v8070_v15 = vadd.f32 %v15537_v21, %v7839_v59  ;;  %v8296_v49 = vmax.f32 %v8072_v33, 0.0 }
 0x2c2   :  { %v10558_v14 = vpack.c.bf16 %v8291_v11, %v8290_v0  ;;  %v12200_v4 = vpop.f32.mrf.mxu0  ;;  %12295 = vmatmul.mubr.bf16.gmra.mxu0 %v12992_v13  ;;  %v12440_v62 = vpop.f32.mrf.mxu1  ;;  %12535 = vmatmul.mubr.bf16.gmra.mxu1 %v12993_v27  ;;  %v17976_v27 = vmax.f32 %v13689_v36, %v13691_v41  ;;  %v13000_v36 = vld [vmem:[%s17150_s0 + $0x808] sm:$0xff]   ;;  %v13001_v41 = vld [vmem:[%s17150_s0 + $0x878] sm:$0xff]  }
 0x2c3   :  { %v8073_v63 = vadd.f32 %v15537_v21, %v7842_v56  ;;  %v7840_v48 = vmax.f32 %v17972_v24, %v7616_v29  ;;  %v7621_v35 = vmax.f32 %v12200_v4, %v12440_v62  ;;  %12298 = vmatprep.mubr.bf16.mxu0 %v12994_v31  ;;  %12538 = vmatprep.mubr.bf16.mxu1 %v12995_v60  ;;  %v8294_v22 = vmax.f32 %v8070_v15, 0.0 }
 0x2c4   :  { %11098 = vst [vmem:[%s17152_s3 + $0x20] sm:$0xff] %v10558_v14   ;;  %v4947_v38 = vpop.f32.mrf.mxu0  ;;  %v6772_v39 = vpop.f32.mrf.mxu1  ;;  %v17977_v31 = vmax.f32 %v13695_v10, %v13697_v57  ;;  %v13002_v57 = vld [vmem:[%s17150_s0 + $0x810] sm:$0xff]   ;;  %v13003_v10 = vld [vmem:[%s17150_s0 + $0x880] sm:$0xff]   ;;  %v17978_v15 = vmax.f32 %v13701_v45, %v13703_v40 }
 0x2c5   :  { %v8297_v50 = vmax.f32 %v8073_v63, 0.0  ;;  %v8071_v1 = vadd.f32 %v15537_v21, %v7840_v48  ;;  %v7619_v2 = vmax.f32 %v4947_v38, %v6772_v39  ;;  %v7845_v9 = vmax.f32 %v17973_v16, %v7621_v35 }
 0x2c6   :  { %v12201_v43 = vpop.f32.mrf.mxu0  ;;  %v12441_v44 = vpop.f32.mrf.mxu1  ;;  %v17979_v35 = vmax.f32 %v13713_v42, %v13715_v25  ;;  %v17980_v42 = vld [vmem:[#allocation2_spill] sm:$0xff] }
 0x2c7   :  { %v10573_v23 = vpack.c.bf16 %v8297_v50, %v8296_v49  ;;  %v8295_v53 = vmax.f32 %v8071_v1, 0.0  ;;  %v7843_v8 = vmax.f32 %v17974_v46, %v7619_v2  ;;  %v7622_v54 = vmax.f32 %v12201_v43, %v12441_v44  ;;  %v17981_v1 = vld [vmem:[#allocation3_spill] sm:$0xff] }
 0x2c8   :  { %v4950_v55 = vpop.f32.mrf.mxu0  ;;  %v6775_v6 = vpop.f32.mrf.mxu1  ;;  %v8076_v58 = vadd.f32 %v15537_v21, %v7845_v9  ;;  %v17982_v2 = vmax.f32 %v17980_v42, %v17981_v1  ;;  %v17998_v42 = vld [vmem:[#allocation14_spill] sm:$0xff]  ;;  %v17999_v1 = vld [vmem:[#allocation15_spill] sm:$0xff] }
 0x2c9   :  { %11101 = vst [vmem:[%s17152_s3 + $0x38] sm:$0xff] %v10573_v23   ;;  %v10568_v7 = vpack.c.bf16 %v8295_v53, %v8294_v22  ;;  %v7620_v32 = vmax.f32 %v4950_v55, %v6775_v6  ;;  %v7846_v47 = vmax.f32 %v17975_v3, %v7622_v54  ;;  %v8074_v13 = vadd.f32 %v15537_v21, %v7843_v8  ;;  %v17984_v22 = vld [vmem:[#allocation5_spill] sm:$0xff]  ;;  %v13005_v55 = vld [vmem:[%s17150_s0 + $0x888] sm:$0xff]  }
 0x2ca   :  { %v12204_v61 = vpop.f32.mrf.mxu0  ;;  %12299 = vmatmul.mubr.bf16.gmra.mxu0 %v12996_v17  ;;  %v12444_v26 = vpop.f32.mrf.mxu1  ;;  %12539 = vmatmul.mubr.bf16.gmra.mxu1 %v12997_v18  ;;  %v8300_v11 = vmax.f32 %v8076_v58, 0.0  ;;  %v17983_v18 = vld [vmem:[#allocation4_spill] sm:$0xff]  ;;  %v13004_v54 = vld [vmem:[%s17150_s0 + $0x818] sm:$0xff]  }
 0x2cb   :  { %11100 = vst [vmem:[%s17152_s3 + $0x30] sm:$0xff] %v10568_v7   ;;  %v7844_v28 = vmax.f32 %v17976_v27, %v7620_v32  ;;  %v7625_v37 = vmax.f32 %v12204_v61, %v12444_v26  ;;  %12302 = vmatprep.mubr.bf16.mxu0 %v12998_v51  ;;  %12542 = vmatprep.mubr.bf16.mxu1 %v12999_v52  ;;  %v8298_v34 = vmax.f32 %v8074_v13, 0.0  ;;  %v17986_v7 = vld [vmem:[#allocation6_spill] sm:$0xff]  ;;  %v17987_v32 = vld [vmem:[#allocation7_spill] sm:$0xff]  ;;  %v13007_v26 = vld [vmem:[%s17150_s0 + $0x890] sm:$0xff]  }
 0x2cc   :  { %v8077_v19 = vadd.f32 %v15537_v21, %v7846_v47  ;;  %v4963_v20 = vpop.f32.mrf.mxu0  ;;  %v6788_v59 = vpop.f32.mrf.mxu1  ;;  %v17985_v23 = vmax.f32 %v17983_v18, %v17984_v22  ;;  %v17988_v58 = vmax.f32 %v17986_v7, %v17987_v32  ;;  %v13006_v61 = vld [vmem:[%s17150_s0 + $0x820] sm:$0xff]   ;;  %v18005_v32 = vld [vmem:[#allocation19_spill] sm:$0xff] }
 0x2cd   :  { %v8075_v30 = vadd.f32 %v15537_v21, %v7844_v28  ;;  %v7849_v60 = vmax.f32 %v17977_v31, %v7625_v37  ;;  %v7623_v0 = vmax.f32 %v4963_v20, %v6788_v59  ;;  %v17989_v20 = vld [vmem:[#allocation8_spill] sm:$0xff]  ;;  %v17990_v59 = vld [vmem:[#allocation9_spill] sm:$0xff]  ;;  %v18004_v7 = vld [vmem:[#allocation18_spill] sm:$0xff] }
 0x2ce   :  { %v8301_v12 = vmax.f32 %v8077_v19, 0.0  ;;  %v12205_v5 = vpop.f32.mrf.mxu0  ;;  %v12445_v33 = vpop.f32.mrf.mxu1 }
 0x2cf   :  { %v8299_v56 = vmax.f32 %v8075_v30, 0.0  ;;  %v7626_v29 = vmax.f32 %v12205_v5, %v12445_v33  ;;  %v7847_v4 = vmax.f32 %v17978_v15, %v7623_v0  ;;  %v8080_v48 = vadd.f32 %v15537_v21, %v7849_v60 }
 0x2d0   :  { %v10583_v14 = vpack.c.bf16 %v8301_v12, %v8300_v11  ;;  %v4966_v62 = vpop.f32.mrf.mxu0  ;;  %v6791_v63 = vpop.f32.mrf.mxu1  ;;  %v17991_v30 = vmax.f32 %v17989_v20, %v17990_v59 }
 0x2d1   :  { %v10578_v24 = vpack.c.bf16 %v8299_v56, %v8298_v34  ;;  %v7850_v38 = vmax.f32 %v17979_v35, %v7626_v29  ;;  %v7624_v39 = vmax.f32 %v4966_v62, %v6791_v63  ;;  %v8078_v25 = vadd.f32 %v15537_v21, %v7847_v4  ;;  %v17995_v63 = vld [vmem:[#allocation12_spill] sm:$0xff] }
 0x2d2   :  { %11103 = vst [vmem:[%s17152_s3 + $0x48] sm:$0xff] %v10583_v14   ;;  %v12208_v49 = vpop.f32.mrf.mxu0  ;;  %12303 = vmatmul.mubr.bf16.gmra.mxu0 %v13000_v36  ;;  %v12448_v50 = vpop.f32.mrf.mxu1  ;;  %12543 = vmatmul.mubr.bf16.gmra.mxu1 %v13001_v41  ;;  %v8304_v44 = vmax.f32 %v8080_v48, 0.0  ;;  %v17992_v36 = vld [vmem:[#allocation10_spill] sm:$0xff]  ;;  %v17993_v41 = vld [vmem:[#allocation11_spill] sm:$0xff] }
 0x2d3   :  { %11102 = vst [vmem:[%s17152_s3 + $0x40] sm:$0xff] %v10578_v24   ;;  %v8081_v40 = vadd.f32 %v15537_v21, %v7850_v38  ;;  %v7629_v45 = vmax.f32 %v12208_v49, %v12448_v50  ;;  %12306 = vmatprep.mubr.bf16.mxu0 %v13002_v57  ;;  %12546 = vmatprep.mubr.bf16.mxu1 %v13003_v10  ;;  %v8302_v13 = vmax.f32 %v8078_v25, 0.0  ;;  %v17996_v24 = vld [vmem:[#allocation13_spill] sm:$0xff]  ;;  %v13008_v49 = vld [vmem:[%s17150_s0 + $0x828] sm:$0xff]  }
 0x2d4   :  { %v7848_v16 = vmax.f32 %v17982_v2, %v7624_v39  ;;  %v4979_v9 = vpop.f32.mrf.mxu0  ;;  %v6804_v43 = vpop.f32.mrf.mxu1  ;;  %v17994_v34 = vmax.f32 %v17992_v36, %v17993_v41  ;;  %v17997_v48 = vmax.f32 %v17995_v63, %v17996_v24  ;;  %v13009_v50 = vld [vmem:[%s17150_s0 + $0x898] sm:$0xff]   ;;  %v18000_v2 = vmax.f32 %v17998_v42, %v17999_v1  ;;  %v13014_v41 = vld [vmem:[%s17150_s0 + $0x840] sm:$0xff]   ;;  %v18013_v24 = vld [vmem:[#allocation24_spill] sm:$0xff] }
 0x2d5   :  { %v8305_v17 = vmax.f32 %v8081_v40, 0.0  ;;  %v7853_v53 = vmax.f32 %v17985_v23, %v7629_v45  ;;  %v7627_v46 = vmax.f32 %v4979_v9, %v6804_v43  ;;  %v13010_v9 = vld [vmem:[%s17150_s0 + $0x830] sm:$0xff]   ;;  %v13011_v43 = vld [vmem:[%s17150_s0 + $0x8a0] sm:$0xff]   ;;  %v18017_v1 = vld [vmem:[#allocation27_spill] sm:$0xff] }
 0x2d6   :  { %v8079_v8 = vadd.f32 %v15537_v21, %v7848_v16  ;;  %v12209_v51 = vpop.f32.mrf.mxu0  ;;  %v12449_v52 = vpop.f32.mrf.mxu1  ;;  %v18016_v42 = vld [vmem:[#allocation26_spill] sm:$0xff] }
 0x2d7   :  { %v10593_v6 = vpack.c.bf16 %v8305_v17, %v8304_v44  ;;  %v7851_v3 = vmax.f32 %v17988_v58, %v7627_v46  ;;  %v7630_v47 = vmax.f32 %v12209_v51, %v12449_v52  ;;  %v8084_v19 = vadd.f32 %v15537_v21, %v7853_v53  ;;  %v18001_v46 = vld [vmem:[#allocation16_spill] sm:$0xff] }
 0x2d8   :  { %v8303_v27 = vmax.f32 %v8079_v8, 0.0  ;;  %v4982_v28 = vpop.f32.mrf.mxu0  ;;  %v6807_v37 = vpop.f32.mrf.mxu1  ;;  %v18002_v8 = vld [vmem:[#allocation17_spill] sm:$0xff]  ;;  %v18006_v58 = vmax.f32 %v18004_v7, %v18005_v32  ;;  %v18022_v7 = vld [vmem:[#allocation30_spill] sm:$0xff]  ;;  %v18023_v32 = vld [vmem:[#allocation31_spill] sm:$0xff] }
 0x2d9   :  { %11105 = vst [vmem:[%s17152_s3 + $0x58] sm:$0xff] %v10593_v6   ;;  %v7854_v31 = vmax.f32 %v17991_v30, %v7630_v47  ;;  %v7628_v60 = vmax.f32 %v4982_v28, %v6807_v37  ;;  %v8082_v11 = vadd.f32 %v15537_v21, %v7851_v3  ;;  %v8308_v14 = vmax.f32 %v8084_v19, 0.0  ;;  %v18007_v28 = vld [vmem:[#allocation20_spill] sm:$0xff]  ;;  %v18008_v37 = vld [vmem:[#allocation21_spill] sm:$0xff] }
 0x2da   :  { %v10588_v0 = vpack.c.bf16 %v8303_v27, %v8302_v13  ;;  %v12212_v12 = vpop.f32.mrf.mxu0  ;;  %12307 = vmatmul.mubr.bf16.gmra.mxu0 %v13004_v54  ;;  %v12452_v5 = vpop.f32.mrf.mxu1  ;;  %12547 = vmatmul.mubr.bf16.gmra.mxu1 %v13005_v55  ;;  %v18003_v51 = vmax.f32 %v18001_v46, %v18002_v8  ;;  %v18009_v19 = vmax.f32 %v18007_v28, %v18008_v37 }
 0x2db   :  { %v8085_v33 = vadd.f32 %v15537_v21, %v7854_v31  ;;  %v7852_v56 = vmax.f32 %v17994_v34, %v7628_v60  ;;  %v7633_v29 = vmax.f32 %v12212_v12, %v12452_v5  ;;  %12310 = vmatprep.mubr.bf16.mxu0 %v13006_v61  ;;  %12550 = vmatprep.mubr.bf16.mxu1 %v13007_v26  ;;  %v8306_v40 = vmax.f32 %v8082_v11, 0.0  ;;  %v13012_v11 = vld [vmem:[%s17150_s0 + $0x838] sm:$0xff]   ;;  %v13013_v12 = vld [vmem:[%s17150_s0 + $0x8a8] sm:$0xff]   ;;  %v13015_v34 = vld [vmem:[%s17150_s0 + $0x8b0] sm:$0xff]  }
 0x2dc   :  { %11104 = vst [vmem:[%s17152_s3 + $0x50] sm:$0xff] %v10588_v0   ;;  %v4995_v57 = vpop.f32.mrf.mxu0  ;;  %v6820_v10 = vpop.f32.mrf.mxu1 }
 0x2dd   :  { %v8309_v15 = vmax.f32 %v8085_v33, 0.0  ;;  %v8083_v4 = vadd.f32 %v15537_v21, %v7852_v56  ;;  %v7631_v62 = vmax.f32 %v4995_v57, %v6820_v10  ;;  %v7857_v35 = vmax.f32 %v17997_v48, %v7633_v29  ;;  %v18010_v29 = vld [vmem:[#allocation22_spill] sm:$0xff]  ;;  %v18011_v57 = vld [vmem:[#allocation23_spill] sm:$0xff]  ;;  %v18014_v48 = vld [vmem:[#allocation25_spill] sm:$0xff] }
 0x2de   :  { %v12213_v38 = vpop.f32.mrf.mxu0  ;;  %v12453_v39 = vpop.f32.mrf.mxu1  ;;  %v18012_v10 = vmax.f32 %v18010_v29, %v18011_v57 }
 0x2df   :  { %v10603_v45 = vpack.c.bf16 %v8309_v15, %v8308_v14  ;;  %v8307_v25 = vmax.f32 %v8083_v4, 0.0  ;;  %v7855_v16 = vmax.f32 %v18000_v2, %v7631_v62  ;;  %v7634_v44 = vmax.f32 %v12213_v38, %v12453_v39 }
 0x2e0   :  { %v4998_v17 = vpop.f32.mrf.mxu0  ;;  %v6823_v18 = vpop.f32.mrf.mxu1  ;;  %v8088_v53 = vadd.f32 %v15537_v21, %v7857_v35  ;;  %v18015_v35 = vmax.f32 %v18013_v24, %v18014_v48  ;;  %v18018_v2 = vmax.f32 %v18016_v42, %v18017_v1  ;;  %v18032_v24 = vld [vmem:[#allocation37_spill] sm:$0xff]  ;;  %v18034_v42 = vld [vmem:[#allocation38_spill] sm:$0xff]  ;;  %v18035_v1 = vld [vmem:[#allocation39_spill] sm:$0xff] }
 0x2e1   :  { %11107 = vst [vmem:[%s17152_s3 + $0x68] sm:$0xff] %v10603_v45   ;;  %v10598_v22 = vpack.c.bf16 %v8307_v25, %v8306_v40  ;;  %v7632_v23 = vmax.f32 %v4998_v17, %v6823_v18  ;;  %v7858_v52 = vmax.f32 %v18003_v51, %v7634_v44  ;;  %v8086_v6 = vadd.f32 %v15537_v21, %v7855_v16  ;;  %v18019_v18 = vld [vmem:[#allocation28_spill] sm:$0xff] }
 0x2e2   :  { %v12216_v54 = vpop.f32.mrf.mxu0  ;;  %12311 = vmatmul.mubr.bf16.gmra.mxu0 %v13008_v49  ;;  %v12456_v55 = vpop.f32.mrf.mxu1  ;;  %12551 = vmatmul.mubr.bf16.gmra.mxu1 %v13009_v50  ;;  %v8312_v30 = vmax.f32 %v8088_v53, 0.0 }
 0x2e3   :  { %11106 = vst [vmem:[%s17152_s3 + $0x60] sm:$0xff] %v10598_v22   ;;  %v7856_v3 = vmax.f32 %v18006_v58, %v7632_v23  ;;  %v7637_v47 = vmax.f32 %v12216_v54, %v12456_v55  ;;  %12314 = vmatprep.mubr.bf16.mxu0 %v13010_v9  ;;  %12554 = vmatprep.mubr.bf16.mxu1 %v13011_v43  ;;  %v8310_v5 = vmax.f32 %v8086_v6, 0.0  ;;  %v18020_v22 = vld [vmem:[#allocation29_spill] sm:$0xff]  ;;  %v13016_v54 = vld [vmem:[%s17150_s0 + $0x848] sm:$0xff]  }
 0x2e4   :  { %v8089_v61 = vadd.f32 %v15537_v21, %v7858_v52  ;;  %v5011_v26 = vpop.f32.mrf.mxu0  ;;  %v6836_v13 = vpop.f32.mrf.mxu1  ;;  %v18021_v23 = vmax.f32 %v18019_v18, %v18020_v22  ;;  %v13017_v55 = vld [vmem:[%s17150_s0 + $0x8b8] sm:$0xff]   ;;  %v18024_v58 = vmax.f32 %v18022_v7, %v18023_v32  ;;  %v18040_v7 = vld [vmem:[#allocation42_spill] sm:$0xff]  ;;  %v18041_v32 = vld [vmem:[#allocation43_spill] sm:$0xff] }
 0x2e5   :  { %v8087_v27 = vadd.f32 %v15537_v21, %v7856_v3  ;;  %v7861_v20 = vmax.f32 %v18009_v19, %v7637_v47  ;;  %v7635_v59 = vmax.f32 %v5011_v26, %v6836_v13  ;;  %v13019_v26 = vld [vmem:[%s17150_s0 + $0xa10] sm:$0xff]  }
 0x2e6   :  { %v8313_v31 = vmax.f32 %v8089_v61, 0.0  ;;  %v12217_v60 = vpop.f32.mrf.mxu0  ;;  %v12457_v0 = vpop.f32.mrf.mxu1  ;;  %v13018_v61 = vld [vmem:[%s17150_s0 + $0x9a0] sm:$0xff]  }
 0x2e7   :  { %v8311_v33 = vmax.f32 %v8087_v27, 0.0  ;;  %v7638_v36 = vmax.f32 %v12217_v60, %v12457_v0  ;;  %v7859_v14 = vmax.f32 %v18012_v10, %v7635_v59  ;;  %v8092_v63 = vadd.f32 %v15537_v21, %v7861_v20  ;;  %v18025_v20 = vld [vmem:[#allocation32_spill] sm:$0xff]  ;;  %v18026_v59 = vld [vmem:[#allocation33_spill] sm:$0xff] }
 0x2e8   :  { %v10613_v56 = vpack.c.bf16 %v8313_v31, %v8312_v30  ;;  %v5014_v15 = vpop.f32.mrf.mxu0  ;;  %v6839_v4 = vpop.f32.mrf.mxu1  ;;  %v18027_v30 = vmax.f32 %v18025_v20, %v18026_v59 }
 0x2e9   :  { %v10608_v62 = vpack.c.bf16 %v8311_v33, %v8310_v5  ;;  %v7862_v38 = vmax.f32 %v18015_v35, %v7638_v36  ;;  %v7636_v39 = vmax.f32 %v5014_v15, %v6839_v4  ;;  %v8090_v25 = vadd.f32 %v15537_v21, %v7859_v14  ;;  %v18028_v36 = vld [vmem:[#allocation34_spill] sm:$0xff] }
 0x2ea   :  { %11109 = vst [vmem:[%s17152_s3 + $0x78] sm:$0xff] %v10613_v56   ;;  %v12220_v49 = vpop.f32.mrf.mxu0  ;;  %12315 = vmatmul.mubr.bf16.gmra.mxu0 %v13012_v11  ;;  %v12460_v50 = vpop.f32.mrf.mxu1  ;;  %12555 = vmatmul.mubr.bf16.gmra.mxu1 %v13013_v12  ;;  %v8316_v44 = vmax.f32 %v8092_v63, 0.0  ;;  %v18031_v63 = vld [vmem:[#allocation36_spill] sm:$0xff] }
 0x2eb   :  { %11108 = vst [vmem:[%s17152_s3 + $0x70] sm:$0xff] %v10608_v62   ;;  %v8093_v40 = vadd.f32 %v15537_v21, %v7862_v38  ;;  %v7641_v45 = vmax.f32 %v12220_v49, %v12460_v50  ;;  %12318 = vmatprep.mubr.bf16.mxu0 %v13014_v41  ;;  %12558 = vmatprep.mubr.bf16.mxu1 %v13015_v34  ;;  %v8314_v13 = vmax.f32 %v8090_v25, 0.0  ;;  %v18029_v41 = vld [vmem:[#allocation35_spill] sm:$0xff]  ;;  %v13021_v50 = vld [vmem:[%s17150_s0 + $0xa18] sm:$0xff]  }
 0x2ec   :  { %v7860_v16 = vmax.f32 %v18018_v2, %v7636_v39  ;;  %v5027_v9 = vpop.f32.mrf.mxu0  ;;  %v6852_v43 = vpop.f32.mrf.mxu1  ;;  %v18030_v34 = vmax.f32 %v18028_v36, %v18029_v41  ;;  %v18033_v48 = vmax.f32 %v18031_v63, %v18032_v24  ;;  %v13020_v49 = vld [vmem:[%s17150_s0 + $0x9a8] sm:$0xff]   ;;  %v18036_v2 = vmax.f32 %v18034_v42, %v18035_v1  ;;  %v13026_v41 = vld [vmem:[%s17150_s0 + $0x9c0] sm:$0xff]   ;;  %v18049_v24 = vld [vmem:[#allocation48_spill] sm:$0xff] }
 0x2ed   :  { %v8317_v17 = vmax.f32 %v8093_v40, 0.0  ;;  %v7865_v53 = vmax.f32 %v18021_v23, %v7641_v45  ;;  %v7639_v46 = vmax.f32 %v5027_v9, %v6852_v43  ;;  %v13022_v9 = vld [vmem:[%s17150_s0 + $0x9b0] sm:$0xff]   ;;  %v13023_v43 = vld [vmem:[%s17150_s0 + $0xa20] sm:$0xff]   ;;  %v18053_v1 = vld [vmem:[#allocation51_spill] sm:$0xff] }
 0x2ee   :  { %v8091_v8 = vadd.f32 %v15537_v21, %v7860_v16  ;;  %v12221_v51 = vpop.f32.mrf.mxu0  ;;  %v12461_v52 = vpop.f32.mrf.mxu1  ;;  %v18052_v42 = vld [vmem:[#allocation50_spill] sm:$0xff] }
 0x2ef   :  { %v10623_v6 = vpack.c.bf16 %v8317_v17, %v8316_v44  ;;  %v7863_v3 = vmax.f32 %v18024_v58, %v7639_v46  ;;  %v7642_v47 = vmax.f32 %v12221_v51, %v12461_v52  ;;  %v8096_v19 = vadd.f32 %v15537_v21, %v7865_v53  ;;  %v18037_v46 = vld [vmem:[#allocation40_spill] sm:$0xff] }
 0x2f0   :  { %v8315_v27 = vmax.f32 %v8091_v8, 0.0  ;;  %v5030_v28 = vpop.f32.mrf.mxu0  ;;  %v6855_v37 = vpop.f32.mrf.mxu1  ;;  %v18038_v8 = vld [vmem:[#allocation41_spill] sm:$0xff]  ;;  %v18042_v58 = vmax.f32 %v18040_v7, %v18041_v32  ;;  %v18058_v7 = vld [vmem:[#allocation54_spill] sm:$0xff]  ;;  %v18059_v32 = vld [vmem:[#allocation55_spill] sm:$0xff] }
 0x2f1   :  { %11111 = vst [vmem:[%s17152_s3 + $0x88] sm:$0xff] %v10623_v6   ;;  %v7866_v31 = vmax.f32 %v18027_v30, %v7642_v47  ;;  %v7640_v60 = vmax.f32 %v5030_v28, %v6855_v37  ;;  %v8094_v11 = vadd.f32 %v15537_v21, %v7863_v3  ;;  %v8320_v14 = vmax.f32 %v8096_v19, 0.0  ;;  %v18043_v28 = vld [vmem:[#allocation44_spill] sm:$0xff]  ;;  %v18044_v37 = vld [vmem:[#allocation45_spill] sm:$0xff] }
 0x2f2   :  { %v10618_v0 = vpack.c.bf16 %v8315_v27, %v8314_v13  ;;  %v12224_v12 = vpop.f32.mrf.mxu0  ;;  %12319 = vmatmul.mubr.bf16.gmra.mxu0 %v13016_v54  ;;  %v12464_v5 = vpop.f32.mrf.mxu1  ;;  %12559 = vmatmul.mubr.bf16.gmra.mxu1 %v13017_v55  ;;  %v18039_v51 = vmax.f32 %v18037_v46, %v18038_v8  ;;  %v18045_v19 = vmax.f32 %v18043_v28, %v18044_v37 }
 0x2f3   :  { %v8097_v33 = vadd.f32 %v15537_v21, %v7866_v31  ;;  %v7864_v56 = vmax.f32 %v18030_v34, %v7640_v60  ;;  %v7645_v29 = vmax.f32 %v12224_v12, %v12464_v5  ;;  %12322 = vmatprep.mubr.bf16.mxu0 %v13018_v61  ;;  %12562 = vmatprep.mubr.bf16.mxu1 %v13019_v26  ;;  %v8318_v40 = vmax.f32 %v8094_v11, 0.0  ;;  %v13024_v11 = vld [vmem:[%s17150_s0 + $0x9b8] sm:$0xff]   ;;  %v13025_v12 = vld [vmem:[%s17150_s0 + $0xa28] sm:$0xff]   ;;  %v13027_v34 = vld [vmem:[%s17150_s0 + $0xa30] sm:$0xff]  }
 0x2f4   :  { %11110 = vst [vmem:[%s17152_s3 + $0x80] sm:$0xff] %v10618_v0   ;;  %v5043_v57 = vpop.f32.mrf.mxu0  ;;  %v6868_v10 = vpop.f32.mrf.mxu1 }
 0x2f5   :  { %v8321_v15 = vmax.f32 %v8097_v33, 0.0  ;;  %v8095_v4 = vadd.f32 %v15537_v21, %v7864_v56  ;;  %v7643_v62 = vmax.f32 %v5043_v57, %v6868_v10  ;;  %v7869_v35 = vmax.f32 %v18033_v48, %v7645_v29  ;;  %v18046_v29 = vld [vmem:[#allocation46_spill] sm:$0xff]  ;;  %v18047_v57 = vld [vmem:[#allocation47_spill] sm:$0xff]  ;;  %v18050_v48 = vld [vmem:[#allocation49_spill] sm:$0xff] }
 0x2f6   :  { %v12225_v38 = vpop.f32.mrf.mxu0  ;;  %v12465_v39 = vpop.f32.mrf.mxu1  ;;  %v18048_v10 = vmax.f32 %v18046_v29, %v18047_v57 }
 0x2f7   :  { %v10633_v45 = vpack.c.bf16 %v8321_v15, %v8320_v14  ;;  %v8319_v25 = vmax.f32 %v8095_v4, 0.0  ;;  %v7867_v16 = vmax.f32 %v18036_v2, %v7643_v62  ;;  %v7646_v44 = vmax.f32 %v12225_v38, %v12465_v39 }
 0x2f8   :  { %v5046_v17 = vpop.f32.mrf.mxu0  ;;  %v6871_v18 = vpop.f32.mrf.mxu1  ;;  %v8100_v53 = vadd.f32 %v15537_v21, %v7869_v35  ;;  %v18051_v35 = vmax.f32 %v18049_v24, %v18050_v48  ;;  %v18054_v2 = vmax.f32 %v18052_v42, %v18053_v1  ;;  %v18068_v24 = vld [vmem:[#allocation61_spill] sm:$0xff]  ;;  %v18070_v42 = vld [vmem:[#allocation62_spill] sm:$0xff]  ;;  %v18071_v1 = vld [vmem:[#allocation63_spill] sm:$0xff] }
 0x2f9   :  { %11113 = vst [vmem:[%s17152_s3 + $0x98] sm:$0xff] %v10633_v45   ;;  %v10628_v22 = vpack.c.bf16 %v8319_v25, %v8318_v40  ;;  %v7644_v23 = vmax.f32 %v5046_v17, %v6871_v18  ;;  %v7870_v52 = vmax.f32 %v18039_v51, %v7646_v44  ;;  %v8098_v6 = vadd.f32 %v15537_v21, %v7867_v16  ;;  %v18055_v18 = vld [vmem:[#allocation52_spill] sm:$0xff] }
 0x2fa   :  { %v12228_v54 = vpop.f32.mrf.mxu0  ;;  %12323 = vmatmul.mubr.bf16.gmra.mxu0 %v13020_v49  ;;  %v12468_v55 = vpop.f32.mrf.mxu1  ;;  %12563 = vmatmul.mubr.bf16.gmra.mxu1 %v13021_v50  ;;  %v8324_v30 = vmax.f32 %v8100_v53, 0.0 }
 0x2fb   :  { %11112 = vst [vmem:[%s17152_s3 + $0x90] sm:$0xff] %v10628_v22   ;;  %v7868_v3 = vmax.f32 %v18042_v58, %v7644_v23  ;;  %v7649_v47 = vmax.f32 %v12228_v54, %v12468_v55  ;;  %12326 = vmatprep.mubr.bf16.mxu0 %v13022_v9  ;;  %12566 = vmatprep.mubr.bf16.mxu1 %v13023_v43  ;;  %v8322_v5 = vmax.f32 %v8098_v6, 0.0  ;;  %v18056_v22 = vld [vmem:[#allocation53_spill] sm:$0xff]  ;;  %v13028_v54 = vld [vmem:[%s17150_s0 + $0x9c8] sm:$0xff]  }
 0x2fc   :  { %v8101_v61 = vadd.f32 %v15537_v21, %v7870_v52  ;;  %v5059_v26 = vpop.f32.mrf.mxu0  ;;  %v6884_v13 = vpop.f32.mrf.mxu1  ;;  %v18057_v23 = vmax.f32 %v18055_v18, %v18056_v22  ;;  %v13029_v55 = vld [vmem:[%s17150_s0 + $0xa38] sm:$0xff]   ;;  %v18060_v58 = vmax.f32 %v18058_v7, %v18059_v32  ;;  %v18076_v7 = vld [vmem:[#allocation66_spill] sm:$0xff]  ;;  %v18077_v32 = vld [vmem:[#allocation67_spill] sm:$0xff] }
 0x2fd   :  { %v8099_v27 = vadd.f32 %v15537_v21, %v7868_v3  ;;  %v7873_v20 = vmax.f32 %v18045_v19, %v7649_v47  ;;  %v7647_v59 = vmax.f32 %v5059_v26, %v6884_v13  ;;  %v13031_v26 = vld [vmem:[%s17150_s0 + $0xa40] sm:$0xff]  }
 0x2fe   :  { %v8325_v31 = vmax.f32 %v8101_v61, 0.0  ;;  %v12229_v60 = vpop.f32.mrf.mxu0  ;;  %v12469_v0 = vpop.f32.mrf.mxu1  ;;  %v13030_v61 = vld [vmem:[%s17150_s0 + $0x9d0] sm:$0xff]  }
 0x2ff   :  { %v8323_v33 = vmax.f32 %v8099_v27, 0.0  ;;  %v7650_v36 = vmax.f32 %v12229_v60, %v12469_v0  ;;  %v7871_v14 = vmax.f32 %v18048_v10, %v7647_v59  ;;  %v8104_v63 = vadd.f32 %v15537_v21, %v7873_v20  ;;  %v18061_v20 = vld [vmem:[#allocation56_spill] sm:$0xff]  ;;  %v18062_v59 = vld [vmem:[#allocation57_spill] sm:$0xff] }
 0x300   :  { %v10643_v56 = vpack.c.bf16 %v8325_v31, %v8324_v30  ;;  %v5062_v15 = vpop.f32.mrf.mxu0  ;;  %v6887_v4 = vpop.f32.mrf.mxu1  ;;  %v18063_v30 = vmax.f32 %v18061_v20, %v18062_v59 }
 0x301   :  { %v10638_v62 = vpack.c.bf16 %v8323_v33, %v8322_v5  ;;  %v7874_v38 = vmax.f32 %v18051_v35, %v7650_v36  ;;  %v7648_v39 = vmax.f32 %v5062_v15, %v6887_v4  ;;  %v8102_v25 = vadd.f32 %v15537_v21, %v7871_v14  ;;  %v18064_v36 = vld [vmem:[#allocation58_spill] sm:$0xff] }
 0x302   :  { %11115 = vst [vmem:[%s17152_s3 + $0xa8] sm:$0xff] %v10643_v56   ;;  %v12232_v49 = vpop.f32.mrf.mxu0  ;;  %12327 = vmatmul.mubr.bf16.gmra.mxu0 %v13024_v11  ;;  %v12472_v50 = vpop.f32.mrf.mxu1  ;;  %12567 = vmatmul.mubr.bf16.gmra.mxu1 %v13025_v12  ;;  %v8328_v44 = vmax.f32 %v8104_v63, 0.0  ;;  %v18067_v63 = vld [vmem:[#allocation60_spill] sm:$0xff] }
 0x303   :  { %11114 = vst [vmem:[%s17152_s3 + $0xa0] sm:$0xff] %v10638_v62   ;;  %v8105_v40 = vadd.f32 %v15537_v21, %v7874_v38  ;;  %v7653_v45 = vmax.f32 %v12232_v49, %v12472_v50  ;;  %12330 = vmatprep.mubr.bf16.mxu0 %v13026_v41  ;;  %12570 = vmatprep.mubr.bf16.mxu1 %v13027_v34  ;;  %v8326_v13 = vmax.f32 %v8102_v25, 0.0  ;;  %v18065_v41 = vld [vmem:[#allocation59_spill] sm:$0xff]  ;;  %v13032_v49 = vld [vmem:[%s17150_s0 + $0x9d8] sm:$0xff]  }
 0x304   :  { %v7872_v16 = vmax.f32 %v18054_v2, %v7648_v39  ;;  %v5075_v9 = vpop.f32.mrf.mxu0  ;;  %v6900_v43 = vpop.f32.mrf.mxu1  ;;  %v18066_v34 = vmax.f32 %v18064_v36, %v18065_v41  ;;  %v18069_v48 = vmax.f32 %v18067_v63, %v18068_v24  ;;  %v13033_v50 = vld [vmem:[%s17150_s0 + $0xa48] sm:$0xff]   ;;  %v18072_v2 = vmax.f32 %v18070_v42, %v18071_v1  ;;  %v13038_v36 = vld [vmem:[%s17150_s0 + $0x9f0] sm:$0xff]   ;;  %v13039_v41 = vld [vmem:[%s17150_s0 + $0xa60] sm:$0xff]  }
 0x305   :  { %v8329_v17 = vmax.f32 %v8105_v40, 0.0  ;;  %v7877_v53 = vmax.f32 %v18057_v23, %v7653_v45  ;;  %v7651_v46 = vmax.f32 %v5075_v9, %v6900_v43  ;;  %v13034_v9 = vld [vmem:[%s17150_s0 + $0x9e0] sm:$0xff]   ;;  %v13035_v43 = vld [vmem:[%s17150_s0 + $0xa50] sm:$0xff]   ;;  %v18089_v1 = vld [vmem:[#allocation75_spill] sm:$0xff] }
 0x306   :  { %v8103_v8 = vadd.f32 %v15537_v21, %v7872_v16  ;;  %v12233_v51 = vpop.f32.mrf.mxu0  ;;  %v12473_v52 = vpop.f32.mrf.mxu1  ;;  %v18085_v24 = vld [vmem:[#allocation72_spill] sm:$0xff]  ;;  %v18088_v42 = vld [vmem:[#allocation74_spill] sm:$0xff] }
 0x307   :  { %v10653_v6 = vpack.c.bf16 %v8329_v17, %v8328_v44  ;;  %v7875_v3 = vmax.f32 %v18060_v58, %v7651_v46  ;;  %v7654_v47 = vmax.f32 %v12233_v51, %v12473_v52  ;;  %v8108_v19 = vadd.f32 %v15537_v21, %v7877_v53  ;;  %v18073_v46 = vld [vmem:[#allocation64_spill] sm:$0xff] }
 0x308   :  { %v8327_v27 = vmax.f32 %v8103_v8, 0.0  ;;  %v5078_v28 = vpop.f32.mrf.mxu0  ;;  %v6903_v37 = vpop.f32.mrf.mxu1  ;;  %v18074_v8 = vld [vmem:[#allocation65_spill] sm:$0xff]  ;;  %v18078_v58 = vmax.f32 %v18076_v7, %v18077_v32  ;;  %v18094_v7 = vld [vmem:[#allocation78_spill] sm:$0xff]  ;;  %v18095_v32 = vld [vmem:[#allocation79_spill] sm:$0xff] }
 0x309   :  { %11117 = vst [vmem:[%s17152_s3 + $0xb8] sm:$0xff] %v10653_v6   ;;  %v7878_v31 = vmax.f32 %v18063_v30, %v7654_v47  ;;  %v7652_v60 = vmax.f32 %v5078_v28, %v6903_v37  ;;  %v8106_v11 = vadd.f32 %v15537_v21, %v7875_v3  ;;  %v8332_v14 = vmax.f32 %v8108_v19, 0.0  ;;  %v18079_v28 = vld [vmem:[#allocation68_spill] sm:$0xff]  ;;  %v18080_v37 = vld [vmem:[#allocation69_spill] sm:$0xff] }
 0x30a   :  { %v10648_v0 = vpack.c.bf16 %v8327_v27, %v8326_v13  ;;  %v12236_v12 = vpop.f32.mrf.mxu0  ;;  %12331 = vmatmul.mubr.bf16.gmra.mxu0 %v13028_v54  ;;  %v12476_v5 = vpop.f32.mrf.mxu1  ;;  %12571 = vmatmul.mubr.bf16.gmra.mxu1 %v13029_v55  ;;  %v18075_v51 = vmax.f32 %v18073_v46, %v18074_v8  ;;  %v18081_v19 = vmax.f32 %v18079_v28, %v18080_v37 }
 0x30b   :  { %v8109_v33 = vadd.f32 %v15537_v21, %v7878_v31  ;;  %v7876_v56 = vmax.f32 %v18066_v34, %v7652_v60  ;;  %v7657_v29 = vmax.f32 %v12236_v12, %v12476_v5  ;;  %12334 = vmatprep.mubr.bf16.mxu0 %v13030_v61  ;;  %12574 = vmatprep.mubr.bf16.mxu1 %v13031_v26  ;;  %v8330_v40 = vmax.f32 %v8106_v11, 0.0  ;;  %v13036_v11 = vld [vmem:[%s17150_s0 + $0x9e8] sm:$0xff]   ;;  %v13037_v12 = vld [vmem:[%s17150_s0 + $0xa58] sm:$0xff]  }
 0x30c   :  { %11116 = vst [vmem:[%s17152_s3 + $0xb0] sm:$0xff] %v10648_v0   ;;  %v5091_v57 = vpop.f32.mrf.mxu0  ;;  %v6916_v10 = vpop.f32.mrf.mxu1 }
 0x30d   :  { %v8333_v15 = vmax.f32 %v8109_v33, 0.0  ;;  %v8107_v4 = vadd.f32 %v15537_v21, %v7876_v56  ;;  %v7655_v62 = vmax.f32 %v5091_v57, %v6916_v10  ;;  %v7881_v35 = vmax.f32 %v18069_v48, %v7657_v29  ;;  %v18082_v56 = vld [vmem:[#allocation70_spill] sm:$0xff]  ;;  %v18083_v29 = vld [vmem:[#allocation71_spill] sm:$0xff]  ;;  %v18086_v48 = vld [vmem:[#allocation73_spill] sm:$0xff] }
 0x30e   :  { %v12237_v38 = vpop.f32.mrf.mxu0  ;;  %v12477_v39 = vpop.f32.mrf.mxu1  ;;  %v18084_v57 = vmax.f32 %v18082_v56, %v18083_v29 }
 0x30f   :  { %v10663_v45 = vpack.c.bf16 %v8333_v15, %v8332_v14  ;;  %v8331_v25 = vmax.f32 %v8107_v4, 0.0  ;;  %v7879_v16 = vmax.f32 %v18072_v2, %v7655_v62  ;;  %v7658_v44 = vmax.f32 %v12237_v38, %v12477_v39  ;;  %v16027_v62 = vld [vmem:[%s17151_s2] ss:$0 sm:$0xff] }
 0x310   :  { %v5094_v17 = vpop.f32.mrf.mxu0  ;;  %v6919_v18 = vpop.f32.mrf.mxu1  ;;  %v8112_v53 = vadd.f32 %v15537_v21, %v7881_v35  ;;  %v18087_v35 = vmax.f32 %v18085_v24, %v18086_v48  ;;  %v18090_v2 = vmax.f32 %v18088_v42, %v18089_v1  ;;  %v18104_v24 = vld [vmem:[#allocation85_spill] sm:$0xff]  ;;  %v18106_v42 = vld [vmem:[#allocation86_spill] sm:$0xff]  ;;  %v18107_v1 = vld [vmem:[#allocation87_spill] sm:$0xff] }
 0x311   :  { %11119 = vst [vmem:[%s17152_s3 + $0xc8] sm:$0xff] %v10663_v45   ;;  %v10658_v22 = vpack.c.bf16 %v8331_v25, %v8330_v40  ;;  %v7656_v23 = vmax.f32 %v5094_v17, %v6919_v18  ;;  %v7882_v52 = vmax.f32 %v18075_v51, %v7658_v44  ;;  %v8110_v6 = vadd.f32 %v15537_v21, %v7879_v16  ;;  %v18091_v18 = vld [vmem:[#allocation76_spill] sm:$0xff] }
 0x312   :  { %v12240_v54 = vpop.f32.mrf.mxu0  ;;  %12335 = vmatmul.mubr.bf16.gmra.mxu0 %v13032_v49  ;;  %v12480_v55 = vpop.f32.mrf.mxu1  ;;  %12575 = vmatmul.mubr.bf16.gmra.mxu1 %v13033_v50  ;;  %v8336_v30 = vmax.f32 %v8112_v53, 0.0 }
 0x313   :  { %11118 = vst [vmem:[%s17152_s3 + $0xc0] sm:$0xff] %v10658_v22   ;;  %v7880_v3 = vmax.f32 %v18078_v58, %v7656_v23  ;;  %v7661_v47 = vmax.f32 %v12240_v54, %v12480_v55  ;;  %12338 = vmatprep.mubr.bf16.mxu0 %v13034_v9  ;;  %12578 = vmatprep.mubr.bf16.mxu1 %v13035_v43  ;;  %v8334_v5 = vmax.f32 %v8110_v6, 0.0  ;;  %v18092_v22 = vld [vmem:[#allocation77_spill] sm:$0xff]  ;;  %v13041_v55 = vld [vmem:[%s17150_s0 + $0xa68] sm:$0xff]  }
 0x314   :  { %v8113_v61 = vadd.f32 %v15537_v21, %v7882_v52  ;;  %v5107_v26 = vpop.f32.mrf.mxu0  ;;  %v6932_v13 = vpop.f32.mrf.mxu1  ;;  %v18093_v23 = vmax.f32 %v18091_v18, %v18092_v22  ;;  %v13040_v54 = vld [vmem:[%s17150_s0 + $0x9f8] sm:$0xff]   ;;  %v18096_v58 = vmax.f32 %v18094_v7, %v18095_v32  ;;  %v18112_v7 = vld [vmem:[#allocation90_spill] sm:$0xff]  ;;  %v18113_v32 = vld [vmem:[#allocation91_spill] sm:$0xff] }
 0x315   :  { %v8111_v27 = vadd.f32 %v15537_v21, %v7880_v3  ;;  %v7885_v20 = vmax.f32 %v18081_v19, %v7661_v47  ;;  %v7659_v59 = vmax.f32 %v5107_v26, %v6932_v13  ;;  %v13043_v26 = vld [vmem:[%s17150_s0 + $0xa70] sm:$0xff]  }
 0x316   :  { %v8337_v31 = vmax.f32 %v8113_v61, 0.0  ;;  %v12241_v60 = vpop.f32.mrf.mxu0  ;;  %v12481_v0 = vpop.f32.mrf.mxu1  ;;  %v13042_v61 = vld [vmem:[%s17150_s0 + $0xa00] sm:$0xff]  }
 0x317   :  { %v8335_v33 = vmax.f32 %v8111_v27, 0.0  ;;  %v7662_v21 = vmax.f32 %v12241_v60, %v12481_v0  ;;  %v7883_v10 = vmax.f32 %v18084_v57, %v7659_v59  ;;  %v8116_v63 = vadd.f32 %v16027_v62, %v7885_v20  ;;  %v18097_v20 = vld [vmem:[#allocation80_spill] sm:$0xff]  ;;  %v18098_v59 = vld [vmem:[#allocation81_spill] sm:$0xff] }
 0x318   :  { %v10673_v34 = vpack.c.bf16 %v8337_v31, %v8336_v30  ;;  %v5110_v14 = vpop.f32.mrf.mxu0  ;;  %v6935_v15 = vpop.f32.mrf.mxu1  ;;  %v18099_v30 = vmax.f32 %v18097_v20, %v18098_v59 }
 0x319   :  { %v10668_v4 = vpack.c.bf16 %v8335_v33, %v8334_v5  ;;  %v7886_v38 = vmax.f32 %v18087_v35, %v7662_v21  ;;  %v7660_v39 = vmax.f32 %v5110_v14, %v6935_v15  ;;  %v8114_v25 = vadd.f32 %v16027_v62, %v7883_v10  ;;  %v18100_v21 = vld [vmem:[#allocation82_spill] sm:$0xff] }
 0x31a   :  { %11121 = vst [vmem:[%s17152_s3 + $0xd8] sm:$0xff] %v10673_v34   ;;  %v12244_v49 = vpop.f32.mrf.mxu0  ;;  %12339 = vmatmul.mubr.bf16.gmra.mxu0 %v13036_v11  ;;  %v12484_v50 = vpop.f32.mrf.mxu1  ;;  %12579 = vmatmul.mubr.bf16.gmra.mxu1 %v13037_v12  ;;  %v8340_v44 = vmax.f32 %v8116_v63, 0.0  ;;  %v18103_v63 = vld [vmem:[#allocation84_spill] sm:$0xff] }
 0x31b   :  { %11120 = vst [vmem:[%s17152_s3 + $0xd0] sm:$0xff] %v10668_v4   ;;  %v8117_v40 = vadd.f32 %v16027_v62, %v7886_v38  ;;  %v7665_v45 = vmax.f32 %v12244_v49, %v12484_v50  ;;  %12342 = vmatprep.mubr.bf16.mxu0 %v13038_v36  ;;  %12582 = vmatprep.mubr.bf16.mxu1 %v13039_v41  ;;  %v8338_v13 = vmax.f32 %v8114_v25, 0.0  ;;  %v18101_v36 = vld [vmem:[#allocation83_spill] sm:$0xff]  ;;  %v13045_v50 = vld [vmem:[%s17150_s0 + $0xa78] sm:$0xff]  }
 0x31c   :  { %v7884_v16 = vmax.f32 %v18090_v2, %v7660_v39  ;;  %v5123_v9 = vpop.f32.mrf.mxu0  ;;  %v6948_v43 = vpop.f32.mrf.mxu1  ;;  %v18102_v41 = vmax.f32 %v18100_v21, %v18101_v36  ;;  %v18105_v48 = vmax.f32 %v18103_v63, %v18104_v24  ;;  %v13044_v49 = vld [vmem:[%s17150_s0 + $0xa08] sm:$0xff]   ;;  %v18108_v2 = vmax.f32 %v18106_v42, %v18107_v1  ;;  %v13050_v36 = vld [vmem:[%s17150_s0 + $0xb70] sm:$0xff]   ;;  %v18124_v42 = vld [vmem:[#allocation98_spill] sm:$0xff] }
 0x31d   :  { %v8341_v17 = vmax.f32 %v8117_v40, 0.0  ;;  %v7889_v53 = vmax.f32 %v18093_v23, %v7665_v45  ;;  %v7663_v46 = vmax.f32 %v5123_v9, %v6948_v43  ;;  %v13046_v9 = vld [vmem:[%s17150_s0 + $0xb60] sm:$0xff]   ;;  %v13047_v43 = vld [vmem:[%s17150_s0 + $0xbd0] sm:$0xff]   ;;  %v18125_v1 = vld [vmem:[#allocation99_spill] sm:$0xff] }
 0x31e   :  { %v8115_v8 = vadd.f32 %v16027_v62, %v7884_v16  ;;  %v12245_v51 = vpop.f32.mrf.mxu0  ;;  %v12485_v52 = vpop.f32.mrf.mxu1  ;;  %v18121_v24 = vld [vmem:[#allocation96_spill] sm:$0xff] }
 0x31f   :  { %v10683_v6 = vpack.c.bf16 %v8341_v17, %v8340_v44  ;;  %v7887_v3 = vmax.f32 %v18096_v58, %v7663_v46  ;;  %v7666_v47 = vmax.f32 %v12245_v51, %v12485_v52  ;;  %v8120_v19 = vadd.f32 %v16027_v62, %v7889_v53  ;;  %v18109_v46 = vld [vmem:[#allocation88_spill] sm:$0xff] }
 0x320   :  { %v8339_v27 = vmax.f32 %v8115_v8, 0.0  ;;  %v5126_v28 = vpop.f32.mrf.mxu0  ;;  %v6951_v37 = vpop.f32.mrf.mxu1  ;;  %v18110_v8 = vld [vmem:[#allocation89_spill] sm:$0xff]  ;;  %v18114_v58 = vmax.f32 %v18112_v7, %v18113_v32  ;;  %v18130_v7 = vld [vmem:[#allocation102_spill] sm:$0xff]  ;;  %v18131_v32 = vld [vmem:[#allocation103_spill] sm:$0xff] }
 0x321   :  { %11123 = vst [vmem:[%s17152_s3 + $0xe8] sm:$0xff] %v10683_v6   ;;  %v7890_v31 = vmax.f32 %v18099_v30, %v7666_v47  ;;  %v7664_v60 = vmax.f32 %v5126_v28, %v6951_v37  ;;  %v8118_v11 = vadd.f32 %v16027_v62, %v7887_v3  ;;  %v8344_v10 = vmax.f32 %v8120_v19, 0.0  ;;  %v18115_v28 = vld [vmem:[#allocation92_spill] sm:$0xff]  ;;  %v18116_v37 = vld [vmem:[#allocation93_spill] sm:$0xff] }
 0x322   :  { %v10678_v0 = vpack.c.bf16 %v8339_v27, %v8338_v13  ;;  %v12248_v12 = vpop.f32.mrf.mxu0  ;;  %12343 = vmatmul.mubr.bf16.gmra.mxu0 %v13040_v54  ;;  %v12488_v5 = vpop.f32.mrf.mxu1  ;;  %12583 = vmatmul.mubr.bf16.gmra.mxu1 %v13041_v55  ;;  %v18111_v51 = vmax.f32 %v18109_v46, %v18110_v8  ;;  %v18117_v19 = vmax.f32 %v18115_v28, %v18116_v37 }
 0x323   :  { %v8121_v33 = vadd.f32 %v16027_v62, %v7890_v31  ;;  %v7888_v34 = vmax.f32 %v18102_v41, %v7664_v60  ;;  %v7669_v56 = vmax.f32 %v12248_v12, %v12488_v5  ;;  %12346 = vmatprep.mubr.bf16.mxu0 %v13042_v61  ;;  %12586 = vmatprep.mubr.bf16.mxu1 %v13043_v26  ;;  %v8342_v40 = vmax.f32 %v8118_v11, 0.0  ;;  %v13048_v11 = vld [vmem:[%s17150_s0 + $0xb68] sm:$0xff]   ;;  %v13049_v12 = vld [vmem:[%s17150_s0 + $0xbd8] sm:$0xff]   ;;  %v13051_v41 = vld [vmem:[%s17150_s0 + $0xbe0] sm:$0xff]  }
 0x324   :  { %11122 = vst [vmem:[%s17152_s3 + $0xe0] sm:$0xff] %v10678_v0   ;;  %v5139_v29 = vpop.f32.mrf.mxu0  ;;  %v6964_v57 = vpop.f32.mrf.mxu1 }
 0x325   :  { %v8345_v14 = vmax.f32 %v8121_v33, 0.0  ;;  %v8119_v15 = vadd.f32 %v16027_v62, %v7888_v34  ;;  %v7667_v4 = vmax.f32 %v5139_v29, %v6964_v57  ;;  %v7893_v35 = vmax.f32 %v18105_v48, %v7669_v56  ;;  %v18118_v56 = vld [vmem:[#allocation94_spill] sm:$0xff]  ;;  %v18119_v29 = vld [vmem:[#allocation95_spill] sm:$0xff]  ;;  %v18122_v48 = vld [vmem:[#allocation97_spill] sm:$0xff] }
 0x326   :  { %v12249_v38 = vpop.f32.mrf.mxu0  ;;  %v12489_v39 = vpop.f32.mrf.mxu1  ;;  %v18120_v57 = vmax.f32 %v18118_v56, %v18119_v29 }
 0x327   :  { %v10693_v45 = vpack.c.bf16 %v8345_v14, %v8344_v10  ;;  %v8343_v25 = vmax.f32 %v8119_v15, 0.0  ;;  %v7891_v16 = vmax.f32 %v18108_v2, %v7667_v4  ;;  %v7670_v44 = vmax.f32 %v12249_v38, %v12489_v39 }
 0x328   :  { %v5142_v17 = vpop.f32.mrf.mxu0  ;;  %v6967_v18 = vpop.f32.mrf.mxu1  ;;  %v8124_v53 = vadd.f32 %v16027_v62, %v7893_v35  ;;  %v18123_v35 = vmax.f32 %v18121_v24, %v18122_v48  ;;  %v18126_v2 = vmax.f32 %v18124_v42, %v18125_v1  ;;  %v18140_v24 = vld [vmem:[#allocation109_spill] sm:$0xff]  ;;  %v18142_v42 = vld [vmem:[#allocation110_spill] sm:$0xff]  ;;  %v18143_v1 = vld [vmem:[#allocation111_spill] sm:$0xff] }
 0x329   :  { %11125 = vst [vmem:[%s17152_s3 + $0xf8] sm:$0xff] %v10693_v45   ;;  %v10688_v22 = vpack.c.bf16 %v8343_v25, %v8342_v40  ;;  %v7668_v23 = vmax.f32 %v5142_v17, %v6967_v18  ;;  %v7894_v52 = vmax.f32 %v18111_v51, %v7670_v44  ;;  %v8122_v6 = vadd.f32 %v16027_v62, %v7891_v16  ;;  %v18127_v18 = vld [vmem:[#allocation100_spill] sm:$0xff] }
 0x32a   :  { %v12252_v54 = vpop.f32.mrf.mxu0  ;;  %12347 = vmatmul.mubr.bf16.gmra.mxu0 %v13044_v49  ;;  %v12492_v55 = vpop.f32.mrf.mxu1  ;;  %12587 = vmatmul.mubr.bf16.gmra.mxu1 %v13045_v50  ;;  %v8348_v30 = vmax.f32 %v8124_v53, 0.0 }
 0x32b   :  { %11124 = vst [vmem:[%s17152_s3 + $0xf0] sm:$0xff] %v10688_v22   ;;  %v7892_v3 = vmax.f32 %v18114_v58, %v7668_v23  ;;  %v7673_v47 = vmax.f32 %v12252_v54, %v12492_v55  ;;  %12350 = vmatprep.mubr.bf16.mxu0 %v13046_v9  ;;  %12590 = vmatprep.mubr.bf16.mxu1 %v13047_v43  ;;  %v8346_v5 = vmax.f32 %v8122_v6, 0.0  ;;  %v18128_v22 = vld [vmem:[#allocation101_spill] sm:$0xff]  ;;  %v13053_v55 = vld [vmem:[%s17150_s0 + $0xbe8] sm:$0xff]  }
 0x32c   :  { %v8125_v61 = vadd.f32 %v16027_v62, %v7894_v52  ;;  %v5155_v26 = vpop.f32.mrf.mxu0  ;;  %v6980_v13 = vpop.f32.mrf.mxu1  ;;  %v18129_v23 = vmax.f32 %v18127_v18, %v18128_v22  ;;  %v13052_v54 = vld [vmem:[%s17150_s0 + $0xb78] sm:$0xff]   ;;  %v18132_v58 = vmax.f32 %v18130_v7, %v18131_v32  ;;  %v18148_v7 = vld [vmem:[#allocation114_spill] sm:$0xff]  ;;  %v18149_v32 = vld [vmem:[#allocation115_spill] sm:$0xff] }
 0x32d   :  { %v8123_v27 = vadd.f32 %v16027_v62, %v7892_v3  ;;  %v7897_v20 = vmax.f32 %v18117_v19, %v7673_v47  ;;  %v7671_v59 = vmax.f32 %v5155_v26, %v6980_v13  ;;  %v13055_v26 = vld [vmem:[%s17150_s0 + $0xbf0] sm:$0xff]  }
 0x32e   :  { %v8349_v31 = vmax.f32 %v8125_v61, 0.0  ;;  %v12253_v60 = vpop.f32.mrf.mxu0  ;;  %v12493_v0 = vpop.f32.mrf.mxu1  ;;  %v13054_v61 = vld [vmem:[%s17150_s0 + $0xb80] sm:$0xff]  }
 0x32f   :  { %v8347_v33 = vmax.f32 %v8123_v27, 0.0  ;;  %v7674_v21 = vmax.f32 %v12253_v60, %v12493_v0  ;;  %v7895_v10 = vmax.f32 %v18120_v57, %v7671_v59  ;;  %v8128_v63 = vadd.f32 %v16027_v62, %v7897_v20  ;;  %v18133_v20 = vld [vmem:[#allocation104_spill] sm:$0xff]  ;;  %v18134_v59 = vld [vmem:[#allocation105_spill] sm:$0xff] }
 0x330   :  { %v10703_v34 = vpack.c.bf16 %v8349_v31, %v8348_v30  ;;  %v5158_v14 = vpop.f32.mrf.mxu0  ;;  %v6983_v15 = vpop.f32.mrf.mxu1  ;;  %v18135_v30 = vmax.f32 %v18133_v20, %v18134_v59 }
 0x331   :  { %v10698_v4 = vpack.c.bf16 %v8347_v33, %v8346_v5  ;;  %v7898_v38 = vmax.f32 %v18123_v35, %v7674_v21  ;;  %v7672_v39 = vmax.f32 %v5158_v14, %v6983_v15  ;;  %v8126_v25 = vadd.f32 %v16027_v62, %v7895_v10  ;;  %v18136_v21 = vld [vmem:[#allocation106_spill] sm:$0xff] }
 0x332   :  { %11127 = vst [vmem:[%s17152_s3 + $0x108] sm:$0xff] %v10703_v34   ;;  %v12256_v49 = vpop.f32.mrf.mxu0  ;;  %12351 = vmatmul.mubr.bf16.gmra.mxu0 %v13048_v11  ;;  %v12496_v50 = vpop.f32.mrf.mxu1  ;;  %12591 = vmatmul.mubr.bf16.gmra.mxu1 %v13049_v12  ;;  %v8352_v44 = vmax.f32 %v8128_v63, 0.0  ;;  %v18139_v63 = vld [vmem:[#allocation108_spill] sm:$0xff] }
 0x333   :  { %11126 = vst [vmem:[%s17152_s3 + $0x100] sm:$0xff] %v10698_v4   ;;  %v8129_v40 = vadd.f32 %v16027_v62, %v7898_v38  ;;  %v7677_v45 = vmax.f32 %v12256_v49, %v12496_v50  ;;  %12354 = vmatprep.mubr.bf16.mxu0 %v13050_v36  ;;  %12594 = vmatprep.mubr.bf16.mxu1 %v13051_v41  ;;  %v8350_v13 = vmax.f32 %v8126_v25, 0.0  ;;  %v18137_v36 = vld [vmem:[#allocation107_spill] sm:$0xff]  ;;  %v13057_v50 = vld [vmem:[%s17150_s0 + $0xbf8] sm:$0xff]  }
 0x334   :  { %v7896_v16 = vmax.f32 %v18126_v2, %v7672_v39  ;;  %v5171_v9 = vpop.f32.mrf.mxu0  ;;  %v6996_v43 = vpop.f32.mrf.mxu1  ;;  %v18138_v41 = vmax.f32 %v18136_v21, %v18137_v36  ;;  %v18141_v48 = vmax.f32 %v18139_v63, %v18140_v24  ;;  %v13056_v49 = vld [vmem:[%s17150_s0 + $0xb88] sm:$0xff]   ;;  %v18144_v2 = vmax.f32 %v18142_v42, %v18143_v1  ;;  %v13062_v36 = vld [vmem:[%s17150_s0 + $0xba0] sm:$0xff]   ;;  %v18157_v24 = vld [vmem:[#allocation120_spill] sm:$0xff] }
 0x335   :  { %v8353_v17 = vmax.f32 %v8129_v40, 0.0  ;;  %v7901_v53 = vmax.f32 %v18129_v23, %v7677_v45  ;;  %v7675_v46 = vmax.f32 %v5171_v9, %v6996_v43  ;;  %v13058_v9 = vld [vmem:[%s17150_s0 + $0xb90] sm:$0xff]   ;;  %v13059_v43 = vld [vmem:[%s17150_s0 + $0xc00] sm:$0xff]   ;;  %v18161_v1 = vld [vmem:[#allocation123_spill] sm:$0xff] }
 0x336   :  { %v8127_v8 = vadd.f32 %v16027_v62, %v7896_v16  ;;  %v12257_v51 = vpop.f32.mrf.mxu0  ;;  %v12497_v52 = vpop.f32.mrf.mxu1  ;;  %v18160_v42 = vld [vmem:[#allocation122_spill] sm:$0xff] }
 0x337   :  { %v10713_v6 = vpack.c.bf16 %v8353_v17, %v8352_v44  ;;  %v7899_v3 = vmax.f32 %v18132_v58, %v7675_v46  ;;  %v7678_v47 = vmax.f32 %v12257_v51, %v12497_v52  ;;  %v8132_v19 = vadd.f32 %v16027_v62, %v7901_v53  ;;  %v18145_v46 = vld [vmem:[#allocation112_spill] sm:$0xff] }
 0x338   :  { %v8351_v27 = vmax.f32 %v8127_v8, 0.0  ;;  %v5174_v28 = vpop.f32.mrf.mxu0  ;;  %v6999_v37 = vpop.f32.mrf.mxu1  ;;  %v18146_v8 = vld [vmem:[#allocation113_spill] sm:$0xff]  ;;  %v18150_v58 = vmax.f32 %v18148_v7, %v18149_v32  ;;  %v18166_v7 = vld [vmem:[#allocation126_spill] sm:$0xff]  ;;  %v18167_v32 = vld [vmem:[#allocation127_spill] sm:$0xff] }
 0x339   :  { %11129 = vst [vmem:[%s17152_s3 + $0x118] sm:$0xff] %v10713_v6   ;;  %v7902_v31 = vmax.f32 %v18135_v30, %v7678_v47  ;;  %v7676_v60 = vmax.f32 %v5174_v28, %v6999_v37  ;;  %v8130_v11 = vadd.f32 %v16027_v62, %v7899_v3  ;;  %v8356_v10 = vmax.f32 %v8132_v19, 0.0  ;;  %v18151_v28 = vld [vmem:[#allocation116_spill] sm:$0xff]  ;;  %v18152_v37 = vld [vmem:[#allocation117_spill] sm:$0xff] }
 0x33a   :  { %v10708_v0 = vpack.c.bf16 %v8351_v27, %v8350_v13  ;;  %v12260_v12 = vpop.f32.mrf.mxu0  ;;  %12355 = vmatmul.mubr.bf16.gmra.mxu0 %v13052_v54  ;;  %v12500_v5 = vpop.f32.mrf.mxu1  ;;  %12595 = vmatmul.mubr.bf16.gmra.mxu1 %v13053_v55  ;;  %v18147_v51 = vmax.f32 %v18145_v46, %v18146_v8  ;;  %v18153_v19 = vmax.f32 %v18151_v28, %v18152_v37 }
 0x33b   :  { %v8133_v33 = vadd.f32 %v16027_v62, %v7902_v31  ;;  %v7900_v34 = vmax.f32 %v18138_v41, %v7676_v60  ;;  %v7681_v56 = vmax.f32 %v12260_v12, %v12500_v5  ;;  %12358 = vmatprep.mubr.bf16.mxu0 %v13054_v61  ;;  %12598 = vmatprep.mubr.bf16.mxu1 %v13055_v26  ;;  %v8354_v40 = vmax.f32 %v8130_v11, 0.0  ;;  %v13060_v11 = vld [vmem:[%s17150_s0 + $0xb98] sm:$0xff]   ;;  %v13061_v12 = vld [vmem:[%s17150_s0 + $0xc08] sm:$0xff]   ;;  %v13063_v41 = vld [vmem:[%s17150_s0 + $0xc10] sm:$0xff]  }
 0x33c   :  { %11128 = vst [vmem:[%s17152_s3 + $0x110] sm:$0xff] %v10708_v0   ;;  %v5187_v29 = vpop.f32.mrf.mxu0  ;;  %v7012_v57 = vpop.f32.mrf.mxu1 }
 0x33d   :  { %v8357_v14 = vmax.f32 %v8133_v33, 0.0  ;;  %v8131_v15 = vadd.f32 %v16027_v62, %v7900_v34  ;;  %v7679_v4 = vmax.f32 %v5187_v29, %v7012_v57  ;;  %v7905_v35 = vmax.f32 %v18141_v48, %v7681_v56  ;;  %v18154_v56 = vld [vmem:[#allocation118_spill] sm:$0xff]  ;;  %v18155_v29 = vld [vmem:[#allocation119_spill] sm:$0xff]  ;;  %v18158_v48 = vld [vmem:[#allocation121_spill] sm:$0xff] }
 0x33e   :  { %v12261_v38 = vpop.f32.mrf.mxu0  ;;  %v12501_v39 = vpop.f32.mrf.mxu1  ;;  %v18156_v57 = vmax.f32 %v18154_v56, %v18155_v29 }
 0x33f   :  { %v10723_v45 = vpack.c.bf16 %v8357_v14, %v8356_v10  ;;  %v8355_v25 = vmax.f32 %v8131_v15, 0.0  ;;  %v7903_v16 = vmax.f32 %v18144_v2, %v7679_v4  ;;  %v7682_v44 = vmax.f32 %v12261_v38, %v12501_v39 }
 0x340   :  { %v5190_v17 = vpop.f32.mrf.mxu0  ;;  %v7015_v18 = vpop.f32.mrf.mxu1  ;;  %v8136_v53 = vadd.f32 %v16027_v62, %v7905_v35  ;;  %v18159_v35 = vmax.f32 %v18157_v24, %v18158_v48  ;;  %v18162_v2 = vmax.f32 %v18160_v42, %v18161_v1  ;;  %v18176_v24 = vld [vmem:[#allocation133_spill] sm:$0xff]  ;;  %v18178_v42 = vld [vmem:[#allocation134_spill] sm:$0xff]  ;;  %v18179_v1 = vld [vmem:[#allocation135_spill] sm:$0xff] }
 0x341   :  { %11131 = vst [vmem:[%s17152_s3 + $0x128] sm:$0xff] %v10723_v45   ;;  %v10718_v22 = vpack.c.bf16 %v8355_v25, %v8354_v40  ;;  %v7680_v23 = vmax.f32 %v5190_v17, %v7015_v18  ;;  %v7906_v52 = vmax.f32 %v18147_v51, %v7682_v44  ;;  %v8134_v6 = vadd.f32 %v16027_v62, %v7903_v16  ;;  %v18163_v18 = vld [vmem:[#allocation124_spill] sm:$0xff] }
 0x342   :  { %v12264_v54 = vpop.f32.mrf.mxu0  ;;  %12359 = vmatmul.mubr.bf16.gmra.mxu0 %v13056_v49  ;;  %v12504_v55 = vpop.f32.mrf.mxu1  ;;  %12599 = vmatmul.mubr.bf16.gmra.mxu1 %v13057_v50  ;;  %v8360_v30 = vmax.f32 %v8136_v53, 0.0 }
 0x343   :  { %11130 = vst [vmem:[%s17152_s3 + $0x120] sm:$0xff] %v10718_v22   ;;  %v7904_v3 = vmax.f32 %v18150_v58, %v7680_v23  ;;  %v7685_v47 = vmax.f32 %v12264_v54, %v12504_v55  ;;  %12362 = vmatprep.mubr.bf16.mxu0 %v13058_v9  ;;  %12602 = vmatprep.mubr.bf16.mxu1 %v13059_v43  ;;  %v8358_v5 = vmax.f32 %v8134_v6, 0.0  ;;  %v18164_v22 = vld [vmem:[#allocation125_spill] sm:$0xff]  ;;  %v13064_v54 = vld [vmem:[%s17150_s0 + $0xba8] sm:$0xff]  }
 0x344   :  { %v8137_v61 = vadd.f32 %v16027_v62, %v7906_v52  ;;  %v5203_v26 = vpop.f32.mrf.mxu0  ;;  %v7028_v13 = vpop.f32.mrf.mxu1  ;;  %v18165_v23 = vmax.f32 %v18163_v18, %v18164_v22  ;;  %v13065_v55 = vld [vmem:[%s17150_s0 + $0xc18] sm:$0xff]   ;;  %v18168_v58 = vmax.f32 %v18166_v7, %v18167_v32  ;;  %v18184_v7 = vld [vmem:[#allocation138_spill] sm:$0xff]  ;;  %v18185_v32 = vld [vmem:[#allocation139_spill] sm:$0xff] }
 0x345   :  { %v8135_v27 = vadd.f32 %v16027_v62, %v7904_v3  ;;  %v7909_v20 = vmax.f32 %v18153_v19, %v7685_v47  ;;  %v7683_v59 = vmax.f32 %v5203_v26, %v7028_v13  ;;  %v13067_v26 = vld [vmem:[%s17150_s0 + $0xc20] sm:$0xff]  }
 0x346   :  { %v8361_v31 = vmax.f32 %v8137_v61, 0.0  ;;  %v12265_v60 = vpop.f32.mrf.mxu0  ;;  %v12505_v0 = vpop.f32.mrf.mxu1  ;;  %v13066_v61 = vld [vmem:[%s17150_s0 + $0xbb0] sm:$0xff]  }
 0x347   :  { %v8359_v33 = vmax.f32 %v8135_v27, 0.0  ;;  %v7686_v21 = vmax.f32 %v12265_v60, %v12505_v0  ;;  %v7907_v10 = vmax.f32 %v18156_v57, %v7683_v59  ;;  %v8140_v63 = vadd.f32 %v16027_v62, %v7909_v20  ;;  %v18169_v20 = vld [vmem:[#allocation128_spill] sm:$0xff]  ;;  %v18170_v59 = vld [vmem:[#allocation129_spill] sm:$0xff] }
 0x348   :  { %v10733_v34 = vpack.c.bf16 %v8361_v31, %v8360_v30  ;;  %v5206_v14 = vpop.f32.mrf.mxu0  ;;  %v7031_v15 = vpop.f32.mrf.mxu1  ;;  %v18171_v30 = vmax.f32 %v18169_v20, %v18170_v59 }
 0x349   :  { %v10728_v4 = vpack.c.bf16 %v8359_v33, %v8358_v5  ;;  %v7910_v38 = vmax.f32 %v18159_v35, %v7686_v21  ;;  %v7684_v39 = vmax.f32 %v5206_v14, %v7031_v15  ;;  %v8138_v25 = vadd.f32 %v16027_v62, %v7907_v10  ;;  %v18172_v21 = vld [vmem:[#allocation130_spill] sm:$0xff] }
 0x34a   :  { %11133 = vst [vmem:[%s17152_s3 + $0x138] sm:$0xff] %v10733_v34   ;;  %v12268_v49 = vpop.f32.mrf.mxu0  ;;  %12363 = vmatmul.mubr.bf16.gmra.mxu0 %v13060_v11  ;;  %v12508_v50 = vpop.f32.mrf.mxu1  ;;  %12603 = vmatmul.mubr.bf16.gmra.mxu1 %v13061_v12  ;;  %v8364_v44 = vmax.f32 %v8140_v63, 0.0  ;;  %v18175_v63 = vld [vmem:[#allocation132_spill] sm:$0xff] }
 0x34b   :  { %11132 = vst [vmem:[%s17152_s3 + $0x130] sm:$0xff] %v10728_v4   ;;  %v8141_v40 = vadd.f32 %v16027_v62, %v7910_v38  ;;  %v7689_v45 = vmax.f32 %v12268_v49, %v12508_v50  ;;  %12366 = vmatprep.mubr.bf16.mxu0 %v13062_v36  ;;  %12606 = vmatprep.mubr.bf16.mxu1 %v13063_v41  ;;  %v8362_v13 = vmax.f32 %v8138_v25, 0.0  ;;  %v18173_v36 = vld [vmem:[#allocation131_spill] sm:$0xff]  ;;  %v13068_v49 = vld [vmem:[%s17150_s0 + $0xbb8] sm:$0xff]  }
 0x34c   :  { %v7908_v16 = vmax.f32 %v18162_v2, %v7684_v39  ;;  %v5219_v9 = vpop.f32.mrf.mxu0  ;;  %v7044_v43 = vpop.f32.mrf.mxu1  ;;  %v18174_v41 = vmax.f32 %v18172_v21, %v18173_v36  ;;  %v18177_v48 = vmax.f32 %v18175_v63, %v18176_v24  ;;  %v13069_v50 = vld [vmem:[%s17150_s0 + $0xc28] sm:$0xff]   ;;  %v18180_v2 = vmax.f32 %v18178_v42, %v18179_v1  ;;  %v13074_v36 = vld [vmem:[%s17150_s0 + $0xd20] sm:$0xff]   ;;  %v18193_v24 = vld [vmem:[#allocation144_spill] sm:$0xff] }
 0x34d   :  { %v8365_v17 = vmax.f32 %v8141_v40, 0.0  ;;  %v7913_v53 = vmax.f32 %v18165_v23, %v7689_v45  ;;  %v7687_v46 = vmax.f32 %v5219_v9, %v7044_v43  ;;  %v13070_v9 = vld [vmem:[%s17150_s0 + $0xbc0] sm:$0xff]   ;;  %v13071_v43 = vld [vmem:[%s17150_s0 + $0xc30] sm:$0xff]   ;;  %v18197_v1 = vld [vmem:[#allocation147_spill] sm:$0xff] }
 0x34e   :  { %v8139_v8 = vadd.f32 %v16027_v62, %v7908_v16  ;;  %v12269_v51 = vpop.f32.mrf.mxu0  ;;  %v12509_v52 = vpop.f32.mrf.mxu1  ;;  %v18196_v42 = vld [vmem:[#allocation146_spill] sm:$0xff] }
 0x34f   :  { %v10743_v6 = vpack.c.bf16 %v8365_v17, %v8364_v44  ;;  %v7911_v3 = vmax.f32 %v18168_v58, %v7687_v46  ;;  %v7690_v47 = vmax.f32 %v12269_v51, %v12509_v52  ;;  %v8144_v19 = vadd.f32 %v16027_v62, %v7913_v53  ;;  %v18181_v46 = vld [vmem:[#allocation136_spill] sm:$0xff] }
 0x350   :  { %v8363_v27 = vmax.f32 %v8139_v8, 0.0  ;;  %v5222_v28 = vpop.f32.mrf.mxu0  ;;  %v7047_v37 = vpop.f32.mrf.mxu1  ;;  %v18182_v8 = vld [vmem:[#allocation137_spill] sm:$0xff]  ;;  %v18186_v58 = vmax.f32 %v18184_v7, %v18185_v32  ;;  %v18202_v7 = vld [vmem:[#allocation150_spill] sm:$0xff]  ;;  %v18203_v32 = vld [vmem:[#allocation151_spill] sm:$0xff] }
 0x351   :  { %11135 = vst [vmem:[%s17152_s3 + $0x148] sm:$0xff] %v10743_v6   ;;  %v7914_v31 = vmax.f32 %v18171_v30, %v7690_v47  ;;  %v7688_v60 = vmax.f32 %v5222_v28, %v7047_v37  ;;  %v8142_v11 = vadd.f32 %v16027_v62, %v7911_v3  ;;  %v8368_v10 = vmax.f32 %v8144_v19, 0.0  ;;  %v18187_v28 = vld [vmem:[#allocation140_spill] sm:$0xff]  ;;  %v18188_v37 = vld [vmem:[#allocation141_spill] sm:$0xff] }
 0x352   :  { %v10738_v0 = vpack.c.bf16 %v8363_v27, %v8362_v13  ;;  %v12272_v12 = vpop.f32.mrf.mxu0  ;;  %12367 = vmatmul.mubr.bf16.gmra.mxu0 %v13064_v54  ;;  %v12512_v5 = vpop.f32.mrf.mxu1  ;;  %12607 = vmatmul.mubr.bf16.gmra.mxu1 %v13065_v55  ;;  %v18183_v51 = vmax.f32 %v18181_v46, %v18182_v8  ;;  %v18189_v19 = vmax.f32 %v18187_v28, %v18188_v37 }
 0x353   :  { %v8145_v33 = vadd.f32 %v16027_v62, %v7914_v31  ;;  %v7912_v34 = vmax.f32 %v18174_v41, %v7688_v60  ;;  %v7693_v56 = vmax.f32 %v12272_v12, %v12512_v5  ;;  %12370 = vmatprep.mubr.bf16.mxu0 %v13066_v61  ;;  %12610 = vmatprep.mubr.bf16.mxu1 %v13067_v26  ;;  %v8366_v40 = vmax.f32 %v8142_v11, 0.0  ;;  %v13072_v11 = vld [vmem:[%s17150_s0 + $0xbc8] sm:$0xff]   ;;  %v13073_v12 = vld [vmem:[%s17150_s0 + $0xc38] sm:$0xff]   ;;  %v13075_v41 = vld [vmem:[%s17150_s0 + $0xd90] sm:$0xff]  }
 0x354   :  { %11134 = vst [vmem:[%s17152_s3 + $0x140] sm:$0xff] %v10738_v0   ;;  %v5235_v29 = vpop.f32.mrf.mxu0  ;;  %v7060_v57 = vpop.f32.mrf.mxu1 }
 0x355   :  { %v8369_v14 = vmax.f32 %v8145_v33, 0.0  ;;  %v8143_v15 = vadd.f32 %v16027_v62, %v7912_v34  ;;  %v7691_v4 = vmax.f32 %v5235_v29, %v7060_v57  ;;  %v7917_v35 = vmax.f32 %v18177_v48, %v7693_v56  ;;  %v18190_v56 = vld [vmem:[#allocation142_spill] sm:$0xff]  ;;  %v18191_v29 = vld [vmem:[#allocation143_spill] sm:$0xff]  ;;  %v18194_v48 = vld [vmem:[#allocation145_spill] sm:$0xff] }
 0x356   :  { %v12273_v38 = vpop.f32.mrf.mxu0  ;;  %v12513_v39 = vpop.f32.mrf.mxu1  ;;  %v18192_v57 = vmax.f32 %v18190_v56, %v18191_v29 }
 0x357   :  { %v10753_v45 = vpack.c.bf16 %v8369_v14, %v8368_v10  ;;  %v8367_v25 = vmax.f32 %v8143_v15, 0.0  ;;  %v7915_v16 = vmax.f32 %v18180_v2, %v7691_v4  ;;  %v7694_v44 = vmax.f32 %v12273_v38, %v12513_v39 }
 0x358   :  { %v5238_v17 = vpop.f32.mrf.mxu0  ;;  %v7063_v18 = vpop.f32.mrf.mxu1  ;;  %v8148_v53 = vadd.f32 %v16027_v62, %v7917_v35  ;;  %v18195_v35 = vmax.f32 %v18193_v24, %v18194_v48  ;;  %v18198_v2 = vmax.f32 %v18196_v42, %v18197_v1  ;;  %v18212_v24 = vld [vmem:[#allocation157_spill] sm:$0xff]  ;;  %v18214_v42 = vld [vmem:[#allocation158_spill] sm:$0xff]  ;;  %v18215_v1 = vld [vmem:[#allocation159_spill] sm:$0xff] }
 0x359   :  { %11137 = vst [vmem:[%s17152_s3 + $0x158] sm:$0xff] %v10753_v45   ;;  %v10748_v22 = vpack.c.bf16 %v8367_v25, %v8366_v40  ;;  %v7692_v23 = vmax.f32 %v5238_v17, %v7063_v18  ;;  %v7918_v52 = vmax.f32 %v18183_v51, %v7694_v44  ;;  %v8146_v6 = vadd.f32 %v16027_v62, %v7915_v16  ;;  %v18199_v18 = vld [vmem:[#allocation148_spill] sm:$0xff] }
 0x35a   :  { %v12276_v54 = vpop.f32.mrf.mxu0  ;;  %12371 = vmatmul.mubr.bf16.gmra.mxu0 %v13068_v49  ;;  %v12516_v55 = vpop.f32.mrf.mxu1  ;;  %12611 = vmatmul.mubr.bf16.gmra.mxu1 %v13069_v50  ;;  %v8372_v30 = vmax.f32 %v8148_v53, 0.0 }
 0x35b   :  { %11136 = vst [vmem:[%s17152_s3 + $0x150] sm:$0xff] %v10748_v22   ;;  %v7916_v3 = vmax.f32 %v18186_v58, %v7692_v23  ;;  %v7697_v47 = vmax.f32 %v12276_v54, %v12516_v55  ;;  %12374 = vmatprep.mubr.bf16.mxu0 %v13070_v9  ;;  %12614 = vmatprep.mubr.bf16.mxu1 %v13071_v43  ;;  %v8370_v5 = vmax.f32 %v8146_v6, 0.0  ;;  %v18200_v22 = vld [vmem:[#allocation149_spill] sm:$0xff]  ;;  %v13076_v54 = vld [vmem:[%s17150_s0 + $0xd28] sm:$0xff]  }
 0x35c   :  { %v8149_v61 = vadd.f32 %v16027_v62, %v7918_v52  ;;  %v5251_v26 = vpop.f32.mrf.mxu0  ;;  %v7076_v13 = vpop.f32.mrf.mxu1  ;;  %v18201_v23 = vmax.f32 %v18199_v18, %v18200_v22  ;;  %v13077_v55 = vld [vmem:[%s17150_s0 + $0xd98] sm:$0xff]   ;;  %v18204_v58 = vmax.f32 %v18202_v7, %v18203_v32  ;;  %v18220_v7 = vld [vmem:[#allocation162_spill] sm:$0xff]  ;;  %v18221_v32 = vld [vmem:[#allocation163_spill] sm:$0xff] }
 0x35d   :  { %v8147_v27 = vadd.f32 %v16027_v62, %v7916_v3  ;;  %v7921_v20 = vmax.f32 %v18189_v19, %v7697_v47  ;;  %v7695_v59 = vmax.f32 %v5251_v26, %v7076_v13  ;;  %v13079_v26 = vld [vmem:[%s17150_s0 + $0xda0] sm:$0xff]  }
 0x35e   :  { %v8373_v31 = vmax.f32 %v8149_v61, 0.0  ;;  %v12277_v60 = vpop.f32.mrf.mxu0  ;;  %v12517_v0 = vpop.f32.mrf.mxu1  ;;  %v13078_v61 = vld [vmem:[%s17150_s0 + $0xd30] sm:$0xff]  }
 0x35f   :  { %v8371_v33 = vmax.f32 %v8147_v27, 0.0  ;;  %v7698_v21 = vmax.f32 %v12277_v60, %v12517_v0  ;;  %v7919_v10 = vmax.f32 %v18192_v57, %v7695_v59  ;;  %v8152_v63 = vadd.f32 %v16027_v62, %v7921_v20  ;;  %v18205_v20 = vld [vmem:[#allocation152_spill] sm:$0xff]  ;;  %v18206_v59 = vld [vmem:[#allocation153_spill] sm:$0xff] }
 0x360   :  { %v10763_v34 = vpack.c.bf16 %v8373_v31, %v8372_v30  ;;  %v5254_v14 = vpop.f32.mrf.mxu0  ;;  %v7079_v15 = vpop.f32.mrf.mxu1  ;;  %v18207_v30 = vmax.f32 %v18205_v20, %v18206_v59 }
 0x361   :  { %v10758_v4 = vpack.c.bf16 %v8371_v33, %v8370_v5  ;;  %v7922_v38 = vmax.f32 %v18195_v35, %v7698_v21  ;;  %v7696_v39 = vmax.f32 %v5254_v14, %v7079_v15  ;;  %v8150_v25 = vadd.f32 %v16027_v62, %v7919_v10  ;;  %v18208_v21 = vld [vmem:[#allocation154_spill] sm:$0xff] }
 0x362   :  { %11139 = vst [vmem:[%s17152_s3 + $0x168] sm:$0xff] %v10763_v34   ;;  %v12280_v49 = vpop.f32.mrf.mxu0  ;;  %12375 = vmatmul.mubr.bf16.gmra.mxu0 %v13072_v11  ;;  %v12520_v50 = vpop.f32.mrf.mxu1  ;;  %12615 = vmatmul.mubr.bf16.gmra.mxu1 %v13073_v12  ;;  %v8376_v44 = vmax.f32 %v8152_v63, 0.0  ;;  %v18211_v63 = vld [vmem:[#allocation156_spill] sm:$0xff] }
 0x363   :  { %11138 = vst [vmem:[%s17152_s3 + $0x160] sm:$0xff] %v10758_v4   ;;  %v8153_v40 = vadd.f32 %v16027_v62, %v7922_v38  ;;  %v7701_v45 = vmax.f32 %v12280_v49, %v12520_v50  ;;  %12378 = vmatprep.mubr.bf16.mxu0 %v13074_v36  ;;  %12618 = vmatprep.mubr.bf16.mxu1 %v13075_v41  ;;  %v8374_v13 = vmax.f32 %v8150_v25, 0.0  ;;  %v18209_v36 = vld [vmem:[#allocation155_spill] sm:$0xff]  ;;  %v13080_v49 = vld [vmem:[%s17150_s0 + $0xd38] sm:$0xff]  }
 0x364   :  { %v7920_v16 = vmax.f32 %v18198_v2, %v7696_v39  ;;  %v5267_v9 = vpop.f32.mrf.mxu0  ;;  %v7092_v43 = vpop.f32.mrf.mxu1  ;;  %v18210_v41 = vmax.f32 %v18208_v21, %v18209_v36  ;;  %v18213_v48 = vmax.f32 %v18211_v63, %v18212_v24  ;;  %v13081_v50 = vld [vmem:[%s17150_s0 + $0xda8] sm:$0xff]   ;;  %v18216_v2 = vmax.f32 %v18214_v42, %v18215_v1  ;;  %v13086_v36 = vld [vmem:[%s17150_s0 + $0xd50] sm:$0xff]   ;;  %v18232_v42 = vld [vmem:[#allocation170_spill] sm:$0xff] }
 0x365   :  { %v8377_v17 = vmax.f32 %v8153_v40, 0.0  ;;  %v7925_v53 = vmax.f32 %v18201_v23, %v7701_v45  ;;  %v7699_v46 = vmax.f32 %v5267_v9, %v7092_v43  ;;  %v13082_v9 = vld [vmem:[%s17150_s0 + $0xd40] sm:$0xff]   ;;  %v13083_v43 = vld [vmem:[%s17150_s0 + $0xdb0] sm:$0xff]   ;;  %v18233_v1 = vld [vmem:[#allocation171_spill] sm:$0xff] }
 0x366   :  { %v8151_v8 = vadd.f32 %v16027_v62, %v7920_v16  ;;  %v12281_v51 = vpop.f32.mrf.mxu0  ;;  %v12521_v52 = vpop.f32.mrf.mxu1  ;;  %v18229_v24 = vld [vmem:[#allocation168_spill] sm:$0xff] }
 0x367   :  { %v10773_v6 = vpack.c.bf16 %v8377_v17, %v8376_v44  ;;  %v7923_v3 = vmax.f32 %v18204_v58, %v7699_v46  ;;  %v7702_v47 = vmax.f32 %v12281_v51, %v12521_v52  ;;  %v8156_v19 = vadd.f32 %v16027_v62, %v7925_v53  ;;  %v18217_v46 = vld [vmem:[#allocation160_spill] sm:$0xff] }
 0x368   :  { %v8375_v27 = vmax.f32 %v8151_v8, 0.0  ;;  %v5270_v28 = vpop.f32.mrf.mxu0  ;;  %v7095_v37 = vpop.f32.mrf.mxu1  ;;  %v18218_v8 = vld [vmem:[#allocation161_spill] sm:$0xff]  ;;  %v18222_v58 = vmax.f32 %v18220_v7, %v18221_v32  ;;  %v18238_v7 = vld [vmem:[#allocation174_spill] sm:$0xff]  ;;  %v18239_v32 = vld [vmem:[#allocation175_spill] sm:$0xff] }
 0x369   :  { %11141 = vst [vmem:[%s17152_s3 + $0x178] sm:$0xff] %v10773_v6   ;;  %v7926_v31 = vmax.f32 %v18207_v30, %v7702_v47  ;;  %v7700_v60 = vmax.f32 %v5270_v28, %v7095_v37  ;;  %v8154_v11 = vadd.f32 %v16027_v62, %v7923_v3  ;;  %v8380_v10 = vmax.f32 %v8156_v19, 0.0  ;;  %v18223_v28 = vld [vmem:[#allocation164_spill] sm:$0xff]  ;;  %v18224_v37 = vld [vmem:[#allocation165_spill] sm:$0xff] }
 0x36a   :  { %v10768_v0 = vpack.c.bf16 %v8375_v27, %v8374_v13  ;;  %v12284_v12 = vpop.f32.mrf.mxu0  ;;  %12379 = vmatmul.mubr.bf16.gmra.mxu0 %v13076_v54  ;;  %v12524_v5 = vpop.f32.mrf.mxu1  ;;  %12619 = vmatmul.mubr.bf16.gmra.mxu1 %v13077_v55  ;;  %v18219_v51 = vmax.f32 %v18217_v46, %v18218_v8  ;;  %v18225_v19 = vmax.f32 %v18223_v28, %v18224_v37 }
 0x36b   :  { %v8157_v33 = vadd.f32 %v16027_v62, %v7926_v31  ;;  %v7924_v34 = vmax.f32 %v18210_v41, %v7700_v60  ;;  %v7705_v56 = vmax.f32 %v12284_v12, %v12524_v5  ;;  %12382 = vmatprep.mubr.bf16.mxu0 %v13078_v61  ;;  %12622 = vmatprep.mubr.bf16.mxu1 %v13079_v26  ;;  %v8378_v40 = vmax.f32 %v8154_v11, 0.0  ;;  %v13084_v11 = vld [vmem:[%s17150_s0 + $0xd48] sm:$0xff]   ;;  %v13085_v12 = vld [vmem:[%s17150_s0 + $0xdb8] sm:$0xff]   ;;  %v13087_v41 = vld [vmem:[%s17150_s0 + $0xdc0] sm:$0xff]  }
 0x36c   :  { %11140 = vst [vmem:[%s17152_s3 + $0x170] sm:$0xff] %v10768_v0   ;;  %v5283_v29 = vpop.f32.mrf.mxu0  ;;  %v7108_v57 = vpop.f32.mrf.mxu1 }
 0x36d   :  { %v8381_v14 = vmax.f32 %v8157_v33, 0.0  ;;  %v8155_v15 = vadd.f32 %v16027_v62, %v7924_v34  ;;  %v7703_v4 = vmax.f32 %v5283_v29, %v7108_v57  ;;  %v7929_v35 = vmax.f32 %v18213_v48, %v7705_v56  ;;  %v18226_v56 = vld [vmem:[#allocation166_spill] sm:$0xff]  ;;  %v18227_v29 = vld [vmem:[#allocation167_spill] sm:$0xff]  ;;  %v18230_v48 = vld [vmem:[#allocation169_spill] sm:$0xff] }
 0x36e   :  { %v12285_v38 = vpop.f32.mrf.mxu0  ;;  %v12525_v39 = vpop.f32.mrf.mxu1  ;;  %v18228_v57 = vmax.f32 %v18226_v56, %v18227_v29 }
 0x36f   :  { %v10783_v45 = vpack.c.bf16 %v8381_v14, %v8380_v10  ;;  %v8379_v25 = vmax.f32 %v8155_v15, 0.0  ;;  %v7927_v16 = vmax.f32 %v18216_v2, %v7703_v4  ;;  %v7706_v44 = vmax.f32 %v12285_v38, %v12525_v39 }
 0x370   :  { %v5286_v17 = vpop.f32.mrf.mxu0  ;;  %v7111_v18 = vpop.f32.mrf.mxu1  ;;  %v8160_v53 = vadd.f32 %v16027_v62, %v7929_v35  ;;  %v18231_v35 = vmax.f32 %v18229_v24, %v18230_v48  ;;  %v18234_v2 = vmax.f32 %v18232_v42, %v18233_v1  ;;  %v18248_v24 = vld [vmem:[#allocation181_spill] sm:$0xff]  ;;  %v18250_v42 = vld [vmem:[#allocation182_spill] sm:$0xff]  ;;  %v18251_v1 = vld [vmem:[#allocation183_spill] sm:$0xff] }
 0x371   :  { %11143 = vst [vmem:[%s17152_s3 + $0x188] sm:$0xff] %v10783_v45   ;;  %v10778_v22 = vpack.c.bf16 %v8379_v25, %v8378_v40  ;;  %v7704_v23 = vmax.f32 %v5286_v17, %v7111_v18  ;;  %v7930_v52 = vmax.f32 %v18219_v51, %v7706_v44  ;;  %v8158_v6 = vadd.f32 %v16027_v62, %v7927_v16  ;;  %v18235_v18 = vld [vmem:[#allocation172_spill] sm:$0xff] }
 0x372   :  { %v12288_v54 = vpop.f32.mrf.mxu0  ;;  %12383 = vmatmul.mubr.bf16.gmra.mxu0 %v13080_v49  ;;  %v12528_v55 = vpop.f32.mrf.mxu1  ;;  %12623 = vmatmul.mubr.bf16.gmra.mxu1 %v13081_v50  ;;  %v8384_v30 = vmax.f32 %v8160_v53, 0.0 }
 0x373   :  { %11142 = vst [vmem:[%s17152_s3 + $0x180] sm:$0xff] %v10778_v22   ;;  %v7928_v3 = vmax.f32 %v18222_v58, %v7704_v23  ;;  %v7709_v47 = vmax.f32 %v12288_v54, %v12528_v55  ;;  %12386 = vmatprep.mubr.bf16.mxu0 %v13082_v9  ;;  %12626 = vmatprep.mubr.bf16.mxu1 %v13083_v43  ;;  %v8382_v5 = vmax.f32 %v8158_v6, 0.0  ;;  %v18236_v22 = vld [vmem:[#allocation173_spill] sm:$0xff]  ;;  %v13089_v55 = vld [vmem:[%s17150_s0 + $0xdc8] sm:$0xff]  }
 0x374   :  { %v8161_v61 = vadd.f32 %v16027_v62, %v7930_v52  ;;  %v5299_v26 = vpop.f32.mrf.mxu0  ;;  %v7124_v13 = vpop.f32.mrf.mxu1  ;;  %v18237_v23 = vmax.f32 %v18235_v18, %v18236_v22  ;;  %v13088_v54 = vld [vmem:[%s17150_s0 + $0xd58] sm:$0xff]   ;;  %v18240_v58 = vmax.f32 %v18238_v7, %v18239_v32  ;;  %v18257_v32 = vld [vmem:[#allocation187_spill] sm:$0xff] }
 0x375   :  { %v8159_v27 = vadd.f32 %v16027_v62, %v7928_v3  ;;  %v7933_v20 = vmax.f32 %v18225_v19, %v7709_v47  ;;  %v7707_v59 = vmax.f32 %v5299_v26, %v7124_v13  ;;  %v13091_v26 = vld [vmem:[%s17150_s0 + $0xdd0] sm:$0xff]  }
 0x376   :  { %v8385_v31 = vmax.f32 %v8161_v61, 0.0  ;;  %v12289_v60 = vpop.f32.mrf.mxu0  ;;  %v12529_v0 = vpop.f32.mrf.mxu1  ;;  %v13090_v61 = vld [vmem:[%s17150_s0 + $0xd60] sm:$0xff]  }
 0x377   :  { %v8383_v33 = vmax.f32 %v8159_v27, 0.0  ;;  %v7710_v21 = vmax.f32 %v12289_v60, %v12529_v0  ;;  %v7931_v10 = vmax.f32 %v18228_v57, %v7707_v59  ;;  %v8164_v63 = vadd.f32 %v16027_v62, %v7933_v20  ;;  %v18241_v20 = vld [vmem:[#allocation176_spill] sm:$0xff]  ;;  %v18242_v59 = vld [vmem:[#allocation177_spill] sm:$0xff] }
 0x378   :  { %v10793_v34 = vpack.c.bf16 %v8385_v31, %v8384_v30  ;;  %v5302_v14 = vpop.f32.mrf.mxu0  ;;  %v7127_v15 = vpop.f32.mrf.mxu1  ;;  %v18243_v30 = vmax.f32 %v18241_v20, %v18242_v59 }
 0x379   :  { %v10788_v4 = vpack.c.bf16 %v8383_v33, %v8382_v5  ;;  %v7934_v38 = vmax.f32 %v18231_v35, %v7710_v21  ;;  %v7708_v39 = vmax.f32 %v5302_v14, %v7127_v15  ;;  %v8162_v25 = vadd.f32 %v16027_v62, %v7931_v10  ;;  %v18244_v21 = vld [vmem:[#allocation178_spill] sm:$0xff] }
 0x37a   :  { %11145 = vst [vmem:[%s17152_s3 + $0x198] sm:$0xff] %v10793_v34   ;;  %v12292_v49 = vpop.f32.mrf.mxu0  ;;  %12387 = vmatmul.mubr.bf16.gmra.mxu0 %v13084_v11  ;;  %v12532_v50 = vpop.f32.mrf.mxu1  ;;  %12627 = vmatmul.mubr.bf16.gmra.mxu1 %v13085_v12  ;;  %v8388_v44 = vmax.f32 %v8164_v63, 0.0  ;;  %v18247_v63 = vld [vmem:[#allocation180_spill] sm:$0xff] }
 0x37b   :  { %11144 = vst [vmem:[%s17152_s3 + $0x190] sm:$0xff] %v10788_v4   ;;  %v8165_v40 = vadd.f32 %v16027_v62, %v7934_v38  ;;  %v7713_v45 = vmax.f32 %v12292_v49, %v12532_v50  ;;  %12390 = vmatprep.mubr.bf16.mxu0 %v13086_v36  ;;  %12630 = vmatprep.mubr.bf16.mxu1 %v13087_v41  ;;  %v8386_v13 = vmax.f32 %v8162_v25, 0.0  ;;  %v18245_v36 = vld [vmem:[#allocation179_spill] sm:$0xff]  ;;  %v13093_v50 = vld [vmem:[%s17150_s0 + $0xdd8] sm:$0xff]  }
 0x37c   :  { %v7932_v16 = vmax.f32 %v18234_v2, %v7708_v39  ;;  %v5315_v9 = vpop.f32.mrf.mxu0  ;;  %v7140_v43 = vpop.f32.mrf.mxu1  ;;  %v18246_v41 = vmax.f32 %v18244_v21, %v18245_v36  ;;  %v18249_v48 = vmax.f32 %v18247_v63, %v18248_v24  ;;  %v13092_v49 = vld [vmem:[%s17150_s0 + $0xd68] sm:$0xff]   ;;  %v18252_v2 = vmax.f32 %v18250_v42, %v18251_v1  ;;  %v13098_v36 = vld [vmem:[%s17150_s0 + $0xd80] sm:$0xff]   ;;  %v18265_v24 = vld [vmem:[#allocation192_spill] sm:$0xff] }
 0x37d   :  { %v8389_v17 = vmax.f32 %v8165_v40, 0.0  ;;  %v7937_v53 = vmax.f32 %v18237_v23, %v7713_v45  ;;  %v7711_v46 = vmax.f32 %v5315_v9, %v7140_v43  ;;  %v13094_v9 = vld [vmem:[%s17150_s0 + $0xd70] sm:$0xff]   ;;  %v13095_v43 = vld [vmem:[%s17150_s0 + $0xde0] sm:$0xff]   ;;  %v18269_v1 = vld [vmem:[#allocation195_spill] sm:$0xff] }
 0x37e   :  { %v8163_v8 = vadd.f32 %v16027_v62, %v7932_v16  ;;  %v12293_v51 = vpop.f32.mrf.mxu0  ;;  %v12533_v52 = vpop.f32.mrf.mxu1  ;;  %v18268_v42 = vld [vmem:[#allocation194_spill] sm:$0xff] }
 0x37f   :  { %v10803_v6 = vpack.c.bf16 %v8389_v17, %v8388_v44  ;;  %v7935_v3 = vmax.f32 %v18240_v58, %v7711_v46  ;;  %v7714_v47 = vmax.f32 %v12293_v51, %v12533_v52  ;;  %v8168_v19 = vadd.f32 %v16027_v62, %v7937_v53  ;;  %v18253_v46 = vld [vmem:[#allocation184_spill] sm:$0xff] }
 0x380   :  { %v8387_v27 = vmax.f32 %v8163_v8, 0.0  ;;  %v5318_v28 = vpop.f32.mrf.mxu0  ;;  %v7143_v37 = vpop.f32.mrf.mxu1  ;;  %v18254_v8 = vld [vmem:[#allocation185_spill] sm:$0xff] }
 0x381   :  { %11147 = vst [vmem:[%s17152_s3 + $0x1a8] sm:$0xff] %v10803_v6   ;;  %v7938_v31 = vmax.f32 %v18243_v30, %v7714_v47  ;;  %v7712_v60 = vmax.f32 %v5318_v28, %v7143_v37  ;;  %v8166_v11 = vadd.f32 %v16027_v62, %v7935_v3  ;;  %v8392_v10 = vmax.f32 %v8168_v19, 0.0  ;;  %v16518_v6 = vld [vmem:[%s17151_s2] ss:$0 sm:$0xff]  ;;  %v18259_v28 = vld [vmem:[#allocation188_spill] sm:$0xff]  ;;  %v18260_v37 = vld [vmem:[#allocation189_spill] sm:$0xff] }
 0x382   :  { %v10798_v0 = vpack.c.bf16 %v8387_v27, %v8386_v13  ;;  %v12296_v12 = vpop.f32.mrf.mxu0  ;;  %12391 = vmatmul.mubr.bf16.gmra.mxu0 %v13088_v54  ;;  %v12536_v5 = vpop.f32.mrf.mxu1  ;;  %12631 = vmatmul.mubr.bf16.gmra.mxu1 %v13089_v55  ;;  %v18255_v51 = vmax.f32 %v18253_v46, %v18254_v8  ;;  %v18261_v19 = vmax.f32 %v18259_v28, %v18260_v37  ;;  %v18277_v37 = vld [vmem:[#allocation200_spill] sm:$0xff] }
 0x383   :  { %v8169_v33 = vadd.f32 %v16027_v62, %v7938_v31  ;;  %v7936_v34 = vmax.f32 %v18246_v41, %v7712_v60  ;;  %v7717_v56 = vmax.f32 %v12296_v12, %v12536_v5  ;;  %12394 = vmatprep.mubr.bf16.mxu0 %v13090_v61  ;;  %12634 = vmatprep.mubr.bf16.mxu1 %v13091_v26  ;;  %v8390_v40 = vmax.f32 %v8166_v11, 0.0  ;;  %v13096_v11 = vld [vmem:[%s17150_s0 + $0xd78] sm:$0xff]   ;;  %v13097_v12 = vld [vmem:[%s17150_s0 + $0xde8] sm:$0xff]   ;;  %v13099_v41 = vld [vmem:[%s17150_s0 + $0xdf0] sm:$0xff]  }
 0x384   :  { %11146 = vst [vmem:[%s17152_s3 + $0x1a0] sm:$0xff] %v10798_v0   ;;  %v5331_v29 = vpop.f32.mrf.mxu0  ;;  %v7156_v57 = vpop.f32.mrf.mxu1 }
 0x385   :  { %v8393_v14 = vmax.f32 %v8169_v33, 0.0  ;;  %v8167_v15 = vadd.f32 %v16027_v62, %v7936_v34  ;;  %v7715_v4 = vmax.f32 %v5331_v29, %v7156_v57  ;;  %v7941_v35 = vmax.f32 %v18249_v48, %v7717_v56  ;;  %v18262_v56 = vld [vmem:[#allocation190_spill] sm:$0xff]  ;;  %v18263_v29 = vld [vmem:[#allocation191_spill] sm:$0xff]  ;;  %v18266_v48 = vld [vmem:[#allocation193_spill] sm:$0xff] }
 0x386   :  { %v12297_v38 = vpop.f32.mrf.mxu0  ;;  %v12537_v39 = vpop.f32.mrf.mxu1  ;;  %v18264_v57 = vmax.f32 %v18262_v56, %v18263_v29 }
 0x387   :  { %v10813_v45 = vpack.c.bf16 %v8393_v14, %v8392_v10  ;;  %v8391_v25 = vmax.f32 %v8167_v15, 0.0  ;;  %v7939_v16 = vmax.f32 %v18252_v2, %v7715_v4  ;;  %v7718_v44 = vmax.f32 %v12297_v38, %v12537_v39 }
 0x388   :  { %v5334_v17 = vpop.f32.mrf.mxu0  ;;  %v7159_v18 = vpop.f32.mrf.mxu1  ;;  %v8172_v53 = vadd.f32 %v16027_v62, %v7941_v35  ;;  %v18256_v62 = vld [vmem:[#allocation186_spill] sm:$0xff]  ;;  %v18267_v35 = vmax.f32 %v18265_v24, %v18266_v48  ;;  %v18270_v2 = vmax.f32 %v18268_v42, %v18269_v1 }
 0x389   :  { %11149 = vst [vmem:[%s17152_s3 + $0x1b8] sm:$0xff] %v10813_v45   ;;  %v10808_v22 = vpack.c.bf16 %v8391_v25, %v8390_v40  ;;  %v7716_v23 = vmax.f32 %v5334_v17, %v7159_v18  ;;  %v7942_v52 = vmax.f32 %v18255_v51, %v7718_v44  ;;  %v8170_v7 = vadd.f32 %v16518_v6, %v7939_v16  ;;  %v18271_v18 = vld [vmem:[#allocation196_spill] sm:$0xff] }
 0x38a   :  { %v12300_v54 = vpop.f32.mrf.mxu0  ;;  %12395 = vmatmul.mubr.bf16.gmra.mxu0 %v13092_v49  ;;  %v12540_v55 = vpop.f32.mrf.mxu1  ;;  %12635 = vmatmul.mubr.bf16.gmra.mxu1 %v13093_v50  ;;  %v18258_v58 = vmax.f32 %v18256_v62, %v18257_v32  ;;  %v8396_v30 = vmax.f32 %v8172_v53, 0.0  ;;  %v18274_v62 = vld [vmem:[#allocation198_spill] sm:$0xff]  ;;  %v18275_v32 = vld [vmem:[#allocation199_spill] sm:$0xff] }
 0x38b   :  { %11148 = vst [vmem:[%s17152_s3 + $0x1b0] sm:$0xff] %v10808_v22   ;;  %v7721_v47 = vmax.f32 %v12300_v54, %v12540_v55  ;;  %12398 = vmatprep.mubr.bf16.mxu0 %v13094_v9  ;;  %12638 = vmatprep.mubr.bf16.mxu1 %v13095_v43  ;;  %v8173_v61 = vadd.f32 %v16518_v6, %v7942_v52  ;;  %v8394_v5 = vmax.f32 %v8170_v7, 0.0  ;;  %v18272_v22 = vld [vmem:[#allocation197_spill] sm:$0xff]  ;;  %v13100_v54 = vld [vmem:[%s17150_s0 + $0xd88] sm:$0xff]  }
 0x38c   :  { %v7940_v3 = vmax.f32 %v18258_v58, %v7716_v23  ;;  %v5347_v26 = vpop.f32.mrf.mxu0  ;;  %v7172_v13 = vpop.f32.mrf.mxu1  ;;  %v18273_v23 = vmax.f32 %v18271_v18, %v18272_v22  ;;  %v13101_v55 = vld [vmem:[%s17150_s0 + $0xdf8] sm:$0xff]   ;;  %v18276_v58 = vmax.f32 %v18274_v62, %v18275_v32 }
 0x38d   :  { %v7945_v20 = vmax.f32 %v18261_v19, %v7721_v47  ;;  %v7719_v59 = vmax.f32 %v5347_v26, %v7172_v13  ;;  %v8397_v31 = vmax.f32 %v8173_v61, 0.0  ;;  %v18278_v19 = vld [vmem:[#allocation201_spill] sm:$0xff] }
 0x38e   :  { %v8171_v27 = vadd.f32 %v16518_v6, %v7940_v3  ;;  %v12301_v60 = vpop.f32.mrf.mxu0  ;;  %v12541_v0 = vpop.f32.mrf.mxu1 }
 0x38f   :  { %v7722_v21 = vmax.f32 %v12301_v60, %v12541_v0  ;;  %v10823_v34 = vpack.c.bf16 %v8397_v31, %v8396_v30  ;;  %v7943_v10 = vmax.f32 %v18264_v57, %v7719_v59  ;;  %v8176_v63 = vadd.f32 %v16518_v6, %v7945_v20 }
 0x390   :  { %v8395_v33 = vmax.f32 %v8171_v27, 0.0  ;;  %v5350_v14 = vpop.f32.mrf.mxu0  ;;  %v7175_v15 = vpop.f32.mrf.mxu1  ;;  %v18279_v20 = vmax.f32 %v18277_v37, %v18278_v19 }
 0x391   :  { %v7946_v38 = vmax.f32 %v18267_v35, %v7722_v21  ;;  %11151 = vst [vmem:[%s17152_s3 + $0x1c8] sm:$0xff] %v10823_v34   ;;  %v7720_v39 = vmax.f32 %v5350_v14, %v7175_v15  ;;  %v8174_v25 = vadd.f32 %v16518_v6, %v7943_v10  ;;  %v8400_v44 = vmax.f32 %v8176_v63, 0.0  ;;  %v18283_v15 = vld [vmem:[#allocation204_spill] sm:$0xff] }
 0x392   :  { %v10818_v4 = vpack.c.bf16 %v8395_v33, %v8394_v5  ;;  %v12304_v49 = vpop.f32.mrf.mxu0  ;;  %12399 = vmatmul.mubr.bf16.gmra.mxu0 %v13096_v11  ;;  %v12544_v50 = vpop.f32.mrf.mxu1  ;;  %12639 = vmatmul.mubr.bf16.gmra.mxu1 %v13097_v12  ;;  %v18280_v5 = vld [vmem:[#allocation202_spill] sm:$0xff]  ;;  %v18281_v33 = vld [vmem:[#allocation203_spill] sm:$0xff] }
 0x393   :  { %v8177_v40 = vadd.f32 %v16518_v6, %v7946_v38  ;;  %v7725_v45 = vmax.f32 %v12304_v49, %v12544_v50  ;;  %12402 = vmatprep.mubr.bf16.mxu0 %v13098_v36  ;;  %12642 = vmatprep.mubr.bf16.mxu1 %v13099_v41  ;;  %v7944_v16 = vmax.f32 %v18270_v2, %v7720_v39  ;;  %v8398_v61 = vmax.f32 %v8174_v25, 0.0  ;;  %v18286_v50 = vld [vmem:[#allocation206_spill] sm:$0xff] }
 0x394   :  { %11150 = vst [vmem:[%s17152_s3 + $0x1c0] sm:$0xff] %v10818_v4   ;;  %v5363_v9 = vpop.f32.mrf.mxu0  ;;  %v7188_v43 = vpop.f32.mrf.mxu1  ;;  %v18282_v21 = vmax.f32 %v18280_v5, %v18281_v33  ;;  %v18284_v4 = vld [vmem:[#allocation205_spill] sm:$0xff] }
 0x395   :  { %v8401_v17 = vmax.f32 %v8177_v40, 0.0  ;;  %v7949_v53 = vmax.f32 %v18273_v23, %v7725_v45  ;;  %v7723_v46 = vmax.f32 %v5363_v9, %v7188_v43  ;;  %v8175_v8 = vadd.f32 %v16518_v6, %v7944_v16  ;;  %v18287_v40 = vld [vmem:[#allocation207_spill] sm:$0xff] }
 0x396   :  { %v12305_v51 = vpop.f32.mrf.mxu0  ;;  %v12545_v52 = vpop.f32.mrf.mxu1  ;;  %v18285_v63 = vmax.f32 %v18283_v15, %v18284_v4  ;;  %v18288_v45 = vmax.f32 %v18286_v50, %v18287_v40 }
 0x397   :  { %v10833_v7 = vpack.c.bf16 %v8401_v17, %v8400_v44  ;;  %v7947_v3 = vmax.f32 %v18276_v58, %v7723_v46  ;;  %v7726_v47 = vmax.f32 %v12305_v51, %v12545_v52  ;;  %v8399_v26 = vmax.f32 %v8175_v8, 0.0  ;;  %v18289_v44 = vld [vmem:[#allocation208_spill] sm:$0xff]  ;;  %v18290_v17 = vld [vmem:[#allocation209_spill] sm:$0xff]  ;;  %v18292_v8 = vld [vmem:[#allocation210_spill] sm:$0xff] }
 0x398   :  { %v5366_v13 = vpop.f32.mrf.mxu0  ;;  %v7191_v27 = vpop.f32.mrf.mxu1  ;;  %v8180_v28 = vadd.f32 %v16518_v6, %v7949_v53  ;;  %v18291_v18 = vmax.f32 %v18289_v44, %v18290_v17  ;;  %v18293_v51 = vld [vmem:[#allocation211_spill] sm:$0xff]  ;;  %v18310_v17 = vld [vmem:[#allocation222_spill] sm:$0xff] }
 0x399   :  { %11153 = vst [vmem:[%s17152_s3 + $0x1d8] sm:$0xff] %v10833_v7   ;;  %v7950_v59 = vmax.f32 %v18279_v20, %v7726_v47  ;;  %v7724_v30 = vmax.f32 %v5366_v13, %v7191_v27  ;;  %v10828_v31 = vpack.c.bf16 %v8399_v26, %v8398_v61  ;;  %v8178_v11 = vadd.f32 %v16518_v6, %v7947_v3  ;;  %v18295_v3 = vld [vmem:[#allocation212_spill] sm:$0xff]  ;;  %v18296_v47 = vld [vmem:[#allocation213_spill] sm:$0xff] }
 0x39a   :  { %v12308_v60 = vpop.f32.mrf.mxu0  ;;  %12403 = vmatmul.mubr.bf16.gmra.mxu0 %v13100_v54  ;;  %v12548_v0 = vpop.f32.mrf.mxu1  ;;  %12643 = vmatmul.mubr.bf16.gmra.mxu1 %v13101_v55  ;;  %v8404_v29 = vmax.f32 %v8180_v28, 0.0  ;;  %v18294_v52 = vmax.f32 %v18292_v8, %v18293_v51  ;;  %v18297_v61 = vmax.f32 %v18295_v3, %v18296_v47 }
 0x39b   :  { %v8181_v12 = vadd.f32 %v16518_v6, %v7950_v59  ;;  %v7948_v36 = vmax.f32 %v18282_v21, %v7724_v30  ;;  %v7729_v41 = vmax.f32 %v12308_v60, %v12548_v0  ;;  %11152 = vst [vmem:[%s17152_s3 + $0x1d0] sm:$0xff] %v10828_v31   ;;  %v8402_v38 = vmax.f32 %v8178_v11, 0.0  ;;  %v18298_v60 = vld [vmem:[#allocation214_spill] sm:$0xff]  ;;  %v18299_v0 = vld [vmem:[#allocation215_spill] sm:$0xff] }
 0x39c   :  { %v5379_v34 = vpop.f32.mrf.mxu0  ;;  %v7204_v56 = vpop.f32.mrf.mxu1  ;;  %v18300_v11 = vmax.f32 %v18298_v60, %v18299_v0 }
 0x39d   :  { %v8405_v57 = vmax.f32 %v8181_v12, 0.0  ;;  %v8179_v10 = vadd.f32 %v16518_v6, %v7948_v36  ;;  %v7727_v14 = vmax.f32 %v5379_v34, %v7204_v56  ;;  %v7953_v24 = vmax.f32 %v18285_v63, %v7729_v41  ;;  %v18301_v41 = vld [vmem:[#allocation216_spill] sm:$0xff]  ;;  %v18302_v34 = vld [vmem:[#allocation217_spill] sm:$0xff] }
 0x39e   :  { %v12309_v48 = vpop.f32.mrf.mxu0  ;;  %v12549_v35 = vpop.f32.mrf.mxu1  ;;  %v18303_v56 = vmax.f32 %v18301_v41, %v18302_v34 }
 0x39f   :  { %v10843_v39 = vpack.c.bf16 %v8405_v57, %v8404_v29  ;;  %v8403_v49 = vmax.f32 %v8179_v10, 0.0  ;;  %v7951_v25 = vmax.f32 %v18288_v45, %v7727_v14  ;;  %v7730_v42 = vmax.f32 %v12309_v48, %v12549_v35  ;;  %v18305_v48 = vld [vmem:[#allocation219_spill] sm:$0xff]  ;;  %v18307_v45 = vld [vmem:[#allocation220_spill] sm:$0xff] }
 0x3a0   :  { %v5382_v1 = vpop.f32.mrf.mxu0  ;;  %v7207_v2 = vpop.f32.mrf.mxu1  ;;  %v8184_v43 = vadd.f32 %v16518_v6, %v7953_v24  ;;  %v18304_v24 = vld [vmem:[#allocation218_spill] sm:$0xff] }
 0x3a1   :  { %11155 = vst [vmem:[%s17152_s3 + $0x1e8] sm:$0xff] %v10843_v39   ;;  %v10838_v16 = vpack.c.bf16 %v8403_v49, %v8402_v38  ;;  %v7728_v9 = vmax.f32 %v5382_v1, %v7207_v2  ;;  %v7954_v22 = vmax.f32 %v18291_v18, %v7730_v42  ;;  %v8182_v46 = vadd.f32 %v16518_v6, %v7951_v25  ;;  %v18308_v25 = vld [vmem:[#allocation221_spill] sm:$0xff]  ;;  %v18311_v18 = vld [vmem:[#allocation223_spill] sm:$0xff] }
 0x3a2   :  { %v12312_v23 = vpop.f32.mrf.mxu0  ;;  %v12552_v53 = vpop.f32.mrf.mxu1  ;;  %v8408_v27 = vmax.f32 %v8184_v43, 0.0  ;;  %v18306_v35 = vmax.f32 %v18304_v24, %v18305_v48  ;;  %v18309_v42 = vmax.f32 %v18307_v45, %v18308_v25 }
 0x3a3   :  { %11154 = vst [vmem:[%s17152_s3 + $0x1e0] sm:$0xff] %v10838_v16   ;;  %v7952_v54 = vmax.f32 %v18294_v52, %v7728_v9  ;;  %v7733_v55 = vmax.f32 %v12312_v23, %v12552_v53  ;;  %v8185_v7 = vadd.f32 %v16518_v6, %v7954_v22  ;;  %v8406_v20 = vmax.f32 %v8182_v46, 0.0 }
 0x3a4   :  { %v5395_v62 = vpop.f32.mrf.mxu0  ;;  %v7220_v32 = vpop.f32.mrf.mxu1  ;;  %v18312_v22 = vmax.f32 %v18310_v17, %v18311_v18 }
 0x3a5   :  { %v8183_v58 = vadd.f32 %v16518_v6, %v7952_v54  ;;  %v7957_v26 = vmax.f32 %v18297_v61, %v7733_v55  ;;  %v7731_v13 = vmax.f32 %v5395_v62, %v7220_v32  ;;  %v8409_v28 = vmax.f32 %v8185_v7, 0.0  ;;  %v18313_v55 = vld [vmem:[#allocation224_spill] sm:$0xff]  ;;  %v18314_v7 = vld [vmem:[#allocation225_spill] sm:$0xff] }
 0x3a6   :  { %v12313_v37 = vpop.f32.mrf.mxu0  ;;  %v12553_v19 = vpop.f32.mrf.mxu1  ;;  %v18315_v62 = vmax.f32 %v18313_v55, %v18314_v7 }
 0x3a7   :  { %v8407_v59 = vmax.f32 %v8183_v58, 0.0  ;;  %v7734_v30 = vmax.f32 %v12313_v37, %v12553_v19  ;;  %v10853_v31 = vpack.c.bf16 %v8409_v28, %v8408_v27  ;;  %v7955_v12 = vmax.f32 %v18300_v11, %v7731_v13  ;;  %v18316_v27 = vld [vmem:[#allocation226_spill] sm:$0xff]  ;;  %v18317_v28 = vld [vmem:[#allocation227_spill] sm:$0xff] }
 0x3a8   :  { %v5398_v5 = vpop.f32.mrf.mxu0  ;;  %v7223_v33 = vpop.f32.mrf.mxu1  ;;  %v8188_v36 = vadd.f32 %v16518_v6, %v7957_v26  ;;  %v18318_v37 = vmax.f32 %v18316_v27, %v18317_v28 }
 0x3a9   :  { %v10848_v21 = vpack.c.bf16 %v8407_v59, %v8406_v20  ;;  %v7958_v29 = vmax.f32 %v18303_v56, %v7734_v30  ;;  %11157 = vst [vmem:[%s17152_s3 + $0x1f8] sm:$0xff] %v10853_v31   ;;  %v7732_v57 = vmax.f32 %v5398_v5, %v7223_v33  ;;  %v8186_v63 = vadd.f32 %v16518_v6, %v7955_v12  ;;  %v18319_v12 = vld [vmem:[#allocation228_spill] sm:$0xff]  ;;  %v18320_v5 = vld [vmem:[#allocation229_spill] sm:$0xff] }
 0x3aa   :  { %v12316_v10 = vpop.f32.mrf.mxu0  ;;  %v12556_v14 = vpop.f32.mrf.mxu1  ;;  %v8412_v50 = vmax.f32 %v8188_v36, 0.0  ;;  %v18321_v33 = vmax.f32 %v18319_v12, %v18320_v5 }
 0x3ab   :  { %11156 = vst [vmem:[%s17152_s3 + $0x1f0] sm:$0xff] %v10848_v21   ;;  %v8189_v15 = vadd.f32 %v16518_v6, %v7958_v29  ;;  %v7737_v4 = vmax.f32 %v12316_v10, %v12556_v14  ;;  %v7956_v38 = vmax.f32 %v18306_v35, %v7732_v57  ;;  %v8410_v46 = vmax.f32 %v8186_v63, 0.0  ;;  %v18322_v57 = vld [vmem:[#allocation230_spill] sm:$0xff]  ;;  %v18323_v10 = vld [vmem:[#allocation231_spill] sm:$0xff] }
 0x3ac   :  { %v5411_v39 = vpop.f32.mrf.mxu0  ;;  %v7236_v49 = vpop.f32.mrf.mxu1  ;;  %v18324_v14 = vmax.f32 %v18322_v57, %v18323_v10 }
 0x3ad   :  { %v8413_v40 = vmax.f32 %v8189_v15, 0.0  ;;  %v7961_v1 = vmax.f32 %v18309_v42, %v7737_v4  ;;  %v7735_v2 = vmax.f32 %v5411_v39, %v7236_v49  ;;  %v8187_v16 = vadd.f32 %v16518_v6, %v7956_v38  ;;  %v18325_v39 = vld [vmem:[#allocation232_spill] sm:$0xff]  ;;  %v18326_v49 = vld [vmem:[#allocation233_spill] sm:$0xff] }
 0x3ae   :  { %v12317_v9 = vpop.f32.mrf.mxu0  ;;  %v12557_v43 = vpop.f32.mrf.mxu1 }
 0x3af   :  { %v10863_v44 = vpack.c.bf16 %v8413_v40, %v8412_v50  ;;  %v7959_v23 = vmax.f32 %v18312_v22, %v7735_v2  ;;  %v7738_v53 = vmax.f32 %v12317_v9, %v12557_v43  ;;  %v8411_v8 = vmax.f32 %v8187_v16, 0.0  ;;  %v18329_v2 = vld [vmem:[#allocation235_spill] sm:$0xff] }
 0x3b0   :  { %v5414_v51 = vpop.f32.mrf.mxu0  ;;  %v7239_v52 = vpop.f32.mrf.mxu1  ;;  %v8192_v54 = vadd.f32 %v16518_v6, %v7961_v1  ;;  %v18327_v50 = vmax.f32 %v18325_v39, %v18326_v49  ;;  %v18328_v1 = vld [vmem:[#allocation234_spill] sm:$0xff] }
 0x3b1   :  { %11159 = vst [vmem:[%s17152_s3 + $0x208] sm:$0xff] %v10863_v44   ;;  %v7962_v32 = vmax.f32 %v18315_v62, %v7738_v53  ;;  %v7736_v58 = vmax.f32 %v5414_v51, %v7239_v52  ;;  %v10858_v3 = vpack.c.bf16 %v8411_v8, %v8410_v46  ;;  %v8190_v26 = vadd.f32 %v16518_v6, %v7959_v23  ;;  %v18331_v23 = vld [vmem:[#allocation236_spill] sm:$0xff]  ;;  %v18332_v53 = vld [vmem:[#allocation237_spill] sm:$0xff]  ;;  %v18346_v49 = vld [vmem:[#allocation246_spill] sm:$0xff] }
 0x3b2   :  { %v12320_v47 = vpop.f32.mrf.mxu0  ;;  %v12560_v61 = vpop.f32.mrf.mxu1  ;;  %v8416_v31 = vmax.f32 %v8192_v54, 0.0  ;;  %v18330_v16 = vmax.f32 %v18328_v1, %v18329_v2  ;;  %v18333_v46 = vmax.f32 %v18331_v23, %v18332_v53 }
 0x3b3   :  { %v8193_v13 = vadd.f32 %v16518_v6, %v7962_v32  ;;  %v7960_v19 = vmax.f32 %v18318_v37, %v7736_v58  ;;  %v7741_v20 = vmax.f32 %v12320_v47, %v12560_v61  ;;  %11158 = vst [vmem:[%s17152_s3 + $0x200] sm:$0xff] %v10858_v3   ;;  %v8414_v34 = vmax.f32 %v8190_v26, 0.0  ;;  %v18334_v47 = vld [vmem:[#allocation238_spill] sm:$0xff]  ;;  %v18335_v61 = vld [vmem:[#allocation239_spill] sm:$0xff] }
 0x3b4   :  { %v5427_v59 = vpop.f32.mrf.mxu0  ;;  %v7252_v30 = vpop.f32.mrf.mxu1  ;;  %v18336_v26 = vmax.f32 %v18334_v47, %v18335_v61 }
 0x3b5   :  { %v8417_v60 = vmax.f32 %v8193_v13, 0.0  ;;  %v8191_v0 = vadd.f32 %v16518_v6, %v7960_v19  ;;  %v7739_v11 = vmax.f32 %v5427_v59, %v7252_v30  ;;  %v7965_v21 = vmax.f32 %v18321_v33, %v7741_v20  ;;  %v18337_v20 = vld [vmem:[#allocation240_spill] sm:$0xff]  ;;  %v18338_v59 = vld [vmem:[#allocation241_spill] sm:$0xff] }
 0x3b6   :  { %v12321_v36 = vpop.f32.mrf.mxu0  ;;  %v12561_v41 = vpop.f32.mrf.mxu1  ;;  %v18339_v30 = vmax.f32 %v18337_v20, %v18338_v59 }
 0x3b7   :  { %v10873_v56 = vpack.c.bf16 %v8417_v60, %v8416_v31  ;;  %v8415_v29 = vmax.f32 %v8191_v0, 0.0  ;;  %v7963_v15 = vmax.f32 %v18324_v14, %v7739_v11  ;;  %v7742_v4 = vmax.f32 %v12321_v36, %v12561_v41  ;;  %v18341_v36 = vld [vmem:[#allocation243_spill] sm:$0xff]  ;;  %v18343_v14 = vld [vmem:[#allocation244_spill] sm:$0xff] }
 0x3b8   :  { %v5430_v63 = vpop.f32.mrf.mxu0  ;;  %v7255_v24 = vpop.f32.mrf.mxu1  ;;  %v8196_v38 = vadd.f32 %v16518_v6, %v7965_v21  ;;  %v18340_v21 = vld [vmem:[#allocation242_spill] sm:$0xff] }
 0x3b9   :  { %11161 = vst [vmem:[%s17152_s3 + $0x218] sm:$0xff] %v10873_v56   ;;  %v10868_v48 = vpack.c.bf16 %v8415_v29, %v8414_v34  ;;  %v7740_v35 = vmax.f32 %v5430_v63, %v7255_v24  ;;  %v7966_v40 = vmax.f32 %v18327_v50, %v7742_v4  ;;  %v8194_v42 = vadd.f32 %v16518_v6, %v7963_v15  ;;  %v18344_v15 = vld [vmem:[#allocation245_spill] sm:$0xff]  ;;  %v18347_v50 = vld [vmem:[#allocation247_spill] sm:$0xff] }
 0x3ba   :  { %v12324_v45 = vpop.f32.mrf.mxu0  ;;  %v12564_v25 = vpop.f32.mrf.mxu1  ;;  %v8420_v52 = vmax.f32 %v8196_v38, 0.0  ;;  %v18342_v41 = vmax.f32 %v18340_v21, %v18341_v36  ;;  %v18345_v4 = vmax.f32 %v18343_v14, %v18344_v15 }
 0x3bb   :  { %11160 = vst [vmem:[%s17152_s3 + $0x210] sm:$0xff] %v10868_v48   ;;  %v7964_v9 = vmax.f32 %v18330_v16, %v7740_v35  ;;  %v7745_v43 = vmax.f32 %v12324_v45, %v12564_v25  ;;  %v8197_v44 = vadd.f32 %v16518_v6, %v7966_v40  ;;  %v8418_v62 = vmax.f32 %v8194_v42, 0.0 }
 0x3bc   :  { %v5443_v17 = vpop.f32.mrf.mxu0  ;;  %v7268_v18 = vpop.f32.mrf.mxu1  ;;  %v18348_v40 = vmax.f32 %v18346_v49, %v18347_v50 }
 0x3bd   :  { %v8195_v22 = vadd.f32 %v16518_v6, %v7964_v9  ;;  %v7969_v8 = vmax.f32 %v18333_v46, %v7745_v43  ;;  %v7743_v51 = vmax.f32 %v5443_v17, %v7268_v18  ;;  %v8421_v54 = vmax.f32 %v8197_v44, 0.0  ;;  %v18349_v43 = vld [vmem:[#allocation248_spill] sm:$0xff]  ;;  %v18350_v44 = vld [vmem:[#allocation249_spill] sm:$0xff] }
 0x3be   :  { %v12325_v55 = vpop.f32.mrf.mxu0  ;;  %v12565_v7 = vpop.f32.mrf.mxu1  ;;  %v18351_v17 = vmax.f32 %v18349_v43, %v18350_v44 }
 0x3bf   :  { %v8419_v32 = vmax.f32 %v8195_v22, 0.0  ;;  %v7746_v58 = vmax.f32 %v12325_v55, %v12565_v7  ;;  %v10883_v3 = vpack.c.bf16 %v8421_v54, %v8420_v52  ;;  %v7967_v13 = vmax.f32 %v18336_v26, %v7743_v51  ;;  %v18352_v52 = vld [vmem:[#allocation250_spill] sm:$0xff]  ;;  %v18353_v54 = vld [vmem:[#allocation251_spill] sm:$0xff] }
 0x3c0   :  { %v5446_v27 = vpop.f32.mrf.mxu0  ;;  %v7271_v28 = vpop.f32.mrf.mxu1  ;;  %v8200_v19 = vadd.f32 %v16518_v6, %v7969_v8  ;;  %v18354_v55 = vmax.f32 %v18352_v52, %v18353_v54 }
 0x3c1   :  { %v10878_v37 = vpack.c.bf16 %v8419_v32, %v8418_v62  ;;  %v7970_v31 = vmax.f32 %v18339_v30, %v7746_v58  ;;  %11163 = vst [vmem:[%s17152_s3 + $0x228] sm:$0xff] %v10883_v3   ;;  %v7744_v60 = vmax.f32 %v5446_v27, %v7271_v28  ;;  %v8198_v33 = vadd.f32 %v16518_v6, %v7967_v13  ;;  %v18355_v13 = vld [vmem:[#allocation252_spill] sm:$0xff]  ;;  %v18356_v27 = vld [vmem:[#allocation253_spill] sm:$0xff] }
 0x3c2   :  { %v12328_v0 = vpop.f32.mrf.mxu0  ;;  %v12568_v11 = vpop.f32.mrf.mxu1  ;;  %v8424_v57 = vmax.f32 %v8200_v19, 0.0  ;;  %v18357_v28 = vmax.f32 %v18355_v13, %v18356_v27 }
 0x3c3   :  { %11162 = vst [vmem:[%s17152_s3 + $0x220] sm:$0xff] %v10878_v37   ;;  %v8201_v12 = vadd.f32 %v16518_v6, %v7970_v31  ;;  %v7749_v5 = vmax.f32 %v12328_v0, %v12568_v11  ;;  %v7968_v34 = vmax.f32 %v18342_v41, %v7744_v60  ;;  %v8422_v42 = vmax.f32 %v8198_v33, 0.0  ;;  %v18358_v60 = vld [vmem:[#allocation254_spill] sm:$0xff]  ;;  %v18359_v0 = vld [vmem:[#allocation255_spill] sm:$0xff] }
 0x3c4   :  { %v5459_v56 = vpop.f32.mrf.mxu0  ;;  %v7284_v29 = vpop.f32.mrf.mxu1  ;;  %v18360_v11 = vmax.f32 %v18358_v60, %v18359_v0 }
 0x3c5   :  { %v8425_v10 = vmax.f32 %v8201_v12, 0.0  ;;  %v7973_v63 = vmax.f32 %v18345_v4, %v7749_v5  ;;  %v7747_v24 = vmax.f32 %v5459_v56, %v7284_v29  ;;  %v8199_v48 = vadd.f32 %v16518_v6, %v7968_v34  ;;  %v18361_v56 = vld [vmem:[#allocation256_spill] sm:$0xff]  ;;  %v18362_v29 = vld [vmem:[#allocation257_spill] sm:$0xff] }
 0x3c6   :  { %v12329_v35 = vpop.f32.mrf.mxu0  ;;  %v12569_v38 = vpop.f32.mrf.mxu1 }
 0x3c7   :  { %v10893_v39 = vpack.c.bf16 %v8425_v10, %v8424_v57  ;;  %v7971_v45 = vmax.f32 %v18348_v40, %v7747_v24  ;;  %v7750_v25 = vmax.f32 %v12329_v35, %v12569_v38  ;;  %v8423_v1 = vmax.f32 %v8199_v48, 0.0  ;;  %v18365_v24 = vld [vmem:[#allocation259_spill] sm:$0xff] }
 0x3c8   :  { %v5462_v2 = vpop.f32.mrf.mxu0  ;;  %v7287_v16 = vpop.f32.mrf.mxu1  ;;  %v8204_v9 = vadd.f32 %v16518_v6, %v7973_v63  ;;  %v18363_v57 = vmax.f32 %v18361_v56, %v18362_v29  ;;  %v18364_v63 = vld [vmem:[#allocation258_spill] sm:$0xff] }
 0x3c9   :  { %11165 = vst [vmem:[%s17152_s3 + $0x238] sm:$0xff] %v10893_v39   ;;  %v7974_v18 = vmax.f32 %v18351_v17, %v7750_v25  ;;  %v7748_v22 = vmax.f32 %v5462_v2, %v7287_v16  ;;  %v10888_v23 = vpack.c.bf16 %v8423_v1, %v8422_v42  ;;  %v8202_v8 = vadd.f32 %v16518_v6, %v7971_v45  ;;  %v18367_v45 = vld [vmem:[#allocation260_spill] sm:$0xff]  ;;  %v18368_v25 = vld [vmem:[#allocation261_spill] sm:$0xff]  ;;  %v18382_v29 = vld [vmem:[#allocation270_spill] sm:$0xff] }
 0x3ca   :  { %v12332_v53 = vpop.f32.mrf.mxu0  ;;  %v12572_v46 = vpop.f32.mrf.mxu1  ;;  %v8428_v3 = vmax.f32 %v8204_v9, 0.0  ;;  %v18366_v48 = vmax.f32 %v18364_v63, %v18365_v24  ;;  %v18369_v42 = vmax.f32 %v18367_v45, %v18368_v25 }
 0x3cb   :  { %v8205_v51 = vadd.f32 %v16518_v6, %v7974_v18  ;;  %v7972_v7 = vmax.f32 %v18354_v55, %v7748_v22  ;;  %v7753_v62 = vmax.f32 %v12332_v53, %v12572_v46  ;;  %11164 = vst [vmem:[%s17152_s3 + $0x230] sm:$0xff] %v10888_v23   ;;  %v8426_v59 = vmax.f32 %v8202_v8, 0.0  ;;  %v18370_v53 = vld [vmem:[#allocation262_spill] sm:$0xff]  ;;  %v18371_v46 = vld [vmem:[#allocation263_spill] sm:$0xff] }
 0x3cc   :  { %v5475_v32 = vpop.f32.mrf.mxu0  ;;  %v7300_v58 = vpop.f32.mrf.mxu1  ;;  %v18372_v8 = vmax.f32 %v18370_v53, %v18371_v46 }
 0x3cd   :  { %v8429_v47 = vmax.f32 %v8205_v51, 0.0  ;;  %v8203_v61 = vadd.f32 %v16518_v6, %v7972_v7  ;;  %v7751_v26 = vmax.f32 %v5475_v32, %v7300_v58  ;;  %v7977_v37 = vmax.f32 %v18357_v28, %v7753_v62  ;;  %v18373_v62 = vld [vmem:[#allocation264_spill] sm:$0xff]  ;;  %v18374_v32 = vld [vmem:[#allocation265_spill] sm:$0xff] }
 0x3ce   :  { %v12333_v19 = vpop.f32.mrf.mxu0  ;;  %v12573_v20 = vpop.f32.mrf.mxu1  ;;  %v18375_v58 = vmax.f32 %v18373_v62, %v18374_v32 }
 0x3cf   :  { %v10903_v30 = vpack.c.bf16 %v8429_v47, %v8428_v3  ;;  %v8427_v31 = vmax.f32 %v8203_v61, 0.0  ;;  %v7975_v12 = vmax.f32 %v18360_v11, %v7751_v26  ;;  %v7754_v5 = vmax.f32 %v12333_v19, %v12573_v20  ;;  %v18377_v19 = vld [vmem:[#allocation267_spill] sm:$0xff]  ;;  %v18379_v11 = vld [vmem:[#allocation268_spill] sm:$0xff] }
 0x3d0   :  { %v5478_v33 = vpop.f32.mrf.mxu0  ;;  %v7303_v21 = vpop.f32.mrf.mxu1  ;;  %v8208_v34 = vadd.f32 %v16518_v6, %v7977_v37  ;;  %v18376_v37 = vld [vmem:[#allocation266_spill] sm:$0xff] }
 0x3d1   :  { %11167 = vst [vmem:[%s17152_s3 + $0x248] sm:$0xff] %v10903_v30   ;;  %v10898_v36 = vpack.c.bf16 %v8427_v31, %v8426_v59  ;;  %v7752_v41 = vmax.f32 %v5478_v33, %v7303_v21  ;;  %v7978_v10 = vmax.f32 %v18363_v57, %v7754_v5  ;;  %v8206_v4 = vadd.f32 %v16518_v6, %v7975_v12  ;;  %v18380_v12 = vld [vmem:[#allocation269_spill] sm:$0xff]  ;;  %v18383_v57 = vld [vmem:[#allocation271_spill] sm:$0xff] }
 0x3d2   :  { %v12336_v14 = vpop.f32.mrf.mxu0  ;;  %v12576_v15 = vpop.f32.mrf.mxu1  ;;  %v8432_v16 = vmax.f32 %v8208_v34, 0.0  ;;  %v18378_v20 = vmax.f32 %v18376_v37, %v18377_v19  ;;  %v18381_v5 = vmax.f32 %v18379_v11, %v18380_v12 }
 0x3d3   :  { %11166 = vst [vmem:[%s17152_s3 + $0x240] sm:$0xff] %v10898_v36   ;;  %v7976_v35 = vmax.f32 %v18366_v48, %v7752_v41  ;;  %v7757_v38 = vmax.f32 %v12336_v14, %v12576_v15  ;;  %v8209_v39 = vadd.f32 %v16518_v6, %v7978_v10  ;;  %v8430_v17 = vmax.f32 %v8206_v4, 0.0 }
 0x3d4   :  { %v5491_v49 = vpop.f32.mrf.mxu0  ;;  %v7316_v50 = vpop.f32.mrf.mxu1  ;;  %v18384_v10 = vmax.f32 %v18382_v29, %v18383_v57 }
 0x3d5   :  { %v8207_v40 = vadd.f32 %v16518_v6, %v7976_v35  ;;  %v7981_v1 = vmax.f32 %v18369_v42, %v7757_v38  ;;  %v7755_v2 = vmax.f32 %v5491_v49, %v7316_v50  ;;  %v8433_v9 = vmax.f32 %v8209_v39, 0.0  ;;  %v18385_v38 = vld [vmem:[#allocation272_spill] sm:$0xff]  ;;  %v18386_v39 = vld [vmem:[#allocation273_spill] sm:$0xff] }
 0x3d6   :  { %v12337_v43 = vpop.f32.mrf.mxu0  ;;  %v12577_v44 = vpop.f32.mrf.mxu1  ;;  %v18387_v49 = vmax.f32 %v18385_v38, %v18386_v39 }
 0x3d7   :  { %v8431_v18 = vmax.f32 %v8207_v40, 0.0  ;;  %v7758_v22 = vmax.f32 %v12337_v43, %v12577_v44  ;;  %v10913_v23 = vpack.c.bf16 %v8433_v9, %v8432_v16  ;;  %v7979_v51 = vmax.f32 %v18372_v8, %v7755_v2  ;;  %v18388_v16 = vld [vmem:[#allocation274_spill] sm:$0xff]  ;;  %v18389_v9 = vld [vmem:[#allocation275_spill] sm:$0xff] }
 0x3d8   :  { %v5494_v52 = vpop.f32.mrf.mxu0  ;;  %v7319_v54 = vpop.f32.mrf.mxu1  ;;  %v8212_v7 = vadd.f32 %v16518_v6, %v7981_v1  ;;  %v18390_v43 = vmax.f32 %v18388_v16, %v18389_v9 }
 0x3d9   :  { %v10908_v55 = vpack.c.bf16 %v8431_v18, %v8430_v17  ;;  %v7982_v3 = vmax.f32 %v18375_v58, %v7758_v22  ;;  %11169 = vst [vmem:[%s17152_s3 + $0x258] sm:$0xff] %v10913_v23   ;;  %v7756_v47 = vmax.f32 %v5494_v52, %v7319_v54  ;;  %v8210_v28 = vadd.f32 %v16518_v6, %v7979_v51  ;;  %v18391_v51 = vld [vmem:[#allocation276_spill] sm:$0xff]  ;;  %v18392_v52 = vld [vmem:[#allocation277_spill] sm:$0xff] }
 0x3da   :  { %v12340_v61 = vpop.f32.mrf.mxu0  ;;  %v12580_v26 = vpop.f32.mrf.mxu1  ;;  %v8436_v60 = vmax.f32 %v8212_v7, 0.0  ;;  %v18393_v54 = vmax.f32 %v18391_v51, %v18392_v52 }
 0x3db   :  { %11168 = vst [vmem:[%s17152_s3 + $0x250] sm:$0xff] %v10908_v55   ;;  %v8213_v13 = vadd.f32 %v16518_v6, %v7982_v3  ;;  %v7761_v27 = vmax.f32 %v12340_v61, %v12580_v26  ;;  %v7980_v59 = vmax.f32 %v18378_v20, %v7756_v47  ;;  %v8434_v4 = vmax.f32 %v8210_v28, 0.0  ;;  %v18394_v47 = vld [vmem:[#allocation278_spill] sm:$0xff]  ;;  %v18395_v61 = vld [vmem:[#allocation279_spill] sm:$0xff] }
 0x3dc   :  { %v5507_v30 = vpop.f32.mrf.mxu0  ;;  %v7332_v31 = vpop.f32.mrf.mxu1  ;;  %v18396_v26 = vmax.f32 %v18394_v47, %v18395_v61 }
 0x3dd   :  { %v8437_v0 = vmax.f32 %v8213_v13, 0.0  ;;  %v7985_v33 = vmax.f32 %v18381_v5, %v7761_v27  ;;  %v7759_v21 = vmax.f32 %v5507_v30, %v7332_v31  ;;  %v8211_v36 = vadd.f32 %v16518_v6, %v7980_v59  ;;  %v18397_v30 = vld [vmem:[#allocation280_spill] sm:$0xff]  ;;  %v18398_v31 = vld [vmem:[#allocation281_spill] sm:$0xff] }
 0x3de   :  { %v12341_v41 = vpop.f32.mrf.mxu0  ;;  %v12581_v34 = vpop.f32.mrf.mxu1 }
 0x3df   :  { %v10923_v56 = vpack.c.bf16 %v8437_v0, %v8436_v60  ;;  %v7983_v14 = vmax.f32 %v18384_v10, %v7759_v21  ;;  %v7762_v15 = vmax.f32 %v12341_v41, %v12581_v34  ;;  %v8435_v63 = vmax.f32 %v8211_v36, 0.0  ;;  %v18401_v21 = vld [vmem:[#allocation283_spill] sm:$0xff] }
 0x3e0   :  { %v5510_v24 = vpop.f32.mrf.mxu0  ;;  %v7335_v48 = vpop.f32.mrf.mxu1  ;;  %v8216_v35 = vadd.f32 %v16518_v6, %v7985_v33  ;;  %v18399_v60 = vmax.f32 %v18397_v30, %v18398_v31  ;;  %v18400_v33 = vld [vmem:[#allocation282_spill] sm:$0xff] }
 0x3e1   :  { %11171 = vst [vmem:[%s17152_s3 + $0x268] sm:$0xff] %v10923_v56   ;;  %v7986_v50 = vmax.f32 %v18387_v49, %v7762_v15  ;;  %v7760_v40 = vmax.f32 %v5510_v24, %v7335_v48  ;;  %v10918_v45 = vpack.c.bf16 %v8435_v63, %v8434_v4  ;;  %v8214_v1 = vadd.f32 %v16518_v6, %v7983_v14  ;;  %v18403_v14 = vld [vmem:[#allocation284_spill] sm:$0xff]  ;;  %v18404_v15 = vld [vmem:[#allocation285_spill] sm:$0xff]  ;;  %v18418_v31 = vld [vmem:[#allocation294_spill] sm:$0xff] }
 0x3e2   :  { %v12344_v25 = vpop.f32.mrf.mxu0  ;;  %v12584_v42 = vpop.f32.mrf.mxu1  ;;  %v8440_v23 = vmax.f32 %v8216_v35, 0.0  ;;  %v18402_v36 = vmax.f32 %v18400_v33, %v18401_v21  ;;  %v18405_v4 = vmax.f32 %v18403_v14, %v18404_v15 }
 0x3e3   :  { %v8217_v2 = vadd.f32 %v16518_v6, %v7986_v50  ;;  %v7984_v44 = vmax.f32 %v18390_v43, %v7760_v40  ;;  %v7765_v17 = vmax.f32 %v12344_v25, %v12584_v42  ;;  %11170 = vst [vmem:[%s17152_s3 + $0x260] sm:$0xff] %v10918_v45   ;;  %v8438_v32 = vmax.f32 %v8214_v1, 0.0  ;;  %v18406_v25 = vld [vmem:[#allocation286_spill] sm:$0xff]  ;;  %v18407_v42 = vld [vmem:[#allocation287_spill] sm:$0xff] }
 0x3e4   :  { %v5523_v18 = vpop.f32.mrf.mxu0  ;;  %v7348_v22 = vpop.f32.mrf.mxu1  ;;  %v18408_v1 = vmax.f32 %v18406_v25, %v18407_v42 }
 0x3e5   :  { %v8441_v53 = vmax.f32 %v8217_v2, 0.0  ;;  %v8215_v46 = vadd.f32 %v16518_v6, %v7984_v44  ;;  %v7763_v8 = vmax.f32 %v5523_v18, %v7348_v22  ;;  %v7989_v55 = vmax.f32 %v18393_v54, %v7765_v17  ;;  %v18409_v17 = vld [vmem:[#allocation288_spill] sm:$0xff]  ;;  %v18410_v18 = vld [vmem:[#allocation289_spill] sm:$0xff] }
 0x3e6   :  { %v12345_v7 = vpop.f32.mrf.mxu0  ;;  %v12585_v62 = vpop.f32.mrf.mxu1  ;;  %v18411_v22 = vmax.f32 %v18409_v17, %v18410_v18 }
 0x3e7   :  { %v10933_v58 = vpack.c.bf16 %v8441_v53, %v8440_v23  ;;  %v8439_v3 = vmax.f32 %v8215_v46, 0.0  ;;  %v7987_v13 = vmax.f32 %v18396_v26, %v7763_v8  ;;  %v7766_v27 = vmax.f32 %v12345_v7, %v12585_v62  ;;  %v18413_v7 = vld [vmem:[#allocation291_spill] sm:$0xff]  ;;  %v18415_v26 = vld [vmem:[#allocation292_spill] sm:$0xff] }
 0x3e8   :  { %v5526_v28 = vpop.f32.mrf.mxu0  ;;  %v7351_v37 = vpop.f32.mrf.mxu1  ;;  %v8220_v59 = vadd.f32 %v16518_v6, %v7989_v55  ;;  %v18412_v55 = vld [vmem:[#allocation290_spill] sm:$0xff] }
 0x3e9   :  { %11173 = vst [vmem:[%s17152_s3 + $0x278] sm:$0xff] %v10933_v58   ;;  %v10928_v19 = vpack.c.bf16 %v8439_v3, %v8438_v32  ;;  %v7764_v20 = vmax.f32 %v5526_v28, %v7351_v37  ;;  %v7990_v0 = vmax.f32 %v18399_v60, %v7766_v27  ;;  %v8218_v5 = vadd.f32 %v16518_v6, %v7987_v13  ;;  %v18416_v13 = vld [vmem:[#allocation293_spill] sm:$0xff]  ;;  %v18419_v60 = vld [vmem:[#allocation295_spill] sm:$0xff] }
 0x3ea   :  { %v12348_v11 = vpop.f32.mrf.mxu0  ;;  %v12588_v12 = vpop.f32.mrf.mxu1  ;;  %v8444_v48 = vmax.f32 %v8220_v59, 0.0  ;;  %v18414_v62 = vmax.f32 %v18412_v55, %v18413_v7  ;;  %v18417_v27 = vmax.f32 %v18415_v26, %v18416_v13 }
 0x3eb   :  { %11172 = vst [vmem:[%s17152_s3 + $0x270] sm:$0xff] %v10928_v19   ;;  %v7988_v41 = vmax.f32 %v18402_v36, %v7764_v20  ;;  %v7769_v34 = vmax.f32 %v12348_v11, %v12588_v12  ;;  %v8221_v56 = vadd.f32 %v16518_v6, %v7990_v0  ;;  %v8442_v49 = vmax.f32 %v8218_v5, 0.0 }
 0x3ec   :  { %v5539_v29 = vpop.f32.mrf.mxu0  ;;  %v7364_v57 = vpop.f32.mrf.mxu1  ;;  %v18420_v0 = vmax.f32 %v18418_v31, %v18419_v60 }
 0x3ed   :  { %v8219_v10 = vadd.f32 %v16518_v6, %v7988_v41  ;;  %v7993_v63 = vmax.f32 %v18405_v4, %v7769_v34  ;;  %v7767_v24 = vmax.f32 %v5539_v29, %v7364_v57  ;;  %v8445_v35 = vmax.f32 %v8221_v56, 0.0  ;;  %v18421_v34 = vld [vmem:[#allocation296_spill] sm:$0xff]  ;;  %v18422_v56 = vld [vmem:[#allocation297_spill] sm:$0xff] }
 0x3ee   :  { %v12349_v38 = vpop.f32.mrf.mxu0  ;;  %v12589_v39 = vpop.f32.mrf.mxu1  ;;  %v18423_v29 = vmax.f32 %v18421_v34, %v18422_v56 }
 0x3ef   :  { %v8443_v50 = vmax.f32 %v8219_v10, 0.0  ;;  %v7770_v40 = vmax.f32 %v12349_v38, %v12589_v39  ;;  %v10943_v45 = vpack.c.bf16 %v8445_v35, %v8444_v48  ;;  %v7991_v2 = vmax.f32 %v18408_v1, %v7767_v24  ;;  %v18424_v48 = vld [vmem:[#allocation298_spill] sm:$0xff]  ;;  %v18425_v35 = vld [vmem:[#allocation299_spill] sm:$0xff] }
 0x3f0   :  { %v5542_v16 = vpop.f32.mrf.mxu0  ;;  %v7367_v9 = vpop.f32.mrf.mxu1  ;;  %v8224_v44 = vadd.f32 %v16518_v6, %v7993_v63  ;;  %v18426_v38 = vmax.f32 %v18424_v48, %v18425_v35 }
 0x3f1   :  { %v10938_v43 = vpack.c.bf16 %v8443_v50, %v8442_v49  ;;  %v7994_v23 = vmax.f32 %v18411_v22, %v7770_v40  ;;  %11175 = vst [vmem:[%s17152_s3 + $0x288] sm:$0xff] %v10943_v45   ;;  %v7768_v53 = vmax.f32 %v5542_v16, %v7367_v9  ;;  %v8222_v54 = vadd.f32 %v16518_v6, %v7991_v2  ;;  %v18427_v2 = vld [vmem:[#allocation300_spill] sm:$0xff]  ;;  %v18428_v16 = vld [vmem:[#allocation301_spill] sm:$0xff] }
 0x3f2   :  { %v12352_v46 = vpop.f32.mrf.mxu0  ;;  %v12592_v8 = vpop.f32.mrf.mxu1  ;;  %v8448_v47 = vmax.f32 %v8224_v44, 0.0  ;;  %v18429_v9 = vmax.f32 %v18427_v2, %v18428_v16 }
 0x3f3   :  { %11174 = vst [vmem:[%s17152_s3 + $0x280] sm:$0xff] %v10938_v43   ;;  %v8225_v51 = vadd.f32 %v16518_v6, %v7994_v23  ;;  %v7773_v52 = vmax.f32 %v12352_v46, %v12592_v8  ;;  %v7992_v32 = vmax.f32 %v18414_v62, %v7768_v53  ;;  %v8446_v5 = vmax.f32 %v8222_v54, 0.0  ;;  %v18430_v53 = vld [vmem:[#allocation302_spill] sm:$0xff]  ;;  %v18431_v46 = vld [vmem:[#allocation303_spill] sm:$0xff] }
 0x3f4   :  { %v5555_v58 = vpop.f32.mrf.mxu0  ;;  %v7380_v3 = vpop.f32.mrf.mxu1  ;;  %v18432_v8 = vmax.f32 %v18430_v53, %v18431_v46 }
 0x3f5   :  { %v8449_v61 = vmax.f32 %v8225_v51, 0.0  ;;  %v7997_v28 = vmax.f32 %v18417_v27, %v7773_v52  ;;  %v7771_v37 = vmax.f32 %v5555_v58, %v7380_v3  ;;  %v8223_v19 = vadd.f32 %v16518_v6, %v7992_v32  ;;  %v18433_v58 = vld [vmem:[#allocation304_spill] sm:$0xff]  ;;  %v18434_v3 = vld [vmem:[#allocation305_spill] sm:$0xff] }
 0x3f6   :  { %v12353_v20 = vpop.f32.mrf.mxu0  ;;  %v12593_v59 = vpop.f32.mrf.mxu1 }
 0x3f7   :  { %v10953_v30 = vpack.c.bf16 %v8449_v61, %v8448_v47  ;;  %v7995_v11 = vmax.f32 %v18420_v0, %v7771_v37  ;;  %v7774_v12 = vmax.f32 %v12353_v20, %v12593_v59  ;;  %v8447_v33 = vmax.f32 %v8223_v19, 0.0  ;;  %v18437_v37 = vld [vmem:[#allocation307_spill] sm:$0xff] }
 0x3f8   :  { %v5558_v21 = vpop.f32.mrf.mxu0  ;;  %v7383_v36 = vpop.f32.mrf.mxu1  ;;  %v8228_v41 = vadd.f32 %v16518_v6, %v7997_v28  ;;  %v18435_v47 = vmax.f32 %v18433_v58, %v18434_v3  ;;  %v18436_v28 = vld [vmem:[#allocation306_spill] sm:$0xff] }
 0x3f9   :  { %11177 = vst [vmem:[%s17152_s3 + $0x298] sm:$0xff] %v10953_v30   ;;  %v7998_v57 = vmax.f32 %v18423_v29, %v7774_v12  ;;  %v7772_v10 = vmax.f32 %v5558_v21, %v7383_v36  ;;  %v10948_v14 = vpack.c.bf16 %v8447_v33, %v8446_v5  ;;  %v8226_v63 = vadd.f32 %v16518_v6, %v7995_v11  ;;  %v18439_v11 = vld [vmem:[#allocation308_spill] sm:$0xff]  ;;  %v18440_v12 = vld [vmem:[#allocation309_spill] sm:$0xff]  ;;  %v18454_v3 = vld [vmem:[#allocation318_spill] sm:$0xff] }
 0x3fa   :  { %v12356_v15 = vpop.f32.mrf.mxu0  ;;  %v12596_v4 = vpop.f32.mrf.mxu1  ;;  %v8452_v45 = vmax.f32 %v8228_v41, 0.0  ;;  %v18438_v19 = vmax.f32 %v18436_v28, %v18437_v37  ;;  %v18441_v5 = vmax.f32 %v18439_v11, %v18440_v12 }
 0x3fb   :  { %v8229_v24 = vadd.f32 %v16518_v6, %v7998_v57  ;;  %v7996_v39 = vmax.f32 %v18426_v38, %v7772_v10  ;;  %v7777_v49 = vmax.f32 %v12356_v15, %v12596_v4  ;;  %11176 = vst [vmem:[%s17152_s3 + $0x290] sm:$0xff] %v10948_v14   ;;  %v8450_v18 = vmax.f32 %v8226_v63, 0.0  ;;  %v18442_v15 = vld [vmem:[#allocation310_spill] sm:$0xff]  ;;  %v18443_v4 = vld [vmem:[#allocation311_spill] sm:$0xff] }
 0x3fc   :  { %v5571_v50 = vpop.f32.mrf.mxu0  ;;  %v7396_v40 = vpop.f32.mrf.mxu1  ;;  %v18444_v63 = vmax.f32 %v18442_v15, %v18443_v4 }
 0x3fd   :  { %v8453_v25 = vmax.f32 %v8229_v24, 0.0  ;;  %v8227_v42 = vadd.f32 %v16518_v6, %v7996_v39  ;;  %v7775_v1 = vmax.f32 %v5571_v50, %v7396_v40  ;;  %v8001_v43 = vmax.f32 %v18429_v9, %v7777_v49  ;;  %v18445_v49 = vld [vmem:[#allocation312_spill] sm:$0xff]  ;;  %v18446_v50 = vld [vmem:[#allocation313_spill] sm:$0xff] }
 0x3fe   :  { %v12357_v44 = vpop.f32.mrf.mxu0  ;;  %v12597_v17 = vpop.f32.mrf.mxu1  ;;  %v18447_v40 = vmax.f32 %v18445_v49, %v18446_v50 }
 0x3ff   :  { %v10963_v22 = vpack.c.bf16 %v8453_v25, %v8452_v45  ;;  %v8451_v23 = vmax.f32 %v8227_v42, 0.0  ;;  %v7999_v51 = vmax.f32 %v18432_v8, %v7775_v1  ;;  %v7778_v52 = vmax.f32 %v12357_v44, %v12597_v17  ;;  %v18449_v44 = vld [vmem:[#allocation315_spill] sm:$0xff]  ;;  %v18451_v8 = vld [vmem:[#allocation316_spill] sm:$0xff] }
 0x400   :  { %v5574_v54 = vpop.f32.mrf.mxu0  ;;  %v7399_v55 = vpop.f32.mrf.mxu1  ;;  %v8232_v32 = vadd.f32 %v16518_v6, %v8001_v43  ;;  %v18448_v43 = vld [vmem:[#allocation314_spill] sm:$0xff] }
 0x401   :  { %11179 = vst [vmem:[%s17152_s3 + $0x2a8] sm:$0xff] %v10963_v22   ;;  %v10958_v7 = vpack.c.bf16 %v8451_v23, %v8450_v18  ;;  %v7776_v62 = vmax.f32 %v5574_v54, %v7399_v55  ;;  %v8002_v61 = vmax.f32 %v18435_v47, %v7778_v52  ;;  %v8230_v27 = vadd.f32 %v16518_v6, %v7999_v51  ;;  %v18452_v51 = vld [vmem:[#allocation317_spill] sm:$0xff]  ;;  %v18455_v47 = vld [vmem:[#allocation319_spill] sm:$0xff] }
 0x402   :  { %v12360_v26 = vpop.f32.mrf.mxu0  ;;  %v12600_v13 = vpop.f32.mrf.mxu1  ;;  %v8456_v36 = vmax.f32 %v8232_v32, 0.0  ;;  %v18450_v17 = vmax.f32 %v18448_v43, %v18449_v44  ;;  %v18453_v52 = vmax.f32 %v18451_v8, %v18452_v51 }
 0x403   :  { %11178 = vst [vmem:[%s17152_s3 + $0x2a0] sm:$0xff] %v10958_v7   ;;  %v8000_v20 = vmax.f32 %v18438_v19, %v7776_v62  ;;  %v7781_v59 = vmax.f32 %v12360_v26, %v12600_v13  ;;  %v8233_v30 = vadd.f32 %v16518_v6, %v8002_v61  ;;  %v8454_v29 = vmax.f32 %v8230_v27, 0.0 }
 0x404   :  { %v5587_v31 = vpop.f32.mrf.mxu0  ;;  %v7412_v60 = vpop.f32.mrf.mxu1  ;;  %v18456_v61 = vmax.f32 %v18454_v3, %v18455_v47 }
 0x405   :  { %v8231_v0 = vadd.f32 %v16518_v6, %v8000_v20  ;;  %v8005_v33 = vmax.f32 %v18441_v5, %v7781_v59  ;;  %v7779_v21 = vmax.f32 %v5587_v31, %v7412_v60  ;;  %v8457_v41 = vmax.f32 %v8233_v30, 0.0  ;;  %v18457_v59 = vld [vmem:[#allocation320_spill] sm:$0xff]  ;;  %v18458_v30 = vld [vmem:[#allocation321_spill] sm:$0xff] }
 0x406   :  { %v12361_v34 = vpop.f32.mrf.mxu0  ;;  %v12601_v56 = vpop.f32.mrf.mxu1  ;;  %v18459_v31 = vmax.f32 %v18457_v59, %v18458_v30 }
 0x407   :  { %v8455_v57 = vmax.f32 %v8231_v0, 0.0  ;;  %v7782_v10 = vmax.f32 %v12361_v34, %v12601_v56  ;;  %v10973_v14 = vpack.c.bf16 %v8457_v41, %v8456_v36  ;;  %v8003_v24 = vmax.f32 %v18444_v63, %v7779_v21  ;;  %v18460_v36 = vld [vmem:[#allocation322_spill] sm:$0xff]  ;;  %v18461_v41 = vld [vmem:[#allocation323_spill] sm:$0xff] }
 0x408   :  { %v5590_v48 = vpop.f32.mrf.mxu0  ;;  %v7415_v35 = vpop.f32.mrf.mxu1  ;;  %v8236_v39 = vadd.f32 %v16518_v6, %v8005_v33  ;;  %v18462_v34 = vmax.f32 %v18460_v36, %v18461_v41 }
 0x409   :  { %v10968_v38 = vpack.c.bf16 %v8455_v57, %v8454_v29  ;;  %v8006_v45 = vmax.f32 %v18447_v40, %v7782_v10  ;;  %11181 = vst [vmem:[%s17152_s3 + $0x2b8] sm:$0xff] %v10973_v14   ;;  %v7780_v25 = vmax.f32 %v5590_v48, %v7415_v35  ;;  %v8234_v9 = vadd.f32 %v16518_v6, %v8003_v24  ;;  %v18463_v24 = vld [vmem:[#allocation324_spill] sm:$0xff]  ;;  %v18464_v48 = vld [vmem:[#allocation325_spill] sm:$0xff] }
 0x40a   :  { %v12364_v42 = vpop.f32.mrf.mxu0  ;;  %v12604_v1 = vpop.f32.mrf.mxu1  ;;  %v8460_v53 = vmax.f32 %v8236_v39, 0.0  ;;  %v18465_v35 = vmax.f32 %v18463_v24, %v18464_v48 }
 0x40b   :  { %11180 = vst [vmem:[%s17152_s3 + $0x2b0] sm:$0xff] %v10968_v38   ;;  %v8237_v2 = vadd.f32 %v16518_v6, %v8006_v45  ;;  %v7785_v16 = vmax.f32 %v12364_v42, %v12604_v1  ;;  %v8004_v18 = vmax.f32 %v18450_v17, %v7780_v25  ;;  %v8458_v27 = vmax.f32 %v8234_v9, 0.0  ;;  %v18466_v25 = vld [vmem:[#allocation326_spill] sm:$0xff]  ;;  %v18467_v42 = vld [vmem:[#allocation327_spill] sm:$0xff] }
 0x40c   :  { %v5603_v22 = vpop.f32.mrf.mxu0  ;;  %v7428_v23 = vpop.f32.mrf.mxu1  ;;  %v18468_v1 = vmax.f32 %v18466_v25, %v18467_v42  ;;  %v16930_v17 = vld [vmem:[%s17151_s2] ss:$0 sm:$0xff] }
 0x40d   :  { %v8461_v46 = vmax.f32 %v8237_v2, 0.0  ;;  %v8009_v54 = vmax.f32 %v18453_v52, %v7785_v16  ;;  %v7783_v55 = vmax.f32 %v5603_v22, %v7428_v23  ;;  %v8235_v7 = vadd.f32 %v16518_v6, %v8004_v18  ;;  %v18469_v22 = vld [vmem:[#allocation328_spill] sm:$0xff]  ;;  %v18470_v23 = vld [vmem:[#allocation329_spill] sm:$0xff] }
 0x40e   :  { %v12365_v62 = vpop.f32.mrf.mxu0  ;;  %v12605_v32 = vpop.f32.mrf.mxu1 }
 0x40f   :  { %v10983_v58 = vpack.c.bf16 %v8461_v46, %v8460_v53  ;;  %v8007_v26 = vmax.f32 %v18456_v61, %v7783_v55  ;;  %v7786_v13 = vmax.f32 %v12365_v62, %v12605_v32  ;;  %v8459_v28 = vmax.f32 %v8235_v7, 0.0  ;;  %v18473_v55 = vld [vmem:[#allocation331_spill] sm:$0xff] }
 0x410   :  { %v5606_v37 = vpop.f32.mrf.mxu0  ;;  %v7431_v19 = vpop.f32.mrf.mxu1  ;;  %v8240_v20 = vadd.f32 %v16518_v6, %v8009_v54  ;;  %v18471_v53 = vmax.f32 %v18469_v22, %v18470_v23  ;;  %v18472_v54 = vld [vmem:[#allocation330_spill] sm:$0xff] }
 0x411   :  { %11183 = vst [vmem:[%s17152_s3 + $0x2c8] sm:$0xff] %v10983_v58   ;;  %v8010_v60 = vmax.f32 %v18459_v31, %v7786_v13  ;;  %v7784_v0 = vmax.f32 %v5606_v37, %v7431_v19  ;;  %v10978_v11 = vpack.c.bf16 %v8459_v28, %v8458_v27  ;;  %v8238_v33 = vadd.f32 %v16518_v6, %v8007_v26  ;;  %v18475_v26 = vld [vmem:[#allocation332_spill] sm:$0xff]  ;;  %v18476_v13 = vld [vmem:[#allocation333_spill] sm:$0xff]  ;;  %v18490_v23 = vld [vmem:[#allocation342_spill] sm:$0xff] }
 0x412   :  { %v12368_v12 = vpop.f32.mrf.mxu0  ;;  %v12608_v5 = vpop.f32.mrf.mxu1  ;;  %v8464_v14 = vmax.f32 %v8240_v20, 0.0  ;;  %v18474_v7 = vmax.f32 %v18472_v54, %v18473_v55  ;;  %v18477_v27 = vmax.f32 %v18475_v26, %v18476_v13 }
 0x413   :  { %v8241_v21 = vadd.f32 %v16518_v6, %v8010_v60  ;;  %v8008_v56 = vmax.f32 %v18462_v34, %v7784_v0  ;;  %v7789_v29 = vmax.f32 %v12368_v12, %v12608_v5  ;;  %11182 = vst [vmem:[%s17152_s3 + $0x2c0] sm:$0xff] %v10978_v11   ;;  %v8462_v50 = vmax.f32 %v8238_v33, 0.0  ;;  %v18478_v12 = vld [vmem:[#allocation334_spill] sm:$0xff]  ;;  %v18479_v5 = vld [vmem:[#allocation335_spill] sm:$0xff] }
 0x414   :  { %v5619_v57 = vpop.f32.mrf.mxu0  ;;  %v7444_v10 = vpop.f32.mrf.mxu1  ;;  %v18480_v33 = vmax.f32 %v18478_v12, %v18479_v5 }
 0x415   :  { %v8465_v15 = vmax.f32 %v8241_v21, 0.0  ;;  %v8239_v4 = vadd.f32 %v16518_v6, %v8008_v56  ;;  %v7787_v63 = vmax.f32 %v5619_v57, %v7444_v10  ;;  %v8013_v38 = vmax.f32 %v18465_v35, %v7789_v29  ;;  %v18481_v29 = vld [vmem:[#allocation336_spill] sm:$0xff]  ;;  %v18482_v57 = vld [vmem:[#allocation337_spill] sm:$0xff] }
 0x416   :  { %v12369_v39 = vpop.f32.mrf.mxu0  ;;  %v12609_v49 = vpop.f32.mrf.mxu1  ;;  %v18483_v10 = vmax.f32 %v18481_v29, %v18482_v57 }
 0x417   :  { %v10993_v40 = vpack.c.bf16 %v8465_v15, %v8464_v14  ;;  %v8463_v45 = vmax.f32 %v8239_v4, 0.0  ;;  %v8011_v2 = vmax.f32 %v18468_v1, %v7787_v63  ;;  %v7790_v16 = vmax.f32 %v12369_v39, %v12609_v49  ;;  %v18485_v39 = vld [vmem:[#allocation339_spill] sm:$0xff]  ;;  %v18487_v1 = vld [vmem:[#allocation340_spill] sm:$0xff] }
 0x418   :  { %v5622_v9 = vpop.f32.mrf.mxu0  ;;  %v7447_v43 = vpop.f32.mrf.mxu1  ;;  %v8244_v18 = vadd.f32 %v16930_v17, %v8013_v38  ;;  %v18484_v38 = vld [vmem:[#allocation338_spill] sm:$0xff] }
 0x419   :  { %11185 = vst [vmem:[%s17152_s3 + $0x2d8] sm:$0xff] %v10993_v40   ;;  %v10988_v6 = vpack.c.bf16 %v8463_v45, %v8462_v50  ;;  %v7788_v44 = vmax.f32 %v5622_v9, %v7447_v43  ;;  %v8014_v46 = vmax.f32 %v18471_v53, %v7790_v16  ;;  %v8242_v52 = vadd.f32 %v16930_v17, %v8011_v2  ;;  %v18488_v2 = vld [vmem:[#allocation341_spill] sm:$0xff]  ;;  %v18491_v53 = vld [vmem:[#allocation343_spill] sm:$0xff] }
 0x41a   :  { %v12372_v8 = vpop.f32.mrf.mxu0  ;;  %v12612_v51 = vpop.f32.mrf.mxu1  ;;  %v8468_v19 = vmax.f32 %v8244_v18, 0.0  ;;  %v18486_v49 = vmax.f32 %v18484_v38, %v18485_v39  ;;  %v18489_v16 = vmax.f32 %v18487_v1, %v18488_v2 }
 0x41b   :  { %11184 = vst [vmem:[%s17152_s3 + $0x2d0] sm:$0xff] %v10988_v6   ;;  %v8012_v62 = vmax.f32 %v18474_v7, %v7788_v44  ;;  %v7793_v32 = vmax.f32 %v12372_v8, %v12612_v51  ;;  %v8245_v58 = vadd.f32 %v16930_v17, %v8014_v46  ;;  %v8466_v31 = vmax.f32 %v8242_v52, 0.0 }
 0x41c   :  { %v5635_v3 = vpop.f32.mrf.mxu0  ;;  %v7460_v47 = vpop.f32.mrf.mxu1  ;;  %v18492_v46 = vmax.f32 %v18490_v23, %v18491_v53 }
 0x41d   :  { %v8243_v61 = vadd.f32 %v16930_v17, %v8012_v62  ;;  %v8017_v28 = vmax.f32 %v18477_v27, %v7793_v32  ;;  %v7791_v37 = vmax.f32 %v5635_v3, %v7460_v47  ;;  %v8469_v20 = vmax.f32 %v8245_v58, 0.0  ;;  %v18493_v32 = vld [vmem:[#allocation344_spill] sm:$0xff]  ;;  %v18494_v58 = vld [vmem:[#allocation345_spill] sm:$0xff] }
 0x41e   :  { %v12373_v59 = vpop.f32.mrf.mxu0  ;;  %v12613_v30 = vpop.f32.mrf.mxu1  ;;  %v18495_v3 = vmax.f32 %v18493_v32, %v18494_v58 }
 0x41f   :  { %v8467_v60 = vmax.f32 %v8243_v61, 0.0  ;;  %v7794_v0 = vmax.f32 %v12373_v59, %v12613_v30  ;;  %v11003_v11 = vpack.c.bf16 %v8469_v20, %v8468_v19  ;;  %v8015_v21 = vmax.f32 %v18480_v33, %v7791_v37  ;;  %v18496_v19 = vld [vmem:[#allocation346_spill] sm:$0xff]  ;;  %v18497_v20 = vld [vmem:[#allocation347_spill] sm:$0xff] }
 0x420   :  { %v5638_v36 = vpop.f32.mrf.mxu0  ;;  %v7463_v41 = vpop.f32.mrf.mxu1  ;;  %v8248_v56 = vadd.f32 %v16930_v17, %v8017_v28  ;;  %v18498_v59 = vmax.f32 %v18496_v19, %v18497_v20 }
 0x421   :  { %v10998_v34 = vpack.c.bf16 %v8467_v60, %v8466_v31  ;;  %v8018_v14 = vmax.f32 %v18483_v10, %v7794_v0  ;;  %11187 = vst [vmem:[%s17152_s3 + $0x2e8] sm:$0xff] %v11003_v11   ;;  %v7792_v15 = vmax.f32 %v5638_v36, %v7463_v41  ;;  %v8246_v35 = vadd.f32 %v16930_v17, %v8015_v21  ;;  %v18499_v21 = vld [vmem:[#allocation348_spill] sm:$0xff]  ;;  %v18500_v36 = vld [vmem:[#allocation349_spill] sm:$0xff] }
 0x422   :  { %v12376_v4 = vpop.f32.mrf.mxu0  ;;  %v12616_v63 = vpop.f32.mrf.mxu1  ;;  %v8472_v25 = vmax.f32 %v8248_v56, 0.0  ;;  %v18501_v41 = vmax.f32 %v18499_v21, %v18500_v36 }
 0x423   :  { %11186 = vst [vmem:[%s17152_s3 + $0x2e0] sm:$0xff] %v10998_v34   ;;  %v8249_v24 = vadd.f32 %v16930_v17, %v8018_v14  ;;  %v7797_v48 = vmax.f32 %v12376_v4, %v12616_v63  ;;  %v8016_v50 = vmax.f32 %v18486_v49, %v7792_v15  ;;  %v8470_v52 = vmax.f32 %v8246_v35, 0.0  ;;  %v18502_v15 = vld [vmem:[#allocation350_spill] sm:$0xff]  ;;  %v18503_v4 = vld [vmem:[#allocation351_spill] sm:$0xff] }
 0x424   :  { %v5651_v40 = vpop.f32.mrf.mxu0  ;;  %v7476_v45 = vpop.f32.mrf.mxu1  ;;  %v18504_v63 = vmax.f32 %v18502_v15, %v18503_v4 }
 0x425   :  { %v8473_v42 = vmax.f32 %v8249_v24, 0.0  ;;  %v8021_v9 = vmax.f32 %v18489_v16, %v7797_v48  ;;  %v7795_v43 = vmax.f32 %v5651_v40, %v7476_v45  ;;  %v8247_v6 = vadd.f32 %v16930_v17, %v8016_v50  ;;  %v18505_v40 = vld [vmem:[#allocation352_spill] sm:$0xff]  ;;  %v18506_v45 = vld [vmem:[#allocation353_spill] sm:$0xff] }
 0x426   :  { %v12377_v44 = vpop.f32.mrf.mxu0  ;;  %v12617_v18 = vpop.f32.mrf.mxu1 }
 0x427   :  { %v11013_v22 = vpack.c.bf16 %v8473_v42, %v8472_v25  ;;  %v8019_v8 = vmax.f32 %v18492_v46, %v7795_v43  ;;  %v7798_v51 = vmax.f32 %v12377_v44, %v12617_v18  ;;  %v8471_v54 = vmax.f32 %v8247_v6, 0.0  ;;  %v18509_v43 = vld [vmem:[#allocation355_spill] sm:$0xff] }
 0x428   :  { %v5654_v55 = vpop.f32.mrf.mxu0  ;;  %v7479_v7 = vpop.f32.mrf.mxu1  ;;  %v8252_v62 = vadd.f32 %v16930_v17, %v8021_v9  ;;  %v18507_v25 = vmax.f32 %v18505_v40, %v18506_v45  ;;  %v18508_v9 = vld [vmem:[#allocation354_spill] sm:$0xff] }
 0x429   :  { %11189 = vst [vmem:[%s17152_s3 + $0x2f8] sm:$0xff] %v11013_v22   ;;  %v8022_v47 = vmax.f32 %v18495_v3, %v7798_v51  ;;  %v7796_v61 = vmax.f32 %v5654_v55, %v7479_v7  ;;  %v11008_v26 = vpack.c.bf16 %v8471_v54, %v8470_v52  ;;  %v8250_v28 = vadd.f32 %v16930_v17, %v8019_v8  ;;  %v18511_v8 = vld [vmem:[#allocation356_spill] sm:$0xff]  ;;  %v18512_v51 = vld [vmem:[#allocation357_spill] sm:$0xff]  ;;  %v18526_v45 = vld [vmem:[#allocation366_spill] sm:$0xff] }
 0x42a   :  { %v12380_v13 = vpop.f32.mrf.mxu0  ;;  %v12620_v27 = vpop.f32.mrf.mxu1  ;;  %v8476_v11 = vmax.f32 %v8252_v62, 0.0  ;;  %v18510_v6 = vmax.f32 %v18508_v9, %v18509_v43  ;;  %v18513_v52 = vmax.f32 %v18511_v8, %v18512_v51 }
 0x42b   :  { %v8253_v37 = vadd.f32 %v16930_v17, %v8022_v47  ;;  %v8020_v30 = vmax.f32 %v18498_v59, %v7796_v61  ;;  %v7801_v31 = vmax.f32 %v12380_v13, %v12620_v27  ;;  %11188 = vst [vmem:[%s17152_s3 + $0x2f0] sm:$0xff] %v11008_v26   ;;  %v8474_v57 = vmax.f32 %v8250_v28, 0.0  ;;  %v18514_v13 = vld [vmem:[#allocation358_spill] sm:$0xff]  ;;  %v18515_v27 = vld [vmem:[#allocation359_spill] sm:$0xff] }
 0x42c   :  { %v5667_v60 = vpop.f32.mrf.mxu0  ;;  %v7492_v0 = vpop.f32.mrf.mxu1  ;;  %v18516_v28 = vmax.f32 %v18514_v13, %v18515_v27 }
 0x42d   :  { %v8477_v12 = vmax.f32 %v8253_v37, 0.0  ;;  %v8251_v5 = vadd.f32 %v16930_v17, %v8020_v30  ;;  %v7799_v33 = vmax.f32 %v5667_v60, %v7492_v0  ;;  %v8025_v34 = vmax.f32 %v18501_v41, %v7801_v31  ;;  %v18517_v31 = vld [vmem:[#allocation360_spill] sm:$0xff]  ;;  %v18518_v60 = vld [vmem:[#allocation361_spill] sm:$0xff] }
 0x42e   :  { %v12381_v56 = vpop.f32.mrf.mxu0  ;;  %v12621_v29 = vpop.f32.mrf.mxu1  ;;  %v18519_v0 = vmax.f32 %v18517_v31, %v18518_v60 }
 0x42f   :  { %v11023_v10 = vpack.c.bf16 %v8477_v12, %v8476_v11  ;;  %v8475_v14 = vmax.f32 %v8251_v5, 0.0  ;;  %v8023_v24 = vmax.f32 %v18504_v63, %v7799_v33  ;;  %v7802_v48 = vmax.f32 %v12381_v56, %v12621_v29  ;;  %v18521_v56 = vld [vmem:[#allocation363_spill] sm:$0xff]  ;;  %v18523_v63 = vld [vmem:[#allocation364_spill] sm:$0xff] }
 0x430   :  { %v5670_v35 = vpop.f32.mrf.mxu0  ;;  %v7495_v38 = vpop.f32.mrf.mxu1  ;;  %v8256_v50 = vadd.f32 %v16930_v17, %v8025_v34  ;;  %v18520_v34 = vld [vmem:[#allocation362_spill] sm:$0xff] }
 0x431   :  { %11191 = vst [vmem:[%s17152_s3 + $0x308] sm:$0xff] %v11023_v10   ;;  %v11018_v39 = vpack.c.bf16 %v8475_v14, %v8474_v57  ;;  %v7800_v49 = vmax.f32 %v5670_v35, %v7495_v38  ;;  %v8026_v42 = vmax.f32 %v18507_v25, %v7802_v48  ;;  %v8254_v16 = vadd.f32 %v16930_v17, %v8023_v24  ;;  %v18524_v24 = vld [vmem:[#allocation365_spill] sm:$0xff]  ;;  %v18527_v25 = vld [vmem:[#allocation367_spill] sm:$0xff] }
 0x432   :  { %v12384_v1 = vpop.f32.mrf.mxu0  ;;  %v12624_v2 = vpop.f32.mrf.mxu1  ;;  %v8480_v7 = vmax.f32 %v8256_v50, 0.0  ;;  %v18522_v29 = vmax.f32 %v18520_v34, %v18521_v56  ;;  %v18525_v48 = vmax.f32 %v18523_v63, %v18524_v24 }
 0x433   :  { %11190 = vst [vmem:[%s17152_s3 + $0x300] sm:$0xff] %v11018_v39   ;;  %v8024_v44 = vmax.f32 %v18510_v6, %v7800_v49  ;;  %v7805_v18 = vmax.f32 %v12384_v1, %v12624_v2  ;;  %v8257_v22 = vadd.f32 %v16930_v17, %v8026_v42  ;;  %v8478_v3 = vmax.f32 %v8254_v16, 0.0 }
 0x434   :  { %v5683_v23 = vpop.f32.mrf.mxu0  ;;  %v7508_v53 = vpop.f32.mrf.mxu1  ;;  %v18528_v42 = vmax.f32 %v18526_v45, %v18527_v25 }
 0x435   :  { %v8255_v46 = vadd.f32 %v16930_v17, %v8024_v44  ;;  %v8029_v54 = vmax.f32 %v18513_v52, %v7805_v18  ;;  %v7803_v55 = vmax.f32 %v5683_v23, %v7508_v53  ;;  %v8481_v62 = vmax.f32 %v8257_v22, 0.0  ;;  %v18529_v18 = vld [vmem:[#allocation368_spill] sm:$0xff]  ;;  %v18530_v22 = vld [vmem:[#allocation369_spill] sm:$0xff] }
 0x436   :  { %v12385_v32 = vpop.f32.mrf.mxu0  ;;  %v12625_v58 = vpop.f32.mrf.mxu1  ;;  %v18531_v23 = vmax.f32 %v18529_v18, %v18530_v22 }
 0x437   :  { %v8479_v47 = vmax.f32 %v8255_v46, 0.0  ;;  %v7806_v61 = vmax.f32 %v12385_v32, %v12625_v58  ;;  %v11033_v26 = vpack.c.bf16 %v8481_v62, %v8480_v7  ;;  %v8027_v37 = vmax.f32 %v18516_v28, %v7803_v55  ;;  %v18532_v7 = vld [vmem:[#allocation370_spill] sm:$0xff]  ;;  %v18533_v62 = vld [vmem:[#allocation371_spill] sm:$0xff] }
 0x438   :  { %v5686_v19 = vpop.f32.mrf.mxu0  ;;  %v7511_v20 = vpop.f32.mrf.mxu1  ;;  %v8260_v30 = vadd.f32 %v16930_v17, %v8029_v54  ;;  %v18534_v32 = vmax.f32 %v18532_v7, %v18533_v62 }
 0x439   :  { %v11028_v59 = vpack.c.bf16 %v8479_v47, %v8478_v3  ;;  %v8030_v11 = vmax.f32 %v18519_v0, %v7806_v61  ;;  %11193 = vst [vmem:[%s17152_s3 + $0x318] sm:$0xff] %v11033_v26   ;;  %v7804_v12 = vmax.f32 %v5686_v19, %v7511_v20  ;;  %v8258_v41 = vadd.f32 %v16930_v17, %v8027_v37  ;;  %v18535_v37 = vld [vmem:[#allocation372_spill] sm:$0xff]  ;;  %v18536_v19 = vld [vmem:[#allocation373_spill] sm:$0xff] }
 0x43a   :  { %v12388_v5 = vpop.f32.mrf.mxu0  ;;  %v12628_v33 = vpop.f32.mrf.mxu1  ;;  %v8484_v15 = vmax.f32 %v8260_v30, 0.0  ;;  %v18537_v20 = vmax.f32 %v18535_v37, %v18536_v19 }
 0x43b   :  { %11192 = vst [vmem:[%s17152_s3 + $0x310] sm:$0xff] %v11028_v59   ;;  %v8261_v21 = vadd.f32 %v16930_v17, %v8030_v11  ;;  %v7809_v36 = vmax.f32 %v12388_v5, %v12628_v33  ;;  %v8028_v57 = vmax.f32 %v18522_v29, %v7804_v12  ;;  %v8482_v16 = vmax.f32 %v8258_v41, 0.0  ;;  %v18538_v12 = vld [vmem:[#allocation374_spill] sm:$0xff]  ;;  %v18539_v5 = vld [vmem:[#allocation375_spill] sm:$0xff] }
 0x43c   :  { %v5699_v10 = vpop.f32.mrf.mxu0  ;;  %v7524_v14 = vpop.f32.mrf.mxu1  ;;  %v18540_v33 = vmax.f32 %v18538_v12, %v18539_v5 }
 0x43d   :  { %v8485_v4 = vmax.f32 %v8261_v21, 0.0  ;;  %v8033_v35 = vmax.f32 %v18525_v48, %v7809_v36  ;;  %v7807_v38 = vmax.f32 %v5699_v10, %v7524_v14  ;;  %v8259_v39 = vadd.f32 %v16930_v17, %v8028_v57  ;;  %v18541_v10 = vld [vmem:[#allocation376_spill] sm:$0xff]  ;;  %v18542_v14 = vld [vmem:[#allocation377_spill] sm:$0xff] }
 0x43e   :  { %v12389_v49 = vpop.f32.mrf.mxu0  ;;  %v12629_v50 = vpop.f32.mrf.mxu1 }
 0x43f   :  { %v11043_v40 = vpack.c.bf16 %v8485_v4, %v8484_v15  ;;  %v8031_v1 = vmax.f32 %v18528_v42, %v7807_v38  ;;  %v7810_v2 = vmax.f32 %v12389_v49, %v12629_v50  ;;  %v8483_v9 = vmax.f32 %v8259_v39, 0.0  ;;  %v18545_v38 = vld [vmem:[#allocation379_spill] sm:$0xff] }
 0x440   :  { %v5702_v43 = vpop.f32.mrf.mxu0  ;;  %v7527_v6 = vpop.f32.mrf.mxu1  ;;  %v8264_v44 = vadd.f32 %v16930_v17, %v8033_v35  ;;  %v18543_v15 = vmax.f32 %v18541_v10, %v18542_v14  ;;  %v18544_v35 = vld [vmem:[#allocation378_spill] sm:$0xff] }
 0x441   :  { %11195 = vst [vmem:[%s17152_s3 + $0x328] sm:$0xff] %v11043_v40   ;;  %v8034_v53 = vmax.f32 %v18531_v23, %v7810_v2  ;;  %v7808_v46 = vmax.f32 %v5702_v43, %v7527_v6  ;;  %v11038_v8 = vpack.c.bf16 %v8483_v9, %v8482_v16  ;;  %v8262_v54 = vadd.f32 %v16930_v17, %v8031_v1  ;;  %v18547_v1 = vld [vmem:[#allocation380_spill] sm:$0xff]  ;;  %v18548_v2 = vld [vmem:[#allocation381_spill] sm:$0xff]  ;;  %v18562_v14 = vld [vmem:[#allocation390_spill] sm:$0xff] }
 0x442   :  { %v12392_v51 = vpop.f32.mrf.mxu0  ;;  %v12632_v52 = vpop.f32.mrf.mxu1  ;;  %v8488_v26 = vmax.f32 %v8264_v44, 0.0  ;;  %v18546_v39 = vmax.f32 %v18544_v35, %v18545_v38  ;;  %v18549_v16 = vmax.f32 %v18547_v1, %v18548_v2 }
 0x443   :  { %v8265_v55 = vadd.f32 %v16930_v17, %v8034_v53  ;;  %v8032_v58 = vmax.f32 %v18534_v32, %v7808_v46  ;;  %v7813_v3 = vmax.f32 %v12392_v51, %v12632_v52  ;;  %11194 = vst [vmem:[%s17152_s3 + $0x320] sm:$0xff] %v11038_v8   ;;  %v8486_v60 = vmax.f32 %v8262_v54, 0.0  ;;  %v18550_v51 = vld [vmem:[#allocation382_spill] sm:$0xff]  ;;  %v18551_v52 = vld [vmem:[#allocation383_spill] sm:$0xff] }
 0x444   :  { %v5715_v47 = vpop.f32.mrf.mxu0  ;;  %v7540_v61 = vpop.f32.mrf.mxu1  ;;  %v18552_v54 = vmax.f32 %v18550_v51, %v18551_v52 }
 0x445   :  { %v8489_v13 = vmax.f32 %v8265_v55, 0.0  ;;  %v8263_v27 = vadd.f32 %v16930_v17, %v8032_v58  ;;  %v7811_v28 = vmax.f32 %v5715_v47, %v7540_v61  ;;  %v8037_v59 = vmax.f32 %v18537_v20, %v7813_v3  ;;  %v18553_v3 = vld [vmem:[#allocation384_spill] sm:$0xff]  ;;  %v18554_v47 = vld [vmem:[#allocation385_spill] sm:$0xff] }
 0x446   :  { %v12393_v30 = vpop.f32.mrf.mxu0  ;;  %v12633_v31 = vpop.f32.mrf.mxu1  ;;  %v18555_v61 = vmax.f32 %v18553_v3, %v18554_v47 }
 0x447   :  { %v11053_v0 = vpack.c.bf16 %v8489_v13, %v8488_v26  ;;  %v8487_v11 = vmax.f32 %v8263_v27, 0.0  ;;  %v8035_v21 = vmax.f32 %v18540_v33, %v7811_v28  ;;  %v7814_v36 = vmax.f32 %v12393_v30, %v12633_v31  ;;  %v18557_v30 = vld [vmem:[#allocation387_spill] sm:$0xff]  ;;  %v18559_v33 = vld [vmem:[#allocation388_spill] sm:$0xff] }
 0x448   :  { %v5718_v41 = vpop.f32.mrf.mxu0  ;;  %v7543_v34 = vpop.f32.mrf.mxu1  ;;  %v8268_v57 = vadd.f32 %v16930_v17, %v8037_v59  ;;  %v18556_v59 = vld [vmem:[#allocation386_spill] sm:$0xff] }
 0x449   :  { %11197 = vst [vmem:[%s17152_s3 + $0x338] sm:$0xff] %v11053_v0   ;;  %v11048_v56 = vpack.c.bf16 %v8487_v11, %v8486_v60  ;;  %v7812_v29 = vmax.f32 %v5718_v41, %v7543_v34  ;;  %v8038_v4 = vmax.f32 %v18543_v15, %v7814_v36  ;;  %v8266_v48 = vadd.f32 %v16930_v17, %v8035_v21  ;;  %v18560_v21 = vld [vmem:[#allocation389_spill] sm:$0xff]  ;;  %v18563_v15 = vld [vmem:[#allocation391_spill] sm:$0xff] }
 0x44a   :  { %v12396_v63 = vpop.f32.mrf.mxu0  ;;  %v12636_v24 = vpop.f32.mrf.mxu1  ;;  %v8492_v6 = vmax.f32 %v8268_v57, 0.0  ;;  %v18558_v31 = vmax.f32 %v18556_v59, %v18557_v30  ;;  %v18561_v36 = vmax.f32 %v18559_v33, %v18560_v21  ;;  %v18580_v21 = vld [vmem:[#allocation402_spill] sm:$0xff] }
 0x44b   :  { %11196 = vst [vmem:[%s17152_s3 + $0x330] sm:$0xff] %v11048_v56   ;;  %v8036_v49 = vmax.f32 %v18546_v39, %v7812_v29  ;;  %v7817_v50 = vmax.f32 %v12396_v63, %v12636_v24  ;;  %v8269_v40 = vadd.f32 %v16930_v17, %v8038_v4  ;;  %v8490_v23 = vmax.f32 %v8266_v48, 0.0 }
 0x44c   :  { %v5731_v45 = vpop.f32.mrf.mxu0  ;;  %v7556_v25 = vpop.f32.mrf.mxu1  ;;  %v18564_v4 = vmax.f32 %v18562_v14, %v18563_v15 }
 0x44d   :  { %v8267_v42 = vadd.f32 %v16930_v17, %v8036_v49  ;;  %v8041_v9 = vmax.f32 %v18549_v16, %v7817_v50  ;;  %v7815_v43 = vmax.f32 %v5731_v45, %v7556_v25  ;;  %v8493_v44 = vmax.f32 %v8269_v40, 0.0  ;;  %v18565_v50 = vld [vmem:[#allocation392_spill] sm:$0xff]  ;;  %v18566_v40 = vld [vmem:[#allocation393_spill] sm:$0xff] }
 0x44e   :  { %v12397_v18 = vpop.f32.mrf.mxu0  ;;  %v12637_v22 = vpop.f32.mrf.mxu1  ;;  %v18567_v45 = vmax.f32 %v18565_v50, %v18566_v40 }
 0x44f   :  { %v8491_v53 = vmax.f32 %v8267_v42, 0.0  ;;  %v7818_v46 = vmax.f32 %v12397_v18, %v12637_v22  ;;  %v11063_v8 = vpack.c.bf16 %v8493_v44, %v8492_v6  ;;  %v8039_v55 = vmax.f32 %v18552_v54, %v7815_v43  ;;  %v18568_v6 = vld [vmem:[#allocation394_spill] sm:$0xff]  ;;  %v18569_v44 = vld [vmem:[#allocation395_spill] sm:$0xff] }
 0x450   :  { %v5734_v7 = vpop.f32.mrf.mxu0  ;;  %v7559_v62 = vpop.f32.mrf.mxu1  ;;  %v8272_v58 = vadd.f32 %v16930_v17, %v8041_v9  ;;  %v18570_v18 = vmax.f32 %v18568_v6, %v18569_v44 }
 0x451   :  { %v11058_v32 = vpack.c.bf16 %v8491_v53, %v8490_v23  ;;  %v8042_v26 = vmax.f32 %v18555_v61, %v7818_v46  ;;  %11199 = vst [vmem:[%s17152_s3 + $0x348] sm:$0xff] %v11063_v8   ;;  %v7816_v13 = vmax.f32 %v5734_v7, %v7559_v62  ;;  %v8270_v20 = vadd.f32 %v16930_v17, %v8039_v55  ;;  %v18571_v55 = vld [vmem:[#allocation396_spill] sm:$0xff]  ;;  %v18572_v7 = vld [vmem:[#allocation397_spill] sm:$0xff] }
 0x452   :  { %v12400_v27 = vpop.f32.mrf.mxu0  ;;  %v12640_v28 = vpop.f32.mrf.mxu1  ;;  %v8496_v12 = vmax.f32 %v8272_v58, 0.0  ;;  %v18573_v62 = vmax.f32 %v18571_v55, %v18572_v7 }
 0x453   :  { %11198 = vst [vmem:[%s17152_s3 + $0x340] sm:$0xff] %v11058_v32   ;;  %v8273_v37 = vadd.f32 %v16930_v17, %v8042_v26  ;;  %v7821_v19 = vmax.f32 %v12400_v27, %v12640_v28  ;;  %v8040_v60 = vmax.f32 %v18558_v31, %v7816_v13  ;;  %v8494_v48 = vmax.f32 %v8270_v20, 0.0  ;;  %v18574_v13 = vld [vmem:[#allocation398_spill] sm:$0xff]  ;;  %v18575_v27 = vld [vmem:[#allocation399_spill] sm:$0xff] }
 0x454   :  { %v5747_v0 = vpop.f32.mrf.mxu0  ;;  %v7572_v11 = vpop.f32.mrf.mxu1  ;;  %v18576_v28 = vmax.f32 %v18574_v13, %v18575_v27 }
 0x455   :  { %v8497_v5 = vmax.f32 %v8273_v37, 0.0  ;;  %v8045_v41 = vmax.f32 %v18561_v36, %v7821_v19  ;;  %v7819_v34 = vmax.f32 %v5747_v0, %v7572_v11  ;;  %v8271_v56 = vadd.f32 %v16930_v17, %v8040_v60  ;;  %v18577_v0 = vld [vmem:[#allocation400_spill] sm:$0xff]  ;;  %v18578_v11 = vld [vmem:[#allocation401_spill] sm:$0xff]  ;;  %v18581_v36 = vld [vmem:[#allocation403_spill] sm:$0xff] }
 0x456   :  { %v12401_v29 = vpop.f32.mrf.mxu0  ;;  %v12641_v57 = vpop.f32.mrf.mxu1 }
 0x457   :  { %v11073_v10 = vpack.c.bf16 %v8497_v5, %v8496_v12  ;;  %v8043_v63 = vmax.f32 %v18564_v4, %v7819_v34  ;;  %v7822_v24 = vmax.f32 %v12401_v29, %v12641_v57  ;;  %v8495_v35 = vmax.f32 %v8271_v56, 0.0 }
 0x458   :  { %v5750_v38 = vpop.f32.mrf.mxu0  ;;  %v7575_v39 = vpop.f32.mrf.mxu1  ;;  %v8276_v49 = vadd.f32 %v16930_v17, %v8045_v41  ;;  %v18579_v12 = vmax.f32 %v18577_v0, %v18578_v11  ;;  %v18582_v41 = vmax.f32 %v18580_v21, %v18581_v36 }
 0x459   :  { %11201 = vst [vmem:[%s17152_s3 + $0x358] sm:$0xff] %v11073_v10   ;;  %v8046_v25 = vmax.f32 %v18567_v45, %v7822_v24  ;;  %v7820_v42 = vmax.f32 %v5750_v38, %v7575_v39  ;;  %v11068_v1 = vpack.c.bf16 %v8495_v35, %v8494_v48  ;;  %v8274_v9 = vadd.f32 %v16930_v17, %v8043_v63 }
 0x45a   :  { %v12404_v2 = vpop.f32.mrf.mxu0  ;;  %v12644_v16 = vpop.f32.mrf.mxu1  ;;  %v8500_v8 = vmax.f32 %v8276_v49, 0.0 }
 0x45b   :  { %v8277_v43 = vadd.f32 %v16930_v17, %v8046_v25  ;;  %v8044_v22 = vmax.f32 %v18570_v18, %v7820_v42  ;;  %v7825_v23 = vmax.f32 %v12404_v2, %v12644_v16  ;;  %11200 = vst [vmem:[%s17152_s3 + $0x350] sm:$0xff] %v11068_v1   ;;  %v8498_v47 = vmax.f32 %v8274_v9, 0.0 }
 0x45c   :  { %v5763_v53 = vpop.f32.mrf.mxu0  ;;  %v7588_v46 = vpop.f32.mrf.mxu1 }
 0x45d   :  { %v8501_v51 = vmax.f32 %v8277_v43, 0.0  ;;  %v8275_v52 = vadd.f32 %v16930_v17, %v8044_v22  ;;  %v7823_v54 = vmax.f32 %v5763_v53, %v7588_v46  ;;  %v8049_v32 = vmax.f32 %v18573_v62, %v7825_v23 }
 0x45e   :  { %v12405_v58 = vpop.f32.mrf.mxu0  ;;  %v12645_v3 = vpop.f32.mrf.mxu1 }
 0x45f   :  { %v11083_v61 = vpack.c.bf16 %v8501_v51, %v8500_v8  ;;  %v8499_v26 = vmax.f32 %v8275_v52, 0.0  ;;  %v8047_v37 = vmax.f32 %v18576_v28, %v7823_v54  ;;  %v7826_v19 = vmax.f32 %v12405_v58, %v12645_v3 }
 0x460   :  { %v5766_v20 = vpop.f32.mrf.mxu0  ;;  %v7591_v59 = vpop.f32.mrf.mxu1  ;;  %v8280_v60 = vadd.f32 %v16930_v17, %v8049_v32 }
 0x461   :  { %11203 = vst [vmem:[%s17152_s3 + $0x368] sm:$0xff] %v11083_v61   ;;  %v11078_v30 = vpack.c.bf16 %v8499_v26, %v8498_v47  ;;  %v7824_v31 = vmax.f32 %v5766_v20, %v7591_v59  ;;  %v8050_v5 = vmax.f32 %v18579_v12, %v7826_v19  ;;  %v8278_v33 = vadd.f32 %v16930_v17, %v8047_v37 }
 0x462   :  { %v8504_v57 = vmax.f32 %v8280_v60, 0.0 }
 0x463   :  { %11202 = vst [vmem:[%s17152_s3 + $0x360] sm:$0xff] %v11078_v30   ;;  %v8048_v34 = vmax.f32 %v18582_v41, %v7824_v31  ;;  %v8281_v56 = vadd.f32 %v16930_v17, %v8050_v5  ;;  %v8502_v14 = vmax.f32 %v8278_v33, 0.0 }
 0x465   :  { %v8279_v29 = vadd.f32 %v16930_v17, %v8048_v34  ;;  %v8505_v10 = vmax.f32 %v8281_v56, 0.0 }
 0x467   :  { %v8503_v15 = vmax.f32 %v8279_v29, 0.0  ;;  %v11093_v4 = vpack.c.bf16 %v8505_v10, %v8504_v57 }
 0x469   :  { %v11088_v63 = vpack.c.bf16 %v8503_v15, %v8502_v14  ;;  %11205 = vst [vmem:[%s17152_s3 + $0x378] sm:$0xff] %v11093_v4  }
 0x46b   :  { %11204 = vst [vmem:[%s17152_s3 + $0x370] sm:$0xff] %v11088_v63  }

// kernel: lenet_forward.3
= control target key start
LH: loop header
LB: loop body
LE: loop exit
PB: predicated region body
PF: predicated region fallthrough
CT: control target
= control target key end

     0   :  { %v12202_v0 = vmov 0   ;;  %vm4057_vm0 = vcmask 1041409   ;;  %vm4060_vm1 = vcmask 1042434   ;;  %vm4063_vm2 = vcmask 1043459   ;;  %s12192_s1 = inlined_call_operand.vmem [shape: bf16[512,128], index: 1, kind: input, shape index: {}]   ;;  %s12193_s0 = inlined_call_operand.vmem [shape: bf16[8,160,512], index: 0, kind: input, shape index: {}]   ;;  %s12194_s3 = inlined_call_operand.vmem [shape: bf16[3200,128], index: 3, kind: input, shape index: {}]   ;;  %s12195_s2 = inlined_call_operand.vmem [shape: f32[1,128], index: 2, kind: input, shape index: {}]   ;;  %s12196_s4 = inlined_call_operand.vmem [shape: f32[1,128], index: 4, kind: input, shape index: {}]   ;;  %s12197_s5 = inlined_call_operand.vmem [shape: bf16[128,128], index: 5, kind: input, shape index: {}]   ;;  %s12198_s7 = inlined_call_operand.vmem [shape: bf16[128,128], index: 7, kind: input, shape index: {}]   ;;  %s12199_s6 = inlined_call_operand.vmem [shape: f32[1,128], index: 6, kind: input, shape index: {}]   ;;  %s12200_s8 = inlined_call_operand.vmem [shape: f32[1,128], index: 8, kind: input, shape index: {}]   ;;  %s12201_s9 = inlined_call_operand.vmem [shape: f32[8,128], index: 9, kind: output, shape index: {}]  }
   0x1   :  { %769 = vmatprep.subr.bf16.mxu0 %v12202_v0  ;;  %962 = vmatprep.subr.bf16.mxu1 %v12202_v0  ;;  %v8661_v1 = vld [vmem:[%s12192_s1 + $0x38] sm:$0xff]   ;;  %v8672_v3 = vld [vmem:[%s12192_s1 + $0x30] sm:$0xff]   ;;  %v8686_v5 = vld [vmem:[%s12192_s1 + $0x28] sm:$0xff]   ;;  %vm4066_vm3 = vcmask 1044484   ;;  %vm4069_vm4 = vcmask 1045509   ;;  %vm4072_vm5 = vcmask 1046534  }
   0x2   :  { %v8666_v2 = vld [vmem:[%s12192_s1 + $0xb8] sm:$0xff]   ;;  %770 = vmatpush1.bf16.msra.mxu0 %v8661_v1  ;;  %v8679_v4 = vld [vmem:[%s12192_s1 + $0xb0] sm:$0xff]   ;;  %v8693_v6 = vld [vmem:[%s12192_s1 + $0xa8] sm:$0xff]   ;;  %vm4075_vm6 = vcmask 1047559   ;;  %vm8605_vm7 = vmmov 0  }
   0x3   :  { %963 = vmatpush1.bf16.msra.mxu1 %v8666_v2  ;;  %771 = vmatprep.subr.bf16.mxu0 %v12202_v0  ;;  %v8700_v7 = vld [vmem:[%s12192_s1 + $0x20] sm:$0xff]   ;;  %v8714_v9 = vld [vmem:[%s12192_s1 + $0x18] sm:$0xff]   ;;  %v8728_v11 = vld [vmem:[%s12192_s1 + $0x10] sm:$0xff]  }
   0x4   :  { %964 = vmatprep.subr.bf16.mxu1 %v12202_v0  ;;  %v8707_v8 = vld [vmem:[%s12192_s1 + $0xa0] sm:$0xff]   ;;  %v8721_v10 = vld [vmem:[%s12192_s1 + $0x98] sm:$0xff]   ;;  %v8735_v12 = vld [vmem:[%s12192_s1 + $0x90] sm:$0xff]  }
   0x5   :  { %v8742_v13 = vld [vmem:[%s12192_s1 + $0x8] sm:$0xff]   ;;  %v8756_v15 = vld [vmem:[%s12192_s1] sm:$0xff]   ;;  %v8770_v17 = vld [vmem:[%s12192_s1 + $0x78] sm:$0xff]  }
   0x6   :  { %772 = vmatpush1.bf16.msra.mxu0 %v8672_v3  ;;  %v8749_v14 = vld [vmem:[%s12192_s1 + $0x88] sm:$0xff]   ;;  %v8763_v16 = vld [vmem:[%s12192_s1 + $0x80] sm:$0xff]   ;;  %v8777_v18 = vld [vmem:[%s12192_s1 + $0xf8] sm:$0xff]  }
   0x7   :  { %965 = vmatpush1.bf16.msra.mxu1 %v8679_v4  ;;  %773 = vmatprep.subr.bf16.mxu0 %v12202_v0  ;;  %v7972_v19 = vld [vmem:[%s12193_s0 + $0x4] ss:$16 sps:$4 sm:$0xff]   ;;  %v7975_v21 = vld [vmem:[%s12193_s0 + $0xc] ss:$16 sps:$4 sm:$0xff]   ;;  %v7970_v35 = vld [vmem:[%s12193_s0] ss:$16 sps:$4 sm:$0xff]  }
   0x8   :  { %966 = vmatprep.subr.bf16.mxu1 %v12202_v0  ;;  %v8787_v20 = vld [vmem:[%s12192_s1 + $0x70] sm:$0xff]   ;;  %801 = vmatprep.mubr.bf16.mxu0 %v7972_v19  ;;  %v8804_v23 = vld [vmem:[%s12192_s1 + $0x68] sm:$0xff]   ;;  %v8818_v25 = vld [vmem:[%s12192_s1 + $0x60] sm:$0xff]  }
   0x9   :  { %v8797_v22 = vld [vmem:[%s12192_s1 + $0xf0] sm:$0xff]   ;;  %994 = vmatprep.mubr.bf16.mxu1 %v7975_v21  ;;  %v8811_v24 = vld [vmem:[%s12192_s1 + $0xe8] sm:$0xff]   ;;  %v8825_v26 = vld [vmem:[%s12192_s1 + $0xe0] sm:$0xff]  }
   0xa   :  { %774 = vmatpush1.bf16.msra.mxu0 %v8686_v5  ;;  %v8832_v27 = vld [vmem:[%s12192_s1 + $0x58] sm:$0xff]   ;;  %v8846_v29 = vld [vmem:[%s12192_s1 + $0x50] sm:$0xff]   ;;  %v8860_v31 = vld [vmem:[%s12192_s1 + $0x48] sm:$0xff]  }
   0xb   :  { %967 = vmatpush1.bf16.msra.mxu1 %v8693_v6  ;;  %775 = vmatprep.subr.bf16.mxu0 %v12202_v0  ;;  %v8839_v28 = vld [vmem:[%s12192_s1 + $0xd8] sm:$0xff]   ;;  %v8853_v30 = vld [vmem:[%s12192_s1 + $0xd0] sm:$0xff]   ;;  %v8867_v32 = vld [vmem:[%s12192_s1 + $0xc8] sm:$0xff]  }
   0xc   :  { %968 = vmatprep.subr.bf16.mxu1 %v12202_v0  ;;  %v8874_v33 = vld [vmem:[%s12192_s1 + $0x40] sm:$0xff]   ;;  %v7973_v36 = vld [vmem:[%s12193_s0 + $0x8] ss:$16 sps:$4 sm:$0xff]   ;;  %v7978_v38 = vld [vmem:[%s12193_s0 + $0x2c] ss:$16 sps:$4 sm:$0xff]  }
   0xd   :  { %v8881_v34 = vld [vmem:[%s12192_s1 + $0xc0] sm:$0xff]   ;;  %v42_v41 = vld [vmem:[%s12193_s0 + $0x48] sm:$0xff] }
   0xe   :  { %776 = vmatpush1.bf16.msra.mxu0 %v8700_v7  ;;  %v7976_v37 = vld [vmem:[%s12193_s0 + $0x24] ss:$16 sps:$4 sm:$0xff]   ;;  %v44_v42 = vld [vmem:[%s12193_s0 + $0x148] sm:$0xff]  ;;  %v7980_v43 = vld [vmem:[%s12193_s0 + $0x20] ss:$16 sps:$4 sm:$0xff]  }
   0xf   :  { %969 = vmatpush1.bf16.msra.mxu1 %v8707_v8  ;;  %777 = vmatprep.subr.bf16.mxu0 %v12202_v0  ;;  %v41_v39 = vld [vmem:[%s12193_s0 + $0x40] sm:$0xff]  ;;  %v7981_v44 = vld [vmem:[%s12193_s0 + $0x28] ss:$16 sps:$4 sm:$0xff]   ;;  %v6943_v46 = vcombine.high %v42_v41, %v44_v42  ;;  %v7984_v49 = vld [vmem:[%s12193_s0 + $0x15c] ss:$16 sps:$4 sm:$0xff]   ;;  %v6942_v50 = vcombine.low %v42_v41, %v44_v42 }
  0x10   :  { %970 = vmatprep.subr.bf16.mxu1 %v12202_v0  ;;  %v43_v40 = vld [vmem:[%s12193_s0 + $0x140] sm:$0xff]  ;;  %v7987_v52 = vld [vmem:[%s12193_s0 + $0x158] ss:$16 sps:$4 sm:$0xff]   ;;  %v7990_v54 = vld [vmem:[%s12193_s0 + $0x17c] ss:$16 sps:$4 sm:$0xff]  }
  0x11   :  { %v6941_v45 = vcombine.high %v41_v39, %v43_v40  ;;  %v7982_v47 = vld [vmem:[%s12193_s0 + $0x154] ss:$16 sps:$4 sm:$0xff]   ;;  %v6940_v48 = vcombine.low %v41_v39, %v43_v40  ;;  %v7986_v51 = vld [vmem:[%s12193_s0 + $0x150] ss:$16 sps:$4 sm:$0xff]   ;;  %v7993_v56 = vld [vmem:[%s12193_s0 + $0x178] ss:$16 sps:$4 sm:$0xff]  }
  0x12   :  { %778 = vmatpush1.bf16.msra.mxu0 %v8714_v9  ;;  %v7988_v53 = vld [vmem:[%s12193_s0 + $0x174] ss:$16 sps:$4 sm:$0xff]   ;;  %v7992_v55 = vld [vmem:[%s12193_s0 + $0x170] ss:$16 sps:$4 sm:$0xff]   ;;  %v7996_v58 = vld [vmem:[%s12193_s0 + $0x28c] ss:$16 sps:$4 sm:$0xff]  }
  0x13   :  { %971 = vmatpush1.bf16.msra.mxu1 %v8721_v10  ;;  %779 = vmatprep.subr.bf16.mxu0 %v12202_v0  ;;  %v7994_v57 = vld [vmem:[%s12193_s0 + $0x284] ss:$16 sps:$4 sm:$0xff]   ;;  %v7998_v59 = vld [vmem:[%s12193_s0 + $0x280] ss:$16 sps:$4 sm:$0xff]   ;;  %v7999_v60 = vld [vmem:[%s12193_s0 + $0x288] ss:$16 sps:$4 sm:$0xff]  }
  0x14   :  { %972 = vmatprep.subr.bf16.mxu1 %v12202_v0  ;;  %v8000_v61 = vld [vmem:[%s12193_s0 + $0x2a4] ss:$16 sps:$4 sm:$0xff]   ;;  %v8002_v62 = vld [vmem:[%s12193_s0 + $0x2ac] ss:$16 sps:$4 sm:$0xff]   ;;  %v8023_v21 = vld [vmem:[%s12193_s0 + $0x508] ss:$16 sps:$4 sm:$0xff]  }
  0x15   :  { %v61_v63 = vld [vmem:[%s12193_s0 + $0x2c0] sm:$0xff]  ;;  %v8020_v19 = vld [vmem:[%s12193_s0 + $0x50c] ss:$16 sps:$4 sm:$0xff]   ;;  %v8041_v41 = vld [vmem:[%s12193_s0 + $0x678] ss:$16 sps:$4 sm:$0xff]  }
  0x16   :  { %780 = vmatpush1.bf16.msra.mxu0 %v8728_v11  ;;  %v8038_v39 = vld [vmem:[%s12193_s0 + $0x67c] ss:$16 sps:$4 sm:$0xff]   ;;  %v8040_v40 = vld [vmem:[%s12193_s0 + $0x670] ss:$16 sps:$4 sm:$0xff]   ;;  %v8042_v42 = vld [vmem:[%s12193_s0 + $0x784] ss:$16 sps:$4 sm:$0xff]  }
  0x17   :  { %973 = vmatpush1.bf16.msra.mxu1 %v8735_v12  ;;  %781 = vmatprep.subr.bf16.mxu0 %v12202_v0 }
  0x18   :  { %974 = vmatprep.subr.bf16.mxu1 %v12202_v0 }
  0x1a   :  { %782 = vmatpush1.bf16.msra.mxu0 %v8742_v13 }
  0x1b   :  { %975 = vmatpush1.bf16.msra.mxu1 %v8749_v14  ;;  %783 = vmatprep.subr.bf16.mxu0 %v12202_v0 }
  0x1c   :  { %976 = vmatprep.subr.bf16.mxu1 %v12202_v0 }
  0x1e   :  { %784 = vmatpush1.bf16.msra.mxu0 %v8756_v15 }
  0x1f   :  { %977 = vmatpush1.bf16.msra.mxu1 %v8763_v16  ;;  %785 = vmatprep.subr.bf16.mxu0 %v12202_v0 }
  0x20   :  { %978 = vmatprep.subr.bf16.mxu1 %v12202_v0 }
  0x22   :  { %786 = vmatpush2.bf16.msra.mxu0 %v8770_v17 }
  0x23   :  { %979 = vmatpush2.bf16.msra.mxu1 %v8777_v18  ;;  %787 = vmatprep.subr.bf16.mxu0 %v12202_v0 }
  0x24   :  { %980 = vmatprep.subr.bf16.mxu1 %v12202_v0 }
  0x26   :  { %788 = vmatpush2.bf16.msra.mxu0 %v8787_v20 }
  0x27   :  { %981 = vmatpush2.bf16.msra.mxu1 %v8797_v22  ;;  %789 = vmatprep.subr.bf16.mxu0 %v12202_v0 }
  0x28   :  { %982 = vmatprep.subr.bf16.mxu1 %v12202_v0 }
  0x2a   :  { %790 = vmatpush2.bf16.msra.mxu0 %v8804_v23 }
  0x2b   :  { %983 = vmatpush2.bf16.msra.mxu1 %v8811_v24  ;;  %791 = vmatprep.subr.bf16.mxu0 %v12202_v0 }
  0x2c   :  { %984 = vmatprep.subr.bf16.mxu1 %v12202_v0 }
  0x2e   :  { %792 = vmatpush2.bf16.msra.mxu0 %v8818_v25 }
  0x2f   :  { %985 = vmatpush2.bf16.msra.mxu1 %v8825_v26  ;;  %793 = vmatprep.subr.bf16.mxu0 %v12202_v0 }
  0x30   :  { %986 = vmatprep.subr.bf16.mxu1 %v12202_v0 }
  0x32   :  { %794 = vmatpush2.bf16.msra.mxu0 %v8832_v27 }
  0x33   :  { %987 = vmatpush2.bf16.msra.mxu1 %v8839_v28  ;;  %795 = vmatprep.subr.bf16.mxu0 %v12202_v0 }
  0x34   :  { %988 = vmatprep.subr.bf16.mxu1 %v12202_v0 }
  0x36   :  { %796 = vmatpush2.bf16.msra.mxu0 %v8846_v29 }
  0x37   :  { %989 = vmatpush2.bf16.msra.mxu1 %v8853_v30  ;;  %797 = vmatprep.subr.bf16.mxu0 %v12202_v0 }
  0x38   :  { %990 = vmatprep.subr.bf16.mxu1 %v12202_v0 }
  0x3a   :  { %798 = vmatpush2.bf16.msra.mxu0 %v8860_v31 }
  0x3b   :  { %991 = vmatpush2.bf16.msra.mxu1 %v8867_v32  ;;  %799 = vmatprep.subr.bf16.mxu0 %v12202_v0 }
  0x3c   :  { %992 = vmatprep.subr.bf16.mxu1 %v12202_v0 }
  0x3e   :  { %800 = vmatpush2.bf16.msra.mxu0 %v8874_v33 }
  0x3f   :  { %993 = vmatpush2.bf16.msra.mxu1 %v8881_v34  ;;  %1635 = vmatprep.subr.bf16.mxu0 %v12202_v0 }
  0x40   :  { %1828 = vmatprep.subr.bf16.mxu1 %v12202_v0 }
  0x41   :  { %802 = vmatmul.mubr.bf16.vlgmr.msra.gmra.mxu0 %v7970_v35  ;;  %v8032_v35 = vld [vmem:[%s12193_s0 + $0x65c] ss:$16 sps:$4 sm:$0xff]  }
  0x42   :  { %995 = vmatmul.mubr.bf16.vlgmr.msra.gmra.mxu1 %v7973_v36  ;;  %1636 = vmatpush1.bf16.msra.mxu0 %v8661_v1  ;;  %v63_v1 = vld [vmem:[%s12193_s0 + $0x3c0] sm:$0xff] }
  0x43   :  { %1829 = vmatpush1.bf16.msra.mxu1 %v8666_v2  ;;  %809 = vmatprep.mubr.bf16.mxu0 %v7976_v37  ;;  %v62_v2 = vld [vmem:[%s12193_s0 + $0x2c8] sm:$0xff]  ;;  %v8034_v36 = vld [vmem:[%s12193_s0 + $0x650] ss:$16 sps:$4 sm:$0xff]  }
  0x44   :  { %1002 = vmatprep.mubr.bf16.mxu1 %v7978_v38  ;;  %1637 = vmatprep.subr.bf16.mxu0 %v12202_v0  ;;  %v8035_v37 = vld [vmem:[%s12193_s0 + $0x658] ss:$16 sps:$4 sm:$0xff]   ;;  %v8036_v38 = vld [vmem:[%s12193_s0 + $0x674] ss:$16 sps:$4 sm:$0xff]  }
  0x45   :  { %1830 = vmatprep.subr.bf16.mxu1 %v12202_v0 }
  0x46   :  { %1638 = vmatpush1.bf16.msra.mxu0 %v8672_v3  ;;  %v8004_v3 = vld [vmem:[%s12193_s0 + $0x2a0] ss:$16 sps:$4 sm:$0xff]  }
  0x47   :  { %1831 = vmatpush1.bf16.msra.mxu1 %v8679_v4  ;;  %1639 = vmatprep.subr.bf16.mxu0 %v12202_v0  ;;  %v64_v4 = vld [vmem:[%s12193_s0 + $0x3c8] sm:$0xff] }
  0x48   :  { %1832 = vmatprep.subr.bf16.mxu1 %v12202_v0 }
  0x49   :  { %810 = vmatmul.mubr.bf16.gmra.mxu0 %v7980_v43  ;;  %v8044_v43 = vld [vmem:[%s12193_s0 + $0x78c] ss:$16 sps:$4 sm:$0xff]  }
  0x4a   :  { %1003 = vmatmul.mubr.bf16.gmra.mxu1 %v7981_v44  ;;  %817 = vmatprep.mubr.bf16.mxu0 %v6941_v45  ;;  %v8046_v44 = vld [vmem:[%s12193_s0 + $0x780] ss:$16 sps:$4 sm:$0xff]   ;;  %v8047_v45 = vld [vmem:[%s12193_s0 + $0x788] ss:$16 sps:$4 sm:$0xff]  }
  0x4b   :  { %1010 = vmatprep.mubr.bf16.mxu1 %v6943_v46  ;;  %1640 = vmatpush1.bf16.msra.mxu0 %v8686_v5  ;;  %v8005_v5 = vld [vmem:[%s12193_s0 + $0x2a8] ss:$16 sps:$4 sm:$0xff]   ;;  %v8048_v46 = vld [vmem:[%s12193_s0 + $0x7a4] ss:$16 sps:$4 sm:$0xff]  }
  0x4c   :  { %1833 = vmatpush1.bf16.msra.mxu1 %v8693_v6  ;;  %1641 = vmatprep.subr.bf16.mxu0 %v12202_v0  ;;  %v6961_v6 = vcombine.high %v61_v63, %v63_v1 }
  0x4d   :  { %1834 = vmatprep.subr.bf16.mxu1 %v12202_v0 }
  0x4f   :  { %1642 = vmatpush1.bf16.msra.mxu0 %v8700_v7  ;;  %v6963_v7 = vcombine.high %v62_v2, %v64_v4 }
  0x50   :  { %1835 = vmatpush1.bf16.msra.mxu1 %v8707_v8  ;;  %1643 = vmatprep.subr.bf16.mxu0 %v12202_v0  ;;  %v8006_v8 = vld [vmem:[%s12193_s0 + $0x3d4] ss:$16 sps:$4 sm:$0xff]  }
  0x51   :  { %818 = vmatmul.mubr.bf16.gmra.mxu0 %v6940_v48  ;;  %1836 = vmatprep.subr.bf16.mxu1 %v12202_v0  ;;  %v101_v48 = vld [vmem:[%s12193_s0 + $0x7c0] sm:$0xff] }
  0x52   :  { %1011 = vmatmul.mubr.bf16.gmra.mxu1 %v6942_v50  ;;  %825 = vmatprep.mubr.bf16.mxu0 %v7982_v47  ;;  %v8050_v47 = vld [vmem:[%s12193_s0 + $0x7ac] ss:$16 sps:$4 sm:$0xff]  }
  0x53   :  { %1018 = vmatprep.mubr.bf16.mxu1 %v7984_v49  ;;  %1644 = vmatpush1.bf16.msra.mxu0 %v8714_v9  ;;  %v6960_v9 = vcombine.low %v61_v63, %v63_v1  ;;  %v103_v49 = vld [vmem:[%s12193_s0 + $0x8c0] sm:$0xff]  ;;  %v102_v50 = vld [vmem:[%s12193_s0 + $0x7c8] sm:$0xff] }
  0x54   :  { %1837 = vmatpush1.bf16.msra.mxu1 %v8721_v10  ;;  %1645 = vmatprep.subr.bf16.mxu0 %v12202_v0  ;;  %v8008_v10 = vld [vmem:[%s12193_s0 + $0x3dc] ss:$16 sps:$4 sm:$0xff]   ;;  %v8064_v1 = vld [vmem:[%s12193_s0 + $0x8f0] ss:$16 sps:$4 sm:$0xff]  }
  0x55   :  { %1838 = vmatprep.subr.bf16.mxu1 %v12202_v0  ;;  %v8062_v63 = vld [vmem:[%s12193_s0 + $0x8fc] ss:$16 sps:$4 sm:$0xff]  }
  0x57   :  { %1646 = vmatpush1.bf16.msra.mxu0 %v8728_v11  ;;  %v6962_v11 = vcombine.low %v62_v2, %v64_v4  ;;  %v8065_v2 = vld [vmem:[%s12193_s0 + $0x8f8] ss:$16 sps:$4 sm:$0xff]   ;;  %v8071_v4 = vld [vmem:[%s12193_s0 + $0x5c] ss:$16 sps:$4 sm:$0xff]  }
  0x58   :  { %1839 = vmatpush1.bf16.msra.mxu1 %v8735_v12  ;;  %1647 = vmatprep.subr.bf16.mxu0 %v12202_v0  ;;  %v8010_v12 = vld [vmem:[%s12193_s0 + $0x3d0] ss:$16 sps:$4 sm:$0xff]  }
  0x59   :  { %826 = vmatmul.mubr.bf16.gmra.mxu0 %v7986_v51  ;;  %1840 = vmatprep.subr.bf16.mxu1 %v12202_v0  ;;  %v104_v51 = vld [vmem:[%s12193_s0 + $0x8c8] sm:$0xff] }
  0x5a   :  { %1019 = vmatmul.mubr.bf16.gmra.mxu1 %v7987_v52  ;;  %833 = vmatprep.mubr.bf16.mxu0 %v7988_v53  ;;  %v8052_v52 = vld [vmem:[%s12193_s0 + $0x7a0] ss:$16 sps:$4 sm:$0xff]   ;;  %v8053_v53 = vld [vmem:[%s12193_s0 + $0x7a8] ss:$16 sps:$4 sm:$0xff]  }
  0x5b   :  { %1026 = vmatprep.mubr.bf16.mxu1 %v7990_v54  ;;  %1648 = vmatpush1.bf16.msra.mxu0 %v8742_v13  ;;  %v8011_v13 = vld [vmem:[%s12193_s0 + $0x3d8] ss:$16 sps:$4 sm:$0xff]   ;;  %v7001_v54 = vcombine.high %v101_v48, %v103_v49 }
  0x5c   :  { %1841 = vmatpush1.bf16.msra.mxu1 %v8749_v14  ;;  %1649 = vmatprep.subr.bf16.mxu0 %v12202_v0  ;;  %v8012_v14 = vld [vmem:[%s12193_s0 + $0x3f4] ss:$16 sps:$4 sm:$0xff]  }
  0x5d   :  { %1842 = vmatprep.subr.bf16.mxu1 %v12202_v0 }
  0x5f   :  { %1650 = vmatpush1.bf16.msra.mxu0 %v8756_v15  ;;  %v8014_v15 = vld [vmem:[%s12193_s0 + $0x3fc] ss:$16 sps:$4 sm:$0xff]  }
  0x60   :  { %1843 = vmatpush1.bf16.msra.mxu1 %v8763_v16  ;;  %1651 = vmatprep.subr.bf16.mxu0 %v12202_v0  ;;  %v8016_v16 = vld [vmem:[%s12193_s0 + $0x3f0] ss:$16 sps:$4 sm:$0xff]  }
  0x61   :  { %834 = vmatmul.mubr.bf16.gmra.mxu0 %v7992_v55  ;;  %1844 = vmatprep.subr.bf16.mxu1 %v12202_v0  ;;  %v7003_v55 = vcombine.high %v102_v50, %v104_v51 }
  0x62   :  { %1027 = vmatmul.mubr.bf16.gmra.mxu1 %v7993_v56  ;;  %841 = vmatprep.mubr.bf16.mxu0 %v7994_v57  ;;  %v7000_v56 = vcombine.low %v101_v48, %v103_v49  ;;  %v7002_v57 = vcombine.low %v102_v50, %v104_v51  ;;  %v9369_v49 = vld [vmem:[%s12192_s1 + $0x78] sm:$0xff]  }
  0x63   :  { %1034 = vmatprep.mubr.bf16.mxu1 %v7996_v58  ;;  %1652 = vmatpush2.bf16.msra.mxu0 %v8770_v17  ;;  %v8017_v17 = vld [vmem:[%s12193_s0 + $0x3f8] ss:$16 sps:$4 sm:$0xff]   ;;  %v8054_v58 = vld [vmem:[%s12193_s0 + $0x8d4] ss:$16 sps:$4 sm:$0xff]  }
  0x64   :  { %1845 = vmatpush2.bf16.msra.mxu1 %v8777_v18  ;;  %1653 = vmatprep.subr.bf16.mxu0 %v12202_v0  ;;  %v8018_v18 = vld [vmem:[%s12193_s0 + $0x504] ss:$16 sps:$4 sm:$0xff]   ;;  %v9375_v51 = vld [vmem:[%s12192_s1 + $0xf8] sm:$0xff]  }
  0x65   :  { %1846 = vmatprep.subr.bf16.mxu1 %v12202_v0 }
  0x67   :  { %1654 = vmatpush2.bf16.msra.mxu0 %v8787_v20  ;;  %v8022_v20 = vld [vmem:[%s12193_s0 + $0x500] ss:$16 sps:$4 sm:$0xff]  }
  0x68   :  { %1847 = vmatpush2.bf16.msra.mxu1 %v8797_v22  ;;  %1655 = vmatprep.subr.bf16.mxu0 %v12202_v0  ;;  %v8024_v22 = vld [vmem:[%s12193_s0 + $0x524] ss:$16 sps:$4 sm:$0xff]  }
  0x69   :  { %842 = vmatmul.mubr.bf16.gmra.mxu0 %v7998_v59  ;;  %1848 = vmatprep.subr.bf16.mxu1 %v12202_v0  ;;  %v8056_v59 = vld [vmem:[%s12193_s0 + $0x8dc] ss:$16 sps:$4 sm:$0xff]  }
  0x6a   :  { %1035 = vmatmul.mubr.bf16.gmra.mxu1 %v7999_v60  ;;  %849 = vmatprep.mubr.bf16.mxu0 %v8000_v61  ;;  %v8058_v60 = vld [vmem:[%s12193_s0 + $0x8d0] ss:$16 sps:$4 sm:$0xff]   ;;  %v8059_v61 = vld [vmem:[%s12193_s0 + $0x8d8] ss:$16 sps:$4 sm:$0xff]  }
  0x6b   :  { %1042 = vmatprep.mubr.bf16.mxu1 %v8002_v62  ;;  %1656 = vmatpush2.bf16.msra.mxu0 %v8804_v23  ;;  %v8026_v23 = vld [vmem:[%s12193_s0 + $0x52c] ss:$16 sps:$4 sm:$0xff]   ;;  %v8060_v62 = vld [vmem:[%s12193_s0 + $0x8f4] ss:$16 sps:$4 sm:$0xff]  }
  0x6c   :  { %1849 = vmatpush2.bf16.msra.mxu1 %v8811_v24  ;;  %1657 = vmatprep.subr.bf16.mxu0 %v12202_v0  ;;  %v81_v24 = vld [vmem:[%s12193_s0 + $0x540] sm:$0xff] }
  0x6d   :  { %1850 = vmatprep.subr.bf16.mxu1 %v12202_v0 }
  0x6f   :  { %1658 = vmatpush2.bf16.msra.mxu0 %v8818_v25  ;;  %v83_v25 = vld [vmem:[%s12193_s0 + $0x640] sm:$0xff] }
  0x70   :  { %1851 = vmatpush2.bf16.msra.mxu1 %v8825_v26  ;;  %1659 = vmatprep.subr.bf16.mxu0 %v12202_v0  ;;  %v82_v26 = vld [vmem:[%s12193_s0 + $0x548] sm:$0xff] }
  0x71   :  { %850 = vmatmul.mubr.bf16.gmra.mxu0 %v8004_v3  ;;  %1852 = vmatprep.subr.bf16.mxu1 %v12202_v0  ;;  %v8068_v3 = vld [vmem:[%s12193_s0 + $0x54] ss:$16 sps:$4 sm:$0xff]  }
  0x72   :  { %1043 = vmatmul.mubr.bf16.gmra.mxu1 %v8005_v5  ;;  %857 = vmatprep.mubr.bf16.mxu0 %v6961_v6  ;;  %v8066_v5 = vld [vmem:[%s12193_s0 + $0x50] ss:$16 sps:$4 sm:$0xff]   ;;  %v8069_v6 = vld [vmem:[%s12193_s0 + $0x58] ss:$16 sps:$4 sm:$0xff]  }
  0x73   :  { %1050 = vmatprep.mubr.bf16.mxu1 %v6963_v7  ;;  %1660 = vmatpush2.bf16.msra.mxu0 %v8832_v27  ;;  %v84_v27 = vld [vmem:[%s12193_s0 + $0x648] sm:$0xff]  ;;  %v8072_v7 = vld [vmem:[%s12193_s0 + $0x74] ss:$16 sps:$4 sm:$0xff]  }
  0x74   :  { %1853 = vmatpush2.bf16.msra.mxu1 %v8839_v28  ;;  %1661 = vmatprep.subr.bf16.mxu0 %v12202_v0  ;;  %v8028_v28 = vld [vmem:[%s12193_s0 + $0x520] ss:$16 sps:$4 sm:$0xff]  }
  0x75   :  { %1854 = vmatprep.subr.bf16.mxu1 %v12202_v0 }
  0x77   :  { %1662 = vmatpush2.bf16.msra.mxu0 %v8846_v29  ;;  %v8029_v29 = vld [vmem:[%s12193_s0 + $0x528] ss:$16 sps:$4 sm:$0xff]  }
  0x78   :  { %1855 = vmatpush2.bf16.msra.mxu1 %v8853_v30  ;;  %1663 = vmatprep.subr.bf16.mxu0 %v12202_v0  ;;  %v6981_v30 = vcombine.high %v81_v24, %v83_v25 }
  0x79   :  { %858 = vmatmul.mubr.bf16.gmra.mxu0 %v6960_v9  ;;  %1856 = vmatprep.subr.bf16.mxu1 %v12202_v0  ;;  %v9207_v9 = vld [vmem:[%s12192_s1 + $0x38] sm:$0xff]  }
  0x7a   :  { %1051 = vmatmul.mubr.bf16.gmra.mxu1 %v6962_v11  ;;  %865 = vmatprep.mubr.bf16.mxu0 %v8006_v8  ;;  %v8074_v8 = vld [vmem:[%s12193_s0 + $0x7c] ss:$16 sps:$4 sm:$0xff]   ;;  %v1163_v11 = vld [vmem:[%s12193_s0 + $0x90] sm:$0xff] }
  0x7b   :  { %1058 = vmatprep.mubr.bf16.mxu1 %v8008_v10  ;;  %1664 = vmatpush2.bf16.msra.mxu0 %v8860_v31  ;;  %v6983_v31 = vcombine.high %v82_v26, %v84_v27  ;;  %v9213_v10 = vld [vmem:[%s12192_s1 + $0xb8] sm:$0xff]  }
  0x7c   :  { %1857 = vmatpush2.bf16.msra.mxu1 %v8867_v32  ;;  %1665 = vmatprep.subr.bf16.mxu0 %v12202_v0  ;;  %v6980_v32 = vcombine.low %v81_v24, %v83_v25  ;;  %v8078_v25 = vld [vmem:[%s12193_s0 + $0x1a4] ss:$16 sps:$4 sm:$0xff]  }
  0x7d   :  { %1858 = vmatprep.subr.bf16.mxu1 %v12202_v0 }
  0x7f   :  { %1666 = vmatpush2.bf16.msra.mxu0 %v8874_v33  ;;  %v6982_v33 = vcombine.low %v82_v26, %v84_v27  ;;  %v8080_v26 = vld [vmem:[%s12193_s0 + $0x1ac] ss:$16 sps:$4 sm:$0xff]   ;;  %v9273_v27 = vld [vmem:[%s12192_s1 + $0x20] sm:$0xff]  }
  0x80   :  { %1859 = vmatpush2.bf16.msra.mxu1 %v8881_v34  ;;  %2541 = vmatprep.subr.bf16.mxu0 %v12202_v0  ;;  %v8030_v34 = vld [vmem:[%s12193_s0 + $0x654] ss:$16 sps:$4 sm:$0xff]  }
  0x81   :  { %866 = vmatmul.mubr.bf16.gmra.mxu0 %v8010_v12  ;;  %2734 = vmatprep.subr.bf16.mxu1 %v12202_v0  ;;  %v1165_v12 = vld [vmem:[%s12193_s0 + $0x190] sm:$0xff] }
  0x82   :  { %1059 = vmatmul.mubr.bf16.gmra.mxu1 %v8011_v13  ;;  %873 = vmatprep.mubr.bf16.mxu0 %v8012_v14  ;;  %v1164_v13 = vld [vmem:[%s12193_s0 + $0x98] sm:$0xff] }
  0x83   :  { %1066 = vmatprep.mubr.bf16.mxu1 %v8014_v15  ;;  %v1166_v14 = vld [vmem:[%s12193_s0 + $0x198] sm:$0xff]  ;;  %v8076_v15 = vld [vmem:[%s12193_s0 + $0x70] ss:$16 sps:$4 sm:$0xff]  }
  0x84   :  { %v7054_v24 = vcombine.low %v1164_v13, %v1166_v14 }
  0x89   :  { %874 = vmatmul.mubr.bf16.gmra.mxu0 %v8016_v16  ;;  %v8077_v16 = vld [vmem:[%s12193_s0 + $0x78] ss:$16 sps:$4 sm:$0xff]  }
  0x8a   :  { %1067 = vmatmul.mubr.bf16.gmra.mxu1 %v8017_v17  ;;  %881 = vmatprep.mubr.bf16.mxu0 %v8018_v18  ;;  %v9239_v17 = vld [vmem:[%s12192_s1 + $0x30] sm:$0xff]   ;;  %v7053_v18 = vcombine.high %v1163_v11, %v1165_v12 }
  0x8b   :  { %1074 = vmatprep.mubr.bf16.mxu1 %v8020_v19  ;;  %v9245_v19 = vld [vmem:[%s12192_s1 + $0xb0] sm:$0xff]  }
  0x91   :  { %882 = vmatmul.mubr.bf16.gmra.mxu0 %v8022_v20  ;;  %v7055_v20 = vcombine.high %v1164_v13, %v1166_v14  ;;  %v8100_v14 = vld [vmem:[%s12193_s0 + $0x2f0] ss:$16 sps:$4 sm:$0xff]  }
  0x92   :  { %1075 = vmatmul.mubr.bf16.gmra.mxu1 %v8023_v21  ;;  %889 = vmatprep.mubr.bf16.mxu0 %v8024_v22  ;;  %v9253_v21 = vld [vmem:[%s12192_s1 + $0x28] sm:$0xff]  }
  0x93   :  { %1082 = vmatprep.mubr.bf16.mxu1 %v8026_v23  ;;  %v9259_v22 = vld [vmem:[%s12192_s1 + $0xa8] sm:$0xff]   ;;  %v7052_v23 = vcombine.low %v1163_v11, %v1165_v12  ;;  %v1186_v11 = vld [vmem:[%s12193_s0 + $0x418] sm:$0xff] }
  0x94   :  { %v9431_v12 = vld [vmem:[%s12192_s1 + $0xe8] sm:$0xff]  }
  0x99   :  { %890 = vmatmul.mubr.bf16.gmra.mxu0 %v8028_v28  ;;  %v9279_v28 = vld [vmem:[%s12192_s1 + $0xa0] sm:$0xff]  }
  0x9a   :  { %1083 = vmatmul.mubr.bf16.gmra.mxu1 %v8029_v29  ;;  %897 = vmatprep.mubr.bf16.mxu0 %v6981_v30  ;;  %v9287_v29 = vld [vmem:[%s12192_s1 + $0x18] sm:$0xff]  }
  0x9b   :  { %1090 = vmatprep.mubr.bf16.mxu1 %v6983_v31  ;;  %v9293_v30 = vld [vmem:[%s12192_s1 + $0x98] sm:$0xff]   ;;  %v8082_v31 = vld [vmem:[%s12193_s0 + $0x1a0] ss:$16 sps:$4 sm:$0xff]  }
  0xa1   :  { %898 = vmatmul.mubr.bf16.gmra.mxu0 %v6980_v32  ;;  %v8083_v32 = vld [vmem:[%s12193_s0 + $0x1a8] ss:$16 sps:$4 sm:$0xff]  }
  0xa2   :  { %1091 = vmatmul.mubr.bf16.gmra.mxu1 %v6982_v33  ;;  %905 = vmatprep.mubr.bf16.mxu0 %v8030_v34  ;;  %v8084_v33 = vld [vmem:[%s12193_s0 + $0x1c4] ss:$16 sps:$4 sm:$0xff]   ;;  %v8086_v34 = vld [vmem:[%s12193_s0 + $0x1cc] ss:$16 sps:$4 sm:$0xff]  }
  0xa3   :  { %1098 = vmatprep.mubr.bf16.mxu1 %v8032_v35  ;;  %v9313_v35 = vld [vmem:[%s12192_s1 + $0x10] sm:$0xff]  }
  0xa9   :  { %906 = vmatmul.mubr.bf16.gmra.mxu0 %v8034_v36  ;;  %v9319_v36 = vld [vmem:[%s12192_s1 + $0x90] sm:$0xff]  }
  0xaa   :  { %1099 = vmatmul.mubr.bf16.gmra.mxu1 %v8035_v37  ;;  %913 = vmatprep.mubr.bf16.mxu0 %v8036_v38  ;;  %v9327_v37 = vld [vmem:[%s12192_s1 + $0x8] sm:$0xff]  }
  0xab   :  { %1106 = vmatprep.mubr.bf16.mxu1 %v8038_v39  ;;  %v9333_v38 = vld [vmem:[%s12192_s1 + $0x88] sm:$0xff]   ;;  %v8088_v39 = vld [vmem:[%s12193_s0 + $0x1c0] ss:$16 sps:$4 sm:$0xff]  }
  0xb1   :  { %914 = vmatmul.mubr.bf16.gmra.mxu0 %v8040_v40  ;;  %v8089_v40 = vld [vmem:[%s12193_s0 + $0x1c8] ss:$16 sps:$4 sm:$0xff]  }
  0xb2   :  { %1107 = vmatmul.mubr.bf16.gmra.mxu1 %v8041_v41  ;;  %921 = vmatprep.mubr.bf16.mxu0 %v8042_v42  ;;  %v8090_v41 = vld [vmem:[%s12193_s0 + $0x2d4] ss:$16 sps:$4 sm:$0xff]   ;;  %v8092_v42 = vld [vmem:[%s12193_s0 + $0x2dc] ss:$16 sps:$4 sm:$0xff]  }
  0xb3   :  { %1114 = vmatprep.mubr.bf16.mxu1 %v8044_v43  ;;  %v9353_v43 = vld [vmem:[%s12192_s1] sm:$0xff]  }
  0xb9   :  { %922 = vmatmul.mubr.bf16.gmra.mxu0 %v8046_v44  ;;  %v9359_v44 = vld [vmem:[%s12192_s1 + $0x80] sm:$0xff]  }
  0xba   :  { %1115 = vmatmul.mubr.bf16.gmra.mxu1 %v8047_v45  ;;  %929 = vmatprep.mubr.bf16.mxu0 %v8048_v46 }
  0xbb   :  { %1122 = vmatprep.mubr.bf16.mxu1 %v8050_v47 }
  0xc1   :  { %930 = vmatmul.mubr.bf16.gmra.mxu0 %v8052_v52 }
  0xc2   :  { %1123 = vmatmul.mubr.bf16.gmra.mxu1 %v8053_v53  ;;  %937 = vmatprep.mubr.bf16.mxu0 %v7001_v54  ;;  %v8094_v53 = vld [vmem:[%s12193_s0 + $0x2d0] ss:$16 sps:$4 sm:$0xff]  }
  0xc3   :  { %1130 = vmatprep.mubr.bf16.mxu1 %v7003_v55  ;;  %v8095_v55 = vld [vmem:[%s12193_s0 + $0x2d8] ss:$16 sps:$4 sm:$0xff]  }
  0xc9   :  { %938 = vmatmul.mubr.bf16.gmra.mxu0 %v7000_v56  ;;  %v8096_v56 = vld [vmem:[%s12193_s0 + $0x2f4] ss:$16 sps:$4 sm:$0xff]  }
  0xca   :  { %1131 = vmatmul.mubr.bf16.gmra.mxu1 %v7002_v57  ;;  %945 = vmatprep.mubr.bf16.mxu0 %v8054_v58 }
  0xcb   :  { %1138 = vmatprep.mubr.bf16.mxu1 %v8056_v59  ;;  %v8098_v59 = vld [vmem:[%s12193_s0 + $0x2fc] ss:$16 sps:$4 sm:$0xff]  }
  0xd1   :  { %946 = vmatmul.mubr.bf16.gmra.mxu0 %v8058_v60  ;;  %v9397_v60 = vld [vmem:[%s12192_s1 + $0x70] sm:$0xff]  }
  0xd2   :  { %1139 = vmatmul.mubr.bf16.gmra.mxu1 %v8059_v61  ;;  %953 = vmatprep.mubr.bf16.mxu0 %v8060_v62  ;;  %v9403_v62 = vld [vmem:[%s12192_s1 + $0xf0] sm:$0xff]  }
  0xd3   :  { %1146 = vmatprep.mubr.bf16.mxu1 %v8062_v63 }
  0xd9   :  { %954 = vmatmul.mubr.bf16.gmra.mxu0 %v8064_v1 }
  0xda   :  { %1147 = vmatmul.mubr.bf16.gmra.mxu1 %v8065_v2  ;;  %1667 = vmatprep.mubr.bf16.mxu0 %v8068_v3 }
  0xdb   :  { %1860 = vmatprep.mubr.bf16.mxu1 %v8071_v4  ;;  %v1183_v4 = vld [vmem:[%s12193_s0 + $0x310] sm:$0xff] }
  0xe1   :  { %1668 = vmatmul.mubr.bf16.vlgmr.msra.gmra.mxu0 %v8066_v5  ;;  %v1185_v5 = vld [vmem:[%s12193_s0 + $0x410] sm:$0xff] }
  0xe2   :  { %1861 = vmatmul.mubr.bf16.vlgmr.msra.gmra.mxu1 %v8069_v6  ;;  %2542 = vmatpush1.bf16.msra.mxu0 %v9207_v9  ;;  %v9419_v6 = vld [vmem:[%s12192_s1 + $0x68] sm:$0xff]  }
  0xe3   :  { %2735 = vmatpush1.bf16.msra.mxu1 %v9213_v10  ;;  %1675 = vmatprep.mubr.bf16.mxu0 %v8072_v7 }
  0xe4   :  { %1868 = vmatprep.mubr.bf16.mxu1 %v8074_v8  ;;  %2543 = vmatprep.subr.bf16.mxu0 %v12202_v0  ;;  %v1184_v8 = vld [vmem:[%s12193_s0 + $0x318] sm:$0xff] }
  0xe5   :  { %2736 = vmatprep.subr.bf16.mxu1 %v12202_v0 }
  0xe6   :  { %2544 = vmatpush1.bf16.msra.mxu0 %v9239_v17 }
  0xe7   :  { %2737 = vmatpush1.bf16.msra.mxu1 %v9245_v19  ;;  %2545 = vmatprep.subr.bf16.mxu0 %v12202_v0 }
  0xe8   :  { %2738 = vmatprep.subr.bf16.mxu1 %v12202_v0 }
  0xe9   :  { %1676 = vmatmul.mubr.bf16.gmra.mxu0 %v8076_v15 }
  0xea   :  { %1869 = vmatmul.mubr.bf16.gmra.mxu1 %v8077_v16  ;;  %1683 = vmatprep.mubr.bf16.mxu0 %v7053_v18  ;;  %v8101_v16 = vld [vmem:[%s12193_s0 + $0x2f8] ss:$16 sps:$4 sm:$0xff]   ;;  %v7073_v18 = vcombine.high %v1183_v4, %v1185_v5 }
  0xeb   :  { %1876 = vmatprep.mubr.bf16.mxu1 %v7055_v20  ;;  %2546 = vmatpush1.bf16.msra.mxu0 %v9253_v21 }
  0xec   :  { %2739 = vmatpush1.bf16.msra.mxu1 %v9259_v22  ;;  %2547 = vmatprep.subr.bf16.mxu0 %v12202_v0 }
  0xed   :  { %2740 = vmatprep.subr.bf16.mxu1 %v12202_v0 }
  0xef   :  { %2548 = vmatpush1.bf16.msra.mxu0 %v9273_v27 }
  0xf0   :  { %2741 = vmatpush1.bf16.msra.mxu1 %v9279_v28  ;;  %2549 = vmatprep.subr.bf16.mxu0 %v12202_v0 }
  0xf1   :  { %1684 = vmatmul.mubr.bf16.gmra.mxu0 %v7052_v23  ;;  %2742 = vmatprep.subr.bf16.mxu1 %v12202_v0 }
  0xf2   :  { %1877 = vmatmul.mubr.bf16.gmra.mxu1 %v7054_v24  ;;  %1691 = vmatprep.mubr.bf16.mxu0 %v8078_v25  ;;  %v7075_v24 = vcombine.high %v1184_v8, %v1186_v11  ;;  %v9447_v25 = vld [vmem:[%s12192_s1 + $0x60] sm:$0xff]  }
  0xf3   :  { %1884 = vmatprep.mubr.bf16.mxu1 %v8080_v26  ;;  %2550 = vmatpush1.bf16.msra.mxu0 %v9287_v29 }
  0xf4   :  { %2743 = vmatpush1.bf16.msra.mxu1 %v9293_v30  ;;  %2551 = vmatprep.subr.bf16.mxu0 %v12202_v0 }
  0xf5   :  { %2744 = vmatprep.subr.bf16.mxu1 %v12202_v0 }
  0xf7   :  { %2552 = vmatpush1.bf16.msra.mxu0 %v9313_v35 }
  0xf8   :  { %2745 = vmatpush1.bf16.msra.mxu1 %v9319_v36  ;;  %2553 = vmatprep.subr.bf16.mxu0 %v12202_v0 }
  0xf9   :  { %1692 = vmatmul.mubr.bf16.gmra.mxu0 %v8082_v31  ;;  %2746 = vmatprep.subr.bf16.mxu1 %v12202_v0  ;;  %v9453_v31 = vld [vmem:[%s12192_s1 + $0xe0] sm:$0xff]  }
  0xfa   :  { %1885 = vmatmul.mubr.bf16.gmra.mxu1 %v8083_v32  ;;  %1699 = vmatprep.mubr.bf16.mxu0 %v8084_v33 }
  0xfb   :  { %1892 = vmatprep.mubr.bf16.mxu1 %v8086_v34  ;;  %2554 = vmatpush1.bf16.msra.mxu0 %v9327_v37 }
  0xfc   :  { %2747 = vmatpush1.bf16.msra.mxu1 %v9333_v38  ;;  %2555 = vmatprep.subr.bf16.mxu0 %v12202_v0 }
  0xfd   :  { %2748 = vmatprep.subr.bf16.mxu1 %v12202_v0 }
  0xff   :  { %2556 = vmatpush1.bf16.msra.mxu0 %v9353_v43 }
 0x100   :  { %2749 = vmatpush1.bf16.msra.mxu1 %v9359_v44  ;;  %2557 = vmatprep.subr.bf16.mxu0 %v12202_v0 }
 0x101   :  { %v803_v45 = vpop.f32.mrf.mxu0  ;;  %1700 = vmatmul.mubr.bf16.gmra.mxu0 %v8088_v39  ;;  %2750 = vmatprep.subr.bf16.mxu1 %v12202_v0 }
 0x102   :  { %v996_v46 = vpop.f32.mrf.mxu1  ;;  %1893 = vmatmul.mubr.bf16.gmra.mxu1 %v8089_v40  ;;  %1707 = vmatprep.mubr.bf16.mxu0 %v8090_v41  ;;  %v9463_v40 = vld [vmem:[%s12192_s1 + $0x58] sm:$0xff]  }
 0x103   :  { %v9364_v47 = vadd.f32 %v996_v46, %v803_v45  ;;  %v805_v48 = vpop.f32.mrf.mxu0  ;;  %1900 = vmatprep.mubr.bf16.mxu1 %v8092_v42  ;;  %2558 = vmatpush2.bf16.msra.mxu0 %v9369_v49  ;;  %v9469_v42 = vld [vmem:[%s12192_s1 + $0xd8] sm:$0xff]   ;;  %v7072_v46 = vcombine.low %v1183_v4, %v1185_v5  ;;  %v9501_v4 = vld [vmem:[%s12192_s1 + $0x48] sm:$0xff]  }
 0x104   :  { %v998_v50 = vpop.f32.mrf.mxu1  ;;  %2751 = vmatpush2.bf16.msra.mxu1 %v9375_v51  ;;  %2559 = vmatprep.subr.bf16.mxu0 %v12202_v0 }
 0x105   :  { %v806_v52 = vpop.f32.mrf.mxu0  ;;  %2752 = vmatprep.subr.bf16.mxu1 %v12202_v0  ;;  %v7074_v50 = vcombine.low %v1184_v8, %v1186_v11  ;;  %v8102_v11 = vld [vmem:[%s12193_s0 + $0x420] ss:$16 sps:$4 sm:$0xff]  }
 0x106   :  { %v999_v54 = vpop.f32.mrf.mxu1 }
 0x107   :  { %v9389_v57 = vadd.f32 %v999_v54, %v806_v52  ;;  %v808_v58 = vpop.f32.mrf.mxu0  ;;  %2560 = vmatpush2.bf16.msra.mxu0 %v9397_v60  ;;  %v8104_v52 = vld [vmem:[%s12193_s0 + $0x424] ss:$16 sps:$4 sm:$0xff]  }
 0x108   :  { %v1001_v61 = vpop.f32.mrf.mxu1  ;;  %2753 = vmatpush2.bf16.msra.mxu1 %v9403_v62  ;;  %2561 = vmatprep.subr.bf16.mxu0 %v12202_v0 }
 0x109   :  { %v811_v63 = vpop.f32.mrf.mxu0  ;;  %1708 = vmatmul.mubr.bf16.gmra.mxu0 %v8094_v53  ;;  %2754 = vmatprep.subr.bf16.mxu1 %v12202_v0 }
 0x10a   :  { %v1004_v1 = vpop.f32.mrf.mxu1  ;;  %1901 = vmatmul.mubr.bf16.gmra.mxu1 %v8095_v55  ;;  %1715 = vmatprep.mubr.bf16.mxu0 %v8096_v56  ;;  %v8107_v55 = vld [vmem:[%s12193_s0 + $0x42c] ss:$16 sps:$4 sm:$0xff]   ;;  %v9485_v56 = vld [vmem:[%s12192_s1 + $0x50] sm:$0xff]  }
 0x10b   :  { %v9408_v2 = vadd.f32 %v1004_v1, %v811_v63  ;;  %v813_v3 = vpop.f32.mrf.mxu0  ;;  %1908 = vmatprep.mubr.bf16.mxu1 %v8098_v59  ;;  %2562 = vmatpush2.bf16.msra.mxu0 %v9419_v6  ;;  %v9491_v59 = vld [vmem:[%s12192_s1 + $0xd0] sm:$0xff]  }
 0x10c   :  { %v1006_v7 = vpop.f32.mrf.mxu1  ;;  %2755 = vmatpush2.bf16.msra.mxu1 %v9431_v12  ;;  %2563 = vmatprep.subr.bf16.mxu0 %v12202_v0 }
 0x10d   :  { %v814_v13 = vpop.f32.mrf.mxu0  ;;  %2756 = vmatprep.subr.bf16.mxu1 %v12202_v0  ;;  %v9507_v7 = vld [vmem:[%s12192_s1 + $0xc8] sm:$0xff]  }
 0x10e   :  { %v1007_v15 = vpop.f32.mrf.mxu1 }
 0x10f   :  { %v9442_v20 = vadd.f32 %v1007_v15, %v814_v13  ;;  %v816_v23 = vpop.f32.mrf.mxu0  ;;  %2564 = vmatpush2.bf16.msra.mxu0 %v9447_v25  ;;  %v8110_v15 = vld [vmem:[%s12193_s0 + $0x444] ss:$16 sps:$4 sm:$0xff]  }
 0x110   :  { %v1009_v26 = vpop.f32.mrf.mxu1  ;;  %2757 = vmatpush2.bf16.msra.mxu1 %v9453_v31  ;;  %2565 = vmatprep.subr.bf16.mxu0 %v12202_v0  ;;  %v8113_v23 = vld [vmem:[%s12193_s0 + $0x44c] ss:$16 sps:$4 sm:$0xff]  }
 0x111   :  { %v819_v32 = vpop.f32.mrf.mxu0  ;;  %1716 = vmatmul.mubr.bf16.gmra.mxu0 %v8100_v14  ;;  %2758 = vmatprep.subr.bf16.mxu1 %v12202_v0  ;;  %v8105_v14 = vld [vmem:[%s12193_s0 + $0x428] ss:$16 sps:$4 sm:$0xff]  }
 0x112   :  { %v1012_v33 = vpop.f32.mrf.mxu1  ;;  %1909 = vmatmul.mubr.bf16.gmra.mxu1 %v8101_v16  ;;  %1723 = vmatprep.mubr.bf16.mxu0 %v7073_v18 }
 0x113   :  { %v9458_v34 = vadd.f32 %v1012_v33, %v819_v32  ;;  %v821_v39 = vpop.f32.mrf.mxu0  ;;  %1916 = vmatprep.mubr.bf16.mxu1 %v7075_v24  ;;  %2566 = vmatpush2.bf16.msra.mxu0 %v9463_v40  ;;  %v9529_v24 = vld [vmem:[%s12192_s1 + $0x40] sm:$0xff]  }
 0x114   :  { %v1014_v41 = vpop.f32.mrf.mxu1  ;;  %2759 = vmatpush2.bf16.msra.mxu1 %v9469_v42  ;;  %2567 = vmatprep.subr.bf16.mxu0 %v12202_v0  ;;  %v9535_v32 = vld [vmem:[%s12192_s1 + $0xc0] sm:$0xff]  }
 0x115   :  { %v822_v45 = vpop.f32.mrf.mxu0  ;;  %2760 = vmatprep.subr.bf16.mxu1 %v12202_v0 }
 0x116   :  { %v1015_v48 = vpop.f32.mrf.mxu1 }
 0x117   :  { %v9477_v53 = vadd.f32 %v1015_v48, %v822_v45  ;;  %v824_v54 = vpop.f32.mrf.mxu0  ;;  %2568 = vmatpush2.bf16.msra.mxu0 %v9485_v56 }
 0x118   :  { %v1017_v58 = vpop.f32.mrf.mxu1  ;;  %2761 = vmatpush2.bf16.msra.mxu1 %v9491_v59  ;;  %2569 = vmatprep.subr.bf16.mxu0 %v12202_v0  ;;  %v8111_v54 = vld [vmem:[%s12193_s0 + $0x448] ss:$16 sps:$4 sm:$0xff]  }
 0x119   :  { %v827_v61 = vpop.f32.mrf.mxu0  ;;  %1724 = vmatmul.mubr.bf16.gmra.mxu0 %v7072_v46  ;;  %2762 = vmatprep.subr.bf16.mxu1 %v12202_v0 }
 0x11a   :  { %v1020_v63 = vpop.f32.mrf.mxu1  ;;  %1917 = vmatmul.mubr.bf16.gmra.mxu1 %v7074_v50  ;;  %1731 = vmatprep.mubr.bf16.mxu0 %v8104_v52  ;;  %v8108_v50 = vld [vmem:[%s12193_s0 + $0x440] ss:$16 sps:$4 sm:$0xff]  }
 0x11b   :  { %v9496_v1 = vadd.f32 %v1020_v63, %v827_v61  ;;  %v829_v3 = vpop.f32.mrf.mxu0  ;;  %1924 = vmatprep.mubr.bf16.mxu1 %v8107_v55  ;;  %2570 = vmatpush2.bf16.msra.mxu0 %v9501_v4  ;;  %v8116_v55 = vld [vmem:[%s12193_s0 + $0x554] ss:$16 sps:$4 sm:$0xff]   ;;  %v8119_v63 = vld [vmem:[%s12193_s0 + $0x55c] ss:$16 sps:$4 sm:$0xff]  }
 0x11c   :  { %v1022_v5 = vpop.f32.mrf.mxu1  ;;  %2763 = vmatpush2.bf16.msra.mxu1 %v9507_v7  ;;  %2571 = vmatprep.subr.bf16.mxu0 %v12202_v0 }
 0x11d   :  { %v830_v8 = vpop.f32.mrf.mxu0  ;;  %2764 = vmatprep.subr.bf16.mxu1 %v12202_v0 }
 0x11e   :  { %v1023_v13 = vpop.f32.mrf.mxu1 }
 0x11f   :  { %v9521_v16 = vadd.f32 %v1023_v13, %v830_v8  ;;  %v832_v18 = vpop.f32.mrf.mxu0  ;;  %2572 = vmatpush2.bf16.msra.mxu0 %v9529_v24 }
 0x120   :  { %v1025_v26 = vpop.f32.mrf.mxu1  ;;  %2765 = vmatpush2.bf16.msra.mxu1 %v9535_v32  ;;  %3407 = vmatprep.subr.bf16.mxu0 %v12202_v0  ;;  %v8114_v18 = vld [vmem:[%s12193_s0 + $0x550] ss:$16 sps:$4 sm:$0xff]  }
 0x121   :  { %v835_v33 = vpop.f32.mrf.mxu0  ;;  %1732 = vmatmul.mubr.bf16.gmra.mxu0 %v8102_v11  ;;  %3600 = vmatprep.subr.bf16.mxu1 %v12202_v0  ;;  %v8117_v26 = vld [vmem:[%s12193_s0 + $0x558] ss:$16 sps:$4 sm:$0xff]  }
 0x122   :  { %v1028_v39 = vpop.f32.mrf.mxu1  ;;  %1925 = vmatmul.mubr.bf16.gmra.mxu1 %v8105_v14  ;;  %1739 = vmatprep.mubr.bf16.mxu0 %v8110_v15 }
 0x123   :  { %v9540_v41 = vadd.f32 %v1028_v39, %v835_v33  ;;  %v837_v45 = vpop.f32.mrf.mxu0  ;;  %1932 = vmatprep.mubr.bf16.mxu1 %v8113_v23  ;;  %v8122_v33 = vld [vmem:[%s12193_s0 + $0x574] ss:$16 sps:$4 sm:$0xff]  }
 0x124   :  { %v1030_v46 = vpop.f32.mrf.mxu1 }
 0x125   :  { %v838_v48 = vpop.f32.mrf.mxu0  ;;  %v8125_v46 = vld [vmem:[%s12193_s0 + $0x57c] ss:$16 sps:$4 sm:$0xff]  }
 0x126   :  { %v1031_v52 = vpop.f32.mrf.mxu1 }
 0x127   :  { %v9551_v58 = vadd.f32 %v1031_v52, %v838_v48  ;;  %v840_v61 = vpop.f32.mrf.mxu0 }
 0x128   :  { %v1033_v3 = vpop.f32.mrf.mxu1  ;;  %v1203_v61 = vld [vmem:[%s12193_s0 + $0x590] sm:$0xff] }
 0x129   :  { %v843_v5 = vpop.f32.mrf.mxu0  ;;  %1740 = vmatmul.mubr.bf16.gmra.mxu0 %v8108_v50 }
 0x12a   :  { %v1036_v8 = vpop.f32.mrf.mxu1  ;;  %1933 = vmatmul.mubr.bf16.gmra.mxu1 %v8111_v54  ;;  %1747 = vmatprep.mubr.bf16.mxu0 %v8116_v55 }
 0x12b   :  { %v9556_v11 = vadd.f32 %v1036_v8, %v843_v5  ;;  %v845_v13 = vpop.f32.mrf.mxu0  ;;  %1940 = vmatprep.mubr.bf16.mxu1 %v8119_v63  ;;  %v1205_v63 = vld [vmem:[%s12193_s0 + $0x690] sm:$0xff]  ;;  %v1204_v5 = vld [vmem:[%s12193_s0 + $0x598] sm:$0xff] }
 0x12c   :  { %v1038_v14 = vpop.f32.mrf.mxu1  ;;  %v1206_v8 = vld [vmem:[%s12193_s0 + $0x698] sm:$0xff] }
 0x12d   :  { %12260 = vst [vmem:[#allocation2_spill] sm:$0xff] %v9556_v11  ;;  %v846_v15 = vpop.f32.mrf.mxu0  ;;  %v8120_v14 = vld [vmem:[%s12193_s0 + $0x570] ss:$16 sps:$4 sm:$0xff]   ;;  %v7094_v11 = vcombine.low %v1204_v5, %v1206_v8 }
 0x12e   :  { %v1039_v23 = vpop.f32.mrf.mxu1 }
 0x12f   :  { %v9567_v39 = vadd.f32 %v1039_v23, %v846_v15  ;;  %v848_v45 = vpop.f32.mrf.mxu0  ;;  %v7093_v23 = vcombine.high %v1203_v61, %v1205_v63 }
 0x130   :  { %v1041_v48 = vpop.f32.mrf.mxu1  ;;  %v7095_v45 = vcombine.high %v1204_v5, %v1206_v8 }
 0x131   :  { %12261 = vst [vmem:[#allocation3_spill] sm:$0xff] %v9567_v39  ;;  %v851_v50 = vpop.f32.mrf.mxu0  ;;  %1748 = vmatmul.mubr.bf16.gmra.mxu0 %v8114_v18  ;;  %v8123_v18 = vld [vmem:[%s12193_s0 + $0x578] ss:$16 sps:$4 sm:$0xff]  }
 0x132   :  { %v1044_v52 = vpop.f32.mrf.mxu1  ;;  %1941 = vmatmul.mubr.bf16.gmra.mxu1 %v8117_v26  ;;  %1755 = vmatprep.mubr.bf16.mxu0 %v8122_v33 }
 0x133   :  { %v9572_v54 = vadd.f32 %v1044_v52, %v851_v50  ;;  %v853_v55 = vpop.f32.mrf.mxu0  ;;  %1948 = vmatprep.mubr.bf16.mxu1 %v8125_v46 }
 0x134   :  { %v1046_v3 = vpop.f32.mrf.mxu1 }
 0x135   :  { %12262 = vst [vmem:[#allocation4_spill] sm:$0xff] %v9572_v54  ;;  %v854_v13 = vpop.f32.mrf.mxu0  ;;  %v7092_v54 = vcombine.low %v1203_v61, %v1205_v63 }
 0x136   :  { %v1047_v15 = vpop.f32.mrf.mxu1 }
 0x137   :  { %v9592_v26 = vadd.f32 %v1047_v15, %v854_v13  ;;  %v856_v33 = vpop.f32.mrf.mxu0  ;;  %v8128_v13 = vld [vmem:[%s12193_s0 + $0x6a4] ss:$16 sps:$4 sm:$0xff]  }
 0x138   :  { %v1049_v46 = vpop.f32.mrf.mxu1 }
 0x139   :  { %12263 = vst [vmem:[#allocation5_spill] sm:$0xff] %v9592_v26  ;;  %v859_v48 = vpop.f32.mrf.mxu0  ;;  %1756 = vmatmul.mubr.bf16.gmra.mxu0 %v8120_v14  ;;  %v8131_v14 = vld [vmem:[%s12193_s0 + $0x6ac] ss:$16 sps:$4 sm:$0xff]   ;;  %v8129_v46 = vld [vmem:[%s12193_s0 + $0x6a8] ss:$16 sps:$4 sm:$0xff]  }
 0x13a   :  { %v1052_v50 = vpop.f32.mrf.mxu1  ;;  %1949 = vmatmul.mubr.bf16.gmra.mxu1 %v8123_v18  ;;  %1763 = vmatprep.mubr.bf16.mxu0 %v7093_v23 }
 0x13b   :  { %v9594_v52 = vadd.f32 %v1052_v50, %v859_v48  ;;  %v861_v55 = vpop.f32.mrf.mxu0  ;;  %1956 = vmatprep.mubr.bf16.mxu1 %v7095_v45  ;;  %v8137_v50 = vld [vmem:[%s12193_s0 + $0x6cc] ss:$16 sps:$4 sm:$0xff]  }
 0x13c   :  { %v1054_v3 = vpop.f32.mrf.mxu1 }
 0x13d   :  { %12264 = vst [vmem:[#allocation6_spill] sm:$0xff] %v9594_v52  ;;  %v862_v0 = vpop.f32.mrf.mxu0 }
 0x13e   :  { %v1055_v39 = vpop.f32.mrf.mxu1 }
 0x13f   :  { %v9599_v15 = vadd.f32 %v1055_v39, %v862_v0  ;;  %v864_v33 = vpop.f32.mrf.mxu0  ;;  %v8126_v0 = vld [vmem:[%s12193_s0 + $0x6a0] ss:$16 sps:$4 sm:$0xff]  }
 0x140   :  { %v1057_v18 = vpop.f32.mrf.mxu1 }
 0x141   :  { %12265 = vst [vmem:[#allocation7_spill] sm:$0xff] %v9599_v15  ;;  %v867_v23 = vpop.f32.mrf.mxu0  ;;  %1764 = vmatmul.mubr.bf16.gmra.mxu0 %v7092_v54 }
 0x142   :  { %v1060_v45 = vpop.f32.mrf.mxu1  ;;  %1957 = vmatmul.mubr.bf16.gmra.mxu1 %v7094_v11  ;;  %1771 = vmatprep.mubr.bf16.mxu0 %v8128_v13  ;;  %v8134_v11 = vld [vmem:[%s12193_s0 + $0x6c4] ss:$16 sps:$4 sm:$0xff]  }
 0x143   :  { %v9604_v61 = vadd.f32 %v1060_v45, %v867_v23  ;;  %v869_v63 = vpop.f32.mrf.mxu0  ;;  %1964 = vmatprep.mubr.bf16.mxu1 %v8131_v14  ;;  %v8132_v45 = vld [vmem:[%s12193_s0 + $0x6c0] ss:$16 sps:$4 sm:$0xff]  }
 0x144   :  { %v1062_v5 = vpop.f32.mrf.mxu1 }
 0x145   :  { %12266 = vst [vmem:[#allocation8_spill] sm:$0xff] %v9604_v61  ;;  %v870_v8 = vpop.f32.mrf.mxu0  ;;  %v8135_v5 = vld [vmem:[%s12193_s0 + $0x6c8] ss:$16 sps:$4 sm:$0xff]  }
 0x146   :  { %v1063_v39 = vpop.f32.mrf.mxu1 }
 0x147   :  { %v9615_v54 = vadd.f32 %v1063_v39, %v870_v8  ;;  %v872_v48 = vpop.f32.mrf.mxu0  ;;  %v8140_v8 = vld [vmem:[%s12193_s0 + $0x7d4] ss:$16 sps:$4 sm:$0xff]  }
 0x148   :  { %v1065_v55 = vpop.f32.mrf.mxu1 }
 0x149   :  { %12267 = vst [vmem:[#allocation9_spill] sm:$0xff] %v9615_v54  ;;  %v875_v3 = vpop.f32.mrf.mxu0  ;;  %1772 = vmatmul.mubr.bf16.gmra.mxu0 %v8126_v0 }
 0x14a   :  { %v1068_v13 = vpop.f32.mrf.mxu1  ;;  %1965 = vmatmul.mubr.bf16.gmra.mxu1 %v8129_v46  ;;  %1779 = vmatprep.mubr.bf16.mxu0 %v8134_v11  ;;  %v8143_v46 = vld [vmem:[%s12193_s0 + $0x7dc] ss:$16 sps:$4 sm:$0xff]  }
 0x14b   :  { %v9620_v33 = vadd.f32 %v1068_v13, %v875_v3  ;;  %v877_v14 = vpop.f32.mrf.mxu0  ;;  %1972 = vmatprep.mubr.bf16.mxu1 %v8137_v50 }
 0x14c   :  { %v1070_v18 = vpop.f32.mrf.mxu1 }
 0x14d   :  { %12268 = vst [vmem:[#allocation10_spill] sm:$0xff] %v9620_v33  ;;  %v878_v23 = vpop.f32.mrf.mxu0  ;;  %v8138_v18 = vld [vmem:[%s12193_s0 + $0x7d0] ss:$16 sps:$4 sm:$0xff]  }
 0x14e   :  { %v1071_v63 = vpop.f32.mrf.mxu1 }
 0x14f   :  { %v9631_v0 = vadd.f32 %v1071_v63, %v878_v23  ;;  %v880_v39 = vpop.f32.mrf.mxu0  ;;  %v8141_v63 = vld [vmem:[%s12193_s0 + $0x7d8] ss:$16 sps:$4 sm:$0xff]  }
 0x150   :  { %v1073_v11 = vpop.f32.mrf.mxu1  ;;  %v8149_v39 = vld [vmem:[%s12193_s0 + $0x7fc] ss:$16 sps:$4 sm:$0xff]  }
 0x151   :  { %12269 = vst [vmem:[#allocation11_spill] sm:$0xff] %v9631_v0  ;;  %v883_v48 = vpop.f32.mrf.mxu0  ;;  %1780 = vmatmul.mubr.bf16.gmra.mxu0 %v8132_v45  ;;  %v8146_v45 = vld [vmem:[%s12193_s0 + $0x7f4] ss:$16 sps:$4 sm:$0xff]  }
 0x152   :  { %v1076_v50 = vpop.f32.mrf.mxu1  ;;  %1973 = vmatmul.mubr.bf16.gmra.mxu1 %v8135_v5  ;;  %1787 = vmatprep.mubr.bf16.mxu0 %v8140_v8 }
 0x153   :  { %v9636_v55 = vadd.f32 %v1076_v50, %v883_v48  ;;  %v885_v3 = vpop.f32.mrf.mxu0  ;;  %1980 = vmatprep.mubr.bf16.mxu1 %v8143_v46 }
 0x154   :  { %v1078_v13 = vpop.f32.mrf.mxu1 }
 0x155   :  { %12270 = vst [vmem:[#allocation12_spill] sm:$0xff] %v9636_v55  ;;  %v886_v14 = vpop.f32.mrf.mxu0  ;;  %v1223_v13 = vld [vmem:[%s12193_s0 + $0x810] sm:$0xff] }
 0x156   :  { %v1079_v23 = vpop.f32.mrf.mxu1 }
 0x157   :  { %v9647_v5 = vadd.f32 %v1079_v23, %v886_v14  ;;  %v888_v8 = vpop.f32.mrf.mxu0  ;;  %v1225_v14 = vld [vmem:[%s12193_s0 + $0x910] sm:$0xff] }
 0x158   :  { %v1081_v46 = vpop.f32.mrf.mxu1  ;;  %v8144_v8 = vld [vmem:[%s12193_s0 + $0x7f0] ss:$16 sps:$4 sm:$0xff]   ;;  %v7112_v15 = vcombine.low %v1223_v13, %v1225_v14 }
 0x159   :  { %12271 = vst [vmem:[#allocation13_spill] sm:$0xff] %v9647_v5  ;;  %v891_v11 = vpop.f32.mrf.mxu0  ;;  %1788 = vmatmul.mubr.bf16.gmra.mxu0 %v8138_v18  ;;  %v1224_v18 = vld [vmem:[%s12193_s0 + $0x818] sm:$0xff] }
 0x15a   :  { %v1084_v48 = vpop.f32.mrf.mxu1  ;;  %1981 = vmatmul.mubr.bf16.gmra.mxu1 %v8141_v63  ;;  %1795 = vmatprep.mubr.bf16.mxu0 %v8146_v45  ;;  %v1226_v63 = vld [vmem:[%s12193_s0 + $0x918] sm:$0xff] }
 0x15b   :  { %v9652_v50 = vadd.f32 %v1084_v48, %v891_v11  ;;  %v893_v3 = vpop.f32.mrf.mxu0  ;;  %1988 = vmatprep.mubr.bf16.mxu1 %v8149_v39  ;;  %v8147_v46 = vld [vmem:[%s12193_s0 + $0x7f8] ss:$16 sps:$4 sm:$0xff]   ;;  %v7113_v11 = vcombine.high %v1223_v13, %v1225_v14  ;;  %v7114_v26 = vcombine.low %v1224_v18, %v1226_v63 }
 0x15c   :  { %v1086_v23 = vpop.f32.mrf.mxu1 }
 0x15d   :  { %12272 = vst [vmem:[#allocation14_spill] sm:$0xff] %v9652_v50  ;;  %v894_v45 = vpop.f32.mrf.mxu0  ;;  %v7115_v23 = vcombine.high %v1224_v18, %v1226_v63  ;;  %v8153_v63 = vld [vmem:[%s12193_s0 + $0x928] ss:$16 sps:$4 sm:$0xff]  }
 0x15e   :  { %v1087_v39 = vpop.f32.mrf.mxu1 }
 0x15f   :  { %v9672_v48 = vadd.f32 %v1087_v39, %v894_v45  ;;  %v896_v3 = vpop.f32.mrf.mxu0  ;;  %v8152_v45 = vld [vmem:[%s12193_s0 + $0x924] ss:$16 sps:$4 sm:$0xff]  }
 0x160   :  { %v1089_v50 = vpop.f32.mrf.mxu1 }
 0x161   :  { %12273 = vst [vmem:[#allocation15_spill] sm:$0xff] %v9672_v48  ;;  %v899_v5 = vpop.f32.mrf.mxu0  ;;  %1796 = vmatmul.mubr.bf16.gmra.mxu0 %v8144_v8  ;;  %v8155_v8 = vld [vmem:[%s12193_s0 + $0x92c] ss:$16 sps:$4 sm:$0xff]  }
 0x162   :  { %v1092_v55 = vpop.f32.mrf.mxu1  ;;  %1989 = vmatmul.mubr.bf16.gmra.mxu1 %v8147_v46  ;;  %1803 = vmatprep.mubr.bf16.mxu0 %v7113_v11  ;;  %v8161_v11 = vld [vmem:[%s12193_s0 + $0x94c] ss:$16 sps:$4 sm:$0xff]  }
 0x163   :  { %v9674_v0 = vadd.f32 %v1092_v55, %v899_v5  ;;  %v901_v33 = vpop.f32.mrf.mxu0  ;;  %1996 = vmatprep.mubr.bf16.mxu1 %v7115_v23 }
 0x164   :  { %v1094_v54 = vpop.f32.mrf.mxu1 }
 0x165   :  { %12274 = vst [vmem:[#allocation16_spill] sm:$0xff] %v9674_v0  ;;  %v902_v61 = vpop.f32.mrf.mxu0 }
 0x166   :  { %v1095_v52 = vpop.f32.mrf.mxu1 }
 0x167   :  { %v9679_v39 = vadd.f32 %v1095_v52, %v902_v61  ;;  %v904_v50 = vpop.f32.mrf.mxu0  ;;  %v8150_v52 = vld [vmem:[%s12193_s0 + $0x920] ss:$16 sps:$4 sm:$0xff]  }
 0x168   :  { %v1097_v55 = vpop.f32.mrf.mxu1 }
 0x169   :  { %12275 = vst [vmem:[#allocation17_spill] sm:$0xff] %v9679_v39  ;;  %v907_v5 = vpop.f32.mrf.mxu0  ;;  %1804 = vmatmul.mubr.bf16.gmra.mxu0 %v7112_v15 }
 0x16a   :  { %v1100_v33 = vpop.f32.mrf.mxu1  ;;  %1997 = vmatmul.mubr.bf16.gmra.mxu1 %v7114_v26  ;;  %1811 = vmatprep.mubr.bf16.mxu0 %v8152_v45  ;;  %v8158_v26 = vld [vmem:[%s12193_s0 + $0x944] ss:$16 sps:$4 sm:$0xff]  }
 0x16b   :  { %v9684_v54 = vadd.f32 %v1100_v33, %v907_v5  ;;  %v909_v13 = vpop.f32.mrf.mxu0  ;;  %2004 = vmatprep.mubr.bf16.mxu1 %v8155_v8  ;;  %v8156_v33 = vld [vmem:[%s12193_s0 + $0x940] ss:$16 sps:$4 sm:$0xff]  }
 0x16c   :  { %v1102_v14 = vpop.f32.mrf.mxu1 }
 0x16d   :  { %12276 = vst [vmem:[#allocation18_spill] sm:$0xff] %v9684_v54  ;;  %v910_v18 = vpop.f32.mrf.mxu0  ;;  %v8159_v14 = vld [vmem:[%s12193_s0 + $0x948] ss:$16 sps:$4 sm:$0xff]  }
 0x16e   :  { %v1103_v61 = vpop.f32.mrf.mxu1 }
 0x16f   :  { %v9695_v15 = vadd.f32 %v1103_v61, %v910_v18  ;;  %v912_v46 = vpop.f32.mrf.mxu0  ;;  %v8164_v18 = vld [vmem:[%s12193_s0 + $0xa4] ss:$16 sps:$4 sm:$0xff]  }
 0x170   :  { %v1105_v3 = vpop.f32.mrf.mxu1 }
 0x171   :  { %12277 = vst [vmem:[#allocation19_spill] sm:$0xff] %v9695_v15  ;;  %v915_v23 = vpop.f32.mrf.mxu0  ;;  %1812 = vmatmul.mubr.bf16.gmra.mxu0 %v8150_v52 }
 0x172   :  { %v1108_v45 = vpop.f32.mrf.mxu1  ;;  %2005 = vmatmul.mubr.bf16.gmra.mxu1 %v8153_v63  ;;  %1819 = vmatprep.mubr.bf16.mxu0 %v8158_v26  ;;  %v8167_v63 = vld [vmem:[%s12193_s0 + $0xac] ss:$16 sps:$4 sm:$0xff]  }
 0x173   :  { %v9700_v50 = vadd.f32 %v1108_v45, %v915_v23  ;;  %v917_v8 = vpop.f32.mrf.mxu0  ;;  %2012 = vmatprep.mubr.bf16.mxu1 %v8161_v11 }
 0x174   :  { %v1110_v55 = vpop.f32.mrf.mxu1 }
 0x175   :  { %12278 = vst [vmem:[#allocation20_spill] sm:$0xff] %v9700_v50  ;;  %v918_v5 = vpop.f32.mrf.mxu0  ;;  %v8162_v55 = vld [vmem:[%s12193_s0 + $0xa0] ss:$16 sps:$4 sm:$0xff]  }
 0x176   :  { %v1111_v13 = vpop.f32.mrf.mxu1 }
 0x177   :  { %v9711_v52 = vadd.f32 %v1111_v13, %v918_v5  ;;  %v920_v61 = vpop.f32.mrf.mxu0  ;;  %v8165_v13 = vld [vmem:[%s12193_s0 + $0xa8] ss:$16 sps:$4 sm:$0xff]  }
 0x178   :  { %v1113_v26 = vpop.f32.mrf.mxu1 }
 0x179   :  { %12279 = vst [vmem:[#allocation21_spill] sm:$0xff] %v9711_v52  ;;  %v923_v46 = vpop.f32.mrf.mxu0  ;;  %1820 = vmatmul.mubr.bf16.gmra.mxu0 %v8156_v33  ;;  %v8272_v52 = vld [vmem:[%s12193_s0 + $0x244] ss:$16 sps:$4 sm:$0xff]  }
 0x17a   :  { %v1116_v11 = vpop.f32.mrf.mxu1  ;;  %2013 = vmatmul.mubr.bf16.gmra.mxu1 %v8159_v14  ;;  %2573 = vmatprep.mubr.bf16.mxu0 %v8164_v18  ;;  %v8170_v14 = vld [vmem:[%s12193_s0 + $0xc4] ss:$16 sps:$4 sm:$0xff]  }
 0x17b   :  { %v9716_v3 = vadd.f32 %v1116_v11, %v923_v46  ;;  %v925_v23 = vpop.f32.mrf.mxu0  ;;  %2766 = vmatprep.mubr.bf16.mxu1 %v8167_v63  ;;  %v8173_v63 = vld [vmem:[%s12193_s0 + $0xcc] ss:$16 sps:$4 sm:$0xff]  }
 0x17c   :  { %v1118_v45 = vpop.f32.mrf.mxu1 }
 0x17d   :  { %12280 = vst [vmem:[#allocation22_spill] sm:$0xff] %v9716_v3  ;;  %v926_v8 = vpop.f32.mrf.mxu0  ;;  %v2069_v45 = vld [vmem:[%s12193_s0 + $0xe0] sm:$0xff] }
 0x17e   :  { %v1119_v5 = vpop.f32.mrf.mxu1 }
 0x17f   :  { %v9724_v61 = vadd.f32 %v1119_v5, %v926_v8  ;;  %v928_v33 = vpop.f32.mrf.mxu0  ;;  %v2071_v8 = vld [vmem:[%s12193_s0 + $0x1e0] sm:$0xff] }
 0x180   :  { %v1121_v18 = vpop.f32.mrf.mxu1  ;;  %v8168_v33 = vld [vmem:[%s12193_s0 + $0xc0] ss:$16 sps:$4 sm:$0xff]  }
 0x181   :  { %12281 = vst [vmem:[#allocation23_spill] sm:$0xff] %v9724_v61  ;;  %v931_v26 = vpop.f32.mrf.mxu0  ;;  %2574 = vmatmul.mubr.bf16.vlgmr.msra.gmra.mxu0 %v8162_v55  ;;  %v12283_v55 = vmov 0   ;;  %v8171_v18 = vld [vmem:[%s12193_s0 + $0xc8] ss:$16 sps:$4 sm:$0xff]  }
 0x182   :  { %v1124_v46 = vpop.f32.mrf.mxu1  ;;  %2767 = vmatmul.mubr.bf16.vlgmr.msra.gmra.mxu1 %v8165_v13  ;;  %3408 = vmatpush1.bf16.msra.mxu0 %v9207_v9  ;;  %v2070_v9 = vld [vmem:[%s12193_s0 + $0xe8] sm:$0xff] }
 0x183   :  { %v9733_v11 = vadd.f32 %v1124_v46, %v931_v26  ;;  %3601 = vmatpush1.bf16.msra.mxu1 %v9213_v10  ;;  %v933_v23 = vpop.f32.mrf.mxu0  ;;  %2581 = vmatprep.mubr.bf16.mxu0 %v8170_v14  ;;  %v2072_v10 = vld [vmem:[%s12193_s0 + $0x1e8] sm:$0xff] }
 0x184   :  { %v1126_v5 = vpop.f32.mrf.mxu1  ;;  %2774 = vmatprep.mubr.bf16.mxu1 %v8173_v63  ;;  %3409 = vmatprep.subr.bf16.mxu0 %v12283_v55  ;;  %v7133_v63 = vcombine.high %v2069_v45, %v2071_v8  ;;  %v7135_v23 = vcombine.high %v2070_v9, %v2072_v10 }
 0x185   :  { %12282 = vst [vmem:[#allocation24_spill] sm:$0xff] %v9733_v11  ;;  %v934_v13 = vpop.f32.mrf.mxu0  ;;  %3602 = vmatprep.subr.bf16.mxu1 %v12283_v55 }
 0x186   :  { %v1127_v14 = vpop.f32.mrf.mxu1  ;;  %3410 = vmatpush1.bf16.msra.mxu0 %v9239_v17 }
 0x187   :  { %v9757_v26 = vadd.f32 %v1127_v14, %v934_v13  ;;  %v936_v46 = vpop.f32.mrf.mxu0  ;;  %3603 = vmatpush1.bf16.msra.mxu1 %v9245_v19  ;;  %3411 = vmatprep.subr.bf16.mxu0 %v12283_v55  ;;  %v7132_v14 = vcombine.low %v2069_v45, %v2071_v8 }
 0x188   :  { %v1129_v5 = vpop.f32.mrf.mxu1  ;;  %3604 = vmatprep.subr.bf16.mxu1 %v12283_v55 }
 0x189   :  { %12284 = vst [vmem:[#allocation25_spill] sm:$0xff] %v9757_v26  ;;  %v939_v11 = vpop.f32.mrf.mxu0  ;;  %2582 = vmatmul.mubr.bf16.gmra.mxu0 %v8168_v33  ;;  %v7134_v33 = vcombine.low %v2070_v9, %v2072_v10  ;;  %v8177_v5 = vld [vmem:[%s12193_s0 + $0x1f8] ss:$16 sps:$4 sm:$0xff]  }
 0x18a   :  { %v1132_v61 = vpop.f32.mrf.mxu1  ;;  %2775 = vmatmul.mubr.bf16.gmra.mxu1 %v8171_v18  ;;  %2589 = vmatprep.mubr.bf16.mxu0 %v7133_v63 }
 0x18b   :  { %v9762_v3 = vadd.f32 %v1132_v61, %v939_v11  ;;  %v941_v17 = vpop.f32.mrf.mxu0  ;;  %2782 = vmatprep.mubr.bf16.mxu1 %v7135_v23  ;;  %3412 = vmatpush1.bf16.msra.mxu0 %v9253_v21  ;;  %v8176_v61 = vld [vmem:[%s12193_s0 + $0x1f4] ss:$16 sps:$4 sm:$0xff]   ;;  %v8179_v21 = vld [vmem:[%s12193_s0 + $0x1fc] ss:$16 sps:$4 sm:$0xff]  }
 0x18c   :  { %v1134_v13 = vpop.f32.mrf.mxu1  ;;  %3605 = vmatpush1.bf16.msra.mxu1 %v9259_v22  ;;  %3413 = vmatprep.subr.bf16.mxu0 %v12283_v55 }
 0x18d   :  { %12285 = vst [vmem:[#allocation26_spill] sm:$0xff] %v9762_v3  ;;  %v942_v19 = vpop.f32.mrf.mxu0  ;;  %3606 = vmatprep.subr.bf16.mxu1 %v12283_v55  ;;  %v8185_v13 = vld [vmem:[%s12193_s0 + $0x21c] ss:$16 sps:$4 sm:$0xff]  }
 0x18e   :  { %v1135_v46 = vpop.f32.mrf.mxu1 }
 0x18f   :  { %v9771_v11 = vadd.f32 %v1135_v46, %v942_v19  ;;  %v944_v18 = vpop.f32.mrf.mxu0  ;;  %3414 = vmatpush1.bf16.msra.mxu0 %v9273_v27 }
 0x190   :  { %v1137_v22 = vpop.f32.mrf.mxu1  ;;  %3607 = vmatpush1.bf16.msra.mxu1 %v9279_v28  ;;  %3415 = vmatprep.subr.bf16.mxu0 %v12283_v55  ;;  %v8174_v28 = vld [vmem:[%s12193_s0 + $0x1f0] ss:$16 sps:$4 sm:$0xff]  }
 0x191   :  { %12286 = vst [vmem:[#allocation27_spill] sm:$0xff] %v9771_v11  ;;  %v947_v45 = vpop.f32.mrf.mxu0  ;;  %2590 = vmatmul.mubr.bf16.gmra.mxu0 %v7132_v14  ;;  %3608 = vmatprep.subr.bf16.mxu1 %v12283_v55  ;;  %v8183_v22 = vld [vmem:[%s12193_s0 + $0x218] ss:$16 sps:$4 sm:$0xff]  }
 0x192   :  { %v1140_v8 = vpop.f32.mrf.mxu1  ;;  %2783 = vmatmul.mubr.bf16.gmra.mxu1 %v7134_v33  ;;  %2597 = vmatprep.mubr.bf16.mxu0 %v8176_v61 }
 0x193   :  { %v9780_v9 = vadd.f32 %v1140_v8, %v947_v45  ;;  %v949_v10 = vpop.f32.mrf.mxu0  ;;  %2790 = vmatprep.mubr.bf16.mxu1 %v8179_v21  ;;  %3416 = vmatpush1.bf16.msra.mxu0 %v9287_v29  ;;  %v8182_v29 = vld [vmem:[%s12193_s0 + $0x214] ss:$16 sps:$4 sm:$0xff]   ;;  %v8191_v8 = vld [vmem:[%s12193_s0 + $0x32c] ss:$16 sps:$4 sm:$0xff]  }
 0x194   :  { %v1142_v63 = vpop.f32.mrf.mxu1  ;;  %3609 = vmatpush1.bf16.msra.mxu1 %v9293_v30  ;;  %3417 = vmatprep.subr.bf16.mxu0 %v12283_v55 }
 0x195   :  { %12287 = vst [vmem:[#allocation28_spill] sm:$0xff] %v9780_v9  ;;  %v950_v27 = vpop.f32.mrf.mxu0  ;;  %3610 = vmatprep.subr.bf16.mxu1 %v12283_v55 }
 0x196   :  { %v1143_v23 = vpop.f32.mrf.mxu1 }
 0x197   :  { %v9795_v17 = vadd.f32 %v1143_v23, %v950_v27  ;;  %v952_v30 = vpop.f32.mrf.mxu0  ;;  %3418 = vmatpush1.bf16.msra.mxu0 %v9313_v35 }
 0x198   :  { %v1145_v19 = vpop.f32.mrf.mxu1  ;;  %3611 = vmatpush1.bf16.msra.mxu1 %v9319_v36  ;;  %3419 = vmatprep.subr.bf16.mxu0 %v12283_v55  ;;  %v8180_v36 = vld [vmem:[%s12193_s0 + $0x210] ss:$16 sps:$4 sm:$0xff]  }
 0x199   :  { %12288 = vst [vmem:[#allocation29_spill] sm:$0xff] %v9795_v17  ;;  %v955_v14 = vpop.f32.mrf.mxu0  ;;  %2598 = vmatmul.mubr.bf16.gmra.mxu0 %v8174_v28  ;;  %3612 = vmatprep.subr.bf16.mxu1 %v12283_v55 }
 0x19a   :  { %v1148_v46 = vpop.f32.mrf.mxu1  ;;  %2791 = vmatmul.mubr.bf16.gmra.mxu1 %v8177_v5  ;;  %2605 = vmatprep.mubr.bf16.mxu0 %v8182_v29  ;;  %v8186_v29 = vld [vmem:[%s12193_s0 + $0x320] ss:$16 sps:$4 sm:$0xff]  }
 0x19b   :  { %v9804_v33 = vadd.f32 %v1148_v46, %v955_v14  ;;  %v957_v61 = vpop.f32.mrf.mxu0  ;;  %2798 = vmatprep.mubr.bf16.mxu1 %v8185_v13  ;;  %3420 = vmatpush1.bf16.msra.mxu0 %v9327_v37  ;;  %v8188_v37 = vld [vmem:[%s12193_s0 + $0x324] ss:$16 sps:$4 sm:$0xff]   ;;  %v8197_v14 = vld [vmem:[%s12193_s0 + $0x34c] ss:$16 sps:$4 sm:$0xff]  }
 0x19c   :  { %v1150_v18 = vpop.f32.mrf.mxu1  ;;  %3613 = vmatpush1.bf16.msra.mxu1 %v9333_v38  ;;  %3421 = vmatprep.subr.bf16.mxu0 %v12283_v55 }
 0x19d   :  { %12289 = vst [vmem:[#allocation30_spill] sm:$0xff] %v9804_v33  ;;  %v958_v35 = vpop.f32.mrf.mxu0  ;;  %3614 = vmatprep.subr.bf16.mxu1 %v12283_v55 }
 0x19e   :  { %v1151_v21 = vpop.f32.mrf.mxu1 }
 0x19f   :  { %v9819_v45 = vadd.f32 %v1151_v21, %v958_v35  ;;  %v960_v38 = vpop.f32.mrf.mxu0  ;;  %3422 = vmatpush1.bf16.msra.mxu0 %v9353_v43 }
 0x1a0   :  { %v1153_v10 = vpop.f32.mrf.mxu1  ;;  %3615 = vmatpush1.bf16.msra.mxu1 %v9359_v44  ;;  %3423 = vmatprep.subr.bf16.mxu0 %v12283_v55  ;;  %v2092_v38 = vld [vmem:[%s12193_s0 + $0x468] sm:$0xff] }
 0x1a1   :  { %12290 = vst [vmem:[#allocation31_spill] sm:$0xff] %v9819_v45  ;;  %v1669_v63 = vpop.f32.mrf.mxu0  ;;  %2606 = vmatmul.mubr.bf16.gmra.mxu0 %v8180_v36  ;;  %3616 = vmatprep.subr.bf16.mxu1 %v12283_v55 }
 0x1a2   :  { %v1862_v27 = vpop.f32.mrf.mxu1  ;;  %2799 = vmatmul.mubr.bf16.gmra.mxu1 %v8183_v22  ;;  %2613 = vmatprep.mubr.bf16.mxu0 %v8188_v37  ;;  %v2090_v37 = vld [vmem:[%s12193_s0 + $0x368] sm:$0xff] }
 0x1a3   :  { %v9828_v28 = vadd.f32 %v1862_v27, %v1669_v63  ;;  %v1671_v23 = vpop.f32.mrf.mxu0  ;;  %2806 = vmatprep.mubr.bf16.mxu1 %v8191_v8  ;;  %3424 = vmatpush2.bf16.msra.mxu0 %v9369_v49  ;;  %v8189_v49 = vld [vmem:[%s12193_s0 + $0x328] ss:$16 sps:$4 sm:$0xff]  }
 0x1a4   :  { %v1864_v5 = vpop.f32.mrf.mxu1  ;;  %3617 = vmatpush2.bf16.msra.mxu1 %v9375_v51  ;;  %3425 = vmatprep.subr.bf16.mxu0 %v12283_v55  ;;  %v8194_v51 = vld [vmem:[%s12193_s0 + $0x344] ss:$16 sps:$4 sm:$0xff]   ;;  %v8195_v27 = vld [vmem:[%s12193_s0 + $0x348] ss:$16 sps:$4 sm:$0xff]  }
 0x1a5   :  { %v1672_v44 = vpop.f32.mrf.mxu0  ;;  %3618 = vmatprep.subr.bf16.mxu1 %v12283_v55 }
 0x1a6   :  { %v1865_v30 = vpop.f32.mrf.mxu1 }
 0x1a7   :  { %v9845_v13 = vadd.f32 %v1865_v30, %v1672_v44  ;;  %v1674_v19 = vpop.f32.mrf.mxu0  ;;  %3426 = vmatpush2.bf16.msra.mxu0 %v9397_v60  ;;  %v2089_v60 = vld [vmem:[%s12193_s0 + $0x360] sm:$0xff]  ;;  %v7155_v44 = vcombine.high %v2090_v37, %v2092_v38 }
 0x1a8   :  { %v1867_v46 = vpop.f32.mrf.mxu1  ;;  %3619 = vmatpush2.bf16.msra.mxu1 %v9403_v62  ;;  %3427 = vmatprep.subr.bf16.mxu0 %v12283_v55  ;;  %v2091_v62 = vld [vmem:[%s12193_s0 + $0x460] sm:$0xff] }
 0x1a9   :  { %v1677_v18 = vpop.f32.mrf.mxu0  ;;  %2614 = vmatmul.mubr.bf16.gmra.mxu0 %v8186_v29  ;;  %3620 = vmatprep.subr.bf16.mxu1 %v12283_v55  ;;  %v7153_v23 = vcombine.high %v2089_v60, %v2091_v62  ;;  %v12296_v30 = vld [vmem:[#allocation6_spill] sm:$0xff] }
 0x1aa   :  { %v1870_v35 = vpop.f32.mrf.mxu1  ;;  %2807 = vmatmul.mubr.bf16.gmra.mxu1 %v8189_v49  ;;  %2621 = vmatprep.mubr.bf16.mxu0 %v8194_v51 }
 0x1ab   :  { %v9856_v36 = vadd.f32 %v1870_v35, %v1677_v18  ;;  %v1679_v21 = vpop.f32.mrf.mxu0  ;;  %2814 = vmatprep.mubr.bf16.mxu1 %v8197_v14  ;;  %3428 = vmatpush2.bf16.msra.mxu0 %v9419_v6  ;;  %v8192_v6 = vld [vmem:[%s12193_s0 + $0x340] ss:$16 sps:$4 sm:$0xff]   ;;  %v7152_v18 = vcombine.low %v2089_v60, %v2091_v62 }
 0x1ac   :  { %v1872_v22 = vpop.f32.mrf.mxu1  ;;  %3621 = vmatpush2.bf16.msra.mxu1 %v9431_v12  ;;  %3429 = vmatprep.subr.bf16.mxu0 %v12283_v55  ;;  %v7154_v21 = vcombine.low %v2090_v37, %v2092_v38 }
 0x1ad   :  { %v1680_v10 = vpop.f32.mrf.mxu0  ;;  %3622 = vmatprep.subr.bf16.mxu1 %v12283_v55  ;;  %v8200_v22 = vld [vmem:[%s12193_s0 + $0x474] ss:$16 sps:$4 sm:$0xff]  }
 0x1ae   :  { %v1873_v63 = vpop.f32.mrf.mxu1 }
 0x1af   :  { %v9882_v5 = vadd.f32 %v1873_v63, %v1680_v10  ;;  %v1682_v12 = vpop.f32.mrf.mxu0  ;;  %3430 = vmatpush2.bf16.msra.mxu0 %v9447_v25 }
 0x1b0   :  { %v1875_v29 = vpop.f32.mrf.mxu1  ;;  %3623 = vmatpush2.bf16.msra.mxu1 %v9453_v31  ;;  %3431 = vmatprep.subr.bf16.mxu0 %v12283_v55 }
 0x1b1   :  { %v1685_v49 = vpop.f32.mrf.mxu0  ;;  %2622 = vmatmul.mubr.bf16.gmra.mxu0 %v8192_v6  ;;  %3624 = vmatprep.subr.bf16.mxu1 %v12283_v55 }
 0x1b2   :  { %v1878_v51 = vpop.f32.mrf.mxu1  ;;  %2815 = vmatmul.mubr.bf16.gmra.mxu1 %v8195_v27  ;;  %2629 = vmatprep.mubr.bf16.mxu0 %v7153_v23  ;;  %v8198_v23 = vld [vmem:[%s12193_s0 + $0x470] ss:$16 sps:$4 sm:$0xff]  }
 0x1b3   :  { %v9890_v19 = vadd.f32 %v1878_v51, %v1685_v49  ;;  %v1687_v14 = vpop.f32.mrf.mxu0  ;;  %2822 = vmatprep.mubr.bf16.mxu1 %v7155_v44  ;;  %3432 = vmatpush2.bf16.msra.mxu0 %v9463_v40  ;;  %v8209_v49 = vld [vmem:[%s12193_s0 + $0x49c] ss:$16 sps:$4 sm:$0xff]  }
 0x1b4   :  { %v1880_v25 = vpop.f32.mrf.mxu1  ;;  %3625 = vmatpush2.bf16.msra.mxu1 %v9469_v42  ;;  %3433 = vmatprep.subr.bf16.mxu0 %v12283_v55  ;;  %v8203_v42 = vld [vmem:[%s12193_s0 + $0x47c] ss:$16 sps:$4 sm:$0xff]  }
 0x1b5   :  { %v1688_v46 = vpop.f32.mrf.mxu0  ;;  %3626 = vmatprep.subr.bf16.mxu1 %v12283_v55 }
 0x1b6   :  { %v1881_v35 = vpop.f32.mrf.mxu1 }
 0x1b7   :  { %v9901_v10 = vadd.f32 %v1881_v35, %v1688_v46  ;;  %v1690_v40 = vpop.f32.mrf.mxu0  ;;  %3434 = vmatpush2.bf16.msra.mxu0 %v9485_v56 }
 0x1b8   :  { %v1883_v6 = vpop.f32.mrf.mxu1  ;;  %3627 = vmatpush2.bf16.msra.mxu1 %v9491_v59  ;;  %3435 = vmatprep.subr.bf16.mxu0 %v12283_v55  ;;  %v8207_v40 = vld [vmem:[%s12193_s0 + $0x498] ss:$16 sps:$4 sm:$0xff]  }
 0x1b9   :  { %v1693_v62 = vpop.f32.mrf.mxu0  ;;  %2630 = vmatmul.mubr.bf16.gmra.mxu0 %v7152_v18  ;;  %3628 = vmatprep.subr.bf16.mxu1 %v12283_v55 }
 0x1ba   :  { %v1886_v37 = vpop.f32.mrf.mxu1  ;;  %2823 = vmatmul.mubr.bf16.gmra.mxu1 %v7154_v21  ;;  %2637 = vmatprep.mubr.bf16.mxu0 %v8200_v22  ;;  %v8224_v21 = vld [vmem:[%s12193_s0 + $0x6f4] ss:$16 sps:$4 sm:$0xff]  }
 0x1bb   :  { %v9912_v38 = vadd.f32 %v1886_v37, %v1693_v62  ;;  %v1695_v63 = vpop.f32.mrf.mxu0  ;;  %2830 = vmatprep.mubr.bf16.mxu1 %v8203_v42  ;;  %3436 = vmatpush2.bf16.msra.mxu0 %v9501_v4  ;;  %v8201_v4 = vld [vmem:[%s12193_s0 + $0x478] ss:$16 sps:$4 sm:$0xff]   ;;  %v8212_v42 = vld [vmem:[%s12193_s0 + $0x5a4] ss:$16 sps:$4 sm:$0xff]   ;;  %v8215_v37 = vld [vmem:[%s12193_s0 + $0x5ac] ss:$16 sps:$4 sm:$0xff]  }
 0x1bc   :  { %v1888_v56 = vpop.f32.mrf.mxu1  ;;  %3629 = vmatpush2.bf16.msra.mxu1 %v9507_v7  ;;  %3437 = vmatprep.subr.bf16.mxu0 %v12283_v55  ;;  %v8206_v7 = vld [vmem:[%s12193_s0 + $0x494] ss:$16 sps:$4 sm:$0xff]  }
 0x1bd   :  { %v1696_v27 = vpop.f32.mrf.mxu0  ;;  %3630 = vmatprep.subr.bf16.mxu1 %v12283_v55  ;;  %v12294_v56 = vld [vmem:[#allocation5_spill] sm:$0xff] }
 0x1be   :  { %v1889_v12 = vpop.f32.mrf.mxu1 }
 0x1bf   :  { %v9929_v44 = vadd.f32 %v1889_v12, %v1696_v27  ;;  %v1698_v29 = vpop.f32.mrf.mxu0  ;;  %3438 = vmatpush2.bf16.msra.mxu0 %v9529_v24 }
 0x1c0   :  { %v1891_v51 = vpop.f32.mrf.mxu1  ;;  %3631 = vmatpush2.bf16.msra.mxu1 %v9535_v32  ;;  %v8204_v32 = vld [vmem:[%s12193_s0 + $0x490] ss:$16 sps:$4 sm:$0xff]  }
 0x1c1   :  { %v1701_v14 = vpop.f32.mrf.mxu0  ;;  %2638 = vmatmul.mubr.bf16.gmra.mxu0 %v8198_v23  ;;  %v12291_v29 = vld [vmem:[#allocation2_spill] sm:$0xff] }
 0x1c2   :  { %v1894_v25 = vpop.f32.mrf.mxu1  ;;  %2831 = vmatmul.mubr.bf16.gmra.mxu1 %v8201_v4  ;;  %2645 = vmatprep.mubr.bf16.mxu0 %v8206_v7 }
 0x1c3   :  { %v9938_v46 = vadd.f32 %v1894_v25, %v1701_v14  ;;  %v1703_v18 = vpop.f32.mrf.mxu0  ;;  %2838 = vmatprep.mubr.bf16.mxu1 %v8209_v49  ;;  %v8210_v14 = vld [vmem:[%s12193_s0 + $0x5a0] ss:$16 sps:$4 sm:$0xff]  }
 0x1c4   :  { %v1896_v35 = vpop.f32.mrf.mxu1  ;;  %v8213_v18 = vld [vmem:[%s12193_s0 + $0x5a8] ss:$16 sps:$4 sm:$0xff]  }
 0x1c5   :  { %v1704_v24 = vpop.f32.mrf.mxu0  ;;  %v8218_v35 = vld [vmem:[%s12193_s0 + $0x5c4] ss:$16 sps:$4 sm:$0xff]  }
 0x1c6   :  { %v1897_v22 = vpop.f32.mrf.mxu1 }
 0x1c7   :  { %v9951_v6 = vadd.f32 %v1897_v22, %v1704_v24  ;;  %v1706_v62 = vpop.f32.mrf.mxu0  ;;  %v8221_v22 = vld [vmem:[%s12193_s0 + $0x5cc] ss:$16 sps:$4 sm:$0xff]  }
 0x1c8   :  { %v1899_v63 = vpop.f32.mrf.mxu1 }
 0x1c9   :  { %v1709_v27 = vpop.f32.mrf.mxu0  ;;  %2646 = vmatmul.mubr.bf16.gmra.mxu0 %v8204_v32 }
 0x1ca   :  { %v1902_v23 = vpop.f32.mrf.mxu1  ;;  %2839 = vmatmul.mubr.bf16.gmra.mxu1 %v8207_v40  ;;  %2653 = vmatprep.mubr.bf16.mxu0 %v8212_v42  ;;  %v12292_v42 = vld [vmem:[#allocation3_spill] sm:$0xff] }
 0x1cb   :  { %v9958_v12 = vadd.f32 %v1902_v23, %v1709_v27  ;;  %v1711_v4 = vpop.f32.mrf.mxu0  ;;  %2846 = vmatprep.mubr.bf16.mxu1 %v8215_v37 }
 0x1cc   :  { %v1904_v7 = vpop.f32.mrf.mxu1  ;;  %v2109_v4 = vld [vmem:[%s12193_s0 + $0x5e0] sm:$0xff] }
 0x1cd   :  { %v1712_v51 = vpop.f32.mrf.mxu0  ;;  %v2111_v7 = vld [vmem:[%s12193_s0 + $0x6e0] sm:$0xff] }
 0x1ce   :  { %v1905_v25 = vpop.f32.mrf.mxu1 }
 0x1cf   :  { %v9971_v24 = vadd.f32 %v1905_v25, %v1712_v51  ;;  %v1714_v32 = vpop.f32.mrf.mxu0  ;;  %v2112_v25 = vld [vmem:[%s12193_s0 + $0x6e8] sm:$0xff] }
 0x1d0   :  { %v1907_v40 = vpop.f32.mrf.mxu1 }
 0x1d1   :  { %v1717_v37 = vpop.f32.mrf.mxu0  ;;  %2654 = vmatmul.mubr.bf16.gmra.mxu0 %v8210_v14  ;;  %v2110_v14 = vld [vmem:[%s12193_s0 + $0x5e8] sm:$0xff] }
 0x1d2   :  { %v1910_v63 = vpop.f32.mrf.mxu1  ;;  %2847 = vmatmul.mubr.bf16.gmra.mxu1 %v8213_v18  ;;  %2661 = vmatprep.mubr.bf16.mxu0 %v8218_v35  ;;  %v12293_v18 = vld [vmem:[#allocation4_spill] sm:$0xff]  ;;  %v7175_v62 = vcombine.high %v2110_v14, %v2112_v25 }
 0x1d3   :  { %v9978_v27 = vadd.f32 %v1910_v63, %v1717_v37  ;;  %v1719_v23 = vpop.f32.mrf.mxu0  ;;  %2854 = vmatprep.mubr.bf16.mxu1 %v8221_v22  ;;  %v8216_v22 = vld [vmem:[%s12193_s0 + $0x5c0] ss:$16 sps:$4 sm:$0xff]   ;;  %v8219_v37 = vld [vmem:[%s12193_s0 + $0x5c8] ss:$16 sps:$4 sm:$0xff]   ;;  %v7173_v63 = vcombine.high %v2109_v4, %v2111_v7 }
 0x1d4   :  { %v1912_v51 = vpop.f32.mrf.mxu1 }
 0x1d5   :  { %v1720_v32 = vpop.f32.mrf.mxu0 }
 0x1d6   :  { %v1913_v40 = vpop.f32.mrf.mxu1 }
 0x1d7   :  { %v10000_v23 = vadd.f32 %v1913_v40, %v1720_v32  ;;  %v1722_v51 = vpop.f32.mrf.mxu0 }
 0x1d8   :  { %v1915_v49 = vpop.f32.mrf.mxu1  ;;  %v7172_v51 = vcombine.low %v2109_v4, %v2111_v7 }
 0x1d9   :  { %v1725_v35 = vpop.f32.mrf.mxu0  ;;  %2662 = vmatmul.mubr.bf16.gmra.mxu0 %v8216_v22  ;;  %v7174_v49 = vcombine.low %v2110_v14, %v2112_v25 }
 0x1da   :  { %v1918_v55 = vpop.f32.mrf.mxu1  ;;  %2855 = vmatmul.mubr.bf16.gmra.mxu1 %v8219_v37  ;;  %2669 = vmatprep.mubr.bf16.mxu0 %v7173_v63 }
 0x1db   :  { %v10004_v59 = vadd.f32 %v1918_v55, %v1725_v35  ;;  %v1727_v60 = vpop.f32.mrf.mxu0  ;;  %2862 = vmatprep.mubr.bf16.mxu1 %v7175_v62 }
 0x1dc   :  { %v1920_v31 = vpop.f32.mrf.mxu1  ;;  %v8227_v60 = vld [vmem:[%s12193_s0 + $0x6fc] ss:$16 sps:$4 sm:$0xff]  }
 0x1dd   :  { %12295 = vst [vmem:[#allocation2_spill] sm:$0xff] %v10004_v59  ;;  %v1728_v40 = vpop.f32.mrf.mxu0 }
 0x1de   :  { %v1921_v8 = vpop.f32.mrf.mxu1 }
 0x1df   :  { %v10011_v22 = vadd.f32 %v1921_v8, %v1728_v40  ;;  %v1730_v37 = vpop.f32.mrf.mxu0 }
 0x1e0   :  { %v1923_v55 = vpop.f32.mrf.mxu1  ;;  %v8222_v37 = vld [vmem:[%s12193_s0 + $0x6f0] ss:$16 sps:$4 sm:$0xff]  }
 0x1e1   :  { %12297 = vst [vmem:[#allocation3_spill] sm:$0xff] %v10011_v22  ;;  %v1733_v35 = vpop.f32.mrf.mxu0  ;;  %2670 = vmatmul.mubr.bf16.gmra.mxu0 %v7172_v51  ;;  %v8225_v51 = vld [vmem:[%s12193_s0 + $0x6f8] ss:$16 sps:$4 sm:$0xff]  }
 0x1e2   :  { %v1926_v4 = vpop.f32.mrf.mxu1  ;;  %2863 = vmatmul.mubr.bf16.gmra.mxu1 %v7174_v49  ;;  %2677 = vmatprep.mubr.bf16.mxu0 %v8224_v21  ;;  %v8230_v21 = vld [vmem:[%s12193_s0 + $0x714] ss:$16 sps:$4 sm:$0xff]  }
 0x1e3   :  { %v10018_v7 = vadd.f32 %v1926_v4, %v1733_v35  ;;  %v1735_v14 = vpop.f32.mrf.mxu0  ;;  %2870 = vmatprep.mubr.bf16.mxu1 %v8227_v60  ;;  %v8233_v35 = vld [vmem:[%s12193_s0 + $0x71c] ss:$16 sps:$4 sm:$0xff]  }
 0x1e4   :  { %v1928_v8 = vpop.f32.mrf.mxu1 }
 0x1e5   :  { %12299 = vst [vmem:[#allocation4_spill] sm:$0xff] %v10018_v7  ;;  %v1736_v40 = vpop.f32.mrf.mxu0 }
 0x1e6   :  { %v1929_v55 = vpop.f32.mrf.mxu1 }
 0x1e7   :  { %v10031_v49 = vadd.f32 %v1929_v55, %v1736_v40  ;;  %v1738_v60 = vpop.f32.mrf.mxu0 }
 0x1e8   :  { %v1931_v4 = vpop.f32.mrf.mxu1 }
 0x1e9   :  { %12301 = vst [vmem:[#allocation5_spill] sm:$0xff] %v10031_v49  ;;  %v1741_v63 = vpop.f32.mrf.mxu0  ;;  %2678 = vmatmul.mubr.bf16.gmra.mxu0 %v8222_v37  ;;  %v8228_v4 = vld [vmem:[%s12193_s0 + $0x710] ss:$16 sps:$4 sm:$0xff]   ;;  %v8231_v37 = vld [vmem:[%s12193_s0 + $0x718] ss:$16 sps:$4 sm:$0xff]  }
 0x1ea   :  { %v1934_v62 = vpop.f32.mrf.mxu1  ;;  %2871 = vmatmul.mubr.bf16.gmra.mxu1 %v8225_v51  ;;  %2685 = vmatprep.mubr.bf16.mxu0 %v8230_v21  ;;  %v8239_v51 = vld [vmem:[%s12193_s0 + $0x82c] ss:$16 sps:$4 sm:$0xff]  }
 0x1eb   :  { %v10038_v32 = vadd.f32 %v1934_v62, %v1741_v63  ;;  %v1743_v61 = vpop.f32.mrf.mxu0  ;;  %2878 = vmatprep.mubr.bf16.mxu1 %v8233_v35  ;;  %v8236_v62 = vld [vmem:[%s12193_s0 + $0x824] ss:$16 sps:$4 sm:$0xff]  }
 0x1ec   :  { %v1936_v40 = vpop.f32.mrf.mxu1  ;;  %v8248_v35 = vld [vmem:[%s12193_s0 + $0x974] ss:$16 sps:$4 sm:$0xff]  }
 0x1ed   :  { %12303 = vst [vmem:[#allocation6_spill] sm:$0xff] %v10038_v32  ;;  %v1744_v43 = vpop.f32.mrf.mxu0 }
 0x1ee   :  { %v1937_v7 = vpop.f32.mrf.mxu1 }
 0x1ef   :  { %v10051_v61 = vadd.f32 %v1937_v7, %v1744_v43  ;;  %v1746_v63 = vpop.f32.mrf.mxu0 }
 0x1f0   :  { %v1939_v21 = vpop.f32.mrf.mxu1 }
 0x1f1   :  { %12305 = vst [vmem:[#allocation32_spill] sm:$0xff] %v10051_v61  ;;  %v1749_v60 = vpop.f32.mrf.mxu0  ;;  %2686 = vmatmul.mubr.bf16.gmra.mxu0 %v8228_v4  ;;  %v8234_v21 = vld [vmem:[%s12193_s0 + $0x820] ss:$16 sps:$4 sm:$0xff]   ;;  %v8237_v4 = vld [vmem:[%s12193_s0 + $0x828] ss:$16 sps:$4 sm:$0xff]  }
 0x1f2   :  { %v1942_v8 = vpop.f32.mrf.mxu1  ;;  %2879 = vmatmul.mubr.bf16.gmra.mxu1 %v8231_v37  ;;  %2693 = vmatprep.mubr.bf16.mxu0 %v8236_v62  ;;  %v8245_v37 = vld [vmem:[%s12193_s0 + $0x84c] ss:$16 sps:$4 sm:$0xff]  }
 0x1f3   :  { %v10058_v32 = vadd.f32 %v1942_v8, %v1749_v60  ;;  %v1751_v55 = vpop.f32.mrf.mxu0  ;;  %2886 = vmatprep.mubr.bf16.mxu1 %v8239_v51  ;;  %v8242_v8 = vld [vmem:[%s12193_s0 + $0x844] ss:$16 sps:$4 sm:$0xff]  }
 0x1f4   :  { %v1944_v43 = vpop.f32.mrf.mxu1 }
 0x1f5   :  { %12307 = vst [vmem:[#allocation33_spill] sm:$0xff] %v10058_v32  ;;  %v1752_v49 = vpop.f32.mrf.mxu0 }
 0x1f6   :  { %v1945_v14 = vpop.f32.mrf.mxu1 }
 0x1f7   :  { %v10071_v55 = vadd.f32 %v1945_v14, %v1752_v49  ;;  %v1754_v60 = vpop.f32.mrf.mxu0  ;;  %v2129_v49 = vld [vmem:[%s12193_s0 + $0x860] sm:$0xff] }
 0x1f8   :  { %v1947_v62 = vpop.f32.mrf.mxu1  ;;  %v2131_v14 = vld [vmem:[%s12193_s0 + $0x960] sm:$0xff] }
 0x1f9   :  { %12309 = vst [vmem:[#allocation34_spill] sm:$0xff] %v10071_v55  ;;  %v1757_v63 = vpop.f32.mrf.mxu0  ;;  %2694 = vmatmul.mubr.bf16.gmra.mxu0 %v8234_v21  ;;  %v2130_v21 = vld [vmem:[%s12193_s0 + $0x868] sm:$0xff] }
 0x1fa   :  { %v1950_v40 = vpop.f32.mrf.mxu1  ;;  %2887 = vmatmul.mubr.bf16.gmra.mxu1 %v8237_v4  ;;  %2701 = vmatprep.mubr.bf16.mxu0 %v8242_v8  ;;  %v8240_v8 = vld [vmem:[%s12193_s0 + $0x840] ss:$16 sps:$4 sm:$0xff]   ;;  %v8243_v62 = vld [vmem:[%s12193_s0 + $0x848] ss:$16 sps:$4 sm:$0xff]  }
 0x1fb   :  { %v10078_v32 = vadd.f32 %v1950_v40, %v1757_v63  ;;  %v1759_v7 = vpop.f32.mrf.mxu0  ;;  %2894 = vmatprep.mubr.bf16.mxu1 %v8245_v37  ;;  %v2132_v40 = vld [vmem:[%s12193_s0 + $0x968] sm:$0xff] }
 0x1fc   :  { %v1952_v60 = vpop.f32.mrf.mxu1  ;;  %v7195_v51 = vcombine.high %v2130_v21, %v2132_v40 }
 0x1fd   :  { %12311 = vst [vmem:[#allocation35_spill] sm:$0xff] %v10078_v32  ;;  %v1760_v4 = vpop.f32.mrf.mxu0  ;;  %v7193_v60 = vcombine.high %v2129_v49, %v2131_v14 }
 0x1fe   :  { %v1953_v37 = vpop.f32.mrf.mxu1 }
 0x1ff   :  { %v10100_v43 = vadd.f32 %v1953_v37, %v1760_v4  ;;  %v1762_v55 = vpop.f32.mrf.mxu0 }
 0x200   :  { %v1955_v61 = vpop.f32.mrf.mxu1  ;;  %v7192_v55 = vcombine.low %v2129_v49, %v2131_v14 }
 0x201   :  { %12313 = vst [vmem:[#allocation36_spill] sm:$0xff] %v10100_v43  ;;  %v1765_v63 = vpop.f32.mrf.mxu0  ;;  %2702 = vmatmul.mubr.bf16.gmra.mxu0 %v8240_v8  ;;  %v7194_v61 = vcombine.low %v2130_v21, %v2132_v40 }
 0x202   :  { %v1958_v32 = vpop.f32.mrf.mxu1  ;;  %2895 = vmatmul.mubr.bf16.gmra.mxu1 %v8243_v62  ;;  %2709 = vmatprep.mubr.bf16.mxu0 %v7193_v60  ;;  %v8246_v60 = vld [vmem:[%s12193_s0 + $0x970] ss:$16 sps:$4 sm:$0xff]  }
 0x203   :  { %v10104_v7 = vadd.f32 %v1958_v32, %v1765_v63  ;;  %v1767_v25 = vpop.f32.mrf.mxu0  ;;  %2902 = vmatprep.mubr.bf16.mxu1 %v7195_v51  ;;  %v8251_v32 = vld [vmem:[%s12193_s0 + $0x97c] ss:$16 sps:$4 sm:$0xff]  }
 0x204   :  { %v1960_v22 = vpop.f32.mrf.mxu1 }
 0x205   :  { %12314 = vst [vmem:[#allocation37_spill] sm:$0xff] %v10104_v7  ;;  %v1768_v37 = vpop.f32.mrf.mxu0 }
 0x206   :  { %v1961_v31 = vpop.f32.mrf.mxu1 }
 0x207   :  { %v10111_v8 = vadd.f32 %v1961_v31, %v1768_v37  ;;  %v1770_v62 = vpop.f32.mrf.mxu0 }
 0x208   :  { %v1963_v25 = vpop.f32.mrf.mxu1 }
 0x209   :  { %12315 = vst [vmem:[#allocation38_spill] sm:$0xff] %v10111_v8  ;;  %v1773_v51 = vpop.f32.mrf.mxu0  ;;  %2710 = vmatmul.mubr.bf16.gmra.mxu0 %v7192_v55  ;;  %v8249_v55 = vld [vmem:[%s12193_s0 + $0x978] ss:$16 sps:$4 sm:$0xff]  }
 0x20a   :  { %v1966_v49 = vpop.f32.mrf.mxu1  ;;  %2903 = vmatmul.mubr.bf16.gmra.mxu1 %v7194_v61  ;;  %2717 = vmatprep.mubr.bf16.mxu0 %v8248_v35  ;;  %v8254_v35 = vld [vmem:[%s12193_s0 + $0x994] ss:$16 sps:$4 sm:$0xff]  }
 0x20b   :  { %v10118_v14 = vadd.f32 %v1966_v49, %v1773_v51  ;;  %v1775_v21 = vpop.f32.mrf.mxu0  ;;  %2910 = vmatprep.mubr.bf16.mxu1 %v8251_v32  ;;  %v8257_v32 = vld [vmem:[%s12193_s0 + $0x99c] ss:$16 sps:$4 sm:$0xff]  }
 0x20c   :  { %v1968_v31 = vpop.f32.mrf.mxu1 }
 0x20d   :  { %12316 = vst [vmem:[#allocation39_spill] sm:$0xff] %v10118_v14  ;;  %v1776_v63 = vpop.f32.mrf.mxu0 }
 0x20e   :  { %v1969_v37 = vpop.f32.mrf.mxu1 }
 0x20f   :  { %v10131_v61 = vadd.f32 %v1969_v37, %v1776_v63  ;;  %v1778_v62 = vpop.f32.mrf.mxu0 }
 0x210   :  { %v1971_v25 = vpop.f32.mrf.mxu1 }
 0x211   :  { %12317 = vst [vmem:[#allocation40_spill] sm:$0xff] %v10131_v61  ;;  %v1781_v49 = vpop.f32.mrf.mxu0  ;;  %2718 = vmatmul.mubr.bf16.gmra.mxu0 %v8246_v60  ;;  %v8252_v25 = vld [vmem:[%s12193_s0 + $0x990] ss:$16 sps:$4 sm:$0xff]   ;;  %v8255_v60 = vld [vmem:[%s12193_s0 + $0x998] ss:$16 sps:$4 sm:$0xff]  }
 0x212   :  { %v1974_v21 = vpop.f32.mrf.mxu1  ;;  %2911 = vmatmul.mubr.bf16.gmra.mxu1 %v8249_v55  ;;  %2725 = vmatprep.mubr.bf16.mxu0 %v8254_v35  ;;  %v8260_v55 = vld [vmem:[%s12193_s0 + $0xf4] ss:$16 sps:$4 sm:$0xff]  }
 0x213   :  { %v10138_v31 = vadd.f32 %v1974_v21, %v1781_v49  ;;  %v1783_v40 = vpop.f32.mrf.mxu0  ;;  %2918 = vmatprep.mubr.bf16.mxu1 %v8257_v32  ;;  %v8263_v32 = vld [vmem:[%s12193_s0 + $0xfc] ss:$16 sps:$4 sm:$0xff]  }
 0x214   :  { %v1976_v63 = vpop.f32.mrf.mxu1 }
 0x215   :  { %12318 = vst [vmem:[#allocation41_spill] sm:$0xff] %v10138_v31  ;;  %v1784_v62 = vpop.f32.mrf.mxu0 }
 0x216   :  { %v1977_v22 = vpop.f32.mrf.mxu1 }
 0x217   :  { %v10151_v40 = vadd.f32 %v1977_v22, %v1784_v62  ;;  %v1786_v35 = vpop.f32.mrf.mxu0 }
 0x218   :  { %v1979_v49 = vpop.f32.mrf.mxu1 }
 0x219   :  { %12319 = vst [vmem:[#allocation42_spill] sm:$0xff] %v10151_v40  ;;  %v1789_v63 = vpop.f32.mrf.mxu0  ;;  %2726 = vmatmul.mubr.bf16.gmra.mxu0 %v8252_v25  ;;  %v8258_v49 = vld [vmem:[%s12193_s0 + $0xf0] ss:$16 sps:$4 sm:$0xff]   ;;  %v8261_v25 = vld [vmem:[%s12193_s0 + $0xf8] ss:$16 sps:$4 sm:$0xff]  }
 0x21a   :  { %v1982_v37 = vpop.f32.mrf.mxu1  ;;  %2919 = vmatmul.mubr.bf16.gmra.mxu1 %v8255_v60  ;;  %3439 = vmatprep.mubr.bf16.mxu0 %v8260_v55  ;;  %v8269_v55 = vld [vmem:[%s12193_s0 + $0x11c] ss:$16 sps:$4 sm:$0xff]  }
 0x21b   :  { %v10158_v51 = vadd.f32 %v1982_v37, %v1789_v63  ;;  %v1791_v4 = vpop.f32.mrf.mxu0  ;;  %3632 = vmatprep.mubr.bf16.mxu1 %v8263_v32  ;;  %v8266_v37 = vld [vmem:[%s12193_s0 + $0x114] ss:$16 sps:$4 sm:$0xff]  }
 0x21c   :  { %v1984_v22 = vpop.f32.mrf.mxu1 }
 0x21d   :  { %12320 = vst [vmem:[#allocation43_spill] sm:$0xff] %v10158_v51  ;;  %v1792_v31 = vpop.f32.mrf.mxu0 }
 0x21e   :  { %v1985_v50 = vpop.f32.mrf.mxu1 }
 0x21f   :  { %v10171_v4 = vadd.f32 %v1985_v50, %v1792_v31  ;;  %v1794_v60 = vpop.f32.mrf.mxu0  ;;  %v2935_v50 = vld [vmem:[%s12193_s0 + $0x130] sm:$0xff] }
 0x220   :  { %v1987_v32 = vpop.f32.mrf.mxu1  ;;  %v2937_v31 = vld [vmem:[%s12193_s0 + $0x230] sm:$0xff] }
 0x221   :  { %12322 = vst [vmem:[#allocation44_spill] sm:$0xff] %v10171_v4  ;;  %v1797_v35 = vpop.f32.mrf.mxu0  ;;  %3440 = vmatmul.mubr.bf16.vlgmr.msra.gmra.mxu0 %v8258_v49  ;;  %v2936_v49 = vld [vmem:[%s12193_s0 + $0x138] sm:$0xff] }
 0x222   :  { %v1990_v21 = vpop.f32.mrf.mxu1  ;;  %3633 = vmatmul.mubr.bf16.vlgmr.msra.gmra.mxu1 %v8261_v25  ;;  %3447 = vmatprep.mubr.bf16.mxu0 %v8266_v37  ;;  %v8264_v37 = vld [vmem:[%s12193_s0 + $0x110] ss:$16 sps:$4 sm:$0xff]   ;;  %v8267_v32 = vld [vmem:[%s12193_s0 + $0x118] ss:$16 sps:$4 sm:$0xff]  }
 0x223   :  { %v10178_v51 = vadd.f32 %v1990_v21, %v1797_v35  ;;  %v1799_v62 = vpop.f32.mrf.mxu0  ;;  %3640 = vmatprep.mubr.bf16.mxu1 %v8269_v55  ;;  %v2938_v21 = vld [vmem:[%s12193_s0 + $0x238] sm:$0xff] }
 0x224   :  { %v1992_v60 = vpop.f32.mrf.mxu1  ;;  %v7215_v63 = vcombine.high %v2936_v49, %v2938_v21 }
 0x225   :  { %12324 = vst [vmem:[#allocation45_spill] sm:$0xff] %v10178_v51  ;;  %v1800_v25 = vpop.f32.mrf.mxu0  ;;  %v7213_v60 = vcombine.high %v2935_v50, %v2937_v31 }
 0x226   :  { %v1993_v55 = vpop.f32.mrf.mxu1 }
 0x227   :  { %v10200_v22 = vadd.f32 %v1993_v55, %v1800_v25  ;;  %v1802_v4 = vpop.f32.mrf.mxu0 }
 0x228   :  { %v1995_v40 = vpop.f32.mrf.mxu1  ;;  %v7212_v4 = vcombine.low %v2935_v50, %v2937_v31 }
 0x229   :  { %12326 = vst [vmem:[#allocation46_spill] sm:$0xff] %v10200_v22  ;;  %v1805_v35 = vpop.f32.mrf.mxu0  ;;  %3448 = vmatmul.mubr.bf16.gmra.mxu0 %v8264_v37  ;;  %v7214_v40 = vcombine.low %v2936_v49, %v2938_v21  ;;  %v8315_v22 = vld [vmem:[%s12193_s0 + $0x618] ss:$16 sps:$4 sm:$0xff]  }
 0x22a   :  { %v1998_v51 = vpop.f32.mrf.mxu1  ;;  %3641 = vmatmul.mubr.bf16.gmra.mxu1 %v8267_v32  ;;  %3455 = vmatprep.mubr.bf16.mxu0 %v7213_v60  ;;  %v8270_v60 = vld [vmem:[%s12193_s0 + $0x240] ss:$16 sps:$4 sm:$0xff]  }
 0x22b   :  { %v10204_v62 = vadd.f32 %v1998_v51, %v1805_v35  ;;  %v1807_v61 = vpop.f32.mrf.mxu0  ;;  %3648 = vmatprep.mubr.bf16.mxu1 %v7215_v63 }
 0x22c   :  { %v2000_v15 = vpop.f32.mrf.mxu1  ;;  %v8275_v61 = vld [vmem:[%s12193_s0 + $0x24c] ss:$16 sps:$4 sm:$0xff]  }
 0x22d   :  { %12327 = vst [vmem:[#allocation47_spill] sm:$0xff] %v10204_v62  ;;  %v1808_v55 = vpop.f32.mrf.mxu0 }
 0x22e   :  { %v2001_v14 = vpop.f32.mrf.mxu1 }
 0x22f   :  { %v10211_v37 = vadd.f32 %v2001_v14, %v1808_v55  ;;  %v1810_v32 = vpop.f32.mrf.mxu0 }
 0x230   :  { %v2003_v51 = vpop.f32.mrf.mxu1 }
 0x231   :  { %12328 = vst [vmem:[#allocation48_spill] sm:$0xff] %v10211_v37  ;;  %v1813_v63 = vpop.f32.mrf.mxu0  ;;  %3456 = vmatmul.mubr.bf16.gmra.mxu0 %v7212_v4  ;;  %v8273_v4 = vld [vmem:[%s12193_s0 + $0x248] ss:$16 sps:$4 sm:$0xff]  }
 0x232   :  { %v2006_v50 = vpop.f32.mrf.mxu1  ;;  %3649 = vmatmul.mubr.bf16.gmra.mxu1 %v7214_v40  ;;  %3463 = vmatprep.mubr.bf16.mxu0 %v8272_v52  ;;  %v8278_v52 = vld [vmem:[%s12193_s0 + $0x264] ss:$16 sps:$4 sm:$0xff]  }
 0x233   :  { %v10218_v31 = vadd.f32 %v2006_v50, %v1813_v63  ;;  %v1815_v49 = vpop.f32.mrf.mxu0  ;;  %3656 = vmatprep.mubr.bf16.mxu1 %v8275_v61  ;;  %v8281_v61 = vld [vmem:[%s12193_s0 + $0x26c] ss:$16 sps:$4 sm:$0xff]  }
 0x234   :  { %v2008_v14 = vpop.f32.mrf.mxu1 }
 0x235   :  { %12329 = vst [vmem:[#allocation49_spill] sm:$0xff] %v10218_v31  ;;  %v1816_v35 = vpop.f32.mrf.mxu0 }
 0x236   :  { %v2009_v55 = vpop.f32.mrf.mxu1 }
 0x237   :  { %v10231_v40 = vadd.f32 %v2009_v55, %v1816_v35  ;;  %v1818_v32 = vpop.f32.mrf.mxu0 }
 0x238   :  { %v2011_v51 = vpop.f32.mrf.mxu1 }
 0x239   :  { %12330 = vst [vmem:[#allocation50_spill] sm:$0xff] %v10231_v40  ;;  %v1821_v50 = vpop.f32.mrf.mxu0  ;;  %3464 = vmatmul.mubr.bf16.gmra.mxu0 %v8270_v60  ;;  %v8276_v51 = vld [vmem:[%s12193_s0 + $0x260] ss:$16 sps:$4 sm:$0xff]   ;;  %v8279_v60 = vld [vmem:[%s12193_s0 + $0x268] ss:$16 sps:$4 sm:$0xff]  }
 0x23a   :  { %v2014_v49 = vpop.f32.mrf.mxu1  ;;  %3657 = vmatmul.mubr.bf16.gmra.mxu1 %v8273_v4  ;;  %3471 = vmatprep.mubr.bf16.mxu0 %v8278_v52  ;;  %v8284_v4 = vld [vmem:[%s12193_s0 + $0x374] ss:$16 sps:$4 sm:$0xff]  }
 0x23b   :  { %v10238_v14 = vadd.f32 %v2014_v49, %v1821_v50  ;;  %v1823_v21 = vpop.f32.mrf.mxu0  ;;  %3664 = vmatprep.mubr.bf16.mxu1 %v8281_v61  ;;  %v8287_v61 = vld [vmem:[%s12193_s0 + $0x37c] ss:$16 sps:$4 sm:$0xff]  }
 0x23c   :  { %v2016_v35 = vpop.f32.mrf.mxu1 }
 0x23d   :  { %12331 = vst [vmem:[#allocation51_spill] sm:$0xff] %v10238_v14  ;;  %v1824_v32 = vpop.f32.mrf.mxu0 }
 0x23e   :  { %v2017_v15 = vpop.f32.mrf.mxu1 }
 0x23f   :  { %v10251_v21 = vadd.f32 %v2017_v15, %v1824_v32  ;;  %v1826_v52 = vpop.f32.mrf.mxu0 }
 0x240   :  { %v2019_v50 = vpop.f32.mrf.mxu1  ;;  %v8282_v52 = vld [vmem:[%s12193_s0 + $0x370] ss:$16 sps:$4 sm:$0xff]  }
 0x241   :  { %12332 = vst [vmem:[#allocation52_spill] sm:$0xff] %v10251_v21  ;;  %v2575_v35 = vpop.f32.mrf.mxu0  ;;  %3472 = vmatmul.mubr.bf16.gmra.mxu0 %v8276_v51  ;;  %v8285_v50 = vld [vmem:[%s12193_s0 + $0x378] ss:$16 sps:$4 sm:$0xff]   ;;  %v8290_v51 = vld [vmem:[%s12193_s0 + $0x394] ss:$16 sps:$4 sm:$0xff]  }
 0x242   :  { %v2768_v55 = vpop.f32.mrf.mxu1  ;;  %3665 = vmatmul.mubr.bf16.gmra.mxu1 %v8279_v60  ;;  %3479 = vmatprep.mubr.bf16.mxu0 %v8284_v4 }
 0x243   :  { %v10258_v63 = vadd.f32 %v2768_v55, %v2575_v35  ;;  %v2577_v25 = vpop.f32.mrf.mxu0  ;;  %3672 = vmatprep.mubr.bf16.mxu1 %v8287_v61 }
 0x244   :  { %v2770_v15 = vpop.f32.mrf.mxu1  ;;  %v8293_v25 = vld [vmem:[%s12193_s0 + $0x39c] ss:$16 sps:$4 sm:$0xff]  }
 0x245   :  { %v2578_v32 = vpop.f32.mrf.mxu0 }
 0x246   :  { %v2771_v14 = vpop.f32.mrf.mxu1 }
 0x247   :  { %v10269_v60 = vadd.f32 %v2771_v14, %v2578_v32  ;;  %v2580_v55 = vpop.f32.mrf.mxu0  ;;  %v2955_v14 = vld [vmem:[%s12193_s0 + $0x3b0] sm:$0xff] }
 0x248   :  { %v2773_v4 = vpop.f32.mrf.mxu1  ;;  %v2957_v32 = vld [vmem:[%s12193_s0 + $0x4b0] sm:$0xff] }
 0x249   :  { %v2583_v61 = vpop.f32.mrf.mxu0  ;;  %3480 = vmatmul.mubr.bf16.gmra.mxu0 %v8282_v52  ;;  %v2956_v52 = vld [vmem:[%s12193_s0 + $0x3b8] sm:$0xff]  ;;  %v7232_v11 = vcombine.low %v2955_v14, %v2957_v32 }
 0x24a   :  { %v2776_v35 = vpop.f32.mrf.mxu1  ;;  %3673 = vmatmul.mubr.bf16.gmra.mxu1 %v8285_v50  ;;  %3487 = vmatprep.mubr.bf16.mxu0 %v8290_v51  ;;  %v2958_v50 = vld [vmem:[%s12193_s0 + $0x4b8] sm:$0xff] }
 0x24b   :  { %v10274_v15 = vadd.f32 %v2776_v35, %v2583_v61  ;;  %v2585_v49 = vpop.f32.mrf.mxu0  ;;  %3680 = vmatprep.mubr.bf16.mxu1 %v8293_v25  ;;  %v8291_v4 = vld [vmem:[%s12193_s0 + $0x398] ss:$16 sps:$4 sm:$0xff]   ;;  %v7233_v61 = vcombine.high %v2955_v14, %v2957_v32  ;;  %v7235_v21 = vcombine.high %v2956_v52, %v2958_v50  ;;  %v7234_v3 = vcombine.low %v2956_v52, %v2958_v50 }
 0x24c   :  { %v2778_v55 = vpop.f32.mrf.mxu1  ;;  %v8288_v49 = vld [vmem:[%s12193_s0 + $0x390] ss:$16 sps:$4 sm:$0xff]   ;;  %v8297_v52 = vld [vmem:[%s12193_s0 + $0x4c8] ss:$16 sps:$4 sm:$0xff]  }
 0x24d   :  { %v2586_v51 = vpop.f32.mrf.mxu0 }
 0x24e   :  { %v2779_v25 = vpop.f32.mrf.mxu1 }
 0x24f   :  { %v10294_v35 = vadd.f32 %v2779_v25, %v2586_v51  ;;  %v2588_v55 = vpop.f32.mrf.mxu0  ;;  %v8296_v51 = vld [vmem:[%s12193_s0 + $0x4c4] ss:$16 sps:$4 sm:$0xff]  }
 0x250   :  { %v2781_v45 = vpop.f32.mrf.mxu1 }
 0x251   :  { %v2591_v33 = vpop.f32.mrf.mxu0  ;;  %3488 = vmatmul.mubr.bf16.gmra.mxu0 %v8288_v49  ;;  %v8299_v49 = vld [vmem:[%s12193_s0 + $0x4cc] ss:$16 sps:$4 sm:$0xff]  }
 0x252   :  { %v2784_v40 = vpop.f32.mrf.mxu1  ;;  %3681 = vmatmul.mubr.bf16.gmra.mxu1 %v8291_v4  ;;  %3495 = vmatprep.mubr.bf16.mxu0 %v7233_v61  ;;  %v8305_v4 = vld [vmem:[%s12193_s0 + $0x4ec] ss:$16 sps:$4 sm:$0xff]  }
 0x253   :  { %v10296_v17 = vadd.f32 %v2784_v40, %v2591_v33  ;;  %v2593_v31 = vpop.f32.mrf.mxu0  ;;  %3688 = vmatprep.mubr.bf16.mxu1 %v7235_v21 }
 0x254   :  { %v2786_v9 = vpop.f32.mrf.mxu1 }
 0x255   :  { %v2594_v37 = vpop.f32.mrf.mxu0 }
 0x256   :  { %v2787_v62 = vpop.f32.mrf.mxu1 }
 0x257   :  { %v10301_v25 = vadd.f32 %v2787_v62, %v2594_v37  ;;  %v2596_v45 = vpop.f32.mrf.mxu0  ;;  %v8294_v62 = vld [vmem:[%s12193_s0 + $0x4c0] ss:$16 sps:$4 sm:$0xff]  }
 0x258   :  { %v2789_v33 = vpop.f32.mrf.mxu1 }
 0x259   :  { %v2599_v40 = vpop.f32.mrf.mxu0  ;;  %3496 = vmatmul.mubr.bf16.gmra.mxu0 %v7232_v11 }
 0x25a   :  { %v2792_v31 = vpop.f32.mrf.mxu1  ;;  %3689 = vmatmul.mubr.bf16.gmra.mxu1 %v7234_v3  ;;  %3503 = vmatprep.mubr.bf16.mxu0 %v8296_v51  ;;  %v8302_v3 = vld [vmem:[%s12193_s0 + $0x4e4] ss:$16 sps:$4 sm:$0xff]  }
 0x25b   :  { %v10306_v9 = vadd.f32 %v2792_v31, %v2599_v40  ;;  %v2601_v21 = vpop.f32.mrf.mxu0  ;;  %3696 = vmatprep.mubr.bf16.mxu1 %v8299_v49  ;;  %v8300_v31 = vld [vmem:[%s12193_s0 + $0x4e0] ss:$16 sps:$4 sm:$0xff]  }
 0x25c   :  { %v2794_v14 = vpop.f32.mrf.mxu1 }
 0x25d   :  { %v2602_v32 = vpop.f32.mrf.mxu0  ;;  %v8303_v14 = vld [vmem:[%s12193_s0 + $0x4e8] ss:$16 sps:$4 sm:$0xff]  }
 0x25e   :  { %v2795_v37 = vpop.f32.mrf.mxu1 }
 0x25f   :  { %v10317_v11 = vadd.f32 %v2795_v37, %v2602_v32  ;;  %v2604_v50 = vpop.f32.mrf.mxu0  ;;  %v8308_v32 = vld [vmem:[%s12193_s0 + $0x5f4] ss:$16 sps:$4 sm:$0xff]  }
 0x260   :  { %v2797_v61 = vpop.f32.mrf.mxu1 }
 0x261   :  { %v2607_v55 = vpop.f32.mrf.mxu0  ;;  %3504 = vmatmul.mubr.bf16.gmra.mxu0 %v8294_v62 }
 0x262   :  { %v2800_v51 = vpop.f32.mrf.mxu1  ;;  %3697 = vmatmul.mubr.bf16.gmra.mxu1 %v8297_v52  ;;  %3511 = vmatprep.mubr.bf16.mxu0 %v8302_v3  ;;  %v8311_v52 = vld [vmem:[%s12193_s0 + $0x5fc] ss:$16 sps:$4 sm:$0xff]  }
 0x263   :  { %v10322_v45 = vadd.f32 %v2800_v51, %v2607_v55  ;;  %v2609_v49 = vpop.f32.mrf.mxu0  ;;  %3704 = vmatprep.mubr.bf16.mxu1 %v8305_v4 }
 0x264   :  { %v2802_v33 = vpop.f32.mrf.mxu1 }
 0x265   :  { %v2610_v40 = vpop.f32.mrf.mxu0  ;;  %v8306_v33 = vld [vmem:[%s12193_s0 + $0x5f0] ss:$16 sps:$4 sm:$0xff]  }
 0x266   :  { %v2803_v21 = vpop.f32.mrf.mxu1 }
 0x267   :  { %v10333_v62 = vadd.f32 %v2803_v21, %v2610_v40  ;;  %v2612_v37 = vpop.f32.mrf.mxu0  ;;  %v8309_v21 = vld [vmem:[%s12193_s0 + $0x5f8] ss:$16 sps:$4 sm:$0xff]  }
 0x268   :  { %v2805_v3 = vpop.f32.mrf.mxu1  ;;  %v8317_v37 = vld [vmem:[%s12193_s0 + $0x61c] ss:$16 sps:$4 sm:$0xff]  }
 0x269   :  { %v2615_v50 = vpop.f32.mrf.mxu0  ;;  %3512 = vmatmul.mubr.bf16.gmra.mxu0 %v8300_v31  ;;  %v8314_v31 = vld [vmem:[%s12193_s0 + $0x614] ss:$16 sps:$4 sm:$0xff]  }
 0x26a   :  { %v2808_v4 = vpop.f32.mrf.mxu1  ;;  %3705 = vmatmul.mubr.bf16.gmra.mxu1 %v8303_v14  ;;  %3519 = vmatprep.mubr.bf16.mxu0 %v8308_v32 }
 0x26b   :  { %v10338_v61 = vadd.f32 %v2808_v4, %v2615_v50  ;;  %v2617_v55 = vpop.f32.mrf.mxu0  ;;  %3712 = vmatprep.mubr.bf16.mxu1 %v8311_v52  ;;  %v2975_v50 = vld [vmem:[%s12193_s0 + $0x630] sm:$0xff] }
 0x26c   :  { %v2810_v51 = vpop.f32.mrf.mxu1  ;;  %v2977_v4 = vld [vmem:[%s12193_s0 + $0x730] sm:$0xff] }
 0x26d   :  { %v2618_v49 = vpop.f32.mrf.mxu0  ;;  %v2976_v51 = vld [vmem:[%s12193_s0 + $0x638] sm:$0xff] }
 0x26e   :  { %v2811_v40 = vpop.f32.mrf.mxu1 }
 0x26f   :  { %v10349_v14 = vadd.f32 %v2811_v40, %v2618_v49  ;;  %v2620_v32 = vpop.f32.mrf.mxu0  ;;  %v2978_v49 = vld [vmem:[%s12193_s0 + $0x738] sm:$0xff] }
 0x270   :  { %v2813_v52 = vpop.f32.mrf.mxu1  ;;  %v7255_v8 = vcombine.high %v2976_v51, %v2978_v49 }
 0x271   :  { %v2623_v3 = vpop.f32.mrf.mxu0  ;;  %3520 = vmatmul.mubr.bf16.gmra.mxu0 %v8306_v33  ;;  %v8354_v33 = vld [vmem:[%s12194_s3 + $0x78] sm:$0xff]  }
 0x272   :  { %v2816_v55 = vpop.f32.mrf.mxu1  ;;  %3713 = vmatmul.mubr.bf16.gmra.mxu1 %v8309_v21  ;;  %3527 = vmatprep.mubr.bf16.mxu0 %v8314_v31  ;;  %v8312_v21 = vld [vmem:[%s12193_s0 + $0x610] ss:$16 sps:$4 sm:$0xff]   ;;  %v8355_v31 = vld [vmem:[%s12194_s3 + $0x38] sm:$0xff]  }
 0x273   :  { %v10369_v40 = vadd.f32 %v2816_v55, %v2623_v3  ;;  %v2625_v32 = vpop.f32.mrf.mxu0  ;;  %3720 = vmatprep.mubr.bf16.mxu1 %v8317_v37  ;;  %7584 = vmatprep.subr.bf16.mxu0 %v8354_v33  ;;  %v7253_v55 = vcombine.high %v2975_v50, %v2977_v4  ;;  %v8320_v33 = vld [vmem:[%s12193_s0 + $0x744] ss:$16 sps:$4 sm:$0xff]  }
 0x274   :  { %v2818_v52 = vpop.f32.mrf.mxu1  ;;  %7585 = vmatpush3.bf16.msra.mxu0 %v8355_v31 }
 0x275   :  { %v2626_v26 = vpop.f32.mrf.mxu0 }
 0x276   :  { %v2819_v3 = vpop.f32.mrf.mxu1 }
 0x277   :  { %v10380_v32 = vadd.f32 %v2819_v3, %v2626_v26  ;;  %v2628_v54 = vpop.f32.mrf.mxu0  ;;  %v7252_v26 = vcombine.low %v2975_v50, %v2977_v4  ;;  %v8318_v50 = vld [vmem:[%s12193_s0 + $0x740] ss:$16 sps:$4 sm:$0xff]  }
 0x278   :  { %v2821_v39 = vpop.f32.mrf.mxu1 }
 0x279   :  { %v2631_v37 = vpop.f32.mrf.mxu0  ;;  %3528 = vmatmul.mubr.bf16.gmra.mxu0 %v8312_v21  ;;  %v8323_v39 = vld [vmem:[%s12193_s0 + $0x74c] ss:$16 sps:$4 sm:$0xff]   ;;  %v7254_v21 = vcombine.low %v2976_v51, %v2978_v49  ;;  %v8321_v51 = vld [vmem:[%s12193_s0 + $0x748] ss:$16 sps:$4 sm:$0xff]   ;;  %v8326_v49 = vld [vmem:[%s12193_s0 + $0x764] ss:$16 sps:$4 sm:$0xff]  }
 0x27a   :  { %v2824_v7 = vpop.f32.mrf.mxu1  ;;  %3721 = vmatmul.mubr.bf16.gmra.mxu1 %v8315_v22  ;;  %3535 = vmatprep.mubr.bf16.mxu0 %v7253_v55 }
 0x27b   :  { %v10382_v52 = vadd.f32 %v2824_v7, %v2631_v37  ;;  %v2633_v0 = vpop.f32.mrf.mxu0  ;;  %3728 = vmatprep.mubr.bf16.mxu1 %v7255_v8 }
 0x27c   :  { %v2826_v43 = vpop.f32.mrf.mxu1 }
 0x27d   :  { %v2634_v31 = vpop.f32.mrf.mxu0 }
 0x27e   :  { %v2827_v54 = vpop.f32.mrf.mxu1 }
 0x27f   :  { %v10390_v3 = vadd.f32 %v2827_v54, %v2634_v31  ;;  %v2636_v22 = vpop.f32.mrf.mxu0  ;;  %v8329_v54 = vld [vmem:[%s12193_s0 + $0x76c] ss:$16 sps:$4 sm:$0xff]  }
 0x280   :  { %v2829_v7 = vpop.f32.mrf.mxu1  ;;  %v8356_v22 = vld [vmem:[%s12194_s3 + $0x70] sm:$0xff]  }
 0x281   :  { %12333 = vst [vmem:[#allocation53_spill] sm:$0xff] %v10390_v3  ;;  %v2639_v55 = vpop.f32.mrf.mxu0  ;;  %3536 = vmatmul.mubr.bf16.gmra.mxu0 %v7252_v26  ;;  %v8357_v7 = vld [vmem:[%s12194_s3 + $0x30] sm:$0xff]   ;;  %7586 = vmatprep.subr.bf16.mxu0 %v8356_v22 }
 0x282   :  { %v2832_v0 = vpop.f32.mrf.mxu1  ;;  %3729 = vmatmul.mubr.bf16.gmra.mxu1 %v7254_v21  ;;  %3543 = vmatprep.mubr.bf16.mxu0 %v8320_v33 }
 0x283   :  { %v10392_v43 = vadd.f32 %v2832_v0, %v2639_v55  ;;  %v2641_v8 = vpop.f32.mrf.mxu0  ;;  %3736 = vmatprep.mubr.bf16.mxu1 %v8323_v39  ;;  %7587 = vmatpush3.bf16.msra.mxu0 %v8357_v7  ;;  %v8359_v7 = vld [vmem:[%s12194_s3 + $0xb8] sm:$0xff]  }
 0x284   :  { %v2834_v4 = vpop.f32.mrf.mxu1 }
 0x285   :  { %12334 = vst [vmem:[#allocation54_spill] sm:$0xff] %v10392_v43  ;;  %v2642_v37 = vpop.f32.mrf.mxu0  ;;  %v8324_v4 = vld [vmem:[%s12193_s0 + $0x760] ss:$16 sps:$4 sm:$0xff]  }
 0x286   :  { %v2835_v31 = vpop.f32.mrf.mxu1 }
 0x287   :  { %v10403_v33 = vadd.f32 %v2835_v31, %v2642_v37  ;;  %v2644_v26 = vpop.f32.mrf.mxu0  ;;  %v8327_v37 = vld [vmem:[%s12193_s0 + $0x768] ss:$16 sps:$4 sm:$0xff]   ;;  %v8332_v31 = vld [vmem:[%s12193_s0 + $0x874] ss:$16 sps:$4 sm:$0xff]  }
 0x288   :  { %v2837_v21 = vpop.f32.mrf.mxu1  ;;  %v8358_v26 = vld [vmem:[%s12194_s3 + $0xf8] sm:$0xff]  }
 0x289   :  { %12335 = vst [vmem:[#allocation55_spill] sm:$0xff] %v10403_v33  ;;  %v2647_v39 = vpop.f32.mrf.mxu0  ;;  %3544 = vmatmul.mubr.bf16.gmra.mxu0 %v8318_v50  ;;  %7606 = vmatprep.subr.bf16.mxu1 %v8358_v26 }
 0x28a   :  { %v2840_v55 = vpop.f32.mrf.mxu1  ;;  %3737 = vmatmul.mubr.bf16.gmra.mxu1 %v8321_v51  ;;  %3551 = vmatprep.mubr.bf16.mxu0 %v8326_v49  ;;  %v8335_v49 = vld [vmem:[%s12193_s0 + $0x87c] ss:$16 sps:$4 sm:$0xff]  }
 0x28b   :  { %v10414_v0 = vadd.f32 %v2840_v55, %v2647_v39  ;;  %v2649_v8 = vpop.f32.mrf.mxu0  ;;  %3744 = vmatprep.mubr.bf16.mxu1 %v8329_v54  ;;  %7607 = vmatpush3.bf16.msra.mxu1 %v8359_v7  ;;  %v2995_v7 = vld [vmem:[%s12193_s0 + $0x8b0] sm:$0xff] }
 0x28c   :  { %v2842_v50 = vpop.f32.mrf.mxu1 }
 0x28d   :  { %12336 = vst [vmem:[#allocation56_spill] sm:$0xff] %v10414_v0  ;;  %v2650_v51 = vpop.f32.mrf.mxu0  ;;  %v8360_v0 = vld [vmem:[%s12194_s3 + $0x68] sm:$0xff]  }
 0x28e   :  { %v2843_v54 = vpop.f32.mrf.mxu1  ;;  %7588 = vmatprep.subr.bf16.mxu0 %v8360_v0  ;;  %v8344_v0 = vld [vmem:[%s12193_s0 + $0x9c4] ss:$16 sps:$4 sm:$0xff]  }
 0x28f   :  { %v10431_v21 = vadd.f32 %v2843_v54, %v2650_v51  ;;  %v2652_v39 = vpop.f32.mrf.mxu0  ;;  %v8330_v51 = vld [vmem:[%s12193_s0 + $0x870] ss:$16 sps:$4 sm:$0xff]   ;;  %v8338_v54 = vld [vmem:[%s12193_s0 + $0x894] ss:$16 sps:$4 sm:$0xff]  }
 0x290   :  { %v2845_v22 = vpop.f32.mrf.mxu1 }
 0x291   :  { %12337 = vst [vmem:[#allocation57_spill] sm:$0xff] %v10431_v21  ;;  %v2655_v55 = vpop.f32.mrf.mxu0  ;;  %3552 = vmatmul.mubr.bf16.gmra.mxu0 %v8324_v4  ;;  %v8333_v4 = vld [vmem:[%s12193_s0 + $0x878] ss:$16 sps:$4 sm:$0xff]  }
 0x292   :  { %v2848_v8 = vpop.f32.mrf.mxu1  ;;  %3745 = vmatmul.mubr.bf16.gmra.mxu1 %v8327_v37  ;;  %3559 = vmatprep.mubr.bf16.mxu0 %v8332_v31 }
 0x293   :  { %v10436_v50 = vadd.f32 %v2848_v8, %v2655_v55  ;;  %v2657_v48 = vpop.f32.mrf.mxu0  ;;  %3752 = vmatprep.mubr.bf16.mxu1 %v8335_v49  ;;  %v2997_v8 = vld [vmem:[%s12193_s0 + $0x9b0] sm:$0xff] }
 0x294   :  { %v2850_v26 = vpop.f32.mrf.mxu1  ;;  %v8341_v48 = vld [vmem:[%s12193_s0 + $0x89c] ss:$16 sps:$4 sm:$0xff]   ;;  %v7273_v21 = vcombine.high %v2995_v7, %v2997_v8 }
 0x295   :  { %12338 = vst [vmem:[#allocation58_spill] sm:$0xff] %v10436_v50  ;;  %v2658_v37 = vpop.f32.mrf.mxu0 }
 0x296   :  { %v2851_v31 = vpop.f32.mrf.mxu1 }
 0x297   :  { %v10450_v39 = vadd.f32 %v2851_v31, %v2658_v37  ;;  %v2660_v22 = vpop.f32.mrf.mxu0  ;;  %v2996_v37 = vld [vmem:[%s12193_s0 + $0x8b8] sm:$0xff] }
 0x298   :  { %v2853_v49 = vpop.f32.mrf.mxu1  ;;  %v2998_v31 = vld [vmem:[%s12193_s0 + $0x9b8] sm:$0xff] }
 0x299   :  { %12339 = vst [vmem:[#allocation59_spill] sm:$0xff] %v10450_v39  ;;  %v2663_v55 = vpop.f32.mrf.mxu0  ;;  %3560 = vmatmul.mubr.bf16.gmra.mxu0 %v8330_v51  ;;  %v8336_v49 = vld [vmem:[%s12193_s0 + $0x890] ss:$16 sps:$4 sm:$0xff]  }
 0x29a   :  { %v2856_v26 = vpop.f32.mrf.mxu1  ;;  %3753 = vmatmul.mubr.bf16.gmra.mxu1 %v8333_v4  ;;  %3567 = vmatprep.mubr.bf16.mxu0 %v8338_v54  ;;  %v8339_v4 = vld [vmem:[%s12193_s0 + $0x898] ss:$16 sps:$4 sm:$0xff]  }
 0x29b   :  { %v10464_v51 = vadd.f32 %v2856_v26, %v2663_v55  ;;  %v2665_v22 = vpop.f32.mrf.mxu0  ;;  %3760 = vmatprep.mubr.bf16.mxu1 %v8341_v48  ;;  %v8361_v55 = vld [vmem:[%s12194_s3 + $0x28] sm:$0xff]   ;;  %v7275_v48 = vcombine.high %v2996_v37, %v2998_v31 }
 0x29c   :  { %v2858_v39 = vpop.f32.mrf.mxu1  ;;  %7589 = vmatpush3.bf16.msra.mxu0 %v8361_v55 }
 0x29d   :  { %12340 = vst [vmem:[#allocation60_spill] sm:$0xff] %v10464_v51  ;;  %v2666_v54 = vpop.f32.mrf.mxu0  ;;  %v8362_v51 = vld [vmem:[%s12194_s3 + $0xf0] sm:$0xff]  }
 0x29e   :  { %v2859_v50 = vpop.f32.mrf.mxu1  ;;  %7608 = vmatprep.subr.bf16.mxu1 %v8362_v51 }
 0x29f   :  { %v10478_v26 = vadd.f32 %v2859_v50, %v2666_v54  ;;  %v2668_v22 = vpop.f32.mrf.mxu0  ;;  %v8363_v50 = vld [vmem:[%s12194_s3 + $0xb0] sm:$0xff]  }
 0x2a0   :  { %v2861_v39 = vpop.f32.mrf.mxu1  ;;  %7609 = vmatpush3.bf16.msra.mxu1 %v8363_v50 }
 0x2a1   :  { %v2671_v33 = vpop.f32.mrf.mxu0  ;;  %3568 = vmatmul.mubr.bf16.gmra.mxu0 %v8336_v49  ;;  %v7272_v49 = vcombine.low %v2995_v7, %v2997_v8  ;;  %v8342_v7 = vld [vmem:[%s12193_s0 + $0x9c0] ss:$16 sps:$4 sm:$0xff]  }
 0x2a2   :  { %v2864_v43 = vpop.f32.mrf.mxu1  ;;  %3761 = vmatmul.mubr.bf16.gmra.mxu1 %v8339_v4  ;;  %3575 = vmatprep.mubr.bf16.mxu0 %v7273_v21 }
 0x2a3   :  { %v10483_v3 = vadd.f32 %v2864_v43, %v2671_v33  ;;  %v2673_v59 = vpop.f32.mrf.mxu0  ;;  %3768 = vmatprep.mubr.bf16.mxu1 %v7275_v48  ;;  %v8347_v43 = vld [vmem:[%s12193_s0 + $0x9cc] ss:$16 sps:$4 sm:$0xff]   ;;  %v7274_v33 = vcombine.low %v2996_v37, %v2998_v31  ;;  %v8345_v37 = vld [vmem:[%s12193_s0 + $0x9c8] ss:$16 sps:$4 sm:$0xff]   ;;  %v8350_v31 = vld [vmem:[%s12193_s0 + $0x9e4] ss:$16 sps:$4 sm:$0xff]  }
 0x2a4   :  { %v2866_v54 = vpop.f32.mrf.mxu1 }
 0x2a5   :  { %v2674_v22 = vpop.f32.mrf.mxu0 }
 0x2a6   :  { %v2867_v59 = vpop.f32.mrf.mxu1 }
 0x2a7   :  { %v10494_v21 = vadd.f32 %v2867_v59, %v2674_v22  ;;  %v2676_v4 = vpop.f32.mrf.mxu0 }
 0x2a8   :  { %v2869_v55 = vpop.f32.mrf.mxu1  ;;  %v8364_v4 = vld [vmem:[%s12194_s3 + $0x60] sm:$0xff]  }
 0x2a9   :  { %12341 = vst [vmem:[#allocation61_spill] sm:$0xff] %v10494_v21  ;;  %v2679_v48 = vpop.f32.mrf.mxu0  ;;  %3576 = vmatmul.mubr.bf16.gmra.mxu0 %v7272_v49  ;;  %v8365_v55 = vld [vmem:[%s12194_s3 + $0x20] sm:$0xff]   ;;  %7590 = vmatprep.subr.bf16.mxu0 %v8364_v4 }
 0x2aa   :  { %v2872_v39 = vpop.f32.mrf.mxu1  ;;  %3769 = vmatmul.mubr.bf16.gmra.mxu1 %v7274_v33  ;;  %3583 = vmatprep.mubr.bf16.mxu0 %v8344_v0  ;;  %v8353_v0 = vld [vmem:[%s12193_s0 + $0x9ec] ss:$16 sps:$4 sm:$0xff]  }
 0x2ab   :  { %v10496_v54 = vadd.f32 %v2872_v39, %v2679_v48  ;;  %v2681_v51 = vpop.f32.mrf.mxu0  ;;  %3776 = vmatprep.mubr.bf16.mxu1 %v8347_v43  ;;  %7591 = vmatpush3.bf16.msra.mxu0 %v8365_v55 }
 0x2ac   :  { %v2874_v8 = vpop.f32.mrf.mxu1 }
 0x2ad   :  { %12342 = vst [vmem:[#allocation62_spill] sm:$0xff] %v10496_v54  ;;  %v2682_v50 = vpop.f32.mrf.mxu0  ;;  %v8348_v8 = vld [vmem:[%s12193_s0 + $0x9e0] ss:$16 sps:$4 sm:$0xff]  }
 0x2ae   :  { %v2875_v22 = vpop.f32.mrf.mxu1 }
 0x2af   :  { %v10510_v49 = vadd.f32 %v2875_v22, %v2682_v50  ;;  %v2684_v59 = vpop.f32.mrf.mxu0  ;;  %v8351_v22 = vld [vmem:[%s12193_s0 + $0x9e8] ss:$16 sps:$4 sm:$0xff]  }
 0x2b0   :  { %v2877_v33 = vpop.f32.mrf.mxu1 }
 0x2b1   :  { %12343 = vst [vmem:[#allocation63_spill] sm:$0xff] %v10510_v49  ;;  %v2687_v43 = vpop.f32.mrf.mxu0  ;;  %3584 = vmatmul.mubr.bf16.gmra.mxu0 %v8342_v7  ;;  %v8366_v7 = vld [vmem:[%s12194_s3 + $0xe8] sm:$0xff]  }
 0x2b2   :  { %v2880_v48 = vpop.f32.mrf.mxu1  ;;  %3777 = vmatmul.mubr.bf16.gmra.mxu1 %v8345_v37  ;;  %3591 = vmatprep.mubr.bf16.mxu0 %v8350_v31 }
 0x2b3   :  { %v10518_v39 = vadd.f32 %v2880_v48, %v2687_v43  ;;  %v2689_v51 = vpop.f32.mrf.mxu0  ;;  %3784 = vmatprep.mubr.bf16.mxu1 %v8353_v0  ;;  %7610 = vmatprep.subr.bf16.mxu1 %v8366_v7  ;;  %v8367_v0 = vld [vmem:[%s12194_s3 + $0xa8] sm:$0xff]  }
 0x2b4   :  { %v2882_v50 = vpop.f32.mrf.mxu1  ;;  %7611 = vmatpush3.bf16.msra.mxu1 %v8367_v0 }
 0x2b5   :  { %12344 = vst [vmem:[#allocation64_spill] sm:$0xff] %v10518_v39  ;;  %v2690_v37 = vpop.f32.mrf.mxu0 }
 0x2b6   :  { %v2883_v31 = vpop.f32.mrf.mxu1 }
 0x2b7   :  { %v10529_v59 = vadd.f32 %v2883_v31, %v2690_v37  ;;  %v2692_v33 = vpop.f32.mrf.mxu0 }
 0x2b8   :  { %v2885_v43 = vpop.f32.mrf.mxu1 }
 0x2b9   :  { %12345 = vst [vmem:[#allocation65_spill] sm:$0xff] %v10529_v59  ;;  %v2695_v4 = vpop.f32.mrf.mxu0  ;;  %3592 = vmatmul.mubr.bf16.gmra.mxu0 %v8348_v8  ;;  %v8368_v43 = vld [vmem:[%s12194_s3 + $0x58] sm:$0xff]  }
 0x2ba   :  { %v2888_v48 = vpop.f32.mrf.mxu1  ;;  %3785 = vmatmul.mubr.bf16.gmra.mxu1 %v8351_v22  ;;  %v8369_v8 = vld [vmem:[%s12194_s3 + $0x18] sm:$0xff]   ;;  %7592 = vmatprep.subr.bf16.mxu0 %v8368_v43 }
 0x2bb   :  { %v10534_v51 = vadd.f32 %v2888_v48, %v2695_v4  ;;  %v2697_v50 = vpop.f32.mrf.mxu0  ;;  %7593 = vmatpush3.bf16.msra.mxu0 %v8369_v8 }
 0x2bc   :  { %v2890_v55 = vpop.f32.mrf.mxu1 }
 0x2bd   :  { %12346 = vst [vmem:[#allocation66_spill] sm:$0xff] %v10534_v51  ;;  %v2698_v39 = vpop.f32.mrf.mxu0  ;;  %v8370_v55 = vld [vmem:[%s12194_s3 + $0xe0] sm:$0xff]  }
 0x2be   :  { %v2891_v7 = vpop.f32.mrf.mxu1  ;;  %7612 = vmatprep.subr.bf16.mxu1 %v8370_v55 }
 0x2bf   :  { %v10536_v49 = vadd.f32 %v2891_v7, %v2698_v39  ;;  %v2700_v37 = vpop.f32.mrf.mxu0 }
 0x2c0   :  { %v2893_v31 = vpop.f32.mrf.mxu1 }
 0x2c1   :  { %12347 = vst [vmem:[#allocation67_spill] sm:$0xff] %v10536_v49  ;;  %v2703_v33 = vpop.f32.mrf.mxu0 }
 0x2c2   :  { %v2896_v22 = vpop.f32.mrf.mxu1 }
 0x2c3   :  { %v10544_v4 = vadd.f32 %v2896_v22, %v2703_v33  ;;  %v2705_v0 = vpop.f32.mrf.mxu0  ;;  %v8371_v33 = vld [vmem:[%s12194_s3 + $0xa0] sm:$0xff]  }
 0x2c4   :  { %v2898_v48 = vpop.f32.mrf.mxu1  ;;  %7613 = vmatpush3.bf16.msra.mxu1 %v8371_v33 }
 0x2c5   :  { %12348 = vst [vmem:[#allocation68_spill] sm:$0xff] %v10544_v4  ;;  %v2706_v39 = vpop.f32.mrf.mxu0 }
 0x2c6   :  { %v2899_v50 = vpop.f32.mrf.mxu1 }
 0x2c7   :  { %v10549_v7 = vadd.f32 %v2899_v50, %v2706_v39  ;;  %v2708_v37 = vpop.f32.mrf.mxu0 }
 0x2c8   :  { %v2901_v31 = vpop.f32.mrf.mxu1 }
 0x2c9   :  { %12349 = vst [vmem:[#allocation69_spill] sm:$0xff] %v10549_v7  ;;  %v2711_v49 = vpop.f32.mrf.mxu0 }
 0x2ca   :  { %v2904_v51 = vpop.f32.mrf.mxu1 }
 0x2cb   :  { %v10554_v43 = vadd.f32 %v2904_v51, %v2711_v49  ;;  %v2713_v8 = vpop.f32.mrf.mxu0  ;;  %v8372_v49 = vld [vmem:[%s12194_s3 + $0x50] sm:$0xff]  }
 0x2cc   :  { %v2906_v22 = vpop.f32.mrf.mxu1  ;;  %v8373_v51 = vld [vmem:[%s12194_s3 + $0x10] sm:$0xff]   ;;  %7594 = vmatprep.subr.bf16.mxu0 %v8372_v49 }
 0x2cd   :  { %12350 = vst [vmem:[#allocation70_spill] sm:$0xff] %v10554_v43  ;;  %v2714_v0 = vpop.f32.mrf.mxu0  ;;  %7595 = vmatpush3.bf16.msra.mxu0 %v8373_v51 }
 0x2ce   :  { %v2907_v48 = vpop.f32.mrf.mxu1 }
 0x2cf   :  { %v10556_v4 = vadd.f32 %v2907_v48, %v2714_v0  ;;  %v2716_v39 = vpop.f32.mrf.mxu0 }
 0x2d0   :  { %v2909_v50 = vpop.f32.mrf.mxu1 }
 0x2d1   :  { %12351 = vst [vmem:[#allocation71_spill] sm:$0xff] %v10556_v4  ;;  %v2719_v37 = vpop.f32.mrf.mxu0 }
 0x2d2   :  { %v2912_v31 = vpop.f32.mrf.mxu1 }
 0x2d3   :  { %v10558_v55 = vadd.f32 %v2912_v31, %v2719_v37  ;;  %v2721_v7 = vpop.f32.mrf.mxu0 }
 0x2d4   :  { %v2914_v59 = vpop.f32.mrf.mxu1 }
 0x2d5   :  { %12352 = vst [vmem:[#allocation72_spill] sm:$0xff] %v10558_v55  ;;  %v2722_v54 = vpop.f32.mrf.mxu0  ;;  %v8374_v59 = vld [vmem:[%s12194_s3 + $0xd8] sm:$0xff]  }
 0x2d6   :  { %v2915_v33 = vpop.f32.mrf.mxu1  ;;  %7614 = vmatprep.subr.bf16.mxu1 %v8374_v59 }
 0x2d7   :  { %v10566_v8 = vadd.f32 %v2915_v33, %v2722_v54  ;;  %v2724_v22 = vpop.f32.mrf.mxu0  ;;  %v8375_v54 = vld [vmem:[%s12194_s3 + $0x98] sm:$0xff]  }
 0x2d8   :  { %v2917_v0 = vpop.f32.mrf.mxu1  ;;  %7615 = vmatpush3.bf16.msra.mxu1 %v8375_v54 }
 0x2d9   :  { %12353 = vst [vmem:[#allocation73_spill] sm:$0xff] %v10566_v8  ;;  %v2727_v48 = vpop.f32.mrf.mxu0 }
 0x2da   :  { %v2920_v39 = vpop.f32.mrf.mxu1 }
 0x2db   :  { %v10571_v7 = vadd.f32 %v2920_v39, %v2727_v48  ;;  %v2729_v50 = vpop.f32.mrf.mxu0 }
 0x2dc   :  { %v2922_v37 = vpop.f32.mrf.mxu1 }
 0x2dd   :  { %12354 = vst [vmem:[#allocation74_spill] sm:$0xff] %v10571_v7  ;;  %v2730_v31 = vpop.f32.mrf.mxu0  ;;  %v12355_v37 = vmax.f32 %v9364_v47, %v9828_v28  ;;  %v8377_v47 = vld [vmem:[%s12194_s3 + $0x8] sm:$0xff]  }
 0x2de   :  { %v2923_v55 = vpop.f32.mrf.mxu1 }
 0x2df   :  { %v10576_v49 = vadd.f32 %v2923_v55, %v2730_v31  ;;  %v2732_v51 = vpop.f32.mrf.mxu0  ;;  %v10585_v55 = vld [vmem:[%s12195_s2] ss:$0 sm:$0xff] }
 0x2e0   :  { %v2925_v33 = vpop.f32.mrf.mxu1 }
 0x2e1   :  { %v3441_v22 = vpop.f32.mrf.mxu0 }
 0x2e2   :  { %v3634_v0 = vpop.f32.mrf.mxu1 }
 0x2e3   :  { %v3635_v8 = vadd.f32 %v3634_v0, %v3441_v22  ;;  %v3443_v4 = vpop.f32.mrf.mxu0 }
 0x2e4   :  { %v3636_v48 = vpop.f32.mrf.mxu1 }
 0x2e5   :  { %v3793_v39 = vmax.f32 %v10258_v63, %v3635_v8  ;;  %v3444_v50 = vpop.f32.mrf.mxu0  ;;  %v8376_v63 = vld [vmem:[%s12194_s3 + $0x48] sm:$0xff]  }
 0x2e6   :  { %v3637_v59 = vpop.f32.mrf.mxu1  ;;  %7596 = vmatprep.subr.bf16.mxu0 %v8376_v63 }
 0x2e7   :  { %v3833_v7 = vmax.f32 %v12355_v37, %v3793_v39  ;;  %v3638_v43 = vadd.f32 %v3637_v59, %v3444_v50  ;;  %v3446_v21 = vpop.f32.mrf.mxu0  ;;  %7597 = vmatpush3.bf16.msra.mxu0 %v8377_v47 }
 0x2e8   :  { %v3639_v31 = vpop.f32.mrf.mxu1  ;;  %v12356_v21 = vmax.f32 %v9389_v57, %v9845_v13  ;;  %v12357_v57 = vmax.f32 %v9408_v2, %v9856_v36 }
 0x2e9   :  { %v3794_v54 = vmax.f32 %v10269_v60, %v3638_v43  ;;  %v3449_v4 = vpop.f32.mrf.mxu0  ;;  %v3880_v22 = vadd.f32 %v10585_v55, %v3833_v7  ;;  %v8378_v43 = vld [vmem:[%s12194_s3 + $0xd0] sm:$0xff]  }
 0x2ea   :  { %v3642_v28 = vpop.f32.mrf.mxu1  ;;  %7616 = vmatprep.subr.bf16.mxu1 %v8378_v43 }
 0x2eb   :  { %v3834_v8 = vmax.f32 %v12356_v21, %v3794_v54  ;;  %v3643_v51 = vadd.f32 %v3642_v28, %v3449_v4  ;;  %v3451_v33 = vpop.f32.mrf.mxu0  ;;  %v3920_v7 = vmax.f32 %v3880_v22, 0.0  ;;  %v8379_v54 = vld [vmem:[%s12194_s3 + $0x90] sm:$0xff]  }
 0x2ec   :  { %v3644_v60 = vpop.f32.mrf.mxu1  ;;  %7617 = vmatpush3.bf16.msra.mxu1 %v8379_v54 }
 0x2ed   :  { %v3881_v0 = vadd.f32 %v10585_v55, %v3834_v8  ;;  %v3795_v48 = vmax.f32 %v10274_v15, %v3643_v51  ;;  %v3452_v39 = vpop.f32.mrf.mxu0  ;;  %v7544_v2 = vpack.c.bf16 %v3920_v7, %v3920_v7  ;;  %v12358_v51 = vmax.f32 %v9442_v20, %v9882_v5 }
 0x2ee   :  { %v3645_v50 = vpop.f32.mrf.mxu1 }
 0x2ef   :  { %v3835_v13 = vmax.f32 %v12357_v57, %v3795_v48  ;;  %v3646_v59 = vadd.f32 %v3645_v50, %v3452_v39  ;;  %v3454_v37 = vpop.f32.mrf.mxu0  ;;  %v3921_v4 = vmax.f32 %v3881_v0, 0.0 }
 0x2f0   :  { %v3647_v31 = vpop.f32.mrf.mxu1 }
 0x2f1   :  { %v3457_v63 = vpop.f32.mrf.mxu0  ;;  %v3882_v47 = vadd.f32 %v10585_v55, %v3835_v13  ;;  %v3796_v15 = vmax.f32 %v10294_v35, %v3646_v59  ;;  %v7552_v48 = vpack.c.bf16 %v3921_v4, %v3921_v4  ;;  %v12359_v35 = vmax.f32 %v9458_v34, %v9890_v19 }
 0x2f2   :  { %v3650_v28 = vpop.f32.mrf.mxu1  ;;  %v10619_v59 = vunpack.c.l.b16 %v7544_v2  ;;  %v12360_v34 = vmax.f32 %v9477_v53, %v9901_v10 }
 0x2f3   :  { %v3651_v21 = vadd.f32 %v3650_v28, %v3457_v63  ;;  %v3459_v8 = vpop.f32.mrf.mxu0  ;;  %v3922_v36 = vmax.f32 %v3882_v47, 0.0  ;;  %v3836_v33 = vmax.f32 %v12358_v51, %v3796_v15  ;;  %v10622_v54 = vunpack.c.l.b16 %v7552_v48  ;;  %v8381_v51 = vld [vmem:[%s12194_s3] sm:$0xff]  }
 0x2f4   :  { %v3652_v22 = vpop.f32.mrf.mxu1  ;;  %v4079_v63 = vrot.slane %v10619_v59, 1  ;;  %v4095_v47 = vrot.slane %v10619_v59, 2  ;;  %v4127_v8 = vrot.slane %v10619_v59, 4 }
 0x2f5   :  { %v3797_v60 = vmax.f32 %v10296_v17, %v3651_v21  ;;  %v3460_v43 = vpop.f32.mrf.mxu0  ;;  %v3883_v39 = vadd.f32 %v10585_v55, %v3836_v33  ;;  %v7560_v7 = vpack.c.bf16 %v3922_v36, %v3922_v36  ;;  %v4111_v21 = vrot.slane %v10619_v59, 3  ;;  %v8380_v36 = vld [vmem:[%s12194_s3 + $0x40] sm:$0xff]  }
 0x2f6   :  { %v3653_v0 = vpop.f32.mrf.mxu1  ;;  %7598 = vmatprep.subr.bf16.mxu0 %v8380_v36  ;;  %v8384_v36 = vld [vmem:[%s12194_s3 + $0xc0] sm:$0xff]  }
 0x2f7   :  { %v3837_v50 = vmax.f32 %v12359_v35, %v3797_v60  ;;  %v3654_v57 = vadd.f32 %v3653_v0, %v3460_v43  ;;  %v3462_v13 = vpop.f32.mrf.mxu0  ;;  %v3923_v20 = vmax.f32 %v3883_v39, 0.0  ;;  %v8382_v43 = vld [vmem:[%s12194_s3 + $0xc8] sm:$0xff]   ;;  %v4175_v0 = vrot.slane %v10622_v54, 1  ;;  %7599 = vmatpush3.bf16.msra.mxu0 %v8381_v51 }
 0x2f8   :  { %v3655_v37 = vpop.f32.mrf.mxu1  ;;  %v8383_v35 = vld [vmem:[%s12194_s3 + $0x88] sm:$0xff]   ;;  %7618 = vmatprep.subr.bf16.mxu1 %v8382_v43 }
 0x2f9   :  { %v3798_v5 = vmax.f32 %v10301_v25, %v3654_v57  ;;  %v3465_v31 = vpop.f32.mrf.mxu0  ;;  %v10631_v25 = vunpack.c.l.b16 %v7560_v7  ;;  %v7568_v33 = vpack.c.bf16 %v3923_v20, %v3923_v20  ;;  %v3884_v53 = vadd.f32 %v10585_v55, %v3837_v50  ;;  %7619 = vmatpush3.bf16.msra.mxu1 %v8383_v35 }
 0x2fa   :  { %v3658_v17 = vpop.f32.mrf.mxu1  ;;  %v4191_v50 = vrot.slane %v10622_v54, 2  ;;  %v4207_v57 = vrot.slane %v10622_v54, 3  ;;  %7620 = vmatprep.subr.bf16.mxu1 %v8384_v36 }
 0x2fb   :  { %v3467_v4 = vpop.f32.mrf.mxu0  ;;  %v3838_v19 = vmax.f32 %v12360_v34, %v3798_v5  ;;  %v3659_v15 = vadd.f32 %v3658_v17, %v3465_v31  ;;  %v4271_v7 = vrot.slane %v10631_v25, 1  ;;  %v4287_v20 = vrot.slane %v10631_v25, 2 }
 0x2fc   :  { %v3660_v28 = vpop.f32.mrf.mxu1  ;;  %v12361_v5 = vmax.f32 %v9496_v1, %v9912_v38  ;;  %v4303_v34 = vrot.slane %v10631_v25, 3  ;;  %v12362_v38 = vmax.f32 %v9521_v16, %v9929_v44 }
 0x2fd   :  { %v3468_v2 = vpop.f32.mrf.mxu0  ;;  %v3885_v10 = vadd.f32 %v10585_v55, %v3838_v19  ;;  %v3799_v22 = vmax.f32 %v10306_v9, %v3659_v15  ;;  %v4223_v9 = vrot.slane %v10622_v54, 4  ;;  %v4319_v19 = vrot.slane %v10631_v25, 4 }
 0x2fe   :  { %v3661_v60 = vpop.f32.mrf.mxu1  ;;  %v10660_v15 = vunpack.c.l.b16 %v7568_v33  ;;  %v3924_v28 = vmax.f32 %v3884_v53, 0.0  ;;  %v8385_v33 = vld [vmem:[%s12194_s3 + $0x80] sm:$0xff]  }
 0x2ff   :  { %v3662_v48 = vadd.f32 %v3661_v60, %v3468_v2  ;;  %v3470_v39 = vpop.f32.mrf.mxu0  ;;  %v3925_v13 = vmax.f32 %v3885_v10, 0.0  ;;  %v3839_v31 = vmax.f32 %v12361_v5, %v3799_v22  ;;  %7621 = vmatpush3.bf16.msra.mxu1 %v8385_v33  ;;  %v8386_v5 = vld [vmem:[%s12194_s3 + $0x178] sm:$0xff]  }
 0x300   :  { %v3663_v37 = vpop.f32.mrf.mxu1  ;;  %v4402_v16 = vrot.slane %v10660_v15, 3  ;;  %v7576_v44 = vpack.c.bf16 %v3924_v28, %v3924_v28  ;;  %7628 = vmatprep.subr.bf16.mxu0 %v8386_v5  ;;  %v4374_v5 = vrot.slane %v10660_v15, 1 }
 0x301   :  { %v3800_v17 = vmax.f32 %v10317_v11, %v3662_v48  ;;  %v3473_v4 = vpop.f32.mrf.mxu0  ;;  %v7545_v51 = vpack.c.bf16 %v3925_v13, %v3925_v13  ;;  %v3886_v1 = vadd.f32 %v10585_v55, %v3839_v31  ;;  %v4388_v13 = vrot.slane %v10660_v15, 2  ;;  %v8387_v31 = vld [vmem:[%s12194_s3 + $0x1f8] sm:$0xff]  }
 0x302   :  { %v3666_v2 = vpop.f32.mrf.mxu1  ;;  %7650 = vmatprep.subr.bf16.mxu1 %v8387_v31 }
 0x303   :  { %v3840_v11 = vmax.f32 %v12362_v38, %v3800_v17  ;;  %v3667_v10 = vadd.f32 %v3666_v2, %v3473_v4  ;;  %v3475_v22 = vpop.f32.mrf.mxu0  ;;  %v4049_v53 = vunpack.c.l.b16 %v7545_v51  ;;  %v3926_v43 = vmax.f32 %v3886_v1, 0.0 }
 0x304   :  { %v3668_v60 = vpop.f32.mrf.mxu1  ;;  %v12363_v38 = vmax.f32 %v9540_v41, %v9938_v46 }
 0x305   :  { %v3887_v48 = vadd.f32 %v10585_v55, %v3840_v11  ;;  %v3801_v39 = vmax.f32 %v10322_v45, %v3667_v10  ;;  %v3476_v35 = vpop.f32.mrf.mxu0  ;;  %v4056_v17 = vrot.slane %v4049_v53, 7  ;;  %v4096_v4 = vrot.slane %v4049_v53, 1 }
 0x306   :  { %v3669_v37 = vpop.f32.mrf.mxu1  ;;  %v4112_v2 = vrot.slane %v4049_v53, 2  ;;  %v4128_v45 = vrot.slane %v4049_v53, 3  ;;  %v7553_v51 = vpack.c.bf16 %v3926_v43, %v3926_v43  ;;  %v10702_v46 = vsel %vm4057_vm0, %v4049_v53, %v4079_v63 }
 0x307   :  { %v3478_v36 = vpop.f32.mrf.mxu0  ;;  %v3927_v1 = vmax.f32 %v3887_v48, 0.0  ;;  %v3841_v28 = vmax.f32 %v12363_v38, %v3801_v39  ;;  %v3670_v11 = vadd.f32 %v3669_v37, %v3476_v35  ;;  %v10687_v22 = vsel %vm4057_vm0, %v4056_v17, %v10619_v59 }
 0x308   :  { %v3671_v10 = vpop.f32.mrf.mxu1  ;;  %v10692_v33 = vsel %vm4057_vm0, %v4128_v45, %v4127_v8  ;;  %v10697_v41 = vsel %vm4057_vm0, %v4096_v4, %v4095_v47  ;;  %v4152_v43 = vunpack.c.l.b16 %v7553_v51  ;;  %v10706_v37 = vunpack.c.l.b16 %v7576_v44 }
 0x309   :  { %v3481_v60 = vpop.f32.mrf.mxu0  ;;  %v7561_v48 = vpack.c.bf16 %v3927_v1, %v3927_v1  ;;  %v3888_v39 = vadd.f32 %v10585_v55, %v3841_v28  ;;  %v3802_v35 = vmax.f32 %v10333_v62, %v3670_v11  ;;  %v10712_v47 = vsel %vm4057_vm0, %v4112_v2, %v4111_v21 }
 0x30a   :  { %v3674_v8 = vpop.f32.mrf.mxu1  ;;  %v4159_v63 = vrot.slane %v4152_v43, 7  ;;  %v10717_v53 = vsel %vm4057_vm0, %v4152_v43, %v4175_v0  ;;  %v4192_v4 = vrot.slane %v4152_v43, 1  ;;  %v4208_v62 = vrot.slane %v4152_v43, 2 }
 0x30b   :  { %v3675_v31 = vadd.f32 %v3674_v8, %v3481_v60  ;;  %v3483_v17 = vpop.f32.mrf.mxu0  ;;  %v4224_v44 = vrot.slane %v4152_v43, 3  ;;  %v4248_v36 = vunpack.c.l.b16 %v7561_v48  ;;  %v3928_v51 = vmax.f32 %v3888_v39, 0.0 }
 0x30c   :  { %v3676_v45 = vpop.f32.mrf.mxu1  ;;  %v12364_v1 = vmax.f32 %v9551_v58, %v9951_v6  ;;  %v10726_v28 = vsel %vm4057_vm0, %v4208_v62, %v4207_v57  ;;  %v10730_v0 = vsel %vm4057_vm0, %v4159_v63, %v10622_v54  ;;  %v10735_v11 = vsel %vm4057_vm0, %v4192_v4, %v4191_v50 }
 0x30d   :  { %v3484_v59 = vpop.f32.mrf.mxu0  ;;  %v3803_v21 = vmax.f32 %v10338_v61, %v3675_v31  ;;  %v4255_v58 = vrot.slane %v4248_v36, 7  ;;  %v4288_v6 = vrot.slane %v4248_v36, 1  ;;  %v4304_v10 = vrot.slane %v4248_v36, 2 }
 0x30e   :  { %v3842_v38 = vmax.f32 %v12364_v1, %v3802_v35  ;;  %v3677_v2 = vpop.f32.mrf.mxu1  ;;  %v4320_v60 = vrot.slane %v4248_v36, 3  ;;  %v7569_v43 = vpack.c.bf16 %v3928_v51, %v3928_v51  ;;  %v12365_v57 = vmax.f32 %v12291_v29, %v9958_v12 }
 0x30f   :  { %v3486_v61 = vpop.f32.mrf.mxu0  ;;  %v3678_v35 = vadd.f32 %v3677_v2, %v3484_v59  ;;  %v10743_v31 = vsel %vm4057_vm0, %v4255_v58, %v10631_v25  ;;  %v10753_v63 = vsel %vm4057_vm0, %v4288_v6, %v4287_v20  ;;  %v10758_v12 = vsel %vm4057_vm0, %v4224_v44, %v4223_v9 }
 0x310   :  { %v3889_v48 = vadd.f32 %v10585_v55, %v3842_v38  ;;  %v3843_v39 = vmax.f32 %v12365_v57, %v3803_v21  ;;  %v3679_v8 = vpop.f32.mrf.mxu1  ;;  %v10748_v50 = vsel %vm4057_vm0, %v4320_v60, %v4319_v19  ;;  %v4344_v29 = vunpack.c.l.b16 %v7569_v43 }
 0x311   :  { %v3489_v17 = vpop.f32.mrf.mxu0  ;;  %v3804_v45 = vmax.f32 %v10349_v14, %v3678_v35  ;;  %v4460_v19 = vrot.slane %v10706_v37, 1  ;;  %v10766_v20 = vsel %vm4057_vm0, %v4248_v36, %v4271_v7  ;;  %v10771_v54 = vsel %vm4057_vm0, %v4304_v10, %v4303_v34 }
 0x312   :  { %v3929_v4 = vmax.f32 %v3889_v48, 0.0  ;;  %v3890_v62 = vadd.f32 %v10585_v55, %v3843_v39  ;;  %v3682_v51 = vpop.f32.mrf.mxu1  ;;  %v4351_v9 = vrot.slane %v4344_v29, 7  ;;  %v10774_v44 = vsel %vm4060_vm1, %v4344_v29, %v4374_v5 }
 0x313   :  { %v3683_v1 = vadd.f32 %v3682_v51, %v3489_v17  ;;  %v3491_v38 = vpop.f32.mrf.mxu0  ;;  %v4389_v14 = vrot.slane %v4344_v29, 1  ;;  %v4403_v59 = vrot.slane %v4344_v29, 2  ;;  %v12366_v6 = vmax.f32 %v12292_v42, %v9971_v24 }
 0x314   :  { %v3684_v21 = vpop.f32.mrf.mxu1  ;;  %v7577_v2 = vpack.c.bf16 %v3929_v4, %v3929_v4  ;;  %v3930_v58 = vmax.f32 %v3890_v62, 0.0  ;;  %v10782_v25 = vsel %vm4060_vm1, %v4351_v9, %v10660_v15  ;;  %v10791_v10 = vsel %vm4057_vm0, %v4351_v9, %v10660_v15 }
 0x315   :  { %v3844_v60 = vmax.f32 %v12366_v6, %v3804_v45  ;;  %v3805_v7 = vmax.f32 %v10369_v40, %v3683_v1  ;;  %v3492_v36 = vpop.f32.mrf.mxu0  ;;  %v10787_v5 = vsel %vm4060_vm1, %v4389_v14, %v4388_v13  ;;  %v10796_v24 = vsel %vm4060_vm1, %v4403_v59, %v4402_v16 }
 0x316   :  { %v3685_v34 = vpop.f32.mrf.mxu1  ;;  %v10798_v42 = vunpack.c.l.b16 %v7577_v2  ;;  %v7546_v40 = vpack.c.bf16 %v3930_v58, %v3930_v58  ;;  %v12367_v43 = vmax.f32 %v12293_v18, %v9978_v27  ;;  %v4432_v57 = vrot.slane %v10706_v37, 7 }
 0x317   :  { %v3891_v61 = vadd.f32 %v10585_v55, %v3844_v60  ;;  %v3494_v13 = vpop.f32.mrf.mxu0  ;;  %v3686_v39 = vadd.f32 %v3685_v34, %v3492_v36  ;;  %v4488_v8 = vrot.slane %v10706_v37, 3  ;;  %v12368_v60 = vmax.f32 %v12294_v56, %v10000_v23  ;;  %v12369_v56 = vld [vmem:[#allocation2_spill] sm:$0xff] }
 0x318   :  { %v3845_v48 = vmax.f32 %v12367_v43, %v3805_v7  ;;  %v3687_v35 = vpop.f32.mrf.mxu1  ;;  %v4433_v15 = vrot.slane %v10798_v42, 6  ;;  %v4446_v16 = vrot.slane %v10798_v42, 7  ;;  %v10810_v17 = vsel %vm4060_vm1, %v10798_v42, %v4460_v19 }
 0x319   :  { %v3497_v29 = vpop.f32.mrf.mxu0  ;;  %v4489_v4 = vrot.slane %v10798_v42, 2  ;;  %v4050_v27 = vunpack.c.l.b16 %v7546_v40  ;;  %v3931_v18 = vmax.f32 %v3891_v61, 0.0  ;;  %v3806_v1 = vmax.f32 %v10380_v32, %v3686_v39 }
 0x31a   :  { %v3892_v62 = vadd.f32 %v10585_v55, %v3845_v48  ;;  %v3690_v45 = vpop.f32.mrf.mxu1  ;;  %v10815_v51 = vsel %vm4060_vm1, %v4433_v15, %v4432_v57  ;;  %v10820_v14 = vsel %vm4060_vm1, %v4446_v16, %v10706_v37  ;;  %v12370_v23 = vmax.f32 %v12296_v30, %v12369_v56  ;;  %v12371_v30 = vld [vmem:[#allocation53_spill] sm:$0xff] }
 0x31b   :  { %v3691_v38 = vadd.f32 %v3690_v45, %v3497_v29  ;;  %v3499_v9 = vpop.f32.mrf.mxu0  ;;  %v4059_v19 = vrot.slane %v4050_v27, 6  ;;  %v10824_v59 = vsel %vm4060_vm1, %v4050_v27, %v10697_v41  ;;  %v4130_v21 = vrot.slane %v4050_v27, 2 }
 0x31c   :  { %v7554_v2 = vpack.c.bf16 %v3931_v18, %v3931_v18  ;;  %v3692_v58 = vpop.f32.mrf.mxu1  ;;  %v3932_v6 = vmax.f32 %v3892_v62, 0.0  ;;  %v3846_v32 = vmax.f32 %v12368_v60, %v3806_v1  ;;  %v10831_v34 = vsel %vm4060_vm1, %v4489_v4, %v4488_v8 }
 0x31d   :  { %v3807_v7 = vmax.f32 %v10382_v52, %v3691_v38  ;;  %v3500_v36 = vpop.f32.mrf.mxu0  ;;  %v10835_v40 = vsel %vm4060_vm1, %v4059_v19, %v10687_v22  ;;  %v4081_v43 = vrot.slane %v4050_v27, 7  ;;  %v4114_v48 = vrot.slane %v4050_v27, 1 }
 0x31e   :  { %v4153_v41 = vunpack.c.l.b16 %v7554_v2  ;;  %v3693_v61 = vpop.f32.mrf.mxu1  ;;  %v7562_v13 = vpack.c.bf16 %v3932_v6, %v3932_v6  ;;  %v3893_v57 = vadd.f32 %v10585_v55, %v3846_v32  ;;  %v12372_v32 = vld [vmem:[#allocation7_spill] sm:$0xff] }
 0x31f   :  { %v3847_v39 = vmax.f32 %v12370_v23, %v3807_v7  ;;  %v3694_v52 = vadd.f32 %v3693_v61, %v3500_v36  ;;  %v3502_v35 = vpop.f32.mrf.mxu0  ;;  %v10843_v22 = vsel %vm4060_vm1, %v4081_v43, %v10702_v46  ;;  %v10847_v29 = vsel %vm4060_vm1, %v4114_v48, %v10712_v47  ;;  %v12373_v7 = vld [vmem:[#allocation3_spill] sm:$0xff] }
 0x320   :  { %v4177_v15 = vrot.slane %v4153_v41, 7  ;;  %v4210_v8 = vrot.slane %v4153_v41, 1  ;;  %v3695_v16 = vpop.f32.mrf.mxu1  ;;  %v10849_v4 = vunpack.c.l.b16 %v7562_v13  ;;  %v3933_v27 = vmax.f32 %v3893_v57, 0.0 }
 0x321   :  { %v3894_v18 = vadd.f32 %v10585_v55, %v3847_v39  ;;  %v3808_v62 = vmax.f32 %v12371_v30, %v3694_v52  ;;  %v3505_v45 = vpop.f32.mrf.mxu0  ;;  %v4161_v9 = vrot.slane %v4153_v41, 6  ;;  %v10859_v46 = vsel %vm4060_vm1, %v4153_v41, %v10735_v11  ;;  %v12375_v39 = vld [vmem:[#allocation54_spill] sm:$0xff]  ;;  %v12376_v30 = vld [vmem:[#allocation8_spill] sm:$0xff] }
 0x322   :  { %v3698_v1 = vpop.f32.mrf.mxu1  ;;  %v10855_v38 = vsel %vm4060_vm1, %v4210_v8, %v10726_v28  ;;  %v10863_v47 = vsel %vm4060_vm1, %v4130_v21, %v10692_v33  ;;  %v4257_v19 = vrot.slane %v10849_v4, 6  ;;  %v10869_v2 = vsel %vm4060_vm1, %v10849_v4, %v10753_v63 }
 0x323   :  { %v4322_v58 = vrot.slane %v10849_v4, 2  ;;  %v7570_v28 = vpack.c.bf16 %v3933_v27, %v3933_v27  ;;  %v3507_v6 = vpop.f32.mrf.mxu0  ;;  %v3934_v60 = vmax.f32 %v3894_v18, 0.0  ;;  %v12374_v11 = vmax.f32 %v12372_v32, %v12373_v7 }
 0x324   :  { %v3699_v61 = vadd.f32 %v3698_v1, %v3505_v45  ;;  %v3700_v43 = vpop.f32.mrf.mxu1  ;;  %v10877_v33 = vsel %vm4060_vm1, %v4161_v9, %v10730_v0  ;;  %v10881_v63 = vsel %vm4060_vm1, %v4177_v15, %v10717_v53  ;;  %v4226_v13 = vrot.slane %v4153_v41, 2 }
 0x325   :  { %v3848_v36 = vmax.f32 %v12374_v11, %v3808_v62  ;;  %v4345_v21 = vunpack.c.l.b16 %v7570_v28  ;;  %v3508_v48 = vpop.f32.mrf.mxu0  ;;  %v4273_v57 = vrot.slane %v10849_v4, 7  ;;  %v7578_v56 = vpack.c.bf16 %v3934_v60, %v3934_v60  ;;  %v12377_v62 = vld [vmem:[#allocation4_spill] sm:$0xff] }
 0x326   :  { %v3809_v52 = vmax.f32 %v12375_v39, %v3699_v61  ;;  %v3701_v35 = vpop.f32.mrf.mxu1  ;;  %v10888_v8 = vsel %vm4060_vm1, %v4257_v19, %v10743_v31  ;;  %v12378_v45 = vmax.f32 %v12376_v30, %v12377_v62  ;;  %v4306_v60 = vrot.slane %v10849_v4, 1  ;;  %v12383_v30 = vld [vmem:[#allocation56_spill] sm:$0xff] }
 0x327   :  { %v3895_v23 = vadd.f32 %v10585_v55, %v3848_v36  ;;  %v4353_v0 = vrot.slane %v4345_v21, 6  ;;  %v4376_v16 = vrot.slane %v4345_v21, 7  ;;  %v10892_v27 = vsel %vm4063_vm2, %v4345_v21, %v10787_v5  ;;  %v3510_v41 = vpop.f32.mrf.mxu0 }
 0x328   :  { %v4405_v53 = vrot.slane %v4345_v21, 1  ;;  %v10894_v15 = vunpack.c.l.b16 %v7578_v56  ;;  %v3849_v1 = vmax.f32 %v12378_v45, %v3809_v52  ;;  %v3702_v9 = vadd.f32 %v3701_v35, %v3508_v48  ;;  %v3703_v28 = vpop.f32.mrf.mxu1  ;;  %v12380_v35 = vld [vmem:[#allocation9_spill] sm:$0xff] }
 0x329   :  { %v3935_v18 = vmax.f32 %v3895_v23, 0.0  ;;  %v10901_v31 = vsel %vm4063_vm2, %v4353_v0, %v10782_v25  ;;  %v3513_v19 = vpop.f32.mrf.mxu0  ;;  %v10905_v5 = vsel %vm4060_vm1, %v4226_v13, %v10758_v12  ;;  %v10909_v6 = vsel %vm4060_vm1, %v4273_v57, %v10766_v20  ;;  %v12379_v12 = vld [vmem:[#allocation55_spill] sm:$0xff]  ;;  %v12381_v41 = vld [vmem:[#allocation5_spill] sm:$0xff] }
 0x32a   :  { %v4435_v32 = vrot.slane %v10894_v15, 5  ;;  %v4448_v7 = vrot.slane %v10894_v15, 6  ;;  %v4462_v11 = vrot.slane %v10894_v15, 7  ;;  %v4491_v25 = vrot.slane %v10894_v15, 1  ;;  %v3706_v36 = vpop.f32.mrf.mxu1 }
 0x32b   :  { %v7547_v61 = vpack.c.bf16 %v3935_v18, %v3935_v18  ;;  %v3896_v43 = vadd.f32 %v10585_v55, %v3849_v1  ;;  %v3810_v21 = vmax.f32 %v12379_v12, %v3702_v9  ;;  %v3707_v48 = vadd.f32 %v3706_v36, %v3513_v19  ;;  %v3515_v13 = vpop.f32.mrf.mxu0 }
 0x32c   :  { %v10920_v20 = vsel %vm4063_vm2, %v4435_v32, %v10815_v51  ;;  %v10924_v4 = vsel %vm4063_vm2, %v4462_v11, %v10810_v17  ;;  %v3708_v57 = vpop.f32.mrf.mxu1  ;;  %v10928_v56 = vsel %vm4063_vm2, %v4491_v25, %v10831_v34  ;;  %v10932_v23 = vsel %vm4060_vm1, %v4306_v60, %v10771_v54  ;;  %v12385_v25 = vld [vmem:[#allocation6_spill] sm:$0xff]  ;;  %v12387_v13 = vld [vmem:[#allocation57_spill] sm:$0xff] }
 0x32d   :  { %v4051_v39 = vunpack.c.l.b16 %v7547_v61  ;;  %v3936_v52 = vmax.f32 %v3896_v43, 0.0  ;;  %v12382_v18 = vmax.f32 %v12380_v35, %v12381_v41  ;;  %v3811_v62 = vmax.f32 %v12383_v30, %v3707_v48  ;;  %v3516_v45 = vpop.f32.mrf.mxu0  ;;  %v12388_v30 = vld [vmem:[#allocation11_spill] sm:$0xff] }
 0x32e   :  { %v3709_v17 = vpop.f32.mrf.mxu1  ;;  %v10940_v1 = vsel %vm4060_vm1, %v4353_v0, %v10791_v10  ;;  %v10944_v34 = vsel %vm4060_vm1, %v4322_v58, %v10748_v50  ;;  %v10948_v54 = vsel %vm4063_vm2, %v4376_v16, %v10774_v44  ;;  %v10952_v9 = vsel %vm4063_vm2, %v4405_v53, %v10796_v24  ;;  %v12384_v0 = vld [vmem:[#allocation10_spill] sm:$0xff] }
 0x32f   :  { %v3850_v51 = vmax.f32 %v12382_v18, %v3810_v21  ;;  %v4062_v28 = vrot.slane %v4051_v39, 5  ;;  %v4099_v19 = vrot.slane %v4051_v39, 7  ;;  %v4132_v60 = vrot.slane %v4051_v39, 1  ;;  %v3518_v11 = vpop.f32.mrf.mxu0 }
 0x330   :  { %v7555_v32 = vpack.c.bf16 %v3936_v52, %v3936_v52  ;;  %v12386_v36 = vmax.f32 %v12384_v0, %v12385_v25  ;;  %v3710_v58 = vadd.f32 %v3709_v17, %v3516_v45  ;;  %v3711_v61 = vpop.f32.mrf.mxu1  ;;  %v4083_v43 = vrot.slane %v4051_v39, 6 }
 0x331   :  { %v3897_v10 = vadd.f32 %v10585_v55, %v3850_v51  ;;  %v10960_v44 = vsel %vm4063_vm2, %v4062_v28, %v10835_v40  ;;  %v10964_v24 = vsel %vm4063_vm2, %v4099_v19, %v10824_v59  ;;  %v3521_v53 = vpop.f32.mrf.mxu0  ;;  %v10968_v12 = vsel %vm4063_vm2, %v4051_v39, %v10847_v29 }
 0x332   :  { %v3851_v50 = vmax.f32 %v12386_v36, %v3811_v62  ;;  %v4154_v16 = vunpack.c.l.b16 %v7555_v32  ;;  %v3812_v57 = vmax.f32 %v12387_v13, %v3710_v58  ;;  %v3714_v52 = vpop.f32.mrf.mxu1  ;;  %v10974_v40 = vsel %vm4063_vm2, %v4083_v43, %v10843_v22  ;;  %v12389_v62 = vld [vmem:[#allocation32_spill] sm:$0xff]  ;;  %v12391_v32 = vld [vmem:[#allocation58_spill] sm:$0xff] }
 0x333   :  { %v3937_v21 = vmax.f32 %v3897_v10, 0.0  ;;  %v3715_v41 = vadd.f32 %v3714_v52, %v3521_v53  ;;  %v3523_v18 = vpop.f32.mrf.mxu0  ;;  %v12390_v45 = vmax.f32 %v12388_v30, %v12389_v62  ;;  %v12392_v43 = vld [vmem:[#allocation12_spill] sm:$0xff] }
 0x334   :  { %v3898_v48 = vadd.f32 %v10585_v55, %v3851_v50  ;;  %v4179_v35 = vrot.slane %v4154_v16, 6  ;;  %v10978_v59 = vsel %vm4063_vm2, %v4154_v16, %v10855_v38  ;;  %v4163_v29 = vrot.slane %v4154_v16, 5  ;;  %v3716_v28 = vpop.f32.mrf.mxu1 }
 0x335   :  { %v7563_v39 = vpack.c.bf16 %v3937_v21, %v3937_v21  ;;  %v3852_v17 = vmax.f32 %v12390_v45, %v3812_v57  ;;  %v4195_v19 = vrot.slane %v4154_v16, 7  ;;  %v3813_v22 = vmax.f32 %v12391_v32, %v3715_v41  ;;  %v3524_v11 = vpop.f32.mrf.mxu0  ;;  %v12397_v32 = vld [vmem:[#allocation34_spill] sm:$0xff] }
 0x336   :  { %v3938_v51 = vmax.f32 %v3898_v48, 0.0  ;;  %v10986_v10 = vsel %vm4063_vm2, %v4163_v29, %v10877_v33  ;;  %v10990_v38 = vsel %vm4063_vm2, %v4132_v60, %v10863_v47  ;;  %v10994_v0 = vsel %vm4063_vm2, %v4179_v35, %v10881_v63  ;;  %v3717_v58 = vpop.f32.mrf.mxu1  ;;  %v12393_v33 = vld [vmem:[#allocation33_spill] sm:$0xff]  ;;  %v12395_v29 = vld [vmem:[#allocation59_spill] sm:$0xff] }
 0x337   :  { %v4250_v25 = vunpack.c.l.b16 %v7563_v39  ;;  %v3899_v50 = vadd.f32 %v10585_v55, %v3852_v17  ;;  %v10999_v61 = vsel %vm4063_vm2, %v4195_v19, %v10859_v46  ;;  %v12394_v53 = vmax.f32 %v12392_v43, %v12393_v33  ;;  %v3526_v47 = vpop.f32.mrf.mxu0  ;;  %v12396_v19 = vld [vmem:[#allocation13_spill] sm:$0xff] }
 0x338   :  { %v7571_v36 = vpack.c.bf16 %v3938_v51, %v3938_v51  ;;  %v3718_v48 = vadd.f32 %v3717_v58, %v3524_v11  ;;  %v4228_v60 = vrot.slane %v4154_v16, 1  ;;  %v11008_v63 = vsel %vm4063_vm2, %v4448_v7, %v10820_v14  ;;  %v3719_v46 = vpop.f32.mrf.mxu1 }
 0x339   :  { %v3853_v21 = vmax.f32 %v12394_v53, %v3813_v22  ;;  %v4259_v13 = vrot.slane %v4250_v25, 5  ;;  %v4291_v57 = vrot.slane %v4250_v25, 7  ;;  %v4324_v52 = vrot.slane %v4250_v25, 1  ;;  %v3529_v51 = vpop.f32.mrf.mxu0 }
 0x33a   :  { %v11010_v35 = vunpack.c.l.b16 %v7571_v36  ;;  %v3939_v41 = vmax.f32 %v3899_v50, 0.0  ;;  %v3814_v39 = vmax.f32 %v12395_v29, %v3718_v48  ;;  %v11016_v16 = vsel %vm4063_vm2, %v4228_v60, %v10905_v5  ;;  %v3722_v62 = vpop.f32.mrf.mxu1 }
 0x33b   :  { %v3900_v18 = vadd.f32 %v10585_v55, %v3853_v21  ;;  %v4275_v45 = vrot.slane %v4250_v25, 6  ;;  %v12398_v22 = vmax.f32 %v12396_v19, %v12397_v32  ;;  %v3723_v36 = vadd.f32 %v3722_v62, %v3529_v51  ;;  %v3531_v50 = vpop.f32.mrf.mxu0  ;;  %v12400_v51 = vld [vmem:[#allocation14_spill] sm:$0xff] }
 0x33c   :  { %v4355_v30 = vrot.slane %v11010_v35, 5  ;;  %v4378_v14 = vrot.slane %v11010_v35, 6  ;;  %v4392_v7 = vrot.slane %v11010_v35, 7  ;;  %v7579_v17 = vpack.c.bf16 %v3939_v41, %v3939_v41  ;;  %v3724_v58 = vpop.f32.mrf.mxu1 }
 0x33d   :  { %v3940_v28 = vmax.f32 %v3900_v18, 0.0  ;;  %v3854_v11 = vmax.f32 %v12398_v22, %v3814_v39  ;;  %v11030_v43 = vsel %vm4063_vm2, %v4275_v45, %v10909_v6  ;;  %v11034_v33 = vsel %vm4063_vm2, %v4259_v13, %v10888_v8  ;;  %v3532_v46 = vpop.f32.mrf.mxu0 }
 0x33e   :  { %v11026_v5 = vsel %vm4066_vm3, %v4392_v7, %v10892_v27  ;;  %v11038_v53 = vsel %vm4063_vm2, %v4250_v25, %v10932_v23  ;;  %v11040_v21 = vunpack.c.l.b16 %v7579_v17  ;;  %v12399_v27 = vld [vmem:[#allocation60_spill] sm:$0xff]  ;;  %v3725_v41 = vpop.f32.mrf.mxu1  ;;  %v11046_v6 = vsel %vm4063_vm2, %v4355_v30, %v10940_v1 }
 0x33f   :  { %v7548_v48 = vpack.c.bf16 %v3940_v28, %v3940_v28  ;;  %v3901_v47 = vadd.f32 %v10585_v55, %v3854_v11  ;;  %v3815_v60 = vmax.f32 %v12399_v27, %v3723_v36  ;;  %v11050_v8 = vsel %vm4066_vm3, %v4355_v30, %v10901_v31  ;;  %v3534_v31 = vpop.f32.mrf.mxu0  ;;  %v12401_v30 = vld [vmem:[#allocation35_spill] sm:$0xff] }
 0x340   :  { %v11054_v23 = vsel %vm4063_vm2, %v4291_v57, %v10869_v2  ;;  %v11058_v25 = vsel %vm4063_vm2, %v4324_v52, %v10944_v34  ;;  %v4474_v13 = vrot.slane %v10706_v37, 2  ;;  %v4475_v18 = vrot.slane %v10798_v42, 1  ;;  %v3727_v62 = vpop.f32.mrf.mxu1 }
 0x341   :  { %v11065_v1 = vsel %vm4066_vm3, %v11040_v21, %v10928_v56  ;;  %v4052_v29 = vunpack.c.l.b16 %v7548_v48  ;;  %v3941_v39 = vmax.f32 %v3901_v47, 0.0  ;;  %v12402_v2 = vmax.f32 %v12400_v51, %v12401_v30  ;;  %v3537_v52 = vpop.f32.mrf.mxu0  ;;  %v12403_v48 = vld [vmem:[#allocation15_spill] sm:$0xff]  ;;  %v12404_v47 = vld [vmem:[#allocation36_spill] sm:$0xff] }
 0x342   :  { %v3726_v7 = vadd.f32 %v3725_v41, %v3532_v46  ;;  %v11072_v34 = vsel %vm4066_vm3, %v4378_v14, %v10948_v54  ;;  %v3730_v32 = vpop.f32.mrf.mxu1  ;;  %v4450_v41 = vrot.slane %v11040_v21, 5 }
 0x343   :  { %v3855_v57 = vmax.f32 %v12402_v2, %v3815_v60  ;;  %v4065_v37 = vrot.slane %v4052_v29, 4  ;;  %v4101_v42 = vrot.slane %v4052_v29, 6  ;;  %v4085_v45 = vrot.slane %v4052_v29, 5  ;;  %v3539_v36 = vpop.f32.mrf.mxu0  ;;  %v12406_v2 = vld [vmem:[#allocation16_spill] sm:$0xff] }
 0x344   :  { %v4117_v17 = vrot.slane %v4052_v29, 7  ;;  %v7556_v56 = vpack.c.bf16 %v3941_v39, %v3941_v39  ;;  %v3816_v19 = vmax.f32 %v10478_v26, %v3726_v7  ;;  %v11078_v22 = vsel %vm4066_vm3, %v4052_v29, %v10990_v38  ;;  %v3732_v60 = vpop.f32.mrf.mxu1 }
 0x345   :  { %v3902_v28 = vadd.f32 %v10585_v55, %v3855_v57  ;;  %v3731_v11 = vadd.f32 %v3730_v32, %v3537_v52  ;;  %v11082_v54 = vsel %vm4066_vm3, %v4085_v45, %v10974_v40  ;;  %v11090_v50 = vsel %vm4066_vm3, %v4065_v37, %v10960_v44  ;;  %v12407_v57 = vld [vmem:[#allocation37_spill] sm:$0xff] }
 0x346   :  { %v11086_v14 = vsel %vm4066_vm3, %v4117_v17, %v10968_v12  ;;  %v4155_v26 = vunpack.c.l.b16 %v7556_v56  ;;  %v12405_v38 = vmax.f32 %v12403_v48, %v12404_v47  ;;  %v11097_v46 = vsel %vm4066_vm3, %v4101_v42, %v10964_v24  ;;  %v3540_v12 = vpop.f32.mrf.mxu0  ;;  %v3733_v30 = vpop.f32.mrf.mxu1  ;;  %v12409_v56 = vld [vmem:[#allocation61_spill] sm:$0xff] }
 0x347   :  { %v3942_v58 = vmax.f32 %v3902_v28, 0.0  ;;  %v3817_v40 = vmax.f32 %v10483_v3, %v3731_v11  ;;  %v11103_v44 = vsel %vm4066_vm3, %v11010_v35, %v10952_v9  ;;  %v11107_v29 = vsel %vm4060_vm1, %v4475_v18, %v4474_v13  ;;  %v12410_v47 = vld [vmem:[#allocation17_spill] sm:$0xff] }
 0x348   :  { %v3856_v27 = vmax.f32 %v12405_v38, %v3816_v19  ;;  %v4181_v31 = vrot.slane %v4155_v26, 5  ;;  %v4213_v39 = vrot.slane %v4155_v26, 7  ;;  %v12408_v3 = vmax.f32 %v12406_v2, %v12407_v57  ;;  %v3542_v37 = vpop.f32.mrf.mxu0  ;;  %v3735_v45 = vpop.f32.mrf.mxu1  ;;  %v12411_v38 = vld [vmem:[#allocation38_spill] sm:$0xff] }
 0x349   :  { %v7564_v51 = vpack.c.bf16 %v3942_v58, %v3942_v58  ;;  %v3734_v62 = vadd.f32 %v3733_v30, %v3540_v12  ;;  %v4165_v42 = vrot.slane %v4155_v26, 4  ;;  %v4197_v9 = vrot.slane %v4155_v26, 6  ;;  %v12414_v45 = vld [vmem:[#allocation18_spill] sm:$0xff] }
 0x34a   :  { %v3903_v24 = vadd.f32 %v10585_v55, %v3856_v27  ;;  %v3857_v7 = vmax.f32 %v12408_v3, %v3817_v40  ;;  %v11115_v13 = vsel %vm4066_vm3, %v4181_v31, %v10994_v0  ;;  %v11119_v18 = vsel %vm4066_vm3, %v4155_v26, %v11016_v16  ;;  %v11124_v55 = vld [vmem:[%s12195_s2] ss:$0 sm:$0xff]  ;;  %v3545_v19 = vpop.f32.mrf.mxu0  ;;  %v3738_v26 = vpop.f32.mrf.mxu1 }
 0x34b   :  { %v4251_v35 = vunpack.c.l.b16 %v7564_v51  ;;  %v3818_v28 = vmax.f32 %v12409_v56, %v3734_v62  ;;  %v11130_v32 = vsel %vm4066_vm3, %v4165_v42, %v10986_v10  ;;  %v11134_v0 = vsel %vm4066_vm3, %v4197_v9, %v10999_v61  ;;  %v12413_v3 = vld [vmem:[#allocation62_spill] sm:$0xff] }
 0x34c   :  { %v3943_v52 = vmax.f32 %v3903_v24, 0.0  ;;  %v3904_v17 = vadd.f32 %v11124_v55, %v3857_v7  ;;  %v12412_v27 = vmax.f32 %v12410_v47, %v12411_v38  ;;  %v3739_v40 = vadd.f32 %v3738_v26, %v3545_v19  ;;  %v3547_v12 = vpop.f32.mrf.mxu0  ;;  %v3740_v51 = vpop.f32.mrf.mxu1  ;;  %v12417_v38 = vld [vmem:[#allocation63_spill] sm:$0xff] }
 0x34d   :  { %v4261_v16 = vrot.slane %v4251_v35, 4  ;;  %v4293_v11 = vrot.slane %v4251_v35, 6  ;;  %v4277_v58 = vrot.slane %v4251_v35, 5  ;;  %v11141_v10 = vsel %vm4066_vm3, %v4213_v39, %v10978_v59 }
 0x34e   :  { %v7572_v36 = vpack.c.bf16 %v3943_v52, %v3943_v52  ;;  %v3944_v48 = vmax.f32 %v3904_v17, 0.0  ;;  %v3858_v60 = vmax.f32 %v12412_v27, %v3818_v28  ;;  %v4309_v30 = vrot.slane %v4251_v35, 7  ;;  %v3548_v62 = vpop.f32.mrf.mxu0  ;;  %v12415_v17 = vld [vmem:[#allocation39_spill] sm:$0xff] }
 0x34f   :  { %v11145_v61 = vsel %vm4066_vm3, %v4277_v58, %v11030_v43  ;;  %v11149_v24 = vsel %vm4066_vm3, %v4261_v16, %v11034_v33  ;;  %v3819_v7 = vmax.f32 %v12413_v3, %v3739_v40  ;;  %v11155_v59 = vsel %vm4066_vm3, %v4293_v11, %v11054_v23  ;;  %v3741_v43 = vpop.f32.mrf.mxu1 }
 0x350   :  { %v4347_v31 = vunpack.c.l.b16 %v7572_v36  ;;  %v7580_v2 = vpack.c.bf16 %v3944_v48, %v3944_v48  ;;  %v3905_v57 = vadd.f32 %v11124_v55, %v3858_v60  ;;  %v11159_v9 = vsel %vm4066_vm3, %v4309_v30, %v11038_v53  ;;  %v3550_v16 = vpop.f32.mrf.mxu0  ;;  %v12418_v30 = vld [vmem:[#allocation19_spill] sm:$0xff] }
 0x351   :  { %v12416_v56 = vmax.f32 %v12414_v45, %v12415_v17  ;;  %v3742_v19 = vadd.f32 %v3741_v43, %v3548_v62  ;;  %v3743_v11 = vpop.f32.mrf.mxu1  ;;  %v11172_v26 = vsel %vm4066_vm3, %v4251_v35, %v11058_v25 }
 0x352   :  { %v4380_v39 = vrot.slane %v4347_v31, 5  ;;  %v4394_v37 = vrot.slane %v4347_v31, 6  ;;  %v4408_v42 = vrot.slane %v4347_v31, 7  ;;  %v11161_v33 = vunpack.c.l.b16 %v7580_v2  ;;  %v3553_v48 = vpop.f32.mrf.mxu0 }
 0x353   :  { %v3945_v52 = vmax.f32 %v3905_v57, 0.0  ;;  %v3859_v28 = vmax.f32 %v12416_v56, %v3819_v7  ;;  %v4357_v36 = vrot.slane %v4347_v31, 4  ;;  %v3820_v27 = vmax.f32 %v12417_v38, %v3742_v19  ;;  %v3746_v60 = vpop.f32.mrf.mxu1  ;;  %v12422_v56 = vld [vmem:[#allocation20_spill] sm:$0xff] }
 0x354   :  { %v11168_v23 = vsel %vm4069_vm4, %v4394_v37, %v11026_v5  ;;  %v11176_v53 = vsel %vm4069_vm4, %v4380_v39, %v11072_v34  ;;  %v3747_v35 = vadd.f32 %v3746_v60, %v3553_v48  ;;  %v3555_v12 = vpop.f32.mrf.mxu0  ;;  %v11190_v34 = vsel %vm4069_vm4, %v4408_v42, %v11103_v44  ;;  %v12421_v37 = vld [vmem:[#allocation64_spill] sm:$0xff] }
 0x355   :  { %v7549_v58 = vpack.c.bf16 %v3945_v52, %v3945_v52  ;;  %v3906_v47 = vadd.f32 %v11124_v55, %v3859_v28  ;;  %v11182_v5 = vsel %vm4066_vm3, %v4357_v36, %v11046_v6  ;;  %v11186_v40 = vsel %vm4069_vm4, %v4357_v36, %v11050_v8  ;;  %v12419_v6 = vld [vmem:[#allocation40_spill] sm:$0xff]  ;;  %v3748_v3 = vpop.f32.mrf.mxu1  ;;  %v12423_v28 = vld [vmem:[#allocation41_spill] sm:$0xff] }
 0x356   :  { %v4451_v31 = vsel %vm4066_vm3, %v4450_v41, %v11008_v63  ;;  %v12420_v2 = vmax.f32 %v12418_v30, %v12419_v6  ;;  %v4452_v8 = vrot.slane %v11161_v33, 4  ;;  %v11203_v7 = vsel %vm4063_vm2, %v10894_v15, %v11107_v29  ;;  %v3556_v43 = vpop.f32.mrf.mxu0  ;;  %v12427_v3 = vld [vmem:[#allocation42_spill] sm:$0xff] }
 0x357   :  { %v4053_v25 = vunpack.c.l.b16 %v7549_v58  ;;  %v3946_v51 = vmax.f32 %v3906_v47, 0.0  ;;  %v3821_v42 = vmax.f32 %v12421_v37, %v3747_v35  ;;  %v3749_v52 = vpop.f32.mrf.mxu1  ;;  %v12424_v19 = vmax.f32 %v12422_v56, %v12423_v28 }
 0x358   :  { %v3860_v57 = vmax.f32 %v12420_v2, %v3820_v27  ;;  %v3750_v11 = vadd.f32 %v3749_v52, %v3556_v43  ;;  %v3558_v36 = vpop.f32.mrf.mxu0  ;;  %v11233_v12 = vsel %vm4069_vm4, %v4452_v8, %v4451_v31 }
 0x359   :  { %v4068_v44 = vrot.slane %v4053_v25, 3  ;;  %v4103_v62 = vrot.slane %v4053_v25, 5  ;;  %v4135_v39 = vrot.slane %v4053_v25, 7  ;;  %v7557_v63 = vpack.c.bf16 %v3946_v51, %v3946_v51  ;;  %v3751_v47 = vpop.f32.mrf.mxu1 }
 0x35a   :  { %v3907_v41 = vadd.f32 %v11124_v55, %v3860_v57  ;;  %v4087_v45 = vrot.slane %v4053_v25, 4  ;;  %v4119_v17 = vrot.slane %v4053_v25, 6  ;;  %v3861_v16 = vmax.f32 %v12424_v19, %v3821_v42  ;;  %v12425_v25 = vld [vmem:[#allocation65_spill] sm:$0xff]  ;;  %v3561_v35 = vpop.f32.mrf.mxu0  ;;  %v12431_v47 = vld [vmem:[#allocation43_spill] sm:$0xff] }
 0x35b   :  { %v11212_v15 = vsel %vm4069_vm4, %v4068_v44, %v11090_v50  ;;  %v11216_v29 = vsel %vm4069_vm4, %v4103_v62, %v11097_v46  ;;  %v4156_v58 = vunpack.c.l.b16 %v7557_v63  ;;  %v3822_v50 = vmax.f32 %v12425_v25, %v3750_v11  ;;  %v3754_v6 = vpop.f32.mrf.mxu1  ;;  %v12426_v57 = vld [vmem:[#allocation21_spill] sm:$0xff] }
 0x35c   :  { %v3947_v48 = vmax.f32 %v3907_v41, 0.0  ;;  %v11220_v38 = vsel %vm4069_vm4, %v4087_v45, %v11082_v54  ;;  %v11224_v27 = vsel %vm4069_vm4, %v4119_v17, %v11086_v14  ;;  %v3908_v60 = vadd.f32 %v11124_v55, %v3861_v16  ;;  %v3563_v42 = vpop.f32.mrf.mxu0  ;;  %v12429_v45 = vld [vmem:[#allocation66_spill] sm:$0xff] }
 0x35d   :  { %v11230_v46 = vsel %vm4069_vm4, %v4135_v39, %v11078_v22  ;;  %v4183_v51 = vrot.slane %v4156_v58, 4  ;;  %v4215_v54 = vrot.slane %v4156_v58, 6  ;;  %v4167_v2 = vrot.slane %v4156_v58, 3  ;;  %v3756_v41 = vpop.f32.mrf.mxu1 }
 0x35e   :  { %v7565_v30 = vpack.c.bf16 %v3947_v48, %v3947_v48  ;;  %v3948_v14 = vmax.f32 %v3908_v60, 0.0  ;;  %v12428_v44 = vmax.f32 %v12426_v57, %v12427_v3  ;;  %v3755_v37 = vadd.f32 %v3754_v6, %v3561_v35  ;;  %v3564_v56 = vpop.f32.mrf.mxu0  ;;  %v12430_v48 = vld [vmem:[#allocation22_spill] sm:$0xff]  ;;  %v12433_v3 = vld [vmem:[#allocation67_spill] sm:$0xff] }
 0x35f   :  { %v4199_v43 = vrot.slane %v4156_v58, 5  ;;  %v11240_v22 = vsel %vm4069_vm4, %v4167_v2, %v11130_v32  ;;  %v11244_v31 = vsel %vm4069_vm4, %v4183_v51, %v11115_v13  ;;  %v4231_v8 = vrot.slane %v4156_v58, 7  ;;  %v3757_v32 = vpop.f32.mrf.mxu1  ;;  %v12434_v41 = vld [vmem:[#allocation23_spill] sm:$0xff] }
 0x360   :  { %v3862_v62 = vmax.f32 %v12428_v44, %v3822_v50  ;;  %v4252_v63 = vunpack.c.l.b16 %v7565_v30  ;;  %v7573_v39 = vpack.c.bf16 %v3948_v14, %v3948_v14  ;;  %v3823_v17 = vmax.f32 %v12429_v45, %v3755_v37  ;;  %v3566_v35 = vpop.f32.mrf.mxu0 }
 0x361   :  { %v11250_v28 = vsel %vm4069_vm4, %v4199_v43, %v11134_v0  ;;  %v11254_v36 = vsel %vm4069_vm4, %v4231_v8, %v11119_v18  ;;  %v12432_v60 = vmax.f32 %v12430_v48, %v12431_v47  ;;  %v3758_v50 = vadd.f32 %v3757_v32, %v3564_v56  ;;  %v3759_v51 = vpop.f32.mrf.mxu1  ;;  %v12435_v8 = vld [vmem:[#allocation44_spill] sm:$0xff] }
 0x362   :  { %v3909_v52 = vadd.f32 %v11124_v55, %v3862_v62  ;;  %v4263_v19 = vrot.slane %v4252_v63, 3  ;;  %v4295_v16 = vrot.slane %v4252_v63, 5  ;;  %v4327_v11 = vrot.slane %v4252_v63, 7  ;;  %v3569_v62 = vpop.f32.mrf.mxu0  ;;  %v12437_v48 = vld [vmem:[#allocation68_spill] sm:$0xff] }
 0x363   :  { %v4348_v13 = vunpack.c.l.b16 %v7573_v39  ;;  %v3863_v25 = vmax.f32 %v12432_v60, %v3823_v17  ;;  %v4279_v30 = vrot.slane %v4252_v63, 4  ;;  %v11261_v0 = vsel %vm4069_vm4, %v4215_v54, %v11141_v10  ;;  %v3762_v37 = vpop.f32.mrf.mxu1  ;;  %v12438_v51 = vld [vmem:[#allocation24_spill] sm:$0xff] }
 0x364   :  { %v3949_v58 = vmax.f32 %v3909_v52, 0.0  ;;  %v11265_v6 = vsel %vm4069_vm4, %v4263_v19, %v11149_v24  ;;  %v4311_v18 = vrot.slane %v4252_v63, 6  ;;  %v3824_v44 = vmax.f32 %v12433_v3, %v3758_v50  ;;  %v3571_v17 = vpop.f32.mrf.mxu0 }
 0x365   :  { %v4396_v2 = vrot.slane %v4348_v13, 5  ;;  %v3910_v57 = vadd.f32 %v11124_v55, %v3863_v25  ;;  %v11271_v42 = vsel %vm4069_vm4, %v4279_v30, %v11145_v61  ;;  %v4359_v54 = vrot.slane %v4348_v13, 3  ;;  %v3764_v61 = vpop.f32.mrf.mxu1  ;;  %v12439_v30 = vld [vmem:[#allocation45_spill] sm:$0xff] }
 0x366   :  { %v7581_v14 = vpack.c.bf16 %v3949_v58, %v3949_v58  ;;  %v11275_v10 = vsel %vm4069_vm4, %v4311_v18, %v11159_v9  ;;  %v11279_v24 = vsel %vm4069_vm4, %v4295_v16, %v11155_v59  ;;  %v12436_v39 = vmax.f32 %v12434_v41, %v12435_v8  ;;  %v3572_v32 = vpop.f32.mrf.mxu0 }
 0x367   :  { %v3950_v63 = vmax.f32 %v3910_v57, 0.0  ;;  %v3763_v45 = vadd.f32 %v3762_v37, %v3569_v62  ;;  %v11288_v56 = vsel %vm4069_vm4, %v4359_v54, %v11182_v5  ;;  %v11292_v9 = vsel %vm4072_vm5, %v4359_v54, %v11186_v40  ;;  %v3765_v60 = vpop.f32.mrf.mxu1  ;;  %v12441_v62 = vld [vmem:[#allocation69_spill] sm:$0xff] }
 0x368   :  { %v11281_v43 = vunpack.c.l.b16 %v7581_v14  ;;  %v3864_v52 = vmax.f32 %v12436_v39, %v3824_v44  ;;  %v11296_v59 = vsel %vm4069_vm4, %v4327_v11, %v11172_v26  ;;  %v4382_v19 = vrot.slane %v4348_v13, 4  ;;  %v3574_v35 = vpop.f32.mrf.mxu0 }
 0x369   :  { %v7550_v16 = vpack.c.bf16 %v3950_v63, %v3950_v63  ;;  %v3825_v47 = vmax.f32 %v12437_v48, %v3763_v45  ;;  %v4410_v25 = vrot.slane %v4348_v13, 6  ;;  %v3766_v40 = vadd.f32 %v3765_v60, %v3572_v32  ;;  %v3767_v57 = vpop.f32.mrf.mxu1  ;;  %v12443_v45 = vld [vmem:[#allocation46_spill] sm:$0xff] }
 0x36a   :  { %v3911_v58 = vadd.f32 %v11124_v55, %v3864_v52  ;;  %v11302_v5 = vsel %vm4072_vm5, %v4382_v19, %v11176_v53  ;;  %v11306_v26 = vsel %vm4072_vm5, %v4396_v2, %v11168_v23  ;;  %v12440_v18 = vmax.f32 %v12438_v51, %v12439_v30  ;;  %v3577_v54 = vpop.f32.mrf.mxu0  ;;  %v12442_v52 = vld [vmem:[#allocation25_spill] sm:$0xff]  ;;  %v12446_v57 = vld [vmem:[#allocation26_spill] sm:$0xff] }
 0x36b   :  { %v4054_v50 = vunpack.c.l.b16 %v7550_v16  ;;  %v11313_v3 = vsel %vm4072_vm5, %v4410_v25, %v11190_v34  ;;  %v4454_v53 = vrot.slane %v11281_v43, 3  ;;  %v3826_v37 = vmax.f32 %v12441_v62, %v3766_v40  ;;  %v3770_v41 = vpop.f32.mrf.mxu1  ;;  %v12445_v40 = vld [vmem:[#allocation70_spill] sm:$0xff] }
 0x36c   :  { %v3951_v11 = vmax.f32 %v3911_v58, 0.0  ;;  %v3865_v14 = vmax.f32 %v12440_v18, %v3825_v47  ;;  %v12444_v17 = vmax.f32 %v12442_v52, %v12443_v45  ;;  %v3771_v34 = vadd.f32 %v3770_v41, %v3577_v54  ;;  %v3579_v19 = vpop.f32.mrf.mxu0 }
 0x36d   :  { %v4071_v13 = vrot.slane %v4054_v50, 2  ;;  %v4105_v44 = vrot.slane %v4054_v50, 4  ;;  %v4089_v63 = vrot.slane %v4054_v50, 3  ;;  %v4121_v8 = vrot.slane %v4054_v50, 5  ;;  %v3772_v47 = vpop.f32.mrf.mxu1 }
 0x36e   :  { %v7558_v23 = vpack.c.bf16 %v3951_v11, %v3951_v11  ;;  %v3912_v2 = vadd.f32 %v11124_v55, %v3865_v14  ;;  %v4137_v39 = vrot.slane %v4054_v50, 6  ;;  %v3866_v61 = vmax.f32 %v12444_v17, %v3826_v37  ;;  %v3580_v35 = vpop.f32.mrf.mxu0  ;;  %v12450_v47 = vld [vmem:[#allocation27_spill] sm:$0xff] }
 0x36f   :  { %v11323_v16 = vsel %vm4072_vm5, %v4089_v63, %v11220_v38  ;;  %v11327_v32 = vsel %vm4072_vm5, %v4071_v13, %v11212_v15  ;;  %v11331_v60 = vsel %vm4072_vm5, %v4121_v8, %v11224_v27  ;;  %v11335_v25 = vsel %vm4072_vm5, %v4105_v44, %v11216_v29  ;;  %v3773_v27 = vpop.f32.mrf.mxu1  ;;  %v12447_v13 = vld [vmem:[#allocation47_spill] sm:$0xff] }
 0x370   :  { %v4157_v58 = vunpack.c.l.b16 %v7558_v23  ;;  %v3952_v48 = vmax.f32 %v3912_v2, 0.0  ;;  %v3913_v50 = vadd.f32 %v11124_v55, %v3866_v61  ;;  %v3827_v38 = vmax.f32 %v12445_v40, %v3771_v34  ;;  %v3582_v54 = vpop.f32.mrf.mxu0 }
 0x371   :  { %v11341_v15 = vsel %vm4072_vm5, %v4137_v39, %v11230_v46  ;;  %v11345_v11 = vsel %vm4072_vm5, %v4454_v53, %v11233_v12  ;;  %v12448_v44 = vmax.f32 %v12446_v57, %v12447_v13  ;;  %v3774_v37 = vadd.f32 %v3773_v27, %v3580_v35  ;;  %v3775_v46 = vpop.f32.mrf.mxu1  ;;  %v12449_v39 = vld [vmem:[#allocation71_spill] sm:$0xff] }
 0x372   :  { %v7566_v51 = vpack.c.bf16 %v3952_v48, %v3952_v48  ;;  %v4169_v30 = vrot.slane %v4157_v58, 2  ;;  %v4201_v18 = vrot.slane %v4157_v58, 4  ;;  %v4185_v14 = vrot.slane %v4157_v58, 3  ;;  %v3585_v45 = vpop.f32.mrf.mxu0  ;;  %v12454_v46 = vld [vmem:[#allocation28_spill] sm:$0xff] }
 0x373   :  { %v3953_v29 = vmax.f32 %v3913_v50, 0.0  ;;  %v3867_v62 = vmax.f32 %v12448_v44, %v3827_v38  ;;  %v4233_v63 = vrot.slane %v4157_v58, 6  ;;  %v3828_v52 = vmax.f32 %v12449_v39, %v3774_v37  ;;  %v12451_v50 = vld [vmem:[#allocation48_spill] sm:$0xff] }
 0x374   :  { %v4253_v23 = vunpack.c.l.b16 %v7566_v51  ;;  %v11352_v2 = vsel %vm4072_vm5, %v4169_v30, %v11240_v22  ;;  %v11356_v12 = vsel %vm4072_vm5, %v4201_v18, %v11250_v28  ;;  %v11360_v53 = vsel %vm4072_vm5, %v4185_v14, %v11244_v31  ;;  %v3778_v22 = vpop.f32.mrf.mxu1  ;;  %v3587_v35 = vpop.f32.mrf.mxu0 }
 0x375   :  { %v7574_v41 = vpack.c.bf16 %v3953_v29, %v3953_v29  ;;  %v3914_v8 = vadd.f32 %v11124_v55, %v3867_v62  ;;  %v11366_v17 = vsel %vm4072_vm5, %v4233_v63, %v11254_v36  ;;  %v4217_v34 = vrot.slane %v4157_v58, 5  ;;  %v12453_v29 = vld [vmem:[#allocation72_spill] sm:$0xff] }
 0x376   :  { %v4281_v61 = vrot.slane %v4253_v23, 3  ;;  %v4265_v19 = vrot.slane %v4253_v23, 2  ;;  %v4313_v28 = vrot.slane %v4253_v23, 5  ;;  %v12452_v31 = vmax.f32 %v12450_v47, %v12451_v50  ;;  %v3780_v51 = vpop.f32.mrf.mxu1  ;;  %v3588_v13 = vpop.f32.mrf.mxu0  ;;  %v12457_v50 = vld [vmem:[#allocation73_spill] sm:$0xff] }
 0x377   :  { %v4349_v48 = vunpack.c.l.b16 %v7574_v41  ;;  %v3779_v38 = vadd.f32 %v3778_v22, %v3585_v45  ;;  %v11377_v36 = vsel %vm4072_vm5, %v4217_v34, %v11261_v0  ;;  %v3954_v18 = vmax.f32 %v3914_v8, 0.0  ;;  %v12455_v41 = vld [vmem:[#allocation49_spill] sm:$0xff] }
 0x378   :  { %v3868_v40 = vmax.f32 %v12452_v31, %v3828_v52  ;;  %v11373_v27 = vsel %vm4072_vm5, %v4281_v61, %v11271_v42  ;;  %v11381_v58 = vsel %vm4072_vm5, %v4265_v19, %v11265_v6  ;;  %v11385_v30 = vsel %vm4072_vm5, %v4313_v28, %v11275_v10  ;;  %v3781_v44 = vpop.f32.mrf.mxu1  ;;  %v3590_v8 = vpop.f32.mrf.mxu0 }
 0x379   :  { %v3829_v57 = vmax.f32 %v12453_v29, %v3779_v38  ;;  %v4478_v42 = vrot.slane %v11040_v21, 7  ;;  %v4361_v62 = vrot.slane %v4349_v48, 2  ;;  %v4297_v0 = vrot.slane %v4253_v23, 4  ;;  %v12458_v29 = vld [vmem:[#allocation29_spill] sm:$0xff]  ;;  %v12463_v8 = vld [vmem:[#allocation51_spill] sm:$0xff] }
 0x37a   :  { %v3915_v14 = vadd.f32 %v11124_v55, %v3868_v40  ;;  %v4329_v37 = vrot.slane %v4253_v23, 6  ;;  %v4384_v54 = vrot.slane %v4349_v48, 3  ;;  %v4398_v63 = vrot.slane %v4349_v48, 4  ;;  %v3783_v45 = vpop.f32.mrf.mxu1  ;;  %v3593_v28 = vpop.f32.mrf.mxu0 }
 0x37b   :  { %v12456_v39 = vmax.f32 %v12454_v46, %v12455_v41  ;;  %v3782_v52 = vadd.f32 %v3781_v44, %v3588_v13  ;;  %v11395_v22 = vsel %vm4072_vm5, %v4361_v62, %v11288_v56  ;;  %v11399_v61 = vsel %vm4075_vm6, %v4361_v62, %v11292_v9 }
 0x37c   :  { %v3955_v6 = vmax.f32 %v3915_v14, 0.0  ;;  %v11403_v23 = vsel %vm4072_vm5, %v4297_v0, %v11279_v24  ;;  %v11407_v34 = vsel %vm4072_vm5, %v4329_v37, %v11296_v59  ;;  %v3786_v56 = vpop.f32.mrf.mxu1  ;;  %v11413_v40 = vsel %vm4075_vm6, %v4384_v54, %v11302_v5  ;;  %v3595_v51 = vpop.f32.mrf.mxu0  ;;  %v12461_v37 = vld [vmem:[#allocation74_spill] sm:$0xff] }
 0x37d   :  { %v3869_v10 = vmax.f32 %v12456_v39, %v3829_v57  ;;  %v3830_v31 = vmax.f32 %v12457_v50, %v3782_v52  ;;  %v4412_v9 = vrot.slane %v4349_v48, 5  ;;  %v7582_v38 = vpack.c.bf16 %v3954_v18, %v3954_v18  ;;  %v12459_v57 = vld [vmem:[#allocation50_spill] sm:$0xff] }
 0x37e   :  { %v7551_v19 = vpack.c.bf16 %v3955_v6, %v3955_v6  ;;  %v3787_v24 = vadd.f32 %v3786_v56, %v3593_v28  ;;  %v11417_v59 = vsel %vm4075_vm6, %v4398_v63, %v11306_v26  ;;  %v12460_v13 = vmax.f32 %v12458_v29, %v12459_v57  ;;  %v3788_v62 = vpop.f32.mrf.mxu1  ;;  %v3596_v26 = vpop.f32.mrf.mxu0  ;;  %v12462_v52 = vld [vmem:[#allocation30_spill] sm:$0xff]  ;;  %v8389_v57 = vld [vmem:[%s12194_s3 + $0x1b8] sm:$0xff]  }
 0x37f   :  { %v3916_v47 = vadd.f32 %v11124_v55, %v3869_v10  ;;  %v11424_v0 = vsel %vm4075_vm6, %v4412_v9, %v11313_v3  ;;  %v11428_v5 = vsel %vm4066_vm3, %v4478_v42, %v11203_v7  ;;  %v12464_v3 = vmax.f32 %v12462_v52, %v12463_v8  ;;  %v8388_v9 = vld [vmem:[%s12194_s3 + $0x138] sm:$0xff]   ;;  %v12465_v62 = vld [vmem:[#allocation31_spill] sm:$0xff] }
 0x380   :  { %v4055_v35 = vunpack.c.l.b16 %v7551_v19  ;;  %v3870_v44 = vmax.f32 %v12460_v13, %v3830_v31  ;;  %v3831_v54 = vmax.f32 %v12461_v37, %v3787_v24  ;;  %v3789_v41 = vpop.f32.mrf.mxu1  ;;  %v3598_v28 = vpop.f32.mrf.mxu0 }
 0x381   :  { %v3956_v14 = vmax.f32 %v3916_v47, 0.0  ;;  %v3790_v19 = vadd.f32 %v3789_v41, %v3596_v26 }
 0x382   :  { %v4074_v48 = vrot.slane %v4055_v35, 1  ;;  %v4107_v18 = vrot.slane %v4055_v35, 3  ;;  %v4091_v63 = vrot.slane %v4055_v35, 2  ;;  %v3917_v46 = vadd.f32 %v11124_v55, %v3870_v44 }
 0x383   :  { %v7559_v6 = vpack.c.bf16 %v3956_v14, %v3956_v14  ;;  %v4123_v39 = vrot.slane %v4055_v35, 4  ;;  %v4139_v10 = vrot.slane %v4055_v35, 5  ;;  %v3871_v45 = vmax.f32 %v12464_v3, %v3831_v54  ;;  %v3791_v35 = vpop.f32.mrf.mxu1 }
 0x384   :  { %v4092_v7 = vsel %vm4075_vm6, %v4091_v63, %v11323_v16  ;;  %v4076_v42 = vsel %vm4075_vm6, %v4074_v48, %v11327_v32  ;;  %v3957_v50 = vmax.f32 %v3917_v46, 0.0  ;;  %v3832_v16 = vmax.f32 %v10576_v49, %v3790_v19  ;;  %v8390_v32 = vld [vmem:[%s12194_s3 + $0x170] sm:$0xff]  }
 0x385   :  { %v11439_v47 = vunpack.c.l.b16 %v7559_v6  ;;  %v4093_v31 = vpack.c.b16 %v4092_v7, %v4092_v7  ;;  %v4124_v56 = vsel %vm4075_vm6, %v4123_v39, %v11331_v60  ;;  %v3918_v24 = vadd.f32 %v11124_v55, %v3871_v45  ;;  %v12466_v48 = vld [vmem:[#allocation52_spill] sm:$0xff] }
 0x386   :  { %v4125_v51 = vpack.c.b16 %v4124_v56, %v4124_v56  ;;  %v4077_v14 = vpack.c.b16 %v4076_v42, %v4076_v42  ;;  %v7567_v29 = vpack.c.bf16 %v3957_v50, %v3957_v50  ;;  %v4108_v60 = vsel %vm4075_vm6, %v4107_v18, %v11335_v25  ;;  %v8391_v25 = vld [vmem:[%s12194_s3 + $0x1f0] sm:$0xff]   ;;  %v8395_v42 = vld [vmem:[%s12194_s3 + $0x1e8] sm:$0xff]  }
 0x387   :  { %6213 = vmatprep.mubr.bf16.mxu0 %v4093_v31  ;;  %v4171_v13 = vrot.slane %v11439_v47, 1  ;;  %v4203_v44 = vrot.slane %v11439_v47, 3  ;;  %v3958_v49 = vmax.f32 %v3918_v24, 0.0  ;;  %v12467_v37 = vmax.f32 %v12465_v62, %v12466_v48  ;;  %v8392_v39 = vld [vmem:[%s12194_s3 + $0x130] sm:$0xff]   ;;  %v8396_v31 = vld [vmem:[%s12194_s3 + $0x128] sm:$0xff]  }
 0x388   :  { %6253 = vmatprep.mubr.bf16.mxu1 %v4125_v51  ;;  %6214 = vmatmul.mubr.bf16.vlgmr.msra.gmra.mxu0 %v4077_v14  ;;  %v4109_v26 = vpack.c.b16 %v4108_v60, %v4108_v60  ;;  %v11466_v18 = vsel %vm4075_vm6, %v4139_v10, %v11341_v15  ;;  %v11468_v63 = vunpack.c.l.b16 %v7582_v38  ;;  %v4254_v6 = vunpack.c.l.b16 %v7567_v29  ;;  %v8394_v38 = vld [vmem:[%s12194_s3 + $0x168] sm:$0xff]  }
 0x389   :  { %v3872_v54 = vmax.f32 %v12467_v37, %v3832_v16  ;;  %7629 = vmatpush3.bf16.msra.mxu0 %v8388_v9  ;;  %v4172_v46 = vsel %vm4075_vm6, %v4171_v13, %v11352_v2  ;;  %v4204_v41 = vsel %vm4075_vm6, %v4203_v44, %v11356_v12  ;;  %v7575_v52 = vpack.c.bf16 %v3958_v49, %v3958_v49  ;;  %v8393_v12 = vld [vmem:[%s12194_s3 + $0x1b0] sm:$0xff]   ;;  %v8397_v16 = vld [vmem:[%s12194_s3 + $0x1a8] sm:$0xff]   ;;  %v8402_v13 = vld [vmem:[%s12194_s3 + $0x158] sm:$0xff]  }
 0x38a   :  { %6254 = vmatmul.mubr.bf16.vlgmr.msra.gmra.mxu1 %v4109_v26  ;;  %7630 = vmatprep.subr.bf16.mxu0 %v8390_v32  ;;  %v4173_v15 = vpack.c.b16 %v4172_v46, %v4172_v46  ;;  %v4187_v10 = vrot.slane %v11439_v47, 2  ;;  %v4205_v2 = vpack.c.b16 %v4204_v41, %v4204_v41  ;;  %v4235_v3 = vrot.slane %v11439_v47, 5  ;;  %v8399_v32 = vld [vmem:[%s12194_s3 + $0x1e0] sm:$0xff]   ;;  %v8405_v41 = vld [vmem:[%s12194_s3 + $0x198] sm:$0xff]  }
 0x38b   :  { %v3919_v8 = vadd.f32 %v11124_v55, %v3872_v54  ;;  %7651 = vmatpush3.bf16.msra.mxu1 %v8389_v57  ;;  %v4283_v45 = vrot.slane %v4254_v6, 2  ;;  %v4219_v55 = vrot.slane %v11439_v47, 4  ;;  %v4350_v19 = vunpack.c.l.b16 %v7575_v52 }
 0x38c   :  { %6293 = vmatprep.mubr.bf16.mxu0 %v4173_v15  ;;  %7652 = vmatprep.subr.bf16.mxu1 %v8391_v25  ;;  %v11492_v28 = vsel %vm4075_vm6, %v4187_v10, %v11360_v53  ;;  %v4267_v50 = vrot.slane %v4254_v6, 1  ;;  %v11499_v47 = vsel %vm4075_vm6, %v4235_v3, %v11366_v17  ;;  %v4315_v9 = vrot.slane %v4254_v6, 4  ;;  %v8398_v53 = vld [vmem:[%s12194_s3 + $0x160] sm:$0xff]  }
 0x38d   :  { %v3959_v7 = vmax.f32 %v3919_v8, 0.0  ;;  %6333 = vmatprep.mubr.bf16.mxu1 %v4205_v2  ;;  %7631 = vmatpush3.bf16.msra.mxu0 %v8392_v39  ;;  %v11503_v56 = vsel %vm4075_vm6, %v4283_v45, %v11373_v27  ;;  %v4400_v35 = vrot.slane %v4350_v19, 3  ;;  %v11513_v17 = vsel %vm4075_vm6, %v4219_v55, %v11377_v36  ;;  %v8400_v36 = vld [vmem:[%s12194_s3 + $0x120] sm:$0xff]   ;;  %v8407_v8 = vld [vmem:[%s12194_s3 + $0x1d0] sm:$0xff]   ;;  %v8410_v55 = vld [vmem:[%s12194_s3 + $0x148] sm:$0xff]  }
 0x38e   :  { %7632 = vmatprep.subr.bf16.mxu0 %v8394_v38  ;;  %v11517_v27 = vsel %vm4075_vm6, %v4267_v50, %v11381_v58  ;;  %v11521_v51 = vsel %vm4075_vm6, %v4315_v9, %v11385_v30  ;;  %v4363_v14 = vrot.slane %v4350_v19, 1  ;;  %v4456_v29 = vrot.slane %v11468_v63, 2  ;;  %v8408_v2 = vld [vmem:[%s12194_s3 + $0x110] sm:$0xff]  }
 0x38f   :  { %v7583_v24 = vpack.c.bf16 %v3959_v7, %v3959_v7  ;;  %7653 = vmatpush3.bf16.msra.mxu1 %v8393_v12  ;;  %v4299_v60 = vrot.slane %v4254_v6, 3  ;;  %v4331_v57 = vrot.slane %v4254_v6, 5  ;;  %v4386_v44 = vrot.slane %v4350_v19, 2 }
 0x390   :  { %7654 = vmatprep.subr.bf16.mxu1 %v8395_v42  ;;  %v11532_v58 = vsel %vm4075_vm6, %v4363_v14, %v11395_v22  ;;  %v11535_v30 = vpack.c.b16 %v4363_v14, %v11399_v61  ;;  %v4414_v49 = vrot.slane %v4350_v19, 4  ;;  %v11541_v62 = vpack.c.b16 %v4400_v35, %v11417_v59  ;;  %v8401_v22 = vld [vmem:[%s12194_s3 + $0x1a0] sm:$0xff]   ;;  %v8403_v59 = vld [vmem:[%s12194_s3 + $0x1d8] sm:$0xff]   ;;  %v8411_v35 = vld [vmem:[%s12194_s3 + $0x1c8] sm:$0xff]  }
 0x391   :  { %7633 = vmatpush3.bf16.msra.mxu0 %v8396_v31  ;;  %v11543_v48 = vunpack.c.l.b16 %v7583_v24  ;;  %v11550_v61 = vsel %vm4075_vm6, %v4299_v60, %v11403_v23  ;;  %v11554_v37 = vsel %vm4075_vm6, %v4331_v57, %v11407_v34  ;;  %v11560_v54 = vpack.c.b16 %v4386_v44, %v11413_v40  ;;  %v8404_v23 = vld [vmem:[%s12194_s3 + $0x118] sm:$0xff]   ;;  %v8406_v40 = vld [vmem:[%s12194_s3 + $0x150] sm:$0xff]   ;;  %v8412_v14 = vld [vmem:[%s12194_s3 + $0x108] sm:$0xff]  }
 0x392   :  { %7634 = vmatprep.subr.bf16.mxu0 %v8398_v53  ;;  %v11563_v26 = vpack.c.b16 %v4414_v49, %v11424_v0  ;;  %v4457_v34 = vsel %vm4075_vm6, %v4456_v29, %v11345_v11  ;;  %v4437_v25 = vrot.slane %v11040_v21, 4  ;;  %v4464_v6 = vrot.slane %v11040_v21, 6  ;;  %v8413_v57 = vld [vmem:[%s12194_s3 + $0x188] sm:$0xff]   ;;  %v8415_v49 = vld [vmem:[%s12194_s3 + $0x1c0] sm:$0xff]  }
 0x393   :  { %7655 = vmatpush3.bf16.msra.mxu1 %v8397_v16  ;;  %v4439_v0 = vrot.slane %v11161_v33, 3  ;;  %v4466_v46 = vrot.slane %v11161_v33, 5  ;;  %v4458_v11 = vrot.slane %v11543_v48, 1  ;;  %v4480_v39 = vrot.slane %v11161_v33, 6 }
 0x394   :  { %7656 = vmatprep.subr.bf16.mxu1 %v8399_v32  ;;  %v4494_v21 = vrot.slane %v11161_v33, 7  ;;  %v4441_v52 = vrot.slane %v11281_v43, 2  ;;  %v4482_v15 = vrot.slane %v11281_v43, 5  ;;  %v4484_v38 = vrot.slane %v11468_v63, 4 }
 0x395   :  { %7635 = vmatpush3.bf16.msra.mxu0 %v8400_v36  ;;  %v4443_v10 = vrot.slane %v11468_v63, 1  ;;  %v11593_v12 = vpack.c.b16 %v4458_v11, %v4457_v34  ;;  %v4481_v33 = vsel %vm4069_vm4, %v4480_v39, %v11428_v5  ;;  %v4486_v3 = vrot.slane %v11543_v48, 3  ;;  %v8409_v5 = vld [vmem:[%s12194_s3 + $0x190] sm:$0xff]   ;;  %v8418_v34 = vld [vmem:[%s12194_s3 + $0x278] sm:$0xff]  }
 0x396   :  { %7636 = vmatprep.subr.bf16.mxu0 %v8402_v13  ;;  %v4468_v45 = vrot.slane %v11281_v43, 4  ;;  %v4483_v19 = vsel %vm4072_vm5, %v4482_v15, %v4481_v33  ;;  %v4438_v7 = vsel %vm4066_vm3, %v4437_v25, %v10920_v20  ;;  %v4496_v42 = vrot.slane %v11281_v43, 6  ;;  %v8421_v11 = vld [vmem:[%s12194_s3 + $0x2b8] sm:$0xff]   ;;  %v8430_v15 = vld [vmem:[%s12194_s3 + $0x260] sm:$0xff]  }
 0x397   :  { %7657 = vmatpush3.bf16.msra.mxu1 %v8401_v22  ;;  %v4470_v50 = vrot.slane %v11468_v63, 3  ;;  %v4485_v31 = vsel %vm4075_vm6, %v4484_v38, %v4483_v19  ;;  %v4440_v9 = vsel %vm4069_vm4, %v4439_v0, %v4438_v7  ;;  %v4465_v43 = vsel %vm4066_vm3, %v4464_v6, %v10924_v4  ;;  %v8414_v4 = vld [vmem:[%s12194_s3 + $0x140] sm:$0xff]   ;;  %v8419_v6 = vld [vmem:[%s12194_s3 + $0x2f8] sm:$0xff]   ;;  %v8429_v38 = vld [vmem:[%s12194_s3 + $0x2a8] sm:$0xff]  }
 0x398   :  { %7658 = vmatprep.subr.bf16.mxu1 %v8403_v59  ;;  %v11615_v24 = vpack.c.b16 %v4486_v3, %v4485_v31  ;;  %v4442_v20 = vsel %vm4072_vm5, %v4441_v52, %v4440_v9  ;;  %v4472_v53 = vrot.slane %v11543_v48, 2  ;;  %v4498_v16 = vrot.slane %v11468_v63, 5  ;;  %v8416_v59 = vld [vmem:[%s12194_s3 + $0x100] sm:$0xff]   ;;  %v8425_v52 = vld [vmem:[%s12194_s3 + $0x2b0] sm:$0xff]   ;;  %v8434_v33 = vld [vmem:[%s12194_s3 + $0x258] sm:$0xff]  }
 0x399   :  { %7637 = vmatpush3.bf16.msra.mxu0 %v8404_v23  ;;  %v4444_v32 = vsel %vm4075_vm6, %v4443_v10, %v4442_v20  ;;  %v4467_v29 = vsel %vm4069_vm4, %v4466_v46, %v4465_v43  ;;  %v4495_v36 = vsel %vm4069_vm4, %v4494_v21, %v11065_v1  ;;  %v4500_v1 = vrot.slane %v11543_v48, 4  ;;  %v8422_v46 = vld [vmem:[%s12194_s3 + $0x270] sm:$0xff]   ;;  %v8431_v10 = vld [vmem:[%s12194_s3 + $0x2e0] sm:$0xff]   ;;  %v8437_v7 = vld [vmem:[%s12194_s3 + $0x298] sm:$0xff]  }
 0x39a   :  { %7638 = vmatprep.subr.bf16.mxu0 %v8406_v40  ;;  %v11633_v60 = vpack.c.b16 %v11543_v48, %v4444_v32  ;;  %v4469_v63 = vsel %vm4072_vm5, %v4468_v45, %v4467_v29  ;;  %v4497_v44 = vsel %vm4072_vm5, %v4496_v42, %v4495_v36  ;;  %v8417_v48 = vld [vmem:[%s12194_s3 + $0x180] sm:$0xff]   ;;  %v8420_v40 = vld [vmem:[%s12194_s3 + $0x238] sm:$0xff]   ;;  %v4141_v0 = vpack.c.b16 %v11466_v18, %v11466_v18  ;;  %v8423_v18 = vld [vmem:[%s12194_s3 + $0x2f0] sm:$0xff]  }
 0x39b   :  { %7659 = vmatpush3.bf16.msra.mxu1 %v8405_v41  ;;  %v4471_v13 = vsel %vm4075_vm6, %v4470_v50, %v4469_v63  ;;  %v4499_v23 = vsel %vm4075_vm6, %v4498_v16, %v4497_v44  ;;  %v4237_v41 = vpack.c.b16 %v11499_v47, %v11499_v47  ;;  %v4189_v39 = vpack.c.b16 %v11492_v28, %v11492_v28  ;;  %v8424_v47 = vld [vmem:[%s12194_s3 + $0x230] sm:$0xff]   ;;  %v8426_v28 = vld [vmem:[%s12194_s3 + $0x268] sm:$0xff]   ;;  %v8433_v3 = vld [vmem:[%s12194_s3 + $0x2a0] sm:$0xff]  }
 0x39c   :  { %7660 = vmatprep.subr.bf16.mxu1 %v8407_v8  ;;  %v11645_v22 = vpack.c.b16 %v4472_v53, %v4471_v13  ;;  %v11657_v25 = vpack.c.b16 %v4500_v1, %v4499_v23  ;;  %v4285_v21 = vpack.c.b16 %v11503_v56, %v11503_v56  ;;  %v8427_v56 = vld [vmem:[%s12194_s3 + $0x2e8] sm:$0xff]   ;;  %v8435_v45 = vld [vmem:[%s12194_s3 + $0x2d8] sm:$0xff]   ;;  %v8438_v19 = vld [vmem:[%s12194_s3 + $0x250] sm:$0xff]   ;;  %v4269_v44 = vpack.c.b16 %v11517_v27, %v11517_v27 }
 0x39d   :  { %7639 = vmatpush3.bf16.msra.mxu0 %v8408_v2  ;;  %v8428_v8 = vld [vmem:[%s12194_s3 + $0x228] sm:$0xff]   ;;  %v8432_v2 = vld [vmem:[%s12194_s3 + $0x220] sm:$0xff]   ;;  %v8439_v42 = vld [vmem:[%s12194_s3 + $0x2d0] sm:$0xff]   ;;  %v4365_v1 = vpack.c.b16 %v11532_v58, %v11532_v58 }
 0x39e   :  { %7640 = vmatprep.subr.bf16.mxu0 %v8410_v55  ;;  %v8436_v55 = vld [vmem:[%s12194_s3 + $0x218] sm:$0xff]   ;;  %v8440_v50 = vld [vmem:[%s12194_s3 + $0x210] sm:$0xff]   ;;  %v8443_v9 = vld [vmem:[%s12194_s3 + $0x2c8] sm:$0xff]  }
 0x39f   :  { %7661 = vmatpush3.bf16.msra.mxu1 %v8409_v5  ;;  %v8442_v5 = vld [vmem:[%s12194_s3 + $0x248] sm:$0xff]   ;;  %v8441_v31 = vld [vmem:[%s12194_s3 + $0x290] sm:$0xff]   ;;  %v8446_v20 = vld [vmem:[%s12194_s3 + $0x240] sm:$0xff]  }
 0x3a0   :  { %7662 = vmatprep.subr.bf16.mxu1 %v8411_v35  ;;  %v8444_v35 = vld [vmem:[%s12194_s3 + $0x208] sm:$0xff]   ;;  %v8447_v53 = vld [vmem:[%s12194_s3 + $0x2c0] sm:$0xff]   ;;  %v8451_v29 = vld [vmem:[%s12194_s3 + $0x3f8] sm:$0xff]  }
 0x3a1   :  { %7641 = vmatpush3.bf16.msra.mxu0 %v8412_v14  ;;  %v8445_v43 = vld [vmem:[%s12194_s3 + $0x288] sm:$0xff]   ;;  %v8448_v16 = vld [vmem:[%s12194_s3 + $0x200] sm:$0xff]   ;;  %v8450_v14 = vld [vmem:[%s12194_s3 + $0x378] sm:$0xff]  }
 0x3a2   :  { %7642 = vmatprep.subr.bf16.mxu0 %v8414_v4  ;;  %v8449_v32 = vld [vmem:[%s12194_s3 + $0x280] sm:$0xff]   ;;  %v8452_v36 = vld [vmem:[%s12194_s3 + $0x338] sm:$0xff]   ;;  %v4221_v4 = vpack.c.b16 %v11513_v17, %v11513_v17  ;;  %v8454_v63 = vld [vmem:[%s12194_s3 + $0x370] sm:$0xff]  }
 0x3a3   :  { %7663 = vmatpush3.bf16.msra.mxu1 %v8413_v57  ;;  %v4317_v57 = vpack.c.b16 %v11521_v51, %v11521_v51  ;;  %v8453_v13 = vld [vmem:[%s12194_s3 + $0x3b8] sm:$0xff]   ;;  %v8455_v17 = vld [vmem:[%s12194_s3 + $0x3f0] sm:$0xff]   ;;  %v8458_v27 = vld [vmem:[%s12194_s3 + $0x368] sm:$0xff]  }
 0x3a4   :  { %7664 = vmatprep.subr.bf16.mxu1 %v8415_v49  ;;  %v8456_v51 = vld [vmem:[%s12194_s3 + $0x330] sm:$0xff]   ;;  %v8459_v58 = vld [vmem:[%s12194_s3 + $0x3e8] sm:$0xff]   ;;  %v8462_v23 = vld [vmem:[%s12194_s3 + $0x360] sm:$0xff]  }
 0x3a5   :  { %7643 = vmatpush3.bf16.msra.mxu0 %v8416_v59  ;;  %v8457_v49 = vld [vmem:[%s12194_s3 + $0x3b0] sm:$0xff]   ;;  %v8460_v59 = vld [vmem:[%s12194_s3 + $0x328] sm:$0xff]  }
 0x3a6   :  { %7672 = vmatprep.subr.bf16.mxu0 %v8418_v34  ;;  %v8461_v34 = vld [vmem:[%s12194_s3 + $0x3a8] sm:$0xff]  }
 0x3a7   :  { %7665 = vmatpush3.bf16.msra.mxu1 %v8417_v48  ;;  %v8463_v48 = vld [vmem:[%s12194_s3 + $0x3e0] sm:$0xff]  }
 0x3a8   :  { %6294 = vmatmul.mubr.bf16.vlgmr.msra.gmra.mxu0 %v4141_v0  ;;  %7694 = vmatprep.subr.bf16.mxu1 %v8419_v6  ;;  %v8464_v6 = vld [vmem:[%s12194_s3 + $0x320] sm:$0xff]  }
 0x3a9   :  { %7673 = vmatpush3.bf16.msra.mxu0 %v8420_v40  ;;  %6373 = vmatprep.mubr.bf16.mxu0 %v4237_v41  ;;  %v8466_v40 = vld [vmem:[%s12194_s3 + $0x358] sm:$0xff]   ;;  %v8465_v0 = vld [vmem:[%s12194_s3 + $0x3a0] sm:$0xff]  }
 0x3aa   :  { %6334 = vmatmul.mubr.bf16.vlgmr.msra.gmra.mxu1 %v4189_v39  ;;  %7674 = vmatprep.subr.bf16.mxu0 %v8422_v46  ;;  %v8467_v46 = vld [vmem:[%s12194_s3 + $0x3d8] sm:$0xff]  }
 0x3ab   :  { %7695 = vmatpush3.bf16.msra.mxu1 %v8421_v11  ;;  %6413 = vmatprep.mubr.bf16.mxu1 %v4285_v21  ;;  %v8468_v41 = vld [vmem:[%s12194_s3 + $0x318] sm:$0xff]   ;;  %v8470_v11 = vld [vmem:[%s12194_s3 + $0x350] sm:$0xff]  }
 0x3ac   :  { %7696 = vmatprep.subr.bf16.mxu1 %v8423_v18  ;;  %v8469_v39 = vld [vmem:[%s12194_s3 + $0x398] sm:$0xff]   ;;  %v8471_v18 = vld [vmem:[%s12194_s3 + $0x3d0] sm:$0xff]  }
 0x3ad   :  { %7675 = vmatpush3.bf16.msra.mxu0 %v8424_v47  ;;  %v8472_v21 = vld [vmem:[%s12194_s3 + $0x310] sm:$0xff]   ;;  %v8474_v47 = vld [vmem:[%s12194_s3 + $0x348] sm:$0xff]  }
 0x3ae   :  { %7676 = vmatprep.subr.bf16.mxu0 %v8426_v28  ;;  %v8473_v28 = vld [vmem:[%s12194_s3 + $0x390] sm:$0xff]  }
 0x3af   :  { %7697 = vmatpush3.bf16.msra.mxu1 %v8425_v52  ;;  %v8475_v52 = vld [vmem:[%s12194_s3 + $0x3c8] sm:$0xff]  }
 0x3b0   :  { %7698 = vmatprep.subr.bf16.mxu1 %v8427_v56  ;;  %v8476_v56 = vld [vmem:[%s12194_s3 + $0x308] sm:$0xff]  }
 0x3b1   :  { %7677 = vmatpush3.bf16.msra.mxu0 %v8428_v8  ;;  %v8478_v8 = vld [vmem:[%s12194_s3 + $0x340] sm:$0xff]  }
 0x3b2   :  { %7678 = vmatprep.subr.bf16.mxu0 %v8430_v15  ;;  %v8477_v15 = vld [vmem:[%s12194_s3 + $0x388] sm:$0xff]  }
 0x3b3   :  { %7699 = vmatpush3.bf16.msra.mxu1 %v8429_v38  ;;  %v4512_v38 = vshll.u32 %v11560_v54, 16 }
 0x3b4   :  { %7700 = vmatprep.subr.bf16.mxu1 %v8431_v10  ;;  %v8479_v10 = vld [vmem:[%s12194_s3 + $0x3c0] sm:$0xff]  }
 0x3b5   :  { %7679 = vmatpush3.bf16.msra.mxu0 %v8432_v2  ;;  %v8480_v2 = vld [vmem:[%s12194_s3 + $0x300] sm:$0xff]  }
 0x3b6   :  { %7680 = vmatprep.subr.bf16.mxu0 %v8434_v33  ;;  %v4526_v33 = vshll.u32 %v11563_v26, 16 }
 0x3b7   :  { %7701 = vmatpush3.bf16.msra.mxu1 %v8433_v3  ;;  %v8482_v3 = vld [vmem:[%s12194_s3 + $0x478] sm:$0xff]  }
 0x3b8   :  { %7702 = vmatprep.subr.bf16.mxu1 %v8435_v45  ;;  %v8481_v45 = vld [vmem:[%s12194_s3 + $0x380] sm:$0xff]  }
 0x3b9   :  { %7681 = vmatpush3.bf16.msra.mxu0 %v8436_v55  ;;  %v4514_v55 = vrot.slane %v4512_v38, 1 }
 0x3ba   :  { %7682 = vmatprep.subr.bf16.mxu0 %v8438_v19  ;;  %v8483_v19 = vld [vmem:[%s12194_s3 + $0x4f8] sm:$0xff]  }
 0x3bb   :  { %7703 = vmatpush3.bf16.msra.mxu1 %v8437_v7  ;;  %v8484_v7 = vld [vmem:[%s12194_s3 + $0x438] sm:$0xff]  }
 0x3bc   :  { %7704 = vmatprep.subr.bf16.mxu1 %v8439_v42  ;;  %v4510_v42 = vshrl.u32 %v11560_v54, 16  ;;  %v4333_v54 = vpack.c.b16 %v11554_v37, %v11554_v37  ;;  %v8489_v37 = vld [vmem:[%s12194_s3 + $0x4b0] sm:$0xff]  }
 0x3bd   :  { %7683 = vmatpush3.bf16.msra.mxu0 %v8440_v50  ;;  %v4528_v50 = vrot.slane %v4526_v33, 1 }
 0x3be   :  { %7684 = vmatprep.subr.bf16.mxu0 %v8442_v5  ;;  %v4301_v5 = vpack.c.b16 %v11550_v61, %v11550_v61  ;;  %v8487_v61 = vld [vmem:[%s12194_s3 + $0x4f0] sm:$0xff]  }
 0x3bf   :  { %7705 = vmatpush3.bf16.msra.mxu1 %v8441_v31  ;;  %v8486_v31 = vld [vmem:[%s12194_s3 + $0x470] sm:$0xff]  }
 0x3c0   :  { %7706 = vmatprep.subr.bf16.mxu1 %v8443_v9  ;;  %v4515_v9 = vor.u32 %v4514_v55, %v4510_v42  ;;  %v8523_v42 = vld [vmem:[%s12194_s3 + $0x5e8] sm:$0xff]  }
 0x3c1   :  { %7685 = vmatpush3.bf16.msra.mxu0 %v8444_v35  ;;  %v8485_v35 = vld [vmem:[%s12194_s3 + $0x4b8] sm:$0xff]  }
 0x3c2   :  { %7686 = vmatprep.subr.bf16.mxu0 %v8446_v20  ;;  %v4524_v20 = vshrl.u32 %v11563_v26, 16  ;;  %v8490_v26 = vld [vmem:[%s12194_s3 + $0x468] sm:$0xff]  }
 0x3c3   :  { %7707 = vmatpush3.bf16.msra.mxu1 %v8445_v43 }
 0x3c4   :  { %7708 = vmatprep.subr.bf16.mxu1 %v8447_v53  ;;  %v4529_v43 = vor.u32 %v4528_v50, %v4524_v20  ;;  %v8488_v53 = vld [vmem:[%s12194_s3 + $0x430] sm:$0xff]   ;;  %v8524_v50 = vld [vmem:[%s12194_s3 + $0x528] sm:$0xff]   ;;  %v8530_v20 = vld [vmem:[%s12194_s3 + $0x558] sm:$0xff]  }
 0x3c5   :  { %7687 = vmatpush3.bf16.msra.mxu0 %v8448_v16  ;;  %v8491_v16 = vld [vmem:[%s12194_s3 + $0x4e8] sm:$0xff]  }
 0x3c6   :  { %7716 = vmatprep.subr.bf16.mxu0 %v8450_v14  ;;  %v8492_v14 = vld [vmem:[%s12194_s3 + $0x428] sm:$0xff]  }
 0x3c7   :  { %7709 = vmatpush3.bf16.msra.mxu1 %v8449_v32  ;;  %v8494_v32 = vld [vmem:[%s12194_s3 + $0x460] sm:$0xff]  }
 0x3c8   :  { %6374 = vmatmul.mubr.bf16.vlgmr.msra.gmra.mxu0 %v4221_v4  ;;  %7738 = vmatprep.subr.bf16.mxu1 %v8451_v29  ;;  %v8493_v29 = vld [vmem:[%s12194_s3 + $0x4a8] sm:$0xff]   ;;  %v8496_v4 = vld [vmem:[%s12194_s3 + $0x420] sm:$0xff]  }
 0x3c9   :  { %7717 = vmatpush3.bf16.msra.mxu0 %v8452_v36  ;;  %6453 = vmatprep.mubr.bf16.mxu0 %v4317_v57  ;;  %v8495_v36 = vld [vmem:[%s12194_s3 + $0x4e0] sm:$0xff]  }
 0x3ca   :  { %6414 = vmatmul.mubr.bf16.vlgmr.msra.gmra.mxu1 %v4269_v44  ;;  %7718 = vmatprep.subr.bf16.mxu0 %v8454_v63  ;;  %v8498_v63 = vld [vmem:[%s12194_s3 + $0x458] sm:$0xff]   ;;  %v8497_v57 = vld [vmem:[%s12194_s3 + $0x4a0] sm:$0xff]  }
 0x3cb   :  { %7739 = vmatpush3.bf16.msra.mxu1 %v8453_v13  ;;  %6493 = vmatprep.mubr.bf16.mxu1 %v4365_v1  ;;  %v8499_v13 = vld [vmem:[%s12194_s3 + $0x4d8] sm:$0xff]  }
 0x3cc   :  { %7740 = vmatprep.subr.bf16.mxu1 %v8455_v17  ;;  %v8500_v44 = vld [vmem:[%s12194_s3 + $0x418] sm:$0xff]   ;;  %v8502_v17 = vld [vmem:[%s12194_s3 + $0x450] sm:$0xff]  }
 0x3cd   :  { %7719 = vmatpush3.bf16.msra.mxu0 %v8456_v51  ;;  %v8501_v1 = vld [vmem:[%s12194_s3 + $0x498] sm:$0xff]   ;;  %v8503_v51 = vld [vmem:[%s12194_s3 + $0x4d0] sm:$0xff]  }
 0x3ce   :  { %7720 = vmatprep.subr.bf16.mxu0 %v8458_v27  ;;  %v8504_v27 = vld [vmem:[%s12194_s3 + $0x410] sm:$0xff]  }
 0x3cf   :  { %7741 = vmatpush3.bf16.msra.mxu1 %v8457_v49  ;;  %v8506_v49 = vld [vmem:[%s12194_s3 + $0x448] sm:$0xff]  }
 0x3d0   :  { %7742 = vmatprep.subr.bf16.mxu1 %v8459_v58  ;;  %v8505_v58 = vld [vmem:[%s12194_s3 + $0x490] sm:$0xff]  }
 0x3d1   :  { %7721 = vmatpush3.bf16.msra.mxu0 %v8460_v59  ;;  %v8507_v59 = vld [vmem:[%s12194_s3 + $0x4c8] sm:$0xff]  }
 0x3d2   :  { %7722 = vmatprep.subr.bf16.mxu0 %v8462_v23  ;;  %v8508_v23 = vld [vmem:[%s12194_s3 + $0x408] sm:$0xff]  }
 0x3d3   :  { %7743 = vmatpush3.bf16.msra.mxu1 %v8461_v34  ;;  %v4505_v34 = vshll.u32 %v11535_v30, 16 }
 0x3d4   :  { %7744 = vmatprep.subr.bf16.mxu1 %v8463_v48  ;;  %v8510_v48 = vld [vmem:[%s12194_s3 + $0x440] sm:$0xff]  }
 0x3d5   :  { %7723 = vmatpush3.bf16.msra.mxu0 %v8464_v6  ;;  %v8509_v6 = vld [vmem:[%s12194_s3 + $0x488] sm:$0xff]  }
 0x3d6   :  { %7724 = vmatprep.subr.bf16.mxu0 %v8466_v40  ;;  %v4540_v40 = vshll.u32 %v11593_v12, 16 }
 0x3d7   :  { %7745 = vmatpush3.bf16.msra.mxu1 %v8465_v0  ;;  %v8511_v0 = vld [vmem:[%s12194_s3 + $0x4c0] sm:$0xff]  }
 0x3d8   :  { %7746 = vmatprep.subr.bf16.mxu1 %v8467_v46  ;;  %v4519_v46 = vshll.u32 %v11541_v62, 16 }
 0x3d9   :  { %7725 = vmatpush3.bf16.msra.mxu0 %v8468_v41  ;;  %v8512_v41 = vld [vmem:[%s12194_s3 + $0x400] sm:$0xff]  }
 0x3da   :  { %7726 = vmatprep.subr.bf16.mxu0 %v8470_v11  ;;  %v4554_v11 = vshll.u32 %v11615_v24, 16 }
 0x3db   :  { %7747 = vmatpush3.bf16.msra.mxu1 %v8469_v39  ;;  %v4507_v39 = vrot.slane %v4505_v34, 1  ;;  %v8604_v34 = vmov 0.0  }
 0x3dc   :  { %7748 = vmatprep.subr.bf16.mxu1 %v8471_v18  ;;  %v8514_v18 = vld [vmem:[%s12194_s3 + $0x578] sm:$0xff]   ;;  %v4556_v38 = vrot.slane %v4554_v11, 1  ;;  %v8553_v11 = vld [vmem:[%s12194_s3 + $0x600] sm:$0xff]  }
 0x3dd   :  { %7727 = vmatpush3.bf16.msra.mxu0 %v8472_v21  ;;  %v8513_v21 = vld [vmem:[%s12194_s3 + $0x480] sm:$0xff]  }
 0x3de   :  { %7728 = vmatprep.subr.bf16.mxu0 %v8474_v47  ;;  %v4542_v47 = vrot.slane %v4540_v40, 1  ;;  %v8550_v40 = vld [vmem:[%s12194_s3 + $0x618] sm:$0xff]  }
 0x3df   :  { %7749 = vmatpush3.bf16.msra.mxu1 %v8473_v28  ;;  %v4503_v28 = vshrl.u32 %v11535_v30, 16  ;;  %v8518_v30 = vld [vmem:[%s12194_s3 + $0x570] sm:$0xff]  }
 0x3e0   :  { %7750 = vmatprep.subr.bf16.mxu1 %v8475_v52  ;;  %v4521_v52 = vrot.slane %v4519_v46, 1  ;;  %v8552_v46 = vld [vmem:[%s12194_s3 + $0x608] sm:$0xff]  }
 0x3e1   :  { %7729 = vmatpush3.bf16.msra.mxu0 %v8476_v56  ;;  %v8515_v56 = vld [vmem:[%s12194_s3 + $0x5f8] sm:$0xff]  }
 0x3e2   :  { %7730 = vmatprep.subr.bf16.mxu0 %v8478_v8  ;;  %v8516_v8 = vld [vmem:[%s12194_s3 + $0x538] sm:$0xff]  }
 0x3e3   :  { %7751 = vmatpush3.bf16.msra.mxu1 %v8477_v15  ;;  %v4538_v15 = vshrl.u32 %v11593_v12, 16 }
 0x3e4   :  { %7752 = vmatprep.subr.bf16.mxu1 %v8479_v10  ;;  %v4508_v10 = vor.u32 %v4507_v39, %v4503_v28 }
 0x3e5   :  { %7731 = vmatpush3.bf16.msra.mxu0 %v8480_v2  ;;  %v4517_v2 = vshrl.u32 %v11541_v62, 16  ;;  %v4543_v33 = vor.u32 %v4542_v47, %v4538_v15  ;;  %v8519_v62 = vld [vmem:[%s12194_s3 + $0x5f0] sm:$0xff]  }
 0x3e6   :  { %7760 = vmatprep.subr.bf16.mxu0 %v8482_v3  ;;  %v8517_v3 = vld [vmem:[%s12194_s3 + $0x5b8] sm:$0xff]  }
 0x3e7   :  { %7753 = vmatpush3.bf16.msra.mxu1 %v8481_v45  ;;  %v4552_v45 = vshrl.u32 %v11615_v24, 16  ;;  %v4522_v55 = vor.u32 %v4521_v52, %v4517_v2  ;;  %v8522_v24 = vld [vmem:[%s12194_s3 + $0x568] sm:$0xff]   ;;  %v7325_v52 = vld [vmem:[%s12196_s4] ss:$0 sm:$0xff] }
 0x3e8   :  { %6454 = vmatmul.mubr.bf16.vlgmr.msra.gmra.mxu0 %v4301_v5  ;;  %7782 = vmatprep.subr.bf16.mxu1 %v8483_v19  ;;  %v8520_v19 = vld [vmem:[%s12194_s3 + $0x530] sm:$0xff]   ;;  %v8526_v5 = vld [vmem:[%s12194_s3 + $0x560] sm:$0xff]  }
 0x3e9   :  { %7761 = vmatpush3.bf16.msra.mxu0 %v8484_v7  ;;  %6533 = vmatprep.mubr.bf16.mxu0 %v4515_v9  ;;  %v4557_v12 = vor.u32 %v4556_v38, %v4552_v45  ;;  %v8521_v7 = vld [vmem:[%s12194_s3 + $0x5b0] sm:$0xff]   ;;  %v8527_v9 = vld [vmem:[%s12194_s3 + $0x5e0] sm:$0xff]  }
 0x3ea   :  { %6494 = vmatmul.mubr.bf16.vlgmr.msra.gmra.mxu1 %v4333_v54  ;;  %7762 = vmatprep.subr.bf16.mxu0 %v8486_v31  ;;  %v8525_v31 = vld [vmem:[%s12194_s3 + $0x5a8] sm:$0xff]   ;;  %v8529_v54 = vld [vmem:[%s12194_s3 + $0x5a0] sm:$0xff]  }
 0x3eb   :  { %7783 = vmatpush3.bf16.msra.mxu1 %v8485_v35  ;;  %6573 = vmatprep.mubr.bf16.mxu1 %v4529_v43  ;;  %v8528_v35 = vld [vmem:[%s12194_s3 + $0x520] sm:$0xff]   ;;  %v8532_v43 = vld [vmem:[%s12194_s3 + $0x518] sm:$0xff]  }
 0x3ec   :  { %7784 = vmatprep.subr.bf16.mxu1 %v8487_v61  ;;  %v8531_v61 = vld [vmem:[%s12194_s3 + $0x5d8] sm:$0xff]  }
 0x3ed   :  { %7763 = vmatpush3.bf16.msra.mxu0 %v8488_v53  ;;  %v8534_v53 = vld [vmem:[%s12194_s3 + $0x550] sm:$0xff]  }
 0x3ee   :  { %7764 = vmatprep.subr.bf16.mxu0 %v8490_v26  ;;  %v8533_v26 = vld [vmem:[%s12194_s3 + $0x598] sm:$0xff]  }
 0x3ef   :  { %7785 = vmatpush3.bf16.msra.mxu1 %v8489_v37  ;;  %v8535_v37 = vld [vmem:[%s12194_s3 + $0x5d0] sm:$0xff]  }
 0x3f0   :  { %7786 = vmatprep.subr.bf16.mxu1 %v8491_v16  ;;  %v8536_v16 = vld [vmem:[%s12194_s3 + $0x510] sm:$0xff]  }
 0x3f1   :  { %7765 = vmatpush3.bf16.msra.mxu0 %v8492_v14  ;;  %v8538_v14 = vld [vmem:[%s12194_s3 + $0x548] sm:$0xff]  }
 0x3f2   :  { %7766 = vmatprep.subr.bf16.mxu0 %v8494_v32  ;;  %v8537_v32 = vld [vmem:[%s12194_s3 + $0x590] sm:$0xff]  }
 0x3f3   :  { %7787 = vmatpush3.bf16.msra.mxu1 %v8493_v29  ;;  %v8539_v29 = vld [vmem:[%s12194_s3 + $0x5c8] sm:$0xff]  }
 0x3f4   :  { %7788 = vmatprep.subr.bf16.mxu1 %v8495_v36  ;;  %v8540_v36 = vld [vmem:[%s12194_s3 + $0x508] sm:$0xff]  }
 0x3f5   :  { %7767 = vmatpush3.bf16.msra.mxu0 %v8496_v4  ;;  %v8542_v4 = vld [vmem:[%s12194_s3 + $0x540] sm:$0xff]  }
 0x3f6   :  { %7768 = vmatprep.subr.bf16.mxu0 %v8498_v63  ;;  %v4533_v63 = vshll.u32 %v11633_v60, 16 }
 0x3f7   :  { %7789 = vmatpush3.bf16.msra.mxu1 %v8497_v57  ;;  %v8541_v57 = vld [vmem:[%s12194_s3 + $0x588] sm:$0xff]  }
 0x3f8   :  { %7790 = vmatprep.subr.bf16.mxu1 %v8499_v13  ;;  %v8543_v13 = vld [vmem:[%s12194_s3 + $0x5c0] sm:$0xff]  }
 0x3f9   :  { %7769 = vmatpush3.bf16.msra.mxu0 %v8500_v44  ;;  %v4547_v44 = vshll.u32 %v11645_v22, 16 }
 0x3fa   :  { %7770 = vmatprep.subr.bf16.mxu0 %v8502_v17  ;;  %v8544_v17 = vld [vmem:[%s12194_s3 + $0x500] sm:$0xff]  }
 0x3fb   :  { %7791 = vmatpush3.bf16.msra.mxu1 %v8501_v1  ;;  %v4535_v1 = vrot.slane %v4533_v63, 1  ;;  %v8560_v63 = vld [vmem:[%s12197_s5 + $0x8] sm:$0xff]  }
 0x3fc   :  { %7792 = vmatprep.subr.bf16.mxu1 %v8503_v51  ;;  %v8545_v51 = vld [vmem:[%s12194_s3 + $0x580] sm:$0xff]  }
 0x3fd   :  { %7771 = vmatpush3.bf16.msra.mxu0 %v8504_v27  ;;  %v4531_v27 = vshrl.u32 %v11633_v60, 16  ;;  %v8547_v60 = vld [vmem:[%s12194_s3 + $0x630] sm:$0xff]  }
 0x3fe   :  { %7772 = vmatprep.subr.bf16.mxu0 %v8506_v49  ;;  %v4549_v49 = vrot.slane %v4547_v44, 1 }
 0x3ff   :  { %7793 = vmatpush3.bf16.msra.mxu1 %v8505_v58  ;;  %v8546_v58 = vld [vmem:[%s12194_s3 + $0x638] sm:$0xff]  }
 0x400   :  { %7794 = vmatprep.subr.bf16.mxu1 %v8507_v59  ;;  %v4536_v59 = vor.u32 %v4535_v1, %v4531_v27  ;;  %v8563_v27 = vld [vmem:[%s12198_s7 + $0x30] sm:$0xff]  }
 0x401   :  { %7773 = vmatpush3.bf16.msra.mxu0 %v8508_v23  ;;  %v4545_v23 = vshrl.u32 %v11645_v22, 16  ;;  %v8548_v22 = vld [vmem:[%s12194_s3 + $0x628] sm:$0xff]  }
 0x402   :  { %7774 = vmatprep.subr.bf16.mxu0 %v8510_v48 }
 0x403   :  { %7795 = vmatpush3.bf16.msra.mxu1 %v8509_v6  ;;  %v4550_v48 = vor.u32 %v4549_v49, %v4545_v23  ;;  %v8549_v6 = vld [vmem:[%s12194_s3 + $0x620] sm:$0xff]   ;;  %v8564_v49 = vld [vmem:[%s12198_s7 + $0x28] sm:$0xff]   ;;  %v8567_v23 = vld [vmem:[%s12198_s7 + $0x10] sm:$0xff]  }
 0x404   :  { %7796 = vmatprep.subr.bf16.mxu1 %v8511_v0  ;;  %v8551_v0 = vld [vmem:[%s12194_s3 + $0x610] sm:$0xff]  }
 0x405   :  { %7775 = vmatpush3.bf16.msra.mxu0 %v8512_v41  ;;  %v4561_v41 = vshll.u32 %v11657_v25, 16 }
 0x406   :  { %7804 = vmatprep.subr.bf16.mxu0 %v8514_v18  ;;  %v4559_v18 = vshrl.u32 %v11657_v25, 16 }
 0x407   :  { %7797 = vmatpush3.bf16.msra.mxu1 %v8513_v21  ;;  %v4563_v39 = vrot.slane %v4561_v41, 1 }
 0x408   :  { %6534 = vmatmul.mubr.bf16.vlgmr.msra.gmra.mxu0 %v4508_v10  ;;  %7826 = vmatprep.subr.bf16.mxu1 %v8515_v56 }
 0x409   :  { %7805 = vmatpush3.bf16.msra.mxu0 %v8516_v8  ;;  %6613 = vmatprep.mubr.bf16.mxu0 %v4543_v33  ;;  %v4564_v21 = vor.u32 %v4563_v39, %v4559_v18 }
 0x40a   :  { %6574 = vmatmul.mubr.bf16.vlgmr.msra.gmra.mxu1 %v4522_v55  ;;  %7806 = vmatprep.subr.bf16.mxu0 %v8518_v30 }
 0x40b   :  { %7827 = vmatpush3.bf16.msra.mxu1 %v8517_v3  ;;  %6653 = vmatprep.mubr.bf16.mxu1 %v4557_v12 }
 0x40c   :  { %7828 = vmatprep.subr.bf16.mxu1 %v8519_v62 }
 0x40d   :  { %7807 = vmatpush3.bf16.msra.mxu0 %v8520_v19 }
 0x40e   :  { %7808 = vmatprep.subr.bf16.mxu0 %v8522_v24 }
 0x40f   :  { %7829 = vmatpush3.bf16.msra.mxu1 %v8521_v7 }
 0x410   :  { %7830 = vmatprep.subr.bf16.mxu1 %v8523_v42 }
 0x411   :  { %7809 = vmatpush3.bf16.msra.mxu0 %v8524_v50 }
 0x412   :  { %7810 = vmatprep.subr.bf16.mxu0 %v8526_v5 }
 0x413   :  { %7831 = vmatpush3.bf16.msra.mxu1 %v8525_v31 }
 0x414   :  { %7832 = vmatprep.subr.bf16.mxu1 %v8527_v9 }
 0x415   :  { %7811 = vmatpush3.bf16.msra.mxu0 %v8528_v35  ;;  %v8554_v35 = vld [vmem:[%s12197_s5 + $0x38] sm:$0xff]  }
 0x416   :  { %7812 = vmatprep.subr.bf16.mxu0 %v8530_v20  ;;  %v8555_v20 = vld [vmem:[%s12197_s5 + $0x30] sm:$0xff]  }
 0x417   :  { %7833 = vmatpush3.bf16.msra.mxu1 %v8529_v54  ;;  %v8556_v54 = vld [vmem:[%s12197_s5 + $0x28] sm:$0xff]  }
 0x418   :  { %7834 = vmatprep.subr.bf16.mxu1 %v8531_v61  ;;  %v8557_v61 = vld [vmem:[%s12197_s5 + $0x20] sm:$0xff]  }
 0x419   :  { %7813 = vmatpush3.bf16.msra.mxu0 %v8532_v43  ;;  %v8558_v43 = vld [vmem:[%s12197_s5 + $0x18] sm:$0xff]  }
 0x41a   :  { %7814 = vmatprep.subr.bf16.mxu0 %v8534_v53  ;;  %v8559_v53 = vld [vmem:[%s12197_s5 + $0x10] sm:$0xff]  }
 0x41b   :  { %7835 = vmatpush3.bf16.msra.mxu1 %v8533_v26 }
 0x41c   :  { %7836 = vmatprep.subr.bf16.mxu1 %v8535_v37 }
 0x41d   :  { %7815 = vmatpush3.bf16.msra.mxu0 %v8536_v16 }
 0x41e   :  { %7816 = vmatprep.subr.bf16.mxu0 %v8538_v14 }
 0x41f   :  { %7837 = vmatpush3.bf16.msra.mxu1 %v8537_v32 }
 0x420   :  { %7838 = vmatprep.subr.bf16.mxu1 %v8539_v29 }
 0x421   :  { %7817 = vmatpush3.bf16.msra.mxu0 %v8540_v36 }
 0x422   :  { %7818 = vmatprep.subr.bf16.mxu0 %v8542_v4 }
 0x423   :  { %7839 = vmatpush3.bf16.msra.mxu1 %v8541_v57 }
 0x424   :  { %7840 = vmatprep.subr.bf16.mxu1 %v8543_v13 }
 0x425   :  { %7819 = vmatpush3.bf16.msra.mxu0 %v8544_v17  ;;  %v8561_v17 = vld [vmem:[%s12197_s5] sm:$0xff]  }
 0x426   :  { %7875 = vmatprep.subr.bf16.mxu0 %v8604_v34 }
 0x427   :  { %7841 = vmatpush3.bf16.msra.mxu1 %v8545_v51  ;;  %v8562_v51 = vld [vmem:[%s12198_s7 + $0x38] sm:$0xff]  }
 0x428   :  { %6614 = vmatmul.mubr.bf16.vlgmr.msra.gmra.mxu0 %v4536_v59  ;;  %7895 = vmatprep.subr.bf16.mxu1 %v8604_v34  ;;  %v8566_v59 = vld [vmem:[%s12198_s7 + $0x18] sm:$0xff]  }
 0x429   :  { %7876 = vmatpush3.bf16.msra.mxu0 %v8546_v58  ;;  %7891 = vmatprep.mubr.msk.bf16.mxu0 %vm8605_vm7, %v8604_v34  ;;  %v8565_v58 = vld [vmem:[%s12198_s7 + $0x20] sm:$0xff]  }
 0x42a   :  { %6654 = vmatmul.mubr.bf16.vlgmr.msra.gmra.mxu1 %v4550_v48  ;;  %7877 = vmatprep.subr.bf16.mxu0 %v8604_v34 }
 0x42b   :  { %7911 = vmatprep.mubr.msk.bf16.mxu1 %vm8605_vm7, %v8604_v34  ;;  %7896 = vmatpush3.bf16.msra.mxu1 %v8554_v35 }
 0x42c   :  { %7897 = vmatprep.subr.bf16.mxu1 %v8604_v34 }
 0x42d   :  { %7878 = vmatpush3.bf16.msra.mxu0 %v8547_v60 }
 0x42e   :  { %7879 = vmatprep.subr.bf16.mxu0 %v8604_v34 }
 0x42f   :  { %7898 = vmatpush3.bf16.msra.mxu1 %v8555_v20 }
 0x430   :  { %7899 = vmatprep.subr.bf16.mxu1 %v8604_v34 }
 0x431   :  { %7880 = vmatpush3.bf16.msra.mxu0 %v8548_v22 }
 0x432   :  { %7881 = vmatprep.subr.bf16.mxu0 %v8604_v34 }
 0x433   :  { %7900 = vmatpush3.bf16.msra.mxu1 %v8556_v54 }
 0x434   :  { %7901 = vmatprep.subr.bf16.mxu1 %v8604_v34 }
 0x435   :  { %7882 = vmatpush3.bf16.msra.mxu0 %v8549_v6 }
 0x436   :  { %7883 = vmatprep.subr.bf16.mxu0 %v8604_v34 }
 0x437   :  { %7902 = vmatpush3.bf16.msra.mxu1 %v8557_v61 }
 0x438   :  { %7903 = vmatprep.subr.bf16.mxu1 %v8604_v34 }
 0x439   :  { %7884 = vmatpush3.bf16.msra.mxu0 %v8550_v40 }
 0x43a   :  { %7885 = vmatprep.subr.bf16.mxu0 %v8604_v34 }
 0x43b   :  { %7904 = vmatpush3.bf16.msra.mxu1 %v8558_v43 }
 0x43c   :  { %7905 = vmatprep.subr.bf16.mxu1 %v8604_v34 }
 0x43d   :  { %7886 = vmatpush3.bf16.msra.mxu0 %v8551_v0 }
 0x43e   :  { %7887 = vmatprep.subr.bf16.mxu0 %v8604_v34 }
 0x43f   :  { %7906 = vmatpush3.bf16.msra.mxu1 %v8559_v53 }
 0x440   :  { %7907 = vmatprep.subr.bf16.mxu1 %v8604_v34 }
 0x441   :  { %7888 = vmatpush3.bf16.msra.mxu0 %v8552_v46 }
 0x442   :  { %7889 = vmatprep.subr.bf16.mxu0 %v8604_v34 }
 0x443   :  { %7908 = vmatpush3.bf16.msra.mxu1 %v8560_v63 }
 0x444   :  { %7909 = vmatprep.subr.bf16.mxu1 %v8604_v34 }
 0x445   :  { %7890 = vmatpush3.bf16.msra.mxu0 %v8553_v11 }
 0x446   :  { %7915 = vmatprep.subr.bf16.mxu0 %v8604_v34 }
 0x447   :  { %7910 = vmatpush3.bf16.msra.mxu1 %v8561_v17 }
 0x448   :  { %7892 = vmatmul.mubr.bf16.vlgmr.msra.gmra.mxu0 %v4564_v21  ;;  %v7600_v47 = vpop.f32.mrf.mxu0 }
 0x449   :  { %7931 = vmatprep.mubr.msk.bf16.mxu0 %vm8605_vm7, %v8604_v34  ;;  %7916 = vmatpush3.bf16.msra.mxu0 %v8562_v51 }
 0x44a   :  { %v7622_v28 = vpop.f32.mrf.mxu1  ;;  %v7601_v56 = vpop.f32.mrf.mxu0  ;;  %7917 = vmatprep.subr.bf16.mxu0 %v8604_v34 }
 0x44b   :  { %v7602_v8 = vadd.f32 %v7601_v56, %v7600_v47 }
 0x44c   :  { %v7623_v15 = vpop.f32.mrf.mxu1  ;;  %v7603_v38 = vpop.f32.mrf.mxu0 }
 0x44d   :  { %v6216_v10 = vadd.f32 %v7602_v8, %v7325_v52  ;;  %v7624_v25 = vadd.f32 %v7623_v15, %v7622_v28  ;;  %7918 = vmatpush3.bf16.msra.mxu0 %v8563_v27 }
 0x44e   :  { %v7625_v2 = vpop.f32.mrf.mxu1  ;;  %v7604_v30 = vpop.f32.mrf.mxu0  ;;  %7919 = vmatprep.subr.bf16.mxu0 %v8604_v34 }
 0x44f   :  { %v6256_v33 = vadd.f32 %v7624_v25, %v6216_v10 }
 0x450   :  { %v7626_v3 = vpop.f32.mrf.mxu1 }
 0x451   :  { %7920 = vmatpush3.bf16.msra.mxu0 %v8564_v49 }
 0x452   :  { %7921 = vmatprep.subr.bf16.mxu0 %v8604_v34 }
 0x455   :  { %7922 = vmatpush3.bf16.msra.mxu0 %v8565_v58 }
 0x456   :  { %7923 = vmatprep.subr.bf16.mxu0 %v8604_v34 }
 0x459   :  { %7924 = vmatpush3.bf16.msra.mxu0 %v8566_v59 }
 0x45a   :  { %7925 = vmatprep.subr.bf16.mxu0 %v8604_v34 }
 0x45d   :  { %7926 = vmatpush3.bf16.msra.mxu0 %v8567_v23 }
 0x45e   :  { %7927 = vmatprep.subr.bf16.mxu0 %v8604_v34 }
 0x468   :  { %v7644_v45 = vpop.f32.mrf.mxu0 }
 0x46a   :  { %v7666_v55 = vpop.f32.mrf.mxu1  ;;  %v7645_v62 = vpop.f32.mrf.mxu0 }
 0x46b   :  { %v7646_v12 = vadd.f32 %v7645_v62, %v7644_v45 }
 0x46c   :  { %v7667_v19 = vpop.f32.mrf.mxu1  ;;  %v7647_v24 = vpop.f32.mrf.mxu0 }
 0x46d   :  { %v6296_v7 = vadd.f32 %v7646_v12, %v6256_v33  ;;  %v7668_v42 = vadd.f32 %v7667_v19, %v7666_v55 }
 0x46e   :  { %v7669_v50 = vpop.f32.mrf.mxu1  ;;  %v7648_v5 = vpop.f32.mrf.mxu0 }
 0x46f   :  { %v6336_v31 = vadd.f32 %v7668_v42, %v6296_v7 }
 0x470   :  { %v7670_v9 = vpop.f32.mrf.mxu1 }
 0x488   :  { %v7688_v26 = vpop.f32.mrf.mxu0 }
 0x48a   :  { %v7710_v37 = vpop.f32.mrf.mxu1  ;;  %v7689_v16 = vpop.f32.mrf.mxu0 }
 0x48b   :  { %v7690_v14 = vadd.f32 %v7689_v16, %v7688_v26  ;;  %v8568_v26 = vld [vmem:[%s12198_s7 + $0x8] sm:$0xff]   ;;  %v7526_v16 = vld [vmem:[%s12199_s6] ss:$0 sm:$0xff] }
 0x48c   :  { %v7711_v32 = vpop.f32.mrf.mxu1  ;;  %v7691_v29 = vpop.f32.mrf.mxu0  ;;  %7928 = vmatpush3.bf16.msra.mxu0 %v8568_v26 }
 0x48d   :  { %v6376_v36 = vadd.f32 %v7690_v14, %v6336_v31  ;;  %v7712_v4 = vadd.f32 %v7711_v32, %v7710_v37  ;;  %v8569_v37 = vld [vmem:[%s12198_s7] sm:$0xff]   ;;  %7929 = vmatprep.subr.bf16.mxu0 %v8604_v34 }
 0x48e   :  { %v7713_v57 = vpop.f32.mrf.mxu1  ;;  %v7692_v13 = vpop.f32.mrf.mxu0 }
 0x48f   :  { %v6416_v44 = vadd.f32 %v7712_v4, %v6376_v36  ;;  %v7535_v13 = vld [vmem:[%s12200_s8] ss:$0 sm:$0xff] }
 0x490   :  { %v7714_v1 = vpop.f32.mrf.mxu1  ;;  %7930 = vmatpush3.bf16.msra.mxu0 %v8569_v37 }
 0x4a8   :  { %v7732_v48 = vpop.f32.mrf.mxu0 }
 0x4aa   :  { %v7754_v60 = vpop.f32.mrf.mxu1  ;;  %v7733_v22 = vpop.f32.mrf.mxu0 }
 0x4ab   :  { %v7734_v6 = vadd.f32 %v7733_v22, %v7732_v48 }
 0x4ac   :  { %v7755_v40 = vpop.f32.mrf.mxu1  ;;  %v7735_v0 = vpop.f32.mrf.mxu0 }
 0x4ad   :  { %v6456_v46 = vadd.f32 %v7734_v6, %v6416_v44  ;;  %v7756_v41 = vadd.f32 %v7755_v40, %v7754_v60 }
 0x4ae   :  { %v7757_v11 = vpop.f32.mrf.mxu1  ;;  %v7736_v39 = vpop.f32.mrf.mxu0 }
 0x4af   :  { %v6496_v18 = vadd.f32 %v7756_v41, %v6456_v46 }
 0x4b0   :  { %v7758_v21 = vpop.f32.mrf.mxu1 }
 0x4c8   :  { %v7776_v47 = vpop.f32.mrf.mxu0 }
 0x4ca   :  { %v7798_v28 = vpop.f32.mrf.mxu1  ;;  %v7777_v52 = vpop.f32.mrf.mxu0 }
 0x4cb   :  { %v7778_v12 = vadd.f32 %v7777_v52, %v7776_v47 }
 0x4cc   :  { %v7799_v56 = vpop.f32.mrf.mxu1  ;;  %v7779_v8 = vpop.f32.mrf.mxu0 }
 0x4cd   :  { %v6536_v19 = vadd.f32 %v7778_v12, %v6496_v18  ;;  %v7800_v24 = vadd.f32 %v7799_v56, %v7798_v28 }
 0x4ce   :  { %v7801_v15 = vpop.f32.mrf.mxu1  ;;  %v7780_v38 = vpop.f32.mrf.mxu0 }
 0x4cf   :  { %v6576_v42 = vadd.f32 %v7800_v24, %v6536_v19 }
 0x4d0   :  { %v7802_v10 = vpop.f32.mrf.mxu1 }
 0x4e8   :  { %v7820_v25 = vpop.f32.mrf.mxu0 }
 0x4ea   :  { %v7842_v2 = vpop.f32.mrf.mxu1  ;;  %v7821_v30 = vpop.f32.mrf.mxu0 }
 0x4eb   :  { %v7822_v7 = vadd.f32 %v7821_v30, %v7820_v25 }
 0x4ec   :  { %v7843_v33 = vpop.f32.mrf.mxu1  ;;  %v7823_v3 = vpop.f32.mrf.mxu0 }
 0x4ed   :  { %v6616_v50 = vadd.f32 %v7822_v7, %v6576_v42  ;;  %v7844_v5 = vadd.f32 %v7843_v33, %v7842_v2 }
 0x4ee   :  { %v7845_v45 = vpop.f32.mrf.mxu1  ;;  %v7824_v55 = vpop.f32.mrf.mxu0 }
 0x4ef   :  { %v6656_v31 = vadd.f32 %v7844_v5, %v6616_v50 }
 0x4f0   :  { %v7846_v62 = vpop.f32.mrf.mxu1 }
 0x508   :  { %v6695_v9 = vpop.f32.mrf.mxu0 }
 0x509   :  { %v6696_v35 = vadd.f32 %v6695_v9, %v6656_v31 }
 0x50a   :  { %v7893_v20 = vpop.f32.mrf.mxu0 }
 0x50b   :  { %v6701_v54 = vmax.f32 %v6696_v35, 0.0 }
 0x50c   :  { %v6698_v61 = vpop.f32.mrf.mxu0 }
 0x50d   :  { %v6702_v43 = vpack.c.bf16 %v6701_v54, %v6701_v54 }
 0x50e   :  { %v7894_v53 = vpop.f32.mrf.mxu0 }
 0x50f   :  { %7912 = vmatmul.mubr.bf16.vlgmr.msra.gmra.mxu1 %v6702_v43 }
 0x5cf   :  { %v6808_v14 = vpop.f32.mrf.mxu1 }
 0x5d0   :  { %v6809_v32 = vadd.f32 %v7526_v16, %v6808_v14 }
 0x5d1   :  { %v7913_v29 = vpop.f32.mrf.mxu1 }
 0x5d2   :  { %v6814_v36 = vmax.f32 %v6809_v32, 0.0 }
 0x5d3   :  { %v6811_v4 = vpop.f32.mrf.mxu1 }
 0x5d4   :  { %v6815_v63 = vpack.c.bf16 %v6814_v36, %v6814_v36 }
 0x5d5   :  { %v7914_v57 = vpop.f32.mrf.mxu1 }
 0x5d6   :  { %7932 = vmatmul.mubr.bf16.vlgmr.msra.gmra.mxu0 %v6815_v63 }
 0x696   :  { %v6921_v44 = vpop.f32.mrf.mxu0 }
 0x697   :  { %v6922_v17 = vadd.f32 %v7535_v13, %v6921_v44 }
 0x698   :  { %v7933_v34 = vpop.f32.mrf.mxu0 }
 0x699   :  { %6927 = vst [vmem:[%s12201_s9] sm:$0xff] %v6922_v17 }
 0x69a   :  { %v6924_v1 = vpop.f32.mrf.mxu0 }
 0x69c   :  { %v7934_v51 = vpop.f32.mrf.mxu0 }

</bundles_post_ra>
